<compile_context>
chip_gen: v6e
topology: v6e:2x2x1
jax: 0.10.0
libtpu: 0.0.40
codegen_flags: <defaults>
</compile_context>

<pallas_src>
import functools

import jax
import jax.numpy as jnp
import numpy as np
from jax.experimental import pallas as pl
from jax.experimental.pallas import tpu as pltpu


# off-center taps of a 3x3 kernel, fixed order shared by kernel and wrapper
_OFF_TAPS = ((0, 0), (0, 1), (0, 2), (1, 0), (1, 2), (2, 0), (2, 1), (2, 2))


def _aspp_kernel(x_ref, yimg_ref, wc_ref, woff_ref, bias_ref, out_ref,
                 pad_ref, *, H, W, Cin, rd, rates, pad, use_im2col):
    """One grid step = one batch element.

    x_ref    : (1, H, W, Cin)   bf16 input (un-padded)
    yimg_ref : (1, 1, rd)       f32 precomputed image-pooling branch result
    wc_ref   : (Cin, (1+R)*rd)  bf16 fused, BN-scale-folded weights
                                [w1 | center taps of each dilated rate]
    woff_ref : (R, 8*Cin, rd)   bf16 off-center taps (BN-scale folded)
    bias_ref : (1+R, rd)        f32 folded BN bias, rows [1x1, r0, r1, r2]
    out_ref  : (1, H, W, (2+R)*rd) f32, channel order [img, 1x1, r0, r1, r2]
    pad_ref  : VMEM scratch (H+2*pad, W+2*pad, Cin) bf16 zero-halo buffer
    """
    Hp, Wp = H + 2 * pad, W + 2 * pad
    bias = bias_ref[...]                                  # (1+R, rd) f32

    # ---- branch 0: image pooling (computed in the wrapper, broadcast here) --
    out_ref[0, :, :, 0:rd] = jnp.broadcast_to(
        yimg_ref[...], (H, W, rd)).astype(out_ref.dtype)

    # ---- fused matmul: 1x1 branch + the dilated-conv center taps ----
    # LHS straight from the contiguous bf16 input block (no scratch re-slice).
    xc = x_ref[0].reshape(H * W, Cin)                     # bf16
    yc = jnp.dot(xc, wc_ref[...],
                 preferred_element_type=jnp.float32)      # (H*W, (1+R)*rd)

    y0 = jnp.maximum(yc[:, 0:rd] + bias[0:1, :], 0.0)
    out_ref[0, :, :, rd:2 * rd] = y0.reshape(H, W, rd).astype(out_ref.dtype)

    # ---- stage the input into the zero-halo scratch (bf16) ----
    # Zero only the 4 halo bands; the interior is fully overwritten each step.
    zr = jnp.zeros((pad, Wp, Cin), pad_ref.dtype)
    zc = jnp.zeros((H, pad, Cin), pad_ref.dtype)
    pad_ref[0:pad, :, :] = zr
    pad_ref[pad + H:Hp, :, :] = zr
    pad_ref[pad:pad + H, 0:pad, :] = zc
    pad_ref[pad:pad + H, pad + W:Wp, :] = zc
    pad_ref[pad:pad + H, pad:pad + W, :] = x_ref[0]

    # ---- dilated 3x3 branches: remaining 8 off-center taps per rate ----
    for ri, r in enumerate(rates):
        if use_im2col:
            # small Cin: im2col the 8 taps along K -> one K = 8*Cin matmul
            slabs = []
            for (ky, kx) in _OFF_TAPS:
                oy = pad + (ky - 1) * r
                ox = pad + (kx - 1) * r
                slabs.append(pad_ref[oy:oy + H, ox:ox + W, :])
            slab = jnp.concatenate(slabs, axis=-1).reshape(H * W, 8 * Cin)
            acc = yc[:, (1 + ri) * rd:(2 + ri) * rd] + jnp.dot(
                slab, woff_ref[ri], preferred_element_type=jnp.float32)
        else:
            # large Cin: K = Cin already fills the MXU; avoid the slab copy
            acc = yc[:, (1 + ri) * rd:(2 + ri) * rd]
            for t, (ky, kx) in enumerate(_OFF_TAPS):
                oy = pad + (ky - 1) * r
                ox = pad + (kx - 1) * r
                lhs = pad_ref[oy:oy + H, ox:ox + W, :].reshape(H * W, Cin)
                acc = acc + jnp.dot(
                    lhs, woff_ref[ri, t * Cin:(t + 1) * Cin, :],
                    preferred_element_type=jnp.float32)
        yb = jnp.maximum(acc + bias[1 + ri:2 + ri, :], 0.0)
        out_ref[0, :, :, (2 + ri) * rd:(3 + ri) * rd] = (
            yb.reshape(H, W, rd).astype(out_ref.dtype))


def aspp_forward(x_nchw, params, *, rates=(6, 12, 18), im2col_max_cin=256):
    """ASPP forward pass. x_nchw: (N, Cin, H, W) float32 -> NCHW output."""
    N, Cin, H, W = x_nchw.shape
    rd = params["w1"].shape[1]
    R = len(rates)
    pad = max(rates)
    out_ch = (2 + R) * rd
    use_im2col = Cin < im2col_max_cin

    # ---- layout / dtype prep (tiny XLA ops) ----
    x_bf16 = jnp.transpose(x_nchw, (0, 2, 3, 1)).astype(jnp.bfloat16)

    scale = params["scale"]                    # (2+R, rd) rows [img,1x1,r0..]
    bias = params["bias"]

    # Fold BN scale into the conv weights (per output channel) before the bf16
    # cast so the kernel epilogue is only add-bias + ReLU.
    w1 = (params["w1"] * scale[1][None, :]).astype(jnp.bfloat16)
    w3 = (params["w3"] * scale[2:, None, None, None, :]).astype(jnp.bfloat16)
    wimg = (params["wimg"] * scale[0][None, :]).astype(jnp.bfloat16)

    # fused weights: [w1 | center tap of each dilated conv]  -> (Cin, (1+R)*rd)
    w_center = jnp.concatenate(
        [w1] + [w3[ri, 1, 1] for ri in range(R)], axis=-1)
    # off-center taps in im2col order, per rate -> (R, 8*Cin, rd)
    w_off = jnp.stack([
        jnp.concatenate([w3[ri, ky, kx] for (ky, kx) in _OFF_TAPS], axis=0)
        for ri in range(R)], axis=0)

    bias_k = bias[1:]                          # rows [1x1, r0, r1, r2]

    # ---- image-pooling branch, hoisted (a global mean cannot be tiled) ----
    mean = jnp.mean(x_bf16.astype(jnp.float32), axis=(1, 2))        # (N, Cin)
    y_img = jnp.dot(mean, wimg.astype(jnp.float32),
                    precision=jax.lax.Precision.HIGHEST)            # (N, rd)
    y_img = jnp.maximum(y_img + bias[0], 0.0).reshape(N, 1, rd)

    kernel = functools.partial(_aspp_kernel, H=H, W=W, Cin=Cin, rd=rd,
                               rates=tuple(rates), pad=pad,
                               use_im2col=use_im2col)

    # TODO(synk): for production shapes (in_dim=2048, H=W=64) add an H-tile
    # grid axis with a 2*max(rate)-row halo (manual make_async_copy of the
    # halo rows), single-buffer the grid-invariant weight operands
    # (pipeline_mode=pl.Buffered(1) or stream w_off per rate from pl.ANY/HBM),
    # and consider a bf16 kernel output -- required to fit v7x's 64 MiB VMEM.
    out_nhwc = pl.pallas_call(
        kernel,
        out_shape=jax.ShapeDtypeStruct((N, H, W, out_ch), jnp.float32),
        grid=(N,),
        in_specs=[
            pl.BlockSpec((1, H, W, Cin), lambda n: (n, 0, 0, 0)),
            pl.BlockSpec((1, 1, rd), lambda n: (n, 0, 0)),
            pl.BlockSpec((Cin, (1 + R) * rd), lambda n: (0, 0)),
            pl.BlockSpec((R, 8 * Cin, rd), lambda n: (0, 0, 0)),
            pl.BlockSpec((1 + R, rd), lambda n: (0, 0)),
        ],
        out_specs=pl.BlockSpec((1, H, W, out_ch), lambda n: (n, 0, 0, 0)),
        scratch_shapes=[
            pltpu.VMEM((H + 2 * pad, W + 2 * pad, Cin), jnp.bfloat16)],
        compiler_params=pltpu.CompilerParams(
            dimension_semantics=("parallel",),
            vmem_limit_bytes=48 * 1024 * 1024),
    )(x_bf16, y_img, w_center, w_off, bias_k)

    # back to NCHW to match the torch module's output layout
    # (a downstream consumer that accepts NHWC could skip this transpose)
    return jnp.transpose(out_nhwc, (0, 3, 1, 2))


def make_params(key, in_dim, reduction_dim, rates, bn_eps=1e-5):
    """Deterministic synthetic parameters (conv weights + eval-mode BN)."""
    R = len(rates)
    keys = jax.random.split(key, 8)

    w1 = 0.1 * jax.random.normal(keys[0], (in_dim, reduction_dim), jnp.float32)
    w3 = 0.1 * jax.random.normal(keys[1], (R, 3, 3, in_dim, reduction_dim),
                                 jnp.float32)
    wimg = 0.1 * jax.random.normal(keys[2], (in_dim, reduction_dim), jnp.float32)

    # BN params per branch, row order [img, 1x1, d_r0, d_r1, d_r2]
    nb = 2 + R
    gamma = 1.0 + 0.1 * jax.random.normal(keys[3], (nb, reduction_dim), jnp.float32)
    beta = 0.05 * jax.random.normal(keys[4], (nb, reduction_dim), jnp.float32)
    rmean = 0.1 * jax.random.normal(keys[5], (nb, reduction_dim), jnp.float32)
    rvar = 0.5 + jnp.abs(jax.random.normal(keys[6], (nb, reduction_dim),
                                           jnp.float32)) * 0.5

    scale = gamma / jnp.sqrt(rvar + bn_eps)
    bias = beta - scale * rmean
    return {"w1": w1, "w3": w3, "wimg": wimg, "scale": scale, "bias": bias}


def aspp_reference(x_nchw, params, *, rates=(6, 12, 18)):
    """Pure-JAX (XLA conv) reference.

    Matches the kernel's quantization point: BN scale folded into the weights
    before the bf16 quantization, f32 accumulation, then add-bias + ReLU.
    """
    N, Cin, H, W = x_nchw.shape
    rd = params["w1"].shape[1]
    scale = params["scale"]
    bias = params["bias"]
    q = lambda a: a.astype(jnp.bfloat16).astype(jnp.float32)
    xq = q(x_nchw)

    def conv(x, w_oihw, dilation, padding):
        return jax.lax.conv_general_dilated(
            x, w_oihw, window_strides=(1, 1),
            padding=[(padding, padding), (padding, padding)],
            rhs_dilation=(dilation, dilation),
            dimension_numbers=("NCHW", "OIHW", "NCHW"),
            precision=jax.lax.Precision.HIGHEST)

    def bias_relu(y, row):
        return jnp.maximum(y + bias[row].reshape(1, rd, 1, 1), 0.0)

    # image pooling branch
    pooled = jnp.mean(xq, axis=(2, 3), keepdims=True)              # (N,Cin,1,1)
    wimg_oihw = q(params["wimg"] * scale[0]).T.reshape(rd, Cin, 1, 1)
    y_img = bias_relu(conv(pooled, wimg_oihw, 1, 0), 0)
    y_img = jnp.broadcast_to(y_img, (N, rd, H, W))

    outs = [y_img]
    w1_oihw = q(params["w1"] * scale[1]).T.reshape(rd, Cin, 1, 1)
    outs.append(bias_relu(conv(xq, w1_oihw, 1, 0), 1))
    for ri, r in enumerate(rates):
        # (3,3,Cin,rd) -> OIHW (rd,Cin,3,3)
        w_oihw = jnp.transpose(q(params["w3"][ri] * scale[2 + ri]), (3, 2, 0, 1))
        outs.append(bias_relu(conv(xq, w_oihw, r, r), 2 + ri))
    return jnp.concatenate(outs, axis=1)


if __name__ == "__main__":
    # Small, module-consistent shapes: batch=2, in_dim=32, spatial 16x16.
    # reduction_dim kept at 128 (lane-aligned; module default is 256).
    N, in_dim, H, W = 2, 32, 16, 16
    reduction_dim = 128
    rates = (6, 12, 18)  # output_stride == 16

    key = jax.random.PRNGKey(0)
    kx, kp = jax.random.split(key)
    x = jax.random.normal(kx, (N, in_dim, H, W), jnp.float32)
    params = make_params(kp, in_dim, reduction_dim, rates)

    out = aspp_forward(x, params, rates=rates)
    out = jax.block_until_ready(out)

    ref = jax.block_until_ready(aspp_reference(x, params, rates=rates))
    assert out.shape == (N, 5 * reduction_dim, H, W), out.shape
    np.testing.assert_allclose(np.asarray(out), np.asarray(ref),
                               rtol=1e-3, atol=1e-3)
    print("KERNEL_OK")
</pallas_src>

<mosaic_0001>
module attributes {stable_mosaic.version = 11 : i64} {
  func.func @_aspp_kernel(%arg0: i32, %arg1: memref<1x16x16x32xbf16, #tpu.memory_space<vmem>>, %arg2: memref<1x1x128xf32, #tpu.memory_space<vmem>>, %arg3: memref<32x512xbf16, #tpu.memory_space<vmem>>, %arg4: memref<3x256x128xbf16, #tpu.memory_space<vmem>>, %arg5: memref<4x128xf32, #tpu.memory_space<vmem>>, %arg6: memref<1x16x16x640xf32, #tpu.memory_space<vmem>>, %arg7: memref<52x52x32xbf16, #tpu.memory_space<vmem>>) attributes {dimension_semantics = [#tpu.dimension_semantics<parallel>], iteration_bounds = array<i64: 2>, scalar_prefetch = 0 : i64, scratch_operands = 1 : i64, tpu.core_type = #tpu.core_type<tc>, window_params = [{transform_indices = @transform_0, window_bounds = array<i64: 1, 16, 16, 32>}, {transform_indices = @transform_1, window_bounds = array<i64: 1, 1, 128>}, {pipeline_mode = #tpu.pipeline_mode<synchronous>, transform_indices = @transform_2, window_bounds = array<i64: 32, 512>}, {pipeline_mode = #tpu.pipeline_mode<synchronous>, transform_indices = @transform_3, window_bounds = array<i64: 3, 256, 128>}, {pipeline_mode = #tpu.pipeline_mode<synchronous>, transform_indices = @transform_4, window_bounds = array<i64: 4, 128>}, {transform_indices = @transform_5, window_bounds = array<i64: 1, 16, 16, 640>}]} {
    %c0 = arith.constant 0 : index
    %c0_0 = arith.constant 0 : index
    %0 = vector.load %arg5[%c0, %c0_0] : memref<4x128xf32, #tpu.memory_space<vmem>>, vector<4x128xf32>
    %c0_1 = arith.constant 0 : index
    %c0_2 = arith.constant 0 : index
    %c0_3 = arith.constant 0 : index
    %1 = vector.load %arg2[%c0_1, %c0_2, %c0_3] : memref<1x1x128xf32, #tpu.memory_space<vmem>>, vector<1x1x128xf32>
    %2 = vector.shape_cast %1 : vector<1x1x128xf32> to vector<1x1x128xf32>
    %3 = vector.broadcast %2 : vector<1x1x128xf32> to vector<16x16x128xf32>
    %c0_4 = arith.constant 0 : index
    %c0_5 = arith.constant 0 : index
    %c0_6 = arith.constant 0 : index
    %c0_7 = arith.constant 0 : index
    %4 = vector.load %arg6[%c0_4, %c0_5, %c0_6, %c0_7] : memref<1x16x16x640xf32, #tpu.memory_space<vmem>>, vector<1x16x16x128xf32>
    %5 = vector.shape_cast %4 : vector<1x16x16x128xf32> to vector<16x16x128xf32>
    %6 = vector.shape_cast %3 : vector<16x16x128xf32> to vector<1x16x16x128xf32>
    tpu.vector_store %arg6[%c0_4, %c0_5, %c0_6, %c0_7], %6 {strides = array<i32>} : memref<1x16x16x640xf32, #tpu.memory_space<vmem>>, vector<1x16x16x128xf32>,
    %c0_8 = arith.constant 0 : index
    %c0_9 = arith.constant 0 : index
    %c0_10 = arith.constant 0 : index
    %c0_11 = arith.constant 0 : index
    %7 = vector.load %arg1[%c0_8, %c0_9, %c0_10, %c0_11] : memref<1x16x16x32xbf16, #tpu.memory_space<vmem>>, vector<1x16x16x32xbf16>
    %8 = vector.shape_cast %7 : vector<1x16x16x32xbf16> to vector<16x16x32xbf16>
    %9 = vector.shape_cast %8 : vector<16x16x32xbf16> to vector<256x32xbf16>
    %c0_12 = arith.constant 0 : index
    %c0_13 = arith.constant 0 : index
    %10 = vector.load %arg3[%c0_12, %c0_13] : memref<32x512xbf16, #tpu.memory_space<vmem>>, vector<32x512xbf16>
    %cst = arith.constant dense<0.000000e+00> : vector<256x512xf32>
    %11 = tpu.matmul %9, %10, %cst {dimension_numbers = #tpu.dot_dimension_numbers<[1], [0], [0], [1], [0, 0, 1, 1], [], []>} : vector<256x32xbf16>, vector<32x512xbf16>, vector<256x512xf32> -> vector<256x512xf32>
    %12 = vector.extract_strided_slice %11 {offsets = [0, 0], sizes = [256, 128], strides = [1, 1]} : vector<256x512xf32> to vector<256x128xf32>
    %13 = vector.extract_strided_slice %0 {offsets = [0, 0], sizes = [1, 128], strides = [1, 1]} : vector<4x128xf32> to vector<1x128xf32>
    %14 = vector.broadcast %13 : vector<1x128xf32> to vector<256x128xf32>
    %15 = arith.addf %12, %14 : vector<256x128xf32>
    %cst_14 = arith.constant 0.000000e+00 : f32
    %16 = vector.broadcast %cst_14 : f32 to vector<256x128xf32>
    %17 = arith.maximumf %15, %16 : vector<256x128xf32>
    %18 = vector.shape_cast %17 : vector<256x128xf32> to vector<16x16x128xf32>
    %c0_15 = arith.constant 0 : index
    %c0_16 = arith.constant 0 : index
    %c0_17 = arith.constant 0 : index
    %c128 = arith.constant 128 : index
    %19 = vector.load %arg6[%c0_15, %c0_16, %c0_17, %c128] : memref<1x16x16x640xf32, #tpu.memory_space<vmem>>, vector<1x16x16x128xf32>
    %20 = vector.shape_cast %19 : vector<1x16x16x128xf32> to vector<16x16x128xf32>
    %21 = vector.shape_cast %18 : vector<16x16x128xf32> to vector<1x16x16x128xf32>
    tpu.vector_store %arg6[%c0_15, %c0_16, %c0_17, %c128], %21 {strides = array<i32>} : memref<1x16x16x640xf32, #tpu.memory_space<vmem>>, vector<1x16x16x128xf32>,
    %cst_18 = arith.constant 0.000000e+00 : bf16
    %22 = vector.broadcast %cst_18 : bf16 to vector<18x52x32xbf16>
    %cst_19 = arith.constant 0.000000e+00 : bf16
    %23 = vector.broadcast %cst_19 : bf16 to vector<16x18x32xbf16>
    %c0_20 = arith.constant 0 : index
    %c0_21 = arith.constant 0 : index
    %c0_22 = arith.constant 0 : index
    %24 = vector.load %arg7[%c0_20, %c0_21, %c0_22] : memref<52x52x32xbf16, #tpu.memory_space<vmem>>, vector<18x52x32xbf16>
    tpu.vector_store %arg7[%c0_20, %c0_21, %c0_22], %22 {strides = array<i32>} : memref<52x52x32xbf16, #tpu.memory_space<vmem>>, vector<18x52x32xbf16>,
    %c34 = arith.constant 34 : index
    %c0_23 = arith.constant 0 : index
    %c0_24 = arith.constant 0 : index
    %25 = vector.load %arg7[%c34, %c0_23, %c0_24] : memref<52x52x32xbf16, #tpu.memory_space<vmem>>, vector<18x52x32xbf16>
    tpu.vector_store %arg7[%c34, %c0_23, %c0_24], %22 {strides = array<i32>} : memref<52x52x32xbf16, #tpu.memory_space<vmem>>, vector<18x52x32xbf16>,
    %c18 = arith.constant 18 : index
    %c0_25 = arith.constant 0 : index
    %c0_26 = arith.constant 0 : index
    %26 = vector.load %arg7[%c18, %c0_25, %c0_26] : memref<52x52x32xbf16, #tpu.memory_space<vmem>>, vector<16x18x32xbf16>
    tpu.vector_store %arg7[%c18, %c0_25, %c0_26], %23 {strides = array<i32>} : memref<52x52x32xbf16, #tpu.memory_space<vmem>>, vector<16x18x32xbf16>,
    %c18_27 = arith.constant 18 : index
    %c34_28 = arith.constant 34 : index
    %c0_29 = arith.constant 0 : index
    %27 = vector.load %arg7[%c18_27, %c34_28, %c0_29] : memref<52x52x32xbf16, #tpu.memory_space<vmem>>, vector<16x18x32xbf16>
    tpu.vector_store %arg7[%c18_27, %c34_28, %c0_29], %23 {strides = array<i32>} : memref<52x52x32xbf16, #tpu.memory_space<vmem>>, vector<16x18x32xbf16>,
    %c0_30 = arith.constant 0 : index
    %c0_31 = arith.constant 0 : index
    %c0_32 = arith.constant 0 : index
    %c0_33 = arith.constant 0 : index
    %28 = vector.load %arg1[%c0_30, %c0_31, %c0_32, %c0_33] : memref<1x16x16x32xbf16, #tpu.memory_space<vmem>>, vector<1x16x16x32xbf16>
    %29 = vector.shape_cast %28 : vector<1x16x16x32xbf16> to vector<16x16x32xbf16>
    %c18_34 = arith.constant 18 : index
    %c18_35 = arith.constant 18 : index
    %c0_36 = arith.constant 0 : index
    %30 = vector.load %arg7[%c18_34, %c18_35, %c0_36] : memref<52x52x32xbf16, #tpu.memory_space<vmem>>, vector<16x16x32xbf16>
    tpu.vector_store %arg7[%c18_34, %c18_35, %c0_36], %29 {strides = array<i32>} : memref<52x52x32xbf16, #tpu.memory_space<vmem>>, vector<16x16x32xbf16>,
    %c12 = arith.constant 12 : index
    %c12_37 = arith.constant 12 : index
    %c0_38 = arith.constant 0 : index
    %31 = vector.load %arg7[%c12, %c12_37, %c0_38] : memref<52x52x32xbf16, #tpu.memory_space<vmem>>, vector<16x16x32xbf16>
    %c12_39 = arith.constant 12 : index
    %c18_40 = arith.constant 18 : index
    %c0_41 = arith.constant 0 : index
    %32 = vector.load %arg7[%c12_39, %c18_40, %c0_41] : memref<52x52x32xbf16, #tpu.memory_space<vmem>>, vector<16x16x32xbf16>
    %c12_42 = arith.constant 12 : index
    %c24 = arith.constant 24 : index
    %c0_43 = arith.constant 0 : index
    %33 = vector.load %arg7[%c12_42, %c24, %c0_43] : memref<52x52x32xbf16, #tpu.memory_space<vmem>>, vector<16x16x32xbf16>
    %c18_44 = arith.constant 18 : index
    %c12_45 = arith.constant 12 : index
    %c0_46 = arith.constant 0 : index
    %34 = vector.load %arg7[%c18_44, %c12_45, %c0_46] : memref<52x52x32xbf16, #tpu.memory_space<vmem>>, vector<16x16x32xbf16>
    %c18_47 = arith.constant 18 : index
    %c24_48 = arith.constant 24 : index
    %c0_49 = arith.constant 0 : index
    %35 = vector.load %arg7[%c18_47, %c24_48, %c0_49] : memref<52x52x32xbf16, #tpu.memory_space<vmem>>, vector<16x16x32xbf16>
    %c24_50 = arith.constant 24 : index
    %c12_51 = arith.constant 12 : index
    %c0_52 = arith.constant 0 : index
    %36 = vector.load %arg7[%c24_50, %c12_51, %c0_52] : memref<52x52x32xbf16, #tpu.memory_space<vmem>>, vector<16x16x32xbf16>
    %c24_53 = arith.constant 24 : index
    %c18_54 = arith.constant 18 : index
    %c0_55 = arith.constant 0 : index
    %37 = vector.load %arg7[%c24_53, %c18_54, %c0_55] : memref<52x52x32xbf16, #tpu.memory_space<vmem>>, vector<16x16x32xbf16>
    %c24_56 = arith.constant 24 : index
    %c24_57 = arith.constant 24 : index
    %c0_58 = arith.constant 0 : index
    %38 = vector.load %arg7[%c24_56, %c24_57, %c0_58] : memref<52x52x32xbf16, #tpu.memory_space<vmem>>, vector<16x16x32xbf16>
    %39 = tpu.concatenate %31, %32, %33, %34, %35, %36, %37, %38 in 2 : vector<16x16x32xbf16>, vector<16x16x32xbf16>, vector<16x16x32xbf16>, vector<16x16x32xbf16>, vector<16x16x32xbf16>, vector<16x16x32xbf16>, vector<16x16x32xbf16>, vector<16x16x32xbf16> -> vector<16x16x256xbf16>
    %40 = vector.shape_cast %39 : vector<16x16x256xbf16> to vector<256x256xbf16>
    %41 = vector.extract_strided_slice %11 {offsets = [0, 128], sizes = [256, 128], strides = [1, 1]} : vector<256x512xf32> to vector<256x128xf32>
    %c0_59 = arith.constant 0 : index
    %c0_60 = arith.constant 0 : index
    %c0_61 = arith.constant 0 : index
    %42 = vector.load %arg4[%c0_59, %c0_60, %c0_61] : memref<3x256x128xbf16, #tpu.memory_space<vmem>>, vector<1x256x128xbf16>
    %43 = vector.shape_cast %42 : vector<1x256x128xbf16> to vector<256x128xbf16>
    %cst_62 = arith.constant dense<0.000000e+00> : vector<256x128xf32>
    %44 = tpu.matmul %40, %43, %cst_62 {dimension_numbers = #tpu.dot_dimension_numbers<[1], [0], [0], [1], [0, 0, 1, 1], [], []>} : vector<256x256xbf16>, vector<256x128xbf16>, vector<256x128xf32> -> vector<256x128xf32>
    %45 = arith.addf %41, %44 : vector<256x128xf32>
    %46 = vector.extract_strided_slice %0 {offsets = [1, 0], sizes = [1, 128], strides = [1, 1]} : vector<4x128xf32> to vector<1x128xf32>
    %47 = vector.broadcast %46 : vector<1x128xf32> to vector<256x128xf32>
    %48 = arith.addf %45, %47 : vector<256x128xf32>
    %cst_63 = arith.constant 0.000000e+00 : f32
    %49 = vector.broadcast %cst_63 : f32 to vector<256x128xf32>
    %50 = arith.maximumf %48, %49 : vector<256x128xf32>
    %51 = vector.shape_cast %50 : vector<256x128xf32> to vector<16x16x128xf32>
    %c0_64 = arith.constant 0 : index
    %c0_65 = arith.constant 0 : index
    %c0_66 = arith.constant 0 : index
    %c256 = arith.constant 256 : index
    %52 = vector.load %arg6[%c0_64, %c0_65, %c0_66, %c256] : memref<1x16x16x640xf32, #tpu.memory_space<vmem>>, vector<1x16x16x128xf32>
    %53 = vector.shape_cast %52 : vector<1x16x16x128xf32> to vector<16x16x128xf32>
    %54 = vector.shape_cast %51 : vector<16x16x128xf32> to vector<1x16x16x128xf32>
    tpu.vector_store %arg6[%c0_64, %c0_65, %c0_66, %c256], %54 {strides = array<i32>} : memref<1x16x16x640xf32, #tpu.memory_space<vmem>>, vector<1x16x16x128xf32>,
    %c6 = arith.constant 6 : index
    %c6_67 = arith.constant 6 : index
    %c0_68 = arith.constant 0 : index
    %55 = vector.load %arg7[%c6, %c6_67, %c0_68] : memref<52x52x32xbf16, #tpu.memory_space<vmem>>, vector<16x16x32xbf16>
    %c6_69 = arith.constant 6 : index
    %c18_70 = arith.constant 18 : index
    %c0_71 = arith.constant 0 : index
    %56 = vector.load %arg7[%c6_69, %c18_70, %c0_71] : memref<52x52x32xbf16, #tpu.memory_space<vmem>>, vector<16x16x32xbf16>
    %c6_72 = arith.constant 6 : index
    %c30 = arith.constant 30 : index
    %c0_73 = arith.constant 0 : index
    %57 = vector.load %arg7[%c6_72, %c30, %c0_73] : memref<52x52x32xbf16, #tpu.memory_space<vmem>>, vector<16x16x32xbf16>
    %c18_74 = arith.constant 18 : index
    %c6_75 = arith.constant 6 : index
    %c0_76 = arith.constant 0 : index
    %58 = vector.load %arg7[%c18_74, %c6_75, %c0_76] : memref<52x52x32xbf16, #tpu.memory_space<vmem>>, vector<16x16x32xbf16>
    %c18_77 = arith.constant 18 : index
    %c30_78 = arith.constant 30 : index
    %c0_79 = arith.constant 0 : index
    %59 = vector.load %arg7[%c18_77, %c30_78, %c0_79] : memref<52x52x32xbf16, #tpu.memory_space<vmem>>, vector<16x16x32xbf16>
    %c30_80 = arith.constant 30 : index
    %c6_81 = arith.constant 6 : index
    %c0_82 = arith.constant 0 : index
    %60 = vector.load %arg7[%c30_80, %c6_81, %c0_82] : memref<52x52x32xbf16, #tpu.memory_space<vmem>>, vector<16x16x32xbf16>
    %c30_83 = arith.constant 30 : index
    %c18_84 = arith.constant 18 : index
    %c0_85 = arith.constant 0 : index
    %61 = vector.load %arg7[%c30_83, %c18_84, %c0_85] : memref<52x52x32xbf16, #tpu.memory_space<vmem>>, vector<16x16x32xbf16>
    %c30_86 = arith.constant 30 : index
    %c30_87 = arith.constant 30 : index
    %c0_88 = arith.constant 0 : index
    %62 = vector.load %arg7[%c30_86, %c30_87, %c0_88] : memref<52x52x32xbf16, #tpu.memory_space<vmem>>, vector<16x16x32xbf16>
    %63 = tpu.concatenate %55, %56, %57, %58, %59, %60, %61, %62 in 2 : vector<16x16x32xbf16>, vector<16x16x32xbf16>, vector<16x16x32xbf16>, vector<16x16x32xbf16>, vector<16x16x32xbf16>, vector<16x16x32xbf16>, vector<16x16x32xbf16>, vector<16x16x32xbf16> -> vector<16x16x256xbf16>
    %64 = vector.shape_cast %63 : vector<16x16x256xbf16> to vector<256x256xbf16>
    %65 = vector.extract_strided_slice %11 {offsets = [0, 256], sizes = [256, 128], strides = [1, 1]} : vector<256x512xf32> to vector<256x128xf32>
    %c1 = arith.constant 1 : index
    %c0_89 = arith.constant 0 : index
    %c0_90 = arith.constant 0 : index
    %66 = vector.load %arg4[%c1, %c0_89, %c0_90] : memref<3x256x128xbf16, #tpu.memory_space<vmem>>, vector<1x256x128xbf16>
    %67 = vector.shape_cast %66 : vector<1x256x128xbf16> to vector<256x128xbf16>
    %cst_91 = arith.constant dense<0.000000e+00> : vector<256x128xf32>
    %68 = tpu.matmul %64, %67, %cst_91 {dimension_numbers = #tpu.dot_dimension_numbers<[1], [0], [0], [1], [0, 0, 1, 1], [], []>} : vector<256x256xbf16>, vector<256x128xbf16>, vector<256x128xf32> -> vector<256x128xf32>
    %69 = arith.addf %65, %68 : vector<256x128xf32>
    %70 = vector.extract_strided_slice %0 {offsets = [2, 0], sizes = [1, 128], strides = [1, 1]} : vector<4x128xf32> to vector<1x128xf32>
    %71 = vector.broadcast %70 : vector<1x128xf32> to vector<256x128xf32>
    %72 = arith.addf %69, %71 : vector<256x128xf32>
    %cst_92 = arith.constant 0.000000e+00 : f32
    %73 = vector.broadcast %cst_92 : f32 to vector<256x128xf32>
    %74 = arith.maximumf %72, %73 : vector<256x128xf32>
    %75 = vector.shape_cast %74 : vector<256x128xf32> to vector<16x16x128xf32>
    %c0_93 = arith.constant 0 : index
    %c0_94 = arith.constant 0 : index
    %c0_95 = arith.constant 0 : index
    %c384 = arith.constant 384 : index
    %76 = vector.load %arg6[%c0_93, %c0_94, %c0_95, %c384] : memref<1x16x16x640xf32, #tpu.memory_space<vmem>>, vector<1x16x16x128xf32>
    %77 = vector.shape_cast %76 : vector<1x16x16x128xf32> to vector<16x16x128xf32>
    %78 = vector.shape_cast %75 : vector<16x16x128xf32> to vector<1x16x16x128xf32>
    tpu.vector_store %arg6[%c0_93, %c0_94, %c0_95, %c384], %78 {strides = array<i32>} : memref<1x16x16x640xf32, #tpu.memory_space<vmem>>, vector<1x16x16x128xf32>,
    %c0_96 = arith.constant 0 : index
    %c0_97 = arith.constant 0 : index
    %c0_98 = arith.constant 0 : index
    %79 = vector.load %arg7[%c0_96, %c0_97, %c0_98] : memref<52x52x32xbf16, #tpu.memory_space<vmem>>, vector<16x16x32xbf16>
    %c0_99 = arith.constant 0 : index
    %c18_100 = arith.constant 18 : index
    %c0_101 = arith.constant 0 : index
    %80 = vector.load %arg7[%c0_99, %c18_100, %c0_101] : memref<52x52x32xbf16, #tpu.memory_space<vmem>>, vector<16x16x32xbf16>
    %c0_102 = arith.constant 0 : index
    %c36 = arith.constant 36 : index
    %c0_103 = arith.constant 0 : index
    %81 = vector.load %arg7[%c0_102, %c36, %c0_103] : memref<52x52x32xbf16, #tpu.memory_space<vmem>>, vector<16x16x32xbf16>
    %c18_104 = arith.constant 18 : index
    %c0_105 = arith.constant 0 : index
    %c0_106 = arith.constant 0 : index
    %82 = vector.load %arg7[%c18_104, %c0_105, %c0_106] : memref<52x52x32xbf16, #tpu.memory_space<vmem>>, vector<16x16x32xbf16>
    %c18_107 = arith.constant 18 : index
    %c36_108 = arith.constant 36 : index
    %c0_109 = arith.constant 0 : index
    %83 = vector.load %arg7[%c18_107, %c36_108, %c0_109] : memref<52x52x32xbf16, #tpu.memory_space<vmem>>, vector<16x16x32xbf16>
    %c36_110 = arith.constant 36 : index
    %c0_111 = arith.constant 0 : index
    %c0_112 = arith.constant 0 : index
    %84 = vector.load %arg7[%c36_110, %c0_111, %c0_112] : memref<52x52x32xbf16, #tpu.memory_space<vmem>>, vector<16x16x32xbf16>
    %c36_113 = arith.constant 36 : index
    %c18_114 = arith.constant 18 : index
    %c0_115 = arith.constant 0 : index
    %85 = vector.load %arg7[%c36_113, %c18_114, %c0_115] : memref<52x52x32xbf16, #tpu.memory_space<vmem>>, vector<16x16x32xbf16>
    %c36_116 = arith.constant 36 : index
    %c36_117 = arith.constant 36 : index
    %c0_118 = arith.constant 0 : index
    %86 = vector.load %arg7[%c36_116, %c36_117, %c0_118] : memref<52x52x32xbf16, #tpu.memory_space<vmem>>, vector<16x16x32xbf16>
    %87 = tpu.concatenate %79, %80, %81, %82, %83, %84, %85, %86 in 2 : vector<16x16x32xbf16>, vector<16x16x32xbf16>, vector<16x16x32xbf16>, vector<16x16x32xbf16>, vector<16x16x32xbf16>, vector<16x16x32xbf16>, vector<16x16x32xbf16>, vector<16x16x32xbf16> -> vector<16x16x256xbf16>
    %88 = vector.shape_cast %87 : vector<16x16x256xbf16> to vector<256x256xbf16>
    %89 = vector.extract_strided_slice %11 {offsets = [0, 384], sizes = [256, 128], strides = [1, 1]} : vector<256x512xf32> to vector<256x128xf32>
    %c2 = arith.constant 2 : index
    %c0_119 = arith.constant 0 : index
    %c0_120 = arith.constant 0 : index
    %90 = vector.load %arg4[%c2, %c0_119, %c0_120] : memref<3x256x128xbf16, #tpu.memory_space<vmem>>, vector<1x256x128xbf16>
    %91 = vector.shape_cast %90 : vector<1x256x128xbf16> to vector<256x128xbf16>
    %cst_121 = arith.constant dense<0.000000e+00> : vector<256x128xf32>
    %92 = tpu.matmul %88, %91, %cst_121 {dimension_numbers = #tpu.dot_dimension_numbers<[1], [0], [0], [1], [0, 0, 1, 1], [], []>} : vector<256x256xbf16>, vector<256x128xbf16>, vector<256x128xf32> -> vector<256x128xf32>
    %93 = arith.addf %89, %92 : vector<256x128xf32>
    %94 = vector.extract_strided_slice %0 {offsets = [3, 0], sizes = [1, 128], strides = [1, 1]} : vector<4x128xf32> to vector<1x128xf32>
    %95 = vector.broadcast %94 : vector<1x128xf32> to vector<256x128xf32>
    %96 = arith.addf %93, %95 : vector<256x128xf32>
    %cst_122 = arith.constant 0.000000e+00 : f32
    %97 = vector.broadcast %cst_122 : f32 to vector<256x128xf32>
    %98 = arith.maximumf %96, %97 : vector<256x128xf32>
    %99 = vector.shape_cast %98 : vector<256x128xf32> to vector<16x16x128xf32>
    %c0_123 = arith.constant 0 : index
    %c0_124 = arith.constant 0 : index
    %c0_125 = arith.constant 0 : index
    %c512 = arith.constant 512 : index
    %100 = vector.load %arg6[%c0_123, %c0_124, %c0_125, %c512] : memref<1x16x16x640xf32, #tpu.memory_space<vmem>>, vector<1x16x16x128xf32>
    %101 = vector.shape_cast %100 : vector<1x16x16x128xf32> to vector<16x16x128xf32>
    %102 = vector.shape_cast %99 : vector<16x16x128xf32> to vector<1x16x16x128xf32>
    tpu.vector_store %arg6[%c0_123, %c0_124, %c0_125, %c512], %102 {strides = array<i32>} : memref<1x16x16x640xf32, #tpu.memory_space<vmem>>, vector<1x16x16x128xf32>,
    return
  }
  func.func @transform_0(%arg0: i32) -> (i32, i32, i32, i32) {
    %c0_i32 = arith.constant 0 : i32
    %c0_i32_0 = arith.constant 0 : i32
    %c0_i32_1 = arith.constant 0 : i32
    %c0_i32_2 = arith.constant 0 : i32
    return %arg0, %c0_i32, %c0_i32_0, %c0_i32_1 : i32, i32, i32, i32
  }
  func.func @transform_1(%arg0: i32) -> (i32, i32, i32) {
    %c0_i32 = arith.constant 0 : i32
    %c0_i32_0 = arith.constant 0 : i32
    %c0_i32_1 = arith.constant 0 : i32
    return %arg0, %c0_i32, %c0_i32_0 : i32, i32, i32
  }
  func.func @transform_2(%arg0: i32) -> (i32, i32) {
    %c0_i32 = arith.constant 0 : i32
    %c0_i32_0 = arith.constant 0 : i32
    %c0_i32_1 = arith.constant 0 : i32
    return %c0_i32, %c0_i32_0 : i32, i32
  }
  func.func @transform_3(%arg0: i32) -> (i32, i32, i32) {
    %c0_i32 = arith.constant 0 : i32
    %c0_i32_0 = arith.constant 0 : i32
    %c0_i32_1 = arith.constant 0 : i32
    %c0_i32_2 = arith.constant 0 : i32
    return %c0_i32, %c0_i32_0, %c0_i32_1 : i32, i32, i32
  }
  func.func @transform_4(%arg0: i32) -> (i32, i32) {
    %c0_i32 = arith.constant 0 : i32
    %c0_i32_0 = arith.constant 0 : i32
    %c0_i32_1 = arith.constant 0 : i32
    return %c0_i32, %c0_i32_0 : i32, i32
  }
  func.func @transform_5(%arg0: i32) -> (i32, i32, i32, i32) {
    %c0_i32 = arith.constant 0 : i32
    %c0_i32_0 = arith.constant 0 : i32
    %c0_i32_1 = arith.constant 0 : i32
    %c0_i32_2 = arith.constant 0 : i32
    return %arg0, %c0_i32, %c0_i32_0, %c0_i32_1 : i32, i32, i32, i32
  }
}

</mosaic_0001>

<bundles_post_ra>
// kernel: tpu_custom_call.1
= control target key start
LH: loop header
LB: loop body
LE: loop exit
PB: predicated region body
PF: predicated region fallthrough
CT: control target
= control target key end

     0   :  { %s15980_s0 = inlined_call_operand.hbm [shape: bf16[2,16,16,32], index: 0, kind: input, shape index: {}]   ;;  %s15981_s1 = inlined_call_operand.hbm [shape: f32[2,1,128], index: 1, kind: input, shape index: {}]   ;;  %s15982_s2 = inlined_call_operand.hbm [shape: bf16[32,512], index: 2, kind: input, shape index: {}]   ;;  %s15983_s3 = inlined_call_operand.hbm [shape: bf16[3,256,128], index: 3, kind: input, shape index: {}]   ;;  %s15984_s4 = inlined_call_operand.hbm [shape: f32[4,128], index: 4, kind: input, shape index: {}]   ;;  %s15985_s5 = inlined_call_operand.hbm [shape: f32[2,16,16,640], index: 5, kind: output, shape index: {}]  }
   0x1   :  { %16005 = sst [smem:[#allocation116_spill]] %s15980_s0 }
   0x2   :  { %16006 = sst [smem:[#allocation117_spill]] %s15982_s2 }
   0x3   :  { %10 = vsyncpa [#allocation4], 0 }
   0x4   :  { %12 = vsyncpa [#allocation4 + $0x1], 0 }
   0x5   :  { %13 = vsyncpa [#allocation7], 0 }
   0x6   :  { %15 = vsyncpa [#allocation7 + $0x1], 0 }
   0x7   :  { %16 = vsyncpa [#allocation10], 0 }
   0x8   :  { %17 = vsyncpa [#allocation5], 0 }
   0x9   :  { %19 = vsyncpa [#allocation5 + $0x1], 0  ;;  %s11911_s18 = smov 0   ;;  %s11913_s19 = smov 0  }
   0xa   :  { %s11915_s20 = smov 0   ;;  %s11917_s21 = smov 0  }
   0xb LB: > { %s11932_s22 = sadd.s32 4294967295, %s11863_s21   ;;  %s9670_s23 = sadd.s32 4294967294, %s11863_s21   ;;  %s11863_s21 = sphi %s11917_s21, %s16458_s21   ;;  %s11859_s20 = sphi %s11915_s20, %s16457_s20   ;;  %s11855_s19 = sphi %s11913_s19, %s16456_s19   ;;  %s11851_s18 = sphi %s11911_s18, %s16455_s18  }
   0xc   : > { %p45_p0 = scmp.ne.s32.totalorder %s11855_s19, %s11851_s18  ;;  %p15986_p1 = scmp.eq.s32.totalorder %s11932_s22, 0 }
   0xd   : > { %p164_p3 = scmp.eq.s32.totalorder %s9670_s23, 1  ;;  %p9671_p5 = scmp.ge.s32.totalorder %s11863_s21, 1 }
   0xe   : > { %p11941_p4 = por %p15986_p1, %p45_p0  ;;  %p171_p7 = scmp.lt.s32.totalorder %s11863_s21, 3 }
   0xf   : > { %p11946_p6 = por %p164_p3, %p45_p0  ;;  %s11865_s27 = smov [#allocation8]  }
  0x10   : > { %s16007_s24 = scalar_select %p11941_p4, 1, 0 }
  0x11   : > { %s16008_s25 = scalar_select %p11946_p6, 1, 0 }
  0x12   : > { %p11951_p8 = pnand %p9671_p5, %p171_p7  ;;  %s183_s28 = sshll.u32 %s11865_s27, 4  ;;  %s184_s28 = int_to_ptr.vmem [resolvable:$true] %s183_s28 }
  0x13   : > { %s11866_s30 = smov [#allocation9]   ;;  %s11664_s7 = scalar_lea.vmem %s184_s28, 1024 }
  0x14   : > { %s16009_s26 = scalar_select %p11951_p8, 1, 0 }
  0x15   : > { %p10826_p9 = pneg %p11951_p8  ;;  %s196_s6 = sshll.u32 %s11866_s30, 4  ;;  %s197_s6 = int_to_ptr.vmem [resolvable:$true] %s196_s6 }
  0x16   : > { %p11665_p13 = scmp.ne.s32.totalorder %s184_s28, %s11664_s7  ;;  %p11672_p5 = scmp.lt.s32.totalorder %s184_s28, %s184_s28 }
  0x17   : > { %p11960_p11 = pnand %p10826_p9, %p15986_p1  ;;  %p11673_p7 = scmp.lt.s32.totalorder %s11664_s7, %s11664_s7 }
  0x19   : > { %p11655_p12 = pneg %p11960_p11  ;;  %p11674_p10 = por %p11673_p7, %p11672_p5 }
  0x1b   : > { %p11667_p0 = pnand %p11665_p13, %p11655_p12 }
  0x1d   : > { %p11668_p3 = pneg %p11667_p0 }
  0x1f   : > { %p11675_p9 = pnand %p11674_p10, %p11668_p3 }
  0x21   : > { %11678 = shalt.err (!%p11675_p9)
}
  0x22   : > { %s11867_s8 = smov 256   ;;  %s11868_s9 = smov 16  }
  0x23   : > { %s16011_s2 = sld [smem:[#allocation117_spill]]  ;;  %s11690_s12 = scalar_lea.vmem %s197_s6, 6144 }
  0x24   : > { %p11691_p1 = scmp.ne.s32.totalorder %s197_s6, %s11690_s12  ;;  %p11698_p2 = scmp.lt.s32.totalorder %s197_s6, %s197_s6 }
  0x25   : > { %p11699_p6 = scmp.lt.s32.totalorder %s11690_s12, %s11690_s12 }
  0x26   : > { %p11693_p13 = pnand %p11691_p1, %p11655_p12 }
  0x27   : > { %p11700_p5 = por %p11699_p6, %p11698_p2 }
  0x28   : > { %p11694_p0 = pneg %p11693_p13 }
  0x29   : > { %10829 = dma.hbm_to_vmem [thread:$0]  (!%p11960_p11), %s16011_s2, 1024, %s184_s28, [#allocation7], %s11867_s8, %s11867_s8, %s11868_s9  }
  0x2a   : > { %p11701_p10 = pnand %p11700_p5, %p11694_p0 }
  0x2c   : > { %11704 = shalt.err (!%p11701_p10)
}
  0x2d   : > { %s11869_s13 = smov 64   ;;  %s11870_s14 = smov 4  }
  0x2e   : > { %10832 = dma.hbm_to_vmem [thread:$0]  (!%p11960_p11), %s15983_s3, 6144, %s197_s6, [#allocation10], %s11869_s13, %s11869_s13, %s11870_s14  }
  0x2f   : > { %s11871_s17 = smov [#allocation11]   ;;  %s11986_s27 = sadd.s32 1, %s11863_s21  }
  0x30   : > { %s210_s23 = sshll.u32 %s11871_s17, 4  ;;  %s211_s23 = int_to_ptr.vmem [resolvable:$true] %s210_s23 }
  0x31   : > { %s11716_s28 = scalar_lea.vmem %s211_s23, 64  ;;  %p11724_p3 = scmp.lt.s32.totalorder %s211_s23, %s211_s23 }
  0x32   : > { %p11717_p1 = scmp.ne.s32.totalorder %s211_s23, %s11716_s28  ;;  %p11725_p7 = scmp.lt.s32.totalorder %s11716_s28, %s11716_s28 }
  0x34   : > { %p11719_p2 = pnand %p11717_p1, %p11655_p12  ;;  %p11726_p9 = por %p11725_p7, %p11724_p3 }
  0x36   : > { %p11720_p6 = pneg %p11719_p2 }
  0x38   : > { %p11727_p13 = pnand %p11726_p9, %p11720_p6 }
  0x3a   : > { %11730 = shalt.err (!%p11727_p13)
}
  0x3b   : > { %10835 = dma.hbm_to_vmem [thread:$0]  (!%p11960_p11), %s15984_s4, 64, %s211_s23, [#allocation10]  }
  0x3c   : > { %s29_s7 = ssub.s32 %s11863_s21, %s11986_s27  ;;  %s32_s8 = sadd.s32 1, %s11859_s20 }
  0x3d   : > { %p30_p12 = scmp.eq.s32.totalorder %s29_s7, 0  ;;  %p39_p0 = scmp.ne.s32.totalorder %s11859_s20, %s11855_s19 }
  0x3e   : > { %p40_p5 = scmp.eq.s32.totalorder %s11863_s21, 0  ;;  %p10850_p10 = scmp.lt.s32.totalorder %s11863_s21, 2 }
  0x3f   : > { %s12004_s29 = scalar_select %p30_p12, %s11859_s20, %s32_s8  }
  0x40   : > { %p41_p1 = por %p40_p5, %p39_p0  ;;  %p16012_p2 = scmp.eq.s32.totalorder %s11932_s22, 1 }
  0x41   : > { %s12013_s10 = sand.u32 1, %s11859_s20   ;;  %s10465_s11 = sshll.u32 %s11863_s21, 11 }
  0x42   : > { %p12008_p6 = por %p16012_p2, %p39_p0  ;;  %s9676_s12 = sshll.u32 %s12013_s10, 7 }
  0x43   : > { %s16014_s0 = sld [smem:[#allocation116_spill]]  ;;  %s225_s23 = scalar_lea.vmem [#allocation3], %s9676_s12 }
  0x44   : > { %s16013_s9 = scalar_select %p12008_p6, 1, 0 }
  0x45   : > { %s232_s28 = sshll.u32 %s225_s23, 4  ;;  %p12022_p11 = pnand %p10850_p10, %p41_p1  ;;  %s12026_s28 = int_to_ptr.vmem [resolvable:$true] %s232_s28 }
  0x47   : > { %p11733_p7 = pneg %p12022_p11 }
  0x49   : > { %s12020_s17 = scalar_lea.hbm %s16014_s0, %s10465_s11  ;;  %s11736_s15 = scalar_lea.hbm %s16014_s0, 4096 }
  0x4a   : > { %s11731_s8 = scalar_lea.hbm %s12020_s17, 2048  ;;  %p11737_p12 = scmp.lt.s32.totalorder %s12020_s17, %s16014_s0 }
  0x4b   : > { %p11732_p3 = scmp.ne.s32.totalorder %s12020_s17, %s11731_s8  ;;  %p11738_p0 = scmp.lt.s32.totalorder %s11736_s15, %s11731_s8 }
  0x4d   : > { %p11734_p9 = pnand %p11733_p7, %p11732_p3  ;;  %p11739_p5 = por %p11738_p0, %p11737_p12 }
  0x4f   : > { %p11735_p13 = pneg %p11734_p9 }
  0x51   : > { %p11740_p10 = pnand %p11739_p5, %p11735_p13 }
  0x53   : > { %11743 = shalt.err (!%p11740_p10)
}
  0x54   : > { %s11744_s6 = scalar_lea.vmem %s12026_s28, 2048  ;;  %s11872_s11 = smov [#allocation3]  }
  0x55   : > { %p11745_p1 = scmp.ne.s32.totalorder %s12026_s28, %s11744_s6  ;;  %s11749_s12 = sshll.u32 %s11872_s11, 4  ;;  %s11750_s12 = int_to_ptr.vmem [resolvable:$false] %s11749_s12 }
  0x56   : > { %s11751_s7 = scalar_lea.vmem %s11750_s12, 4096  ;;  %p11752_p9 = scmp.lt.s32.totalorder %s12026_s28, %s11750_s12 }
  0x57   : > { %p11747_p2 = pnand %p11745_p1, %p11733_p7  ;;  %p11753_p6 = scmp.lt.s32.totalorder %s11751_s7, %s11744_s6 }
  0x59   : > { %p11748_p3 = pneg %p11747_p2  ;;  %p11754_p4 = por %p11753_p6, %p11752_p9 }
  0x5b   : > { %p11755_p12 = pnand %p11754_p4, %p11748_p3 }
  0x5d   : > { %11758 = shalt.err (!%p11755_p12)
}
  0x5e   : > { %s16016_s8 = scalar_lea.sflag [#allocation4], %s12013_s10  ;;  %s9679_s15 = sshll.u32 %s11863_s21, 4 }
  0x5f   : > { %10839 = dma.hbm_to_vmem [thread:$0]  (!%p12022_p11), %s12020_s17, 2048, %s12026_s28, %s16016_s8, %s11869_s13, %s11869_s13, %s11870_s14  }
  0x60   : > { %s12063_s7 = scalar_lea.hbm %s15981_s1, %s9679_s15  ;;  %s245_s23 = scalar_lea.vmem [#allocation6], %s12013_s10 }
  0x61   : > { %s252_s11 = sshll.u32 %s245_s23, 4  ;;  %s16017_s12 = sand.u32 1, %s11863_s21   ;;  %s253_s11 = int_to_ptr.vmem [resolvable:$true] %s252_s11 }
  0x62   : > { %s243_s0 = scalar_lea.sflag [#allocation7], %s16017_s12  ;;  %s11759_s2 = scalar_lea.hbm %s12063_s7, 16 }
  0x63   : > { %p11760_p4 = scmp.ne.s32.totalorder %s12063_s7, %s11759_s2  ;;  %s11764_s17 = scalar_lea.hbm %s15981_s1, 32 }
  0x64   : > { %p11765_p0 = scmp.lt.s32.totalorder %s12063_s7, %s15981_s1  ;;  %p11766_p5 = scmp.lt.s32.totalorder %s11764_s17, %s11759_s2 }
  0x65   : > { %p11762_p6 = pnand %p11760_p4, %p11733_p7 }
  0x66   : > { %p11767_p10 = por %p11766_p5, %p11765_p0 }
  0x67   : > { %p11763_p13 = pneg %p11762_p6 }
  0x69   : > { %p11768_p1 = pnand %p11767_p10, %p11763_p13 }
  0x6b   : > { %11771 = shalt.err (!%p11768_p1)
}
  0x6c   : > { %s11772_s10 = scalar_lea.vmem %s253_s11, 16  ;;  %s11873_s15 = smov [#allocation6]  }
  0x6d   : > { %p11773_p2 = scmp.ne.s32.totalorder %s253_s11, %s11772_s10  ;;  %s11777_s16 = sshll.u32 %s11873_s15, 4  ;;  %s11778_s16 = int_to_ptr.vmem [resolvable:$false] %s11777_s16 }
  0x6e   : > { %s11779_s6 = scalar_lea.vmem %s11778_s16, 32  ;;  %p11780_p12 = scmp.lt.s32.totalorder %s253_s11, %s11778_s16 }
  0x6f   : > { %p11775_p3 = pnand %p11773_p2, %p11733_p7  ;;  %p11781_p4 = scmp.lt.s32.totalorder %s11779_s6, %s11772_s10 }
  0x71   : > { %p11776_p9 = pneg %p11775_p3  ;;  %p11782_p6 = por %p11781_p4, %p11780_p12 }
  0x73   : > { %p11783_p8 = pnand %p11782_p6, %p11776_p9 }
  0x75   : > { %11786 = shalt.err (!%p11783_p8)
}
  0x76   : > { %10842 = dma.hbm_to_vmem [thread:$0]  (!%p12022_p11), %s12063_s7, 16, %s253_s11, %s243_s0  }
  0x77   : > { %p16018_p13 = scmp.ne.s32.totalorder %s16009_s26, 0 }
  0x79   : > { %261 = sbr.rel (%p16018_p13) target bundleno = 1546 (0x60a), region = 40 }
  0x7e   : > { %s12089_s2 = sand.u32 1, %s11855_s19   ;;  %p16019_p7 = scmp.ne.s32.totalorder %s16007_s24, 0 }
  0x7f   : > { %s9681_s23 = sshll.u32 %s12089_s2, 7  ;;  %s264_s12 = scalar_lea.sflag [#allocation4], %s12089_s2 }
  0x80   : > { %s12093_s13 = scalar_lea.vmem [#allocation3], %s9681_s23 }
  0x81   : > { %11830 = dma.done.wait (%p16019_p7), %s264_s12, 2048  }
  0x82   : > { %11832 = vsyncadd (%p16019_p7), %s264_s12, 4294965248  ;;  %s272_s0 = sand.u32 1, %s11932_s22   ;;  %s275_s30 = scalar_lea.vmem [#allocation6], %s12089_s2 }
  0x83   : > { %s273_s26 = scalar_lea.sflag [#allocation7], %s272_s0 }
  0x84   : > { %11834 = dma.done.wait (%p16019_p7), %s273_s26, 16  }
  0x85   : > { %11836 = vsyncadd (%p16019_p7), %s273_s26, 4294967280  ;;  %p16020_p8 = scmp.eq.s32.totalorder %s11932_s22, 0 }
  0x87   : > { %11838 = dma.done.wait (%p16020_p8), [#allocation7], 1024   ;;  %p16021_p11 = pmov %p16020_p8 }
  0x88   : > { %p16022_p0 = pmov %p16020_p8 }
  0x89   : > { %11840 = vsyncadd (%p16021_p11), [#allocation7], 4294966272 }
  0x8a   : > { %11842 = dma.done.wait (%p16022_p0), [#allocation10], 6208   ;;  %p16023_p5 = pmov %p16022_p0 }
  0x8b   : > { %vm1061_vm0 = vcmask 254976   ;;  %vm1054_vm1 = vcmask 257024   ;;  %v15990_v0 = vmov 0   ;;  %vm1312_vm2 = vcmask 253952   ;;  %v1408_v1 = vld [vmem:[%s12093_s13] sm:$0xf] }
  0x8c   : > { %11844 = vsyncadd (%p16023_p5), [#allocation10], 4294961088  ;;  %1062 = vst.msk [vmem:[#allocation2 + $0x18] sm:$0x3] %vm1061_vm0, %v15990_v0  ;;  %vm1359_vm3 = vcmask 257025   ;;  %600 = vmatprep.mubr.bf16.mxu0 %v15990_v0  ;;  %680 = vmatprep.mubr.bf16.mxu1 %v15990_v0  ;;  %vm1472_vm4 = vcmask 1040384  }
  0x8d   : > { %1069 = vst.msk [vmem:[#allocation2 + $0x34] sm:$0x3] %vm1061_vm0, %v15990_v0  ;;  %1076 = vst.msk [vmem:[#allocation2 + $0x50] sm:$0x3] %vm1061_vm0, %v15990_v0  ;;  %v1409_v4 = vld [vmem:[%s12093_s13 + $0x4] sm:$0xf] }
  0x8e   : > { %1083 = vst.msk [vmem:[#allocation2 + $0x6c] sm:$0x3] %vm1061_vm0, %v15990_v0  ;;  %1090 = vst.msk [vmem:[#allocation2 + $0x88] sm:$0x3] %vm1061_vm0, %v15990_v0  ;;  %vm1473_vm5 = vcmask 1044484   ;;  %v1475_v10 = vrot.slane %v1408_v1, 7 }
  0x8f   : > { %1097 = vst.msk [vmem:[#allocation2 + $0xa4] sm:$0x3] %vm1061_vm0, %v15990_v0  ;;  %1104 = vst.msk [vmem:[#allocation2 + $0xc0] sm:$0x3] %vm1061_vm0, %v15990_v0  ;;  %v1477_v14 = vrot.slane %v1409_v4, 7  ;;  %s11875_s24 = smov 32  }
  0x90   : > { %1111 = vst.msk [vmem:[#allocation2 + $0xdc] sm:$0x3] %vm1061_vm0, %v15990_v0  ;;  %1118 = vst.msk [vmem:[#allocation2 + $0xf8] sm:$0x3] %vm1061_vm0, %v15990_v0  ;;  %v1476_v22 = vrot.slane %v1475_v10, 4  ;;  %s11876_s7 = smov 64  }
  0x91   : > { %1125 = vst.msk [vmem:[#allocation2 + $0x114] sm:$0x3] %vm1061_vm0, %v15990_v0  ;;  %1132 = vst.msk [vmem:[#allocation2 + $0x130] sm:$0x3] %vm1061_vm0, %v15990_v0  ;;  %v1410_v30 = vld [vmem:[%s12093_s13 + $0x8] sm:$0xf] }
  0x92   : > { %1139 = vst.msk [vmem:[#allocation2 + $0x14c] sm:$0x3] %vm1061_vm0, %v15990_v0  ;;  %1146 = vst.msk [vmem:[#allocation2 + $0x168] sm:$0x3] %vm1061_vm0, %v15990_v0  ;;  %v1479_v45 = vrot.slane %v1477_v14, 4  ;;  %v1480_v48 = vrot.slane %v1410_v30, 7 }
  0x93   : > { %1153 = vst.msk [vmem:[#allocation2 + $0x184] sm:$0x3] %vm1061_vm0, %v15990_v0  ;;  %1160 = vst.msk [vmem:[#allocation2 + $0x1a0] sm:$0x3] %vm1061_vm0, %v15990_v0  ;;  %v1411_v47 = vld [vmem:[%s12093_s13 + $0xc] sm:$0xf] }
  0x94   : > { %1167 = vst.msk [vmem:[#allocation2 + $0x1bc] sm:$0x3] %vm1061_vm0, %v15990_v0  ;;  %1203 = vst.msk [vmem:[#allocation2 + $0x408] sm:$0x3] %vm1061_vm0, %v15990_v0  ;;  %v1482_v51 = vrot.slane %v1411_v47, 7  ;;  %v1481_v54 = vrot.slane %v1480_v48, 4 }
  0x95   : > { %1210 = vst.msk [vmem:[#allocation2 + $0x424] sm:$0x3] %vm1061_vm0, %v15990_v0  ;;  %1217 = vst.msk [vmem:[#allocation2 + $0x440] sm:$0x3] %vm1061_vm0, %v15990_v0  ;;  %v1412_v52 = vld [vmem:[%s12093_s13 + $0x10] sm:$0xf] }
  0x96   : > { %1224 = vst.msk [vmem:[#allocation2 + $0x45c] sm:$0x3] %vm1061_vm0, %v15990_v0  ;;  %1231 = vst.msk [vmem:[#allocation2 + $0x478] sm:$0x3] %vm1061_vm0, %v15990_v0  ;;  %v1413_v55 = vld [vmem:[%s12093_s13 + $0x14] sm:$0xf] }
  0x97   : > { %1238 = vst.msk [vmem:[#allocation2 + $0x494] sm:$0x3] %vm1061_vm0, %v15990_v0  ;;  %1245 = vst.msk [vmem:[#allocation2 + $0x4b0] sm:$0x3] %vm1061_vm0, %v15990_v0  ;;  %v1485_v56 = vrot.slane %v1412_v52, 7  ;;  %v1484_v61 = vrot.slane %v1482_v51, 4 }
  0x98   : > { %1252 = vst.msk [vmem:[#allocation2 + $0x4cc] sm:$0x3] %vm1061_vm0, %v15990_v0  ;;  %1259 = vst.msk [vmem:[#allocation2 + $0x4e8] sm:$0x3] %vm1061_vm0, %v15990_v0  ;;  %v1414_v57 = vld [vmem:[%s12093_s13 + $0x18] sm:$0xf] }
  0x99   : > { %1266 = vst.msk [vmem:[#allocation2 + $0x504] sm:$0x3] %vm1061_vm0, %v15990_v0  ;;  %1273 = vst.msk [vmem:[#allocation2 + $0x520] sm:$0x3] %vm1061_vm0, %v15990_v0  ;;  %v1487_v62 = vrot.slane %v1413_v55, 7  ;;  %v1486_v4 = vrot.slane %v1485_v56, 4 }
  0x9a   : > { %1280 = vst.msk [vmem:[#allocation2 + $0x53c] sm:$0x3] %vm1061_vm0, %v15990_v0  ;;  %1287 = vst.msk [vmem:[#allocation2 + $0x558] sm:$0x3] %vm1061_vm0, %v15990_v0  ;;  %v1415_v63 = vld [vmem:[%s12093_s13 + $0x1c] sm:$0xf] }
  0x9b   : > { %1294 = vst.msk [vmem:[#allocation2 + $0x574] sm:$0x3] %vm1061_vm0, %v15990_v0  ;;  %1301 = vst.msk [vmem:[#allocation2 + $0x590] sm:$0x3] %vm1061_vm0, %v15990_v0  ;;  %s11877_s11 = smov 96   ;;  %vm519_vm7 = vcmask 261120  }
  0x9c   : > { %1308 = vst.msk [vmem:[#allocation2 + $0x5ac] sm:$0x3] %vm1061_vm0, %v15990_v0  ;;  %1362 = vst.msk [vmem:[#allocation2 + $0x210] sm:$0x3] %vm1061_vm0, %v15990_v0  ;;  %vm4895_vm8 = vcmask 1041408   ;;  %vm3333_vm9 = vcmask 523264  }
  0x9d   : > { %1365 = vst.msk [vmem:[#allocation2 + $0x22c] sm:$0x3] %vm1061_vm0, %v15990_v0  ;;  %1368 = vst.msk [vmem:[#allocation2 + $0x248] sm:$0x3] %vm1061_vm0, %v15990_v0  ;;  %vm3382_vm10 = vcmask 785408   ;;  %vm3703_vm11 = vcmask 1045504  }
  0x9e   : > { %1371 = vst.msk [vmem:[#allocation2 + $0x264] sm:$0x3] %vm1061_vm0, %v15990_v0  ;;  %1374 = vst.msk [vmem:[#allocation2 + $0x280] sm:$0x3] %vm1061_vm0, %v15990_v0  ;;  %s10806_s14 = smul.u32 1280, %s12089_s2  ;;  %vm7752_vm12 = vcmask 1046528  }
  0x9f   : > { %1377 = vst.msk [vmem:[#allocation2 + $0x29c] sm:$0x3] %vm1061_vm0, %v15990_v0  ;;  %1380 = vst.msk [vmem:[#allocation2 + $0x2b8] sm:$0x3] %vm1061_vm0, %v15990_v0  ;;  %vm6656_vm13 = vcmask 1044480   ;;  %s10807_s28 = smul.u32 20480, %s11932_s22 }
  0xa0   : > { %1383 = vst.msk [vmem:[#allocation2 + $0x2d4] sm:$0x3] %vm1061_vm0, %v15990_v0  ;;  %1386 = vst.msk [vmem:[#allocation2 + $0x2f0] sm:$0x3] %vm1061_vm0, %v15990_v0  ;;  %s13802_s17 = scalar_lea.vmem [#allocation12], %s10806_s14  ;;  %s9536_s22 = scalar_lea.sflag [#allocation5], %s12089_s2 }
  0xa1   : > { %1389 = vst.msk [vmem:[#allocation2 + $0x30c] sm:$0x3] %vm1061_vm0, %v15990_v0  ;;  %1392 = vst.msk [vmem:[#allocation2 + $0x328] sm:$0x3] %vm1061_vm0, %v15990_v0  ;;  %s9549_s8 = sshll.u32 %s13802_s17, 4  ;;  %s15934_s16 = scalar_lea.hbm %s15985_s5, %s10807_s28  ;;  %s15936_s8 = int_to_ptr.vmem [resolvable:$true] %s9549_s8 }
  0xa2   : > { %1395 = vst.msk [vmem:[#allocation2 + $0x344] sm:$0x3] %vm1061_vm0, %v15990_v0  ;;  %1398 = vst.msk [vmem:[#allocation2 + $0x360] sm:$0x3] %vm1061_vm0, %v15990_v0  ;;  %s11787_s6 = scalar_lea.vmem %s15936_s8, 20480  ;;  %p16452_p1 = scmp.ne.s32.totalorder %s16013_s9, 0 }
  0xa3   : > { %1401 = vst.msk [vmem:[#allocation2 + $0x37c] sm:$0x3] %vm1061_vm0, %v15990_v0  ;;  %1404 = vst.msk [vmem:[#allocation2 + $0x398] sm:$0x3] %vm1061_vm0, %v15990_v0  ;;  %p11788_p10 = scmp.ne.s32.totalorder %s15936_s8, %s11787_s6  ;;  %s11878_s23 = smov [#allocation12]  }
  0xa4   : > { %1407 = vst.msk [vmem:[#allocation2 + $0x3b4] sm:$0x3] %vm1061_vm0, %v15990_v0  ;;  %vm12815_vm6 = vmor %vm1472_vm4, %vm1473_vm5  ;;  %s11791_s12 = sshll.u32 %s11878_s23, 4  ;;  %s11792_s12 = int_to_ptr.vmem [resolvable:$false] %s11791_s12 }
  0xa5   : > { %1149 = vst.msk [vmem:[#allocation2 + $0x174] sm:$0xf] %vm1054_vm1, %v15990_v0  ;;  %1150 = vst.msk [vmem:[#allocation2 + $0x178] sm:$0xf] %vm1054_vm1, %v15990_v0  ;;  %v1478_v29 = vsel %vm12815_vm6, %v1476_v22, %v1477_v14  ;;  %v1418_v14 = vld [vmem:[%s12093_s13 + $0x28] sm:$0xf]  ;;  %p11789_p2 = pnand %p11788_p10, %p16452_p1  ;;  %p11794_p9 = scmp.lt.s32.totalorder %s15936_s8, %s11792_s12 }
  0xa6   : > { %1151 = vst.msk [vmem:[#allocation2 + $0x17c] sm:$0xf] %vm1054_vm1, %v15990_v0  ;;  %1055 = vst.msk [vmem:[#allocation2] sm:$0xf] %vm1054_vm1, %v15990_v0 }
  0xa7   : > { %1056 = vst.msk [vmem:[#allocation2 + $0x4] sm:$0xf] %vm1054_vm1, %v15990_v0  ;;  %1057 = vst.msk [vmem:[#allocation2 + $0x8] sm:$0xf] %vm1054_vm1, %v15990_v0  ;;  %p11790_p3 = pneg %p11789_p2 }
  0xa8   : > { %1058 = vst.msk [vmem:[#allocation2 + $0xc] sm:$0xf] %vm1054_vm1, %v15990_v0  ;;  %1059 = vst.msk [vmem:[#allocation2 + $0x10] sm:$0xf] %vm1054_vm1, %v15990_v0 }
  0xa9   : > { %1060 = vst.msk [vmem:[#allocation2 + $0x14] sm:$0xf] %vm1054_vm1, %v15990_v0  ;;  %1063 = vst.msk [vmem:[#allocation2 + $0x1c] sm:$0xf] %vm1054_vm1, %v15990_v0 }
  0xaa   : > { %1064 = vst.msk [vmem:[#allocation2 + $0x20] sm:$0xf] %vm1054_vm1, %v15990_v0  ;;  %1065 = vst.msk [vmem:[#allocation2 + $0x24] sm:$0xf] %vm1054_vm1, %v15990_v0 }
  0xab   : > { %1066 = vst.msk [vmem:[#allocation2 + $0x28] sm:$0xf] %vm1054_vm1, %v15990_v0  ;;  %1067 = vst.msk [vmem:[#allocation2 + $0x2c] sm:$0xf] %vm1054_vm1, %v15990_v0 }
  0xac   : > { %1068 = vst.msk [vmem:[#allocation2 + $0x30] sm:$0xf] %vm1054_vm1, %v15990_v0  ;;  %1070 = vst.msk [vmem:[#allocation2 + $0x38] sm:$0xf] %vm1054_vm1, %v15990_v0  ;;  %v1703_v2 = vld [vmem:[#allocation2 + $0x174] sm:$0xe] }
  0xad   : > { %1071 = vst.msk [vmem:[#allocation2 + $0x3c] sm:$0xf] %vm1054_vm1, %v15990_v0  ;;  %1072 = vst.msk [vmem:[#allocation2 + $0x40] sm:$0xf] %vm1054_vm1, %v15990_v0  ;;  %v12804_v3 = vld [vmem:[#allocation2 + $0x178] sm:$0xf] }
  0xae   : > { %1073 = vst.msk [vmem:[#allocation2 + $0x44] sm:$0xf] %vm1054_vm1, %v15990_v0  ;;  %1074 = vst.msk [vmem:[#allocation2 + $0x48] sm:$0xf] %vm1054_vm1, %v15990_v0  ;;  %v9776_v5 = vcombine.low %v1703_v2, %v12804_v3  ;;  %v1483_v2 = vsel %vm12815_vm6, %v1481_v54, %v1482_v51 }
  0xaf   : > { %1075 = vst.msk [vmem:[#allocation2 + $0x4c] sm:$0xf] %vm1054_vm1, %v15990_v0  ;;  %1077 = vst.msk [vmem:[#allocation2 + $0x54] sm:$0xf] %vm1054_vm1, %v15990_v0 }
  0xb0   : > { %1078 = vst.msk [vmem:[#allocation2 + $0x58] sm:$0xf] %vm1054_vm1, %v15990_v0  ;;  %1079 = vst.msk [vmem:[#allocation2 + $0x5c] sm:$0xf] %vm1054_vm1, %v15990_v0  ;;  %v2216_v11 = vrot.slane %v9776_v5, 7  ;;  %v1490_v5 = vrot.slane %v1414_v57, 7 }
  0xb1   : > { %1080 = vst.msk [vmem:[#allocation2 + $0x60] sm:$0xf] %vm1054_vm1, %v15990_v0  ;;  %1081 = vst.msk [vmem:[#allocation2 + $0x64] sm:$0xf] %vm1054_vm1, %v15990_v0 }
  0xb2   : > { %1082 = vst.msk [vmem:[#allocation2 + $0x68] sm:$0xf] %vm1054_vm1, %v15990_v0  ;;  %1084 = vst.msk [vmem:[#allocation2 + $0x70] sm:$0xf] %vm1054_vm1, %v15990_v0  ;;  %2265 = vrot.lane.b32.xlu1 %v2216_v11, %s11875_s24 }
  0xb3   : > { %1085 = vst.msk [vmem:[#allocation2 + $0x74] sm:$0xf] %vm1054_vm1, %v15990_v0  ;;  %1086 = vst.msk [vmem:[#allocation2 + $0x78] sm:$0xf] %vm1054_vm1, %v15990_v0 }
  0xb4   : > { %1087 = vst.msk [vmem:[#allocation2 + $0x7c] sm:$0xf] %vm1054_vm1, %v15990_v0  ;;  %1088 = vst.msk [vmem:[#allocation2 + $0x80] sm:$0xf] %vm1054_vm1, %v15990_v0 }
  0xb5   : > { %1089 = vst.msk [vmem:[#allocation2 + $0x84] sm:$0xf] %vm1054_vm1, %v15990_v0  ;;  %1091 = vst.msk [vmem:[#allocation2 + $0x8c] sm:$0xf] %vm1054_vm1, %v15990_v0 }
  0xb6   : > { %1092 = vst.msk [vmem:[#allocation2 + $0x90] sm:$0xf] %vm1054_vm1, %v15990_v0  ;;  %1093 = vst.msk [vmem:[#allocation2 + $0x94] sm:$0xf] %vm1054_vm1, %v15990_v0 }
  0xb7   : > { %1094 = vst.msk [vmem:[#allocation2 + $0x98] sm:$0xf] %vm1054_vm1, %v15990_v0  ;;  %1095 = vst.msk [vmem:[#allocation2 + $0x9c] sm:$0xf] %vm1054_vm1, %v15990_v0 }
  0xb8   : > { %1096 = vst.msk [vmem:[#allocation2 + $0xa0] sm:$0xf] %vm1054_vm1, %v15990_v0  ;;  %1098 = vst.msk [vmem:[#allocation2 + $0xa8] sm:$0xf] %vm1054_vm1, %v15990_v0 }
  0xb9   : > { %1099 = vst.msk [vmem:[#allocation2 + $0xac] sm:$0xf] %vm1054_vm1, %v15990_v0  ;;  %1100 = vst.msk [vmem:[#allocation2 + $0xb0] sm:$0xf] %vm1054_vm1, %v15990_v0 }
  0xba   : > { %1101 = vst.msk [vmem:[#allocation2 + $0xb4] sm:$0xf] %vm1054_vm1, %v15990_v0  ;;  %1102 = vst.msk [vmem:[#allocation2 + $0xb8] sm:$0xf] %vm1054_vm1, %v15990_v0 }
  0xbb   : > { %1103 = vst.msk [vmem:[#allocation2 + $0xbc] sm:$0xf] %vm1054_vm1, %v15990_v0  ;;  %1105 = vst.msk [vmem:[#allocation2 + $0xc4] sm:$0xf] %vm1054_vm1, %v15990_v0 }
  0xbc   : > { %1106 = vst.msk [vmem:[#allocation2 + $0xc8] sm:$0xf] %vm1054_vm1, %v15990_v0  ;;  %1107 = vst.msk [vmem:[#allocation2 + $0xcc] sm:$0xf] %vm1054_vm1, %v15990_v0 }
  0xbd   : > { %1108 = vst.msk [vmem:[#allocation2 + $0xd0] sm:$0xf] %vm1054_vm1, %v15990_v0  ;;  %1109 = vst.msk [vmem:[#allocation2 + $0xd4] sm:$0xf] %vm1054_vm1, %v15990_v0 }
  0xbe   : > { %1110 = vst.msk [vmem:[#allocation2 + $0xd8] sm:$0xf] %vm1054_vm1, %v15990_v0  ;;  %1112 = vst.msk [vmem:[#allocation2 + $0xe0] sm:$0xf] %vm1054_vm1, %v15990_v0 }
  0xbf   : > { %1113 = vst.msk [vmem:[#allocation2 + $0xe4] sm:$0xf] %vm1054_vm1, %v15990_v0  ;;  %1114 = vst.msk [vmem:[#allocation2 + $0xe8] sm:$0xf] %vm1054_vm1, %v15990_v0 }
  0xc0   : > { %1115 = vst.msk [vmem:[#allocation2 + $0xec] sm:$0xf] %vm1054_vm1, %v15990_v0  ;;  %1116 = vst.msk [vmem:[#allocation2 + $0xf0] sm:$0xf] %vm1054_vm1, %v15990_v0 }
  0xc1   : > { %1117 = vst.msk [vmem:[#allocation2 + $0xf4] sm:$0xf] %vm1054_vm1, %v15990_v0  ;;  %1119 = vst.msk [vmem:[#allocation2 + $0xfc] sm:$0xf] %vm1054_vm1, %v15990_v0 }
  0xc2   : > { %1120 = vst.msk [vmem:[#allocation2 + $0x100] sm:$0xf] %vm1054_vm1, %v15990_v0  ;;  %1121 = vst.msk [vmem:[#allocation2 + $0x104] sm:$0xf] %vm1054_vm1, %v15990_v0 }
  0xc3   : > { %1122 = vst.msk [vmem:[#allocation2 + $0x108] sm:$0xf] %vm1054_vm1, %v15990_v0  ;;  %1123 = vst.msk [vmem:[#allocation2 + $0x10c] sm:$0xf] %vm1054_vm1, %v15990_v0 }
  0xc4   : > { %1124 = vst.msk [vmem:[#allocation2 + $0x110] sm:$0xf] %vm1054_vm1, %v15990_v0  ;;  %1126 = vst.msk [vmem:[#allocation2 + $0x118] sm:$0xf] %vm1054_vm1, %v15990_v0 }
  0xc5   : > { %1127 = vst.msk [vmem:[#allocation2 + $0x11c] sm:$0xf] %vm1054_vm1, %v15990_v0  ;;  %1128 = vst.msk [vmem:[#allocation2 + $0x120] sm:$0xf] %vm1054_vm1, %v15990_v0 }
  0xc6   : > { %1129 = vst.msk [vmem:[#allocation2 + $0x124] sm:$0xf] %vm1054_vm1, %v15990_v0  ;;  %1130 = vst.msk [vmem:[#allocation2 + $0x128] sm:$0xf] %vm1054_vm1, %v15990_v0 }
  0xc7   : > { %1131 = vst.msk [vmem:[#allocation2 + $0x12c] sm:$0xf] %vm1054_vm1, %v15990_v0  ;;  %1133 = vst.msk [vmem:[#allocation2 + $0x134] sm:$0xf] %vm1054_vm1, %v15990_v0 }
  0xc8   : > { %1134 = vst.msk [vmem:[#allocation2 + $0x138] sm:$0xf] %vm1054_vm1, %v15990_v0  ;;  %1135 = vst.msk [vmem:[#allocation2 + $0x13c] sm:$0xf] %vm1054_vm1, %v15990_v0 }
  0xc9   : > { %1136 = vst.msk [vmem:[#allocation2 + $0x140] sm:$0xf] %vm1054_vm1, %v15990_v0  ;;  %1137 = vst.msk [vmem:[#allocation2 + $0x144] sm:$0xf] %vm1054_vm1, %v15990_v0 }
  0xca   : > { %1138 = vst.msk [vmem:[#allocation2 + $0x148] sm:$0xf] %vm1054_vm1, %v15990_v0  ;;  %1140 = vst.msk [vmem:[#allocation2 + $0x150] sm:$0xf] %vm1054_vm1, %v15990_v0 }
  0xcb   : > { %1141 = vst.msk [vmem:[#allocation2 + $0x154] sm:$0xf] %vm1054_vm1, %v15990_v0  ;;  %1142 = vst.msk [vmem:[#allocation2 + $0x158] sm:$0xf] %vm1054_vm1, %v15990_v0 }
  0xcc   : > { %1143 = vst.msk [vmem:[#allocation2 + $0x15c] sm:$0xf] %vm1054_vm1, %v15990_v0  ;;  %1144 = vst.msk [vmem:[#allocation2 + $0x160] sm:$0xf] %vm1054_vm1, %v15990_v0 }
  0xcd   : > { %1145 = vst.msk [vmem:[#allocation2 + $0x164] sm:$0xf] %vm1054_vm1, %v15990_v0  ;;  %1147 = vst.msk [vmem:[#allocation2 + $0x16c] sm:$0xf] %vm1054_vm1, %v15990_v0 }
  0xce   : > { %1148 = vst.msk [vmem:[#allocation2 + $0x170] sm:$0xf] %vm1054_vm1, %v15990_v0  ;;  %1152 = vst.msk [vmem:[#allocation2 + $0x180] sm:$0xf] %vm1054_vm1, %v15990_v0 }
  0xcf   : > { %1154 = vst.msk [vmem:[#allocation2 + $0x188] sm:$0xf] %vm1054_vm1, %v15990_v0  ;;  %1155 = vst.msk [vmem:[#allocation2 + $0x18c] sm:$0xf] %vm1054_vm1, %v15990_v0 }
  0xd0   : > { %1156 = vst.msk [vmem:[#allocation2 + $0x190] sm:$0xf] %vm1054_vm1, %v15990_v0  ;;  %1157 = vst.msk [vmem:[#allocation2 + $0x194] sm:$0xf] %vm1054_vm1, %v15990_v0 }
  0xd1   : > { %1158 = vst.msk [vmem:[#allocation2 + $0x198] sm:$0xf] %vm1054_vm1, %v15990_v0  ;;  %1159 = vst.msk [vmem:[#allocation2 + $0x19c] sm:$0xf] %vm1054_vm1, %v15990_v0 }
  0xd2   : > { %1161 = vst.msk [vmem:[#allocation2 + $0x1a4] sm:$0xf] %vm1054_vm1, %v15990_v0  ;;  %1162 = vst.msk [vmem:[#allocation2 + $0x1a8] sm:$0xf] %vm1054_vm1, %v15990_v0  ;;  %v1700_v6 = vld [vmem:[#allocation2 + $0x158] sm:$0xe] }
  0xd3   : > { %1163 = vst.msk [vmem:[#allocation2 + $0x1ac] sm:$0xf] %vm1054_vm1, %v15990_v0  ;;  %1164 = vst.msk [vmem:[#allocation2 + $0x1b0] sm:$0xf] %vm1054_vm1, %v15990_v0  ;;  %v12808_v7 = vld [vmem:[#allocation2 + $0x15c] sm:$0xf] }
  0xd4   : > { %1165 = vst.msk [vmem:[#allocation2 + $0x1b4] sm:$0xf] %vm1054_vm1, %v15990_v0  ;;  %1166 = vst.msk [vmem:[#allocation2 + $0x1b8] sm:$0xf] %vm1054_vm1, %v15990_v0  ;;  %v9774_v8 = vcombine.low %v1700_v6, %v12808_v7  ;;  %v1416_v6 = vld [vmem:[%s12093_s13 + $0x20] sm:$0xf] }
  0xd5   : > { %1168 = vst.msk [vmem:[#allocation2 + $0x1c0] sm:$0xf] %vm1054_vm1, %v15990_v0  ;;  %1169 = vst.msk [vmem:[#allocation2 + $0x1c4] sm:$0xf] %vm1054_vm1, %v15990_v0 }
  0xd6   : > { %1170 = vst.msk [vmem:[#allocation2 + $0x1c8] sm:$0xf] %vm1054_vm1, %v15990_v0  ;;  %1171 = vst.msk [vmem:[#allocation2 + $0x1cc] sm:$0xf] %vm1054_vm1, %v15990_v0  ;;  %v2213_v15 = vrot.slane %v9774_v8, 7 }
  0xd7   : > { %1172 = vst.msk [vmem:[#allocation2 + $0x1d0] sm:$0xf] %vm1054_vm1, %v15990_v0  ;;  %1173 = vst.msk [vmem:[#allocation2 + $0x1d4] sm:$0xf] %vm1054_vm1, %v15990_v0  ;;  %v1706_v12 = vld [vmem:[#allocation2 + $0x190] sm:$0xe] }
  0xd8   : > { %1175 = vst.msk [vmem:[#allocation2 + $0x1dc] sm:$0xf] %vm1054_vm1, %v15990_v0  ;;  %1176 = vst.msk [vmem:[#allocation2 + $0x1e0] sm:$0xf] %vm1054_vm1, %v15990_v0  ;;  %v12811_v13 = vld [vmem:[#allocation2 + $0x194] sm:$0xf]  ;;  %2261 = vrot.lane.b32.xlu0 %v2213_v15, %s11875_s24 }
  0xd9   : > { %1177 = vst.msk [vmem:[#allocation2 + $0x1e4] sm:$0xf] %vm1054_vm1, %v15990_v0  ;;  %1178 = vst.msk [vmem:[#allocation2 + $0x1e8] sm:$0xf] %vm1054_vm1, %v15990_v0  ;;  %v9778_v17 = vcombine.low %v1706_v12, %v12811_v13  ;;  %v1417_v8 = vld [vmem:[%s12093_s13 + $0x24] sm:$0xf] }
  0xda   : > { %1179 = vst.msk [vmem:[#allocation2 + $0x1ec] sm:$0xf] %vm1054_vm1, %v15990_v0  ;;  %1180 = vst.msk [vmem:[#allocation2 + $0x1f0] sm:$0xf] %vm1054_vm1, %v15990_v0  ;;  %v1709_v18 = vld [vmem:[#allocation2 + $0x1ac] sm:$0xe] }
  0xdb   : > { %1183 = vst.msk [vmem:[#allocation2 + $0x3b8] sm:$0xf] %vm1054_vm1, %v15990_v0  ;;  %1184 = vst.msk [vmem:[#allocation2 + $0x3bc] sm:$0xf] %vm1054_vm1, %v15990_v0  ;;  %v12821_v21 = vld [vmem:[#allocation2 + $0x1b0] sm:$0xf] }
  0xdc   : > { %1185 = vst.msk [vmem:[#allocation2 + $0x3c0] sm:$0xf] %vm1054_vm1, %v15990_v0  ;;  %1186 = vst.msk [vmem:[#allocation2 + $0x3c4] sm:$0xf] %vm1054_vm1, %v15990_v0  ;;  %v2219_v24 = vrot.slane %v9778_v17, 7  ;;  %v9780_v25 = vcombine.low %v1709_v18, %v12821_v21  ;;  %v1497_v12 = vrot.slane %v1417_v8, 7 }
  0xdd   : > { %1187 = vst.msk [vmem:[#allocation2 + $0x3c8] sm:$0xf] %vm1054_vm1, %v15990_v0  ;;  %1188 = vst.msk [vmem:[#allocation2 + $0x3cc] sm:$0xf] %vm1054_vm1, %v15990_v0  ;;  %v1712_v33 = vld [vmem:[#allocation2 + $0x1c8] sm:$0xe] }
  0xde   : > { %1190 = vst.msk [vmem:[#allocation2 + $0x3d4] sm:$0xf] %vm1054_vm1, %v15990_v0  ;;  %1191 = vst.msk [vmem:[#allocation2 + $0x3d8] sm:$0xf] %vm1054_vm1, %v15990_v0  ;;  %v2222_v31 = vrot.slane %v9780_v25, 7  ;;  %2269 = vrot.lane.b32.xlu0 %v2219_v24, %s11875_s24  ;;  %v1491_v17 = vrot.slane %v1490_v5, 4 }
  0xdf   : > { %1192 = vst.msk [vmem:[#allocation2 + $0x3dc] sm:$0xf] %vm1054_vm1, %v15990_v0  ;;  %1193 = vst.msk [vmem:[#allocation2 + $0x3e0] sm:$0xf] %vm1054_vm1, %v15990_v0  ;;  %v12829_v34 = vld [vmem:[#allocation2 + $0x1cc] sm:$0xf] }
  0xe0   : > { %1194 = vst.msk [vmem:[#allocation2 + $0x3e4] sm:$0xf] %vm1054_vm1, %v15990_v0  ;;  %1195 = vst.msk [vmem:[#allocation2 + $0x3e8] sm:$0xf] %vm1054_vm1, %v15990_v0  ;;  %v9782_v36 = vcombine.low %v1712_v33, %v12829_v34  ;;  %v1715_v39 = vld [vmem:[#allocation2 + $0x1e4] sm:$0xe] }
  0xe1   : > { %1197 = vst.msk [vmem:[#allocation2 + $0x3f0] sm:$0xf] %vm1054_vm1, %v15990_v0  ;;  %1198 = vst.msk [vmem:[#allocation2 + $0x3f4] sm:$0xf] %vm1054_vm1, %v15990_v0  ;;  %v12836_v40 = vld [vmem:[#allocation2 + $0x1e8] sm:$0xf] }
  0xe2   : > { %1199 = vst.msk [vmem:[#allocation2 + $0x3f8] sm:$0xf] %vm1054_vm1, %v15990_v0  ;;  %1200 = vst.msk [vmem:[#allocation2 + $0x3fc] sm:$0xf] %vm1054_vm1, %v15990_v0  ;;  %v12838_v41 = vrot.slane %v9782_v36, 7  ;;  %v9784_v43 = vcombine.low %v1715_v39, %v12836_v40  ;;  %2273 = vrot.lane.b32.xlu0 %v2222_v31, %s11875_s24 }
  0xe3   : > { %1201 = vst.msk [vmem:[#allocation2 + $0x400] sm:$0xf] %vm1054_vm1, %v15990_v0  ;;  %1202 = vst.msk [vmem:[#allocation2 + $0x404] sm:$0xf] %vm1054_vm1, %v15990_v0  ;;  %v1419_v18 = vld [vmem:[%s12093_s13 + $0x2c] sm:$0xf] }
  0xe4   : > { %1204 = vst.msk [vmem:[#allocation2 + $0x40c] sm:$0xf] %vm1054_vm1, %v15990_v0  ;;  %1205 = vst.msk [vmem:[#allocation2 + $0x410] sm:$0xf] %vm1054_vm1, %v15990_v0  ;;  %v12845_v49 = vrot.slane %v9784_v43, 7  ;;  %v1502_v25 = vrot.slane %v1419_v18, 7 }
  0xe5   : > { %1206 = vst.msk [vmem:[#allocation2 + $0x414] sm:$0xf] %vm1054_vm1, %v15990_v0  ;;  %1207 = vst.msk [vmem:[#allocation2 + $0x418] sm:$0xf] %vm1054_vm1, %v15990_v0  ;;  %v1423_v43 = vld [vmem:[%s12093_s13 + $0x3c] sm:$0xf] }
  0xe6   : > { %1208 = vst.msk [vmem:[#allocation2 + $0x41c] sm:$0xf] %vm1054_vm1, %v15990_v0  ;;  %1209 = vst.msk [vmem:[#allocation2 + $0x420] sm:$0xf] %vm1054_vm1, %v15990_v0 }
  0xe7   : > { %1211 = vst.msk [vmem:[#allocation2 + $0x428] sm:$0xf] %vm1054_vm1, %v15990_v0  ;;  %1212 = vst.msk [vmem:[#allocation2 + $0x42c] sm:$0xf] %vm1054_vm1, %v15990_v0 }
  0xe8   : > { %1213 = vst.msk [vmem:[#allocation2 + $0x430] sm:$0xf] %vm1054_vm1, %v15990_v0  ;;  %1214 = vst.msk [vmem:[#allocation2 + $0x434] sm:$0xf] %vm1054_vm1, %v15990_v0 }
  0xe9   : > { %1215 = vst.msk [vmem:[#allocation2 + $0x438] sm:$0xf] %vm1054_vm1, %v15990_v0  ;;  %1216 = vst.msk [vmem:[#allocation2 + $0x43c] sm:$0xf] %vm1054_vm1, %v15990_v0 }
  0xea   : > { %1218 = vst.msk [vmem:[#allocation2 + $0x444] sm:$0xf] %vm1054_vm1, %v15990_v0  ;;  %1219 = vst.msk [vmem:[#allocation2 + $0x448] sm:$0xf] %vm1054_vm1, %v15990_v0 }
  0xeb   : > { %1220 = vst.msk [vmem:[#allocation2 + $0x44c] sm:$0xf] %vm1054_vm1, %v15990_v0  ;;  %1221 = vst.msk [vmem:[#allocation2 + $0x450] sm:$0xf] %vm1054_vm1, %v15990_v0 }
  0xec   : > { %1222 = vst.msk [vmem:[#allocation2 + $0x454] sm:$0xf] %vm1054_vm1, %v15990_v0  ;;  %1223 = vst.msk [vmem:[#allocation2 + $0x458] sm:$0xf] %vm1054_vm1, %v15990_v0 }
  0xed   : > { %1225 = vst.msk [vmem:[#allocation2 + $0x460] sm:$0xf] %vm1054_vm1, %v15990_v0  ;;  %1226 = vst.msk [vmem:[#allocation2 + $0x464] sm:$0xf] %vm1054_vm1, %v15990_v0 }
  0xee   : > { %1227 = vst.msk [vmem:[#allocation2 + $0x468] sm:$0xf] %vm1054_vm1, %v15990_v0  ;;  %1228 = vst.msk [vmem:[#allocation2 + $0x46c] sm:$0xf] %vm1054_vm1, %v15990_v0 }
  0xef   : > { %1229 = vst.msk [vmem:[#allocation2 + $0x470] sm:$0xf] %vm1054_vm1, %v15990_v0  ;;  %1230 = vst.msk [vmem:[#allocation2 + $0x474] sm:$0xf] %vm1054_vm1, %v15990_v0 }
  0xf0   : > { %1232 = vst.msk [vmem:[#allocation2 + $0x47c] sm:$0xf] %vm1054_vm1, %v15990_v0  ;;  %1233 = vst.msk [vmem:[#allocation2 + $0x480] sm:$0xf] %vm1054_vm1, %v15990_v0 }
  0xf1   : > { %1234 = vst.msk [vmem:[#allocation2 + $0x484] sm:$0xf] %vm1054_vm1, %v15990_v0  ;;  %1235 = vst.msk [vmem:[#allocation2 + $0x488] sm:$0xf] %vm1054_vm1, %v15990_v0 }
  0xf2   : > { %1236 = vst.msk [vmem:[#allocation2 + $0x48c] sm:$0xf] %vm1054_vm1, %v15990_v0  ;;  %1237 = vst.msk [vmem:[#allocation2 + $0x490] sm:$0xf] %vm1054_vm1, %v15990_v0 }
  0xf3   : > { %1239 = vst.msk [vmem:[#allocation2 + $0x498] sm:$0xf] %vm1054_vm1, %v15990_v0  ;;  %1240 = vst.msk [vmem:[#allocation2 + $0x49c] sm:$0xf] %vm1054_vm1, %v15990_v0 }
  0xf4   : > { %1241 = vst.msk [vmem:[#allocation2 + $0x4a0] sm:$0xf] %vm1054_vm1, %v15990_v0  ;;  %1242 = vst.msk [vmem:[#allocation2 + $0x4a4] sm:$0xf] %vm1054_vm1, %v15990_v0 }
  0xf5   : > { %1243 = vst.msk [vmem:[#allocation2 + $0x4a8] sm:$0xf] %vm1054_vm1, %v15990_v0  ;;  %1244 = vst.msk [vmem:[#allocation2 + $0x4ac] sm:$0xf] %vm1054_vm1, %v15990_v0 }
  0xf6   : > { %1246 = vst.msk [vmem:[#allocation2 + $0x4b4] sm:$0xf] %vm1054_vm1, %v15990_v0  ;;  %1247 = vst.msk [vmem:[#allocation2 + $0x4b8] sm:$0xf] %vm1054_vm1, %v15990_v0 }
  0xf7   : > { %1248 = vst.msk [vmem:[#allocation2 + $0x4bc] sm:$0xf] %vm1054_vm1, %v15990_v0  ;;  %1249 = vst.msk [vmem:[#allocation2 + $0x4c0] sm:$0xf] %vm1054_vm1, %v15990_v0 }
  0xf8   : > { %1250 = vst.msk [vmem:[#allocation2 + $0x4c4] sm:$0xf] %vm1054_vm1, %v15990_v0  ;;  %1251 = vst.msk [vmem:[#allocation2 + $0x4c8] sm:$0xf] %vm1054_vm1, %v15990_v0 }
  0xf9   : > { %1253 = vst.msk [vmem:[#allocation2 + $0x4d0] sm:$0xf] %vm1054_vm1, %v15990_v0  ;;  %1254 = vst.msk [vmem:[#allocation2 + $0x4d4] sm:$0xf] %vm1054_vm1, %v15990_v0 }
  0xfa   : > { %1255 = vst.msk [vmem:[#allocation2 + $0x4d8] sm:$0xf] %vm1054_vm1, %v15990_v0  ;;  %1256 = vst.msk [vmem:[#allocation2 + $0x4dc] sm:$0xf] %vm1054_vm1, %v15990_v0 }
  0xfb   : > { %1257 = vst.msk [vmem:[#allocation2 + $0x4e0] sm:$0xf] %vm1054_vm1, %v15990_v0  ;;  %1258 = vst.msk [vmem:[#allocation2 + $0x4e4] sm:$0xf] %vm1054_vm1, %v15990_v0 }
  0xfc   : > { %1260 = vst.msk [vmem:[#allocation2 + $0x4ec] sm:$0xf] %vm1054_vm1, %v15990_v0  ;;  %1261 = vst.msk [vmem:[#allocation2 + $0x4f0] sm:$0xf] %vm1054_vm1, %v15990_v0 }
  0xfd   : > { %1262 = vst.msk [vmem:[#allocation2 + $0x4f4] sm:$0xf] %vm1054_vm1, %v15990_v0  ;;  %1263 = vst.msk [vmem:[#allocation2 + $0x4f8] sm:$0xf] %vm1054_vm1, %v15990_v0 }
  0xfe   : > { %1264 = vst.msk [vmem:[#allocation2 + $0x4fc] sm:$0xf] %vm1054_vm1, %v15990_v0  ;;  %1265 = vst.msk [vmem:[#allocation2 + $0x500] sm:$0xf] %vm1054_vm1, %v15990_v0 }
  0xff   : > { %1267 = vst.msk [vmem:[#allocation2 + $0x508] sm:$0xf] %vm1054_vm1, %v15990_v0  ;;  %1268 = vst.msk [vmem:[#allocation2 + $0x50c] sm:$0xf] %vm1054_vm1, %v15990_v0 }
 0x100   : > { %1269 = vst.msk [vmem:[#allocation2 + $0x510] sm:$0xf] %vm1054_vm1, %v15990_v0  ;;  %1270 = vst.msk [vmem:[#allocation2 + $0x514] sm:$0xf] %vm1054_vm1, %v15990_v0 }
 0x101   : > { %1271 = vst.msk [vmem:[#allocation2 + $0x518] sm:$0xf] %vm1054_vm1, %v15990_v0  ;;  %1272 = vst.msk [vmem:[#allocation2 + $0x51c] sm:$0xf] %vm1054_vm1, %v15990_v0 }
 0x102   : > { %1274 = vst.msk [vmem:[#allocation2 + $0x524] sm:$0xf] %vm1054_vm1, %v15990_v0  ;;  %1275 = vst.msk [vmem:[#allocation2 + $0x528] sm:$0xf] %vm1054_vm1, %v15990_v0 }
 0x103   : > { %1276 = vst.msk [vmem:[#allocation2 + $0x52c] sm:$0xf] %vm1054_vm1, %v15990_v0  ;;  %1277 = vst.msk [vmem:[#allocation2 + $0x530] sm:$0xf] %vm1054_vm1, %v15990_v0 }
 0x104   : > { %1278 = vst.msk [vmem:[#allocation2 + $0x534] sm:$0xf] %vm1054_vm1, %v15990_v0  ;;  %1279 = vst.msk [vmem:[#allocation2 + $0x538] sm:$0xf] %vm1054_vm1, %v15990_v0 }
 0x105   : > { %1281 = vst.msk [vmem:[#allocation2 + $0x540] sm:$0xf] %vm1054_vm1, %v15990_v0  ;;  %1282 = vst.msk [vmem:[#allocation2 + $0x544] sm:$0xf] %vm1054_vm1, %v15990_v0 }
 0x106   : > { %1283 = vst.msk [vmem:[#allocation2 + $0x548] sm:$0xf] %vm1054_vm1, %v15990_v0  ;;  %1284 = vst.msk [vmem:[#allocation2 + $0x54c] sm:$0xf] %vm1054_vm1, %v15990_v0 }
 0x107   : > { %1285 = vst.msk [vmem:[#allocation2 + $0x550] sm:$0xf] %vm1054_vm1, %v15990_v0  ;;  %1286 = vst.msk [vmem:[#allocation2 + $0x554] sm:$0xf] %vm1054_vm1, %v15990_v0 }
 0x108   : > { %1288 = vst.msk [vmem:[#allocation2 + $0x55c] sm:$0xf] %vm1054_vm1, %v15990_v0  ;;  %1289 = vst.msk [vmem:[#allocation2 + $0x560] sm:$0xf] %vm1054_vm1, %v15990_v0 }
 0x109   : > { %1290 = vst.msk [vmem:[#allocation2 + $0x564] sm:$0xf] %vm1054_vm1, %v15990_v0  ;;  %1291 = vst.msk [vmem:[#allocation2 + $0x568] sm:$0xf] %vm1054_vm1, %v15990_v0 }
 0x10a   : > { %1292 = vst.msk [vmem:[#allocation2 + $0x56c] sm:$0xf] %vm1054_vm1, %v15990_v0  ;;  %1293 = vst.msk [vmem:[#allocation2 + $0x570] sm:$0xf] %vm1054_vm1, %v15990_v0 }
 0x10b   : > { %1295 = vst.msk [vmem:[#allocation2 + $0x578] sm:$0xf] %vm1054_vm1, %v15990_v0  ;;  %1296 = vst.msk [vmem:[#allocation2 + $0x57c] sm:$0xf] %vm1054_vm1, %v15990_v0 }
 0x10c   : > { %1297 = vst.msk [vmem:[#allocation2 + $0x580] sm:$0xf] %vm1054_vm1, %v15990_v0  ;;  %1298 = vst.msk [vmem:[#allocation2 + $0x584] sm:$0xf] %vm1054_vm1, %v15990_v0 }
 0x10d   : > { %1299 = vst.msk [vmem:[#allocation2 + $0x588] sm:$0xf] %vm1054_vm1, %v15990_v0  ;;  %1300 = vst.msk [vmem:[#allocation2 + $0x58c] sm:$0xf] %vm1054_vm1, %v15990_v0 }
 0x10e   : > { %1302 = vst.msk [vmem:[#allocation2 + $0x594] sm:$0xf] %vm1054_vm1, %v15990_v0  ;;  %1303 = vst.msk [vmem:[#allocation2 + $0x598] sm:$0xf] %vm1054_vm1, %v15990_v0 }
 0x10f   : > { %1304 = vst.msk [vmem:[#allocation2 + $0x59c] sm:$0xf] %vm1054_vm1, %v15990_v0  ;;  %1305 = vst.msk [vmem:[#allocation2 + $0x5a0] sm:$0xf] %vm1054_vm1, %v15990_v0 }
 0x110   : > { %1306 = vst.msk [vmem:[#allocation2 + $0x5a4] sm:$0xf] %vm1054_vm1, %v15990_v0  ;;  %1307 = vst.msk [vmem:[#allocation2 + $0x5a8] sm:$0xf] %vm1054_vm1, %v15990_v0 }
 0x111   : > { %1310 = vst.msk [vmem:[#allocation2 + $0x1f8] sm:$0xf] %vm1054_vm1, %v15990_v0  ;;  %1311 = vst.msk [vmem:[#allocation2 + $0x1fc] sm:$0xf] %vm1054_vm1, %v15990_v0 }
 0x112   : > { %1314 = vst.msk [vmem:[#allocation2 + $0x214] sm:$0xf] %vm1054_vm1, %v15990_v0  ;;  %1315 = vst.msk [vmem:[#allocation2 + $0x218] sm:$0xf] %vm1054_vm1, %v15990_v0 }
 0x113   : > { %1317 = vst.msk [vmem:[#allocation2 + $0x230] sm:$0xf] %vm1054_vm1, %v15990_v0  ;;  %1318 = vst.msk [vmem:[#allocation2 + $0x234] sm:$0xf] %vm1054_vm1, %v15990_v0 }
 0x114   : > { %1320 = vst.msk [vmem:[#allocation2 + $0x24c] sm:$0xf] %vm1054_vm1, %v15990_v0  ;;  %1321 = vst.msk [vmem:[#allocation2 + $0x250] sm:$0xf] %vm1054_vm1, %v15990_v0 }
 0x115   : > { %1323 = vst.msk [vmem:[#allocation2 + $0x268] sm:$0xf] %vm1054_vm1, %v15990_v0  ;;  %1324 = vst.msk [vmem:[#allocation2 + $0x26c] sm:$0xf] %vm1054_vm1, %v15990_v0 }
 0x116   : > { %1326 = vst.msk [vmem:[#allocation2 + $0x284] sm:$0xf] %vm1054_vm1, %v15990_v0  ;;  %1327 = vst.msk [vmem:[#allocation2 + $0x288] sm:$0xf] %vm1054_vm1, %v15990_v0 }
 0x117   : > { %1329 = vst.msk [vmem:[#allocation2 + $0x2a0] sm:$0xf] %vm1054_vm1, %v15990_v0  ;;  %1330 = vst.msk [vmem:[#allocation2 + $0x2a4] sm:$0xf] %vm1054_vm1, %v15990_v0 }
 0x118   : > { %1332 = vst.msk [vmem:[#allocation2 + $0x2bc] sm:$0xf] %vm1054_vm1, %v15990_v0  ;;  %1333 = vst.msk [vmem:[#allocation2 + $0x2c0] sm:$0xf] %vm1054_vm1, %v15990_v0 }
 0x119   : > { %1335 = vst.msk [vmem:[#allocation2 + $0x2d8] sm:$0xf] %vm1054_vm1, %v15990_v0  ;;  %1336 = vst.msk [vmem:[#allocation2 + $0x2dc] sm:$0xf] %vm1054_vm1, %v15990_v0 }
 0x11a   : > { %1338 = vst.msk [vmem:[#allocation2 + $0x2f4] sm:$0xf] %vm1054_vm1, %v15990_v0  ;;  %1339 = vst.msk [vmem:[#allocation2 + $0x2f8] sm:$0xf] %vm1054_vm1, %v15990_v0 }
 0x11b   : > { %1341 = vst.msk [vmem:[#allocation2 + $0x310] sm:$0xf] %vm1054_vm1, %v15990_v0  ;;  %1342 = vst.msk [vmem:[#allocation2 + $0x314] sm:$0xf] %vm1054_vm1, %v15990_v0 }
 0x11c   : > { %1344 = vst.msk [vmem:[#allocation2 + $0x32c] sm:$0xf] %vm1054_vm1, %v15990_v0  ;;  %1345 = vst.msk [vmem:[#allocation2 + $0x330] sm:$0xf] %vm1054_vm1, %v15990_v0 }
 0x11d   : > { %1347 = vst.msk [vmem:[#allocation2 + $0x348] sm:$0xf] %vm1054_vm1, %v15990_v0  ;;  %1348 = vst.msk [vmem:[#allocation2 + $0x34c] sm:$0xf] %vm1054_vm1, %v15990_v0 }
 0x11e   : > { %1350 = vst.msk [vmem:[#allocation2 + $0x364] sm:$0xf] %vm1054_vm1, %v15990_v0  ;;  %1351 = vst.msk [vmem:[#allocation2 + $0x368] sm:$0xf] %vm1054_vm1, %v15990_v0 }
 0x11f   : > { %1353 = vst.msk [vmem:[#allocation2 + $0x380] sm:$0xf] %vm1054_vm1, %v15990_v0  ;;  %1354 = vst.msk [vmem:[#allocation2 + $0x384] sm:$0xf] %vm1054_vm1, %v15990_v0 }
 0x120   : > { %1356 = vst.msk [vmem:[#allocation2 + $0x39c] sm:$0xf] %vm1054_vm1, %v15990_v0  ;;  %1357 = vst.msk [vmem:[#allocation2 + $0x3a0] sm:$0xf] %vm1054_vm1, %v15990_v0 }
 0x121   : > { %1361 = vst.msk [vmem:[#allocation2 + $0x20c] sm:$0xf] %vm1054_vm1, %v15990_v0  ;;  %1364 = vst.msk [vmem:[#allocation2 + $0x228] sm:$0xf] %vm1054_vm1, %v15990_v0 }
 0x122   : > { %1367 = vst.msk [vmem:[#allocation2 + $0x244] sm:$0xf] %vm1054_vm1, %v15990_v0  ;;  %1370 = vst.msk [vmem:[#allocation2 + $0x260] sm:$0xf] %vm1054_vm1, %v15990_v0 }
 0x123   : > { %1373 = vst.msk [vmem:[#allocation2 + $0x27c] sm:$0xf] %vm1054_vm1, %v15990_v0  ;;  %1376 = vst.msk [vmem:[#allocation2 + $0x298] sm:$0xf] %vm1054_vm1, %v15990_v0 }
 0x124   : > { %1379 = vst.msk [vmem:[#allocation2 + $0x2b4] sm:$0xf] %vm1054_vm1, %v15990_v0  ;;  %1382 = vst.msk [vmem:[#allocation2 + $0x2d0] sm:$0xf] %vm1054_vm1, %v15990_v0 }
 0x125   : > { %1385 = vst.msk [vmem:[#allocation2 + $0x2ec] sm:$0xf] %vm1054_vm1, %v15990_v0  ;;  %1388 = vst.msk [vmem:[#allocation2 + $0x308] sm:$0xf] %vm1054_vm1, %v15990_v0 }
 0x126   : > { %1391 = vst.msk [vmem:[#allocation2 + $0x324] sm:$0xf] %vm1054_vm1, %v15990_v0  ;;  %1394 = vst.msk [vmem:[#allocation2 + $0x340] sm:$0xf] %vm1054_vm1, %v15990_v0 }
 0x127   : > { %1397 = vst.msk [vmem:[#allocation2 + $0x35c] sm:$0xf] %vm1054_vm1, %v15990_v0  ;;  %1400 = vst.msk [vmem:[#allocation2 + $0x378] sm:$0xf] %vm1054_vm1, %v15990_v0 }
 0x128   : > { %1403 = vst.msk [vmem:[#allocation2 + $0x394] sm:$0xf] %vm1054_vm1, %v15990_v0  ;;  %1406 = vst.msk [vmem:[#allocation2 + $0x3b0] sm:$0xf] %vm1054_vm1, %v15990_v0 }
 0x129   : > { %1313 = vst.msk [vmem:[#allocation2 + $0x200] sm:$0x1] %vm1312_vm2, %v15990_v0  ;;  %1316 = vst.msk [vmem:[#allocation2 + $0x21c] sm:$0x1] %vm1312_vm2, %v15990_v0 }
 0x12a   : > { %1319 = vst.msk [vmem:[#allocation2 + $0x238] sm:$0x1] %vm1312_vm2, %v15990_v0  ;;  %1322 = vst.msk [vmem:[#allocation2 + $0x254] sm:$0x1] %vm1312_vm2, %v15990_v0 }
 0x12b   : > { %1325 = vst.msk [vmem:[#allocation2 + $0x270] sm:$0x1] %vm1312_vm2, %v15990_v0  ;;  %1328 = vst.msk [vmem:[#allocation2 + $0x28c] sm:$0x1] %vm1312_vm2, %v15990_v0 }
 0x12c   : > { %1331 = vst.msk [vmem:[#allocation2 + $0x2a8] sm:$0x1] %vm1312_vm2, %v15990_v0  ;;  %1334 = vst.msk [vmem:[#allocation2 + $0x2c4] sm:$0x1] %vm1312_vm2, %v15990_v0 }
 0x12d   : > { %1337 = vst.msk [vmem:[#allocation2 + $0x2e0] sm:$0x1] %vm1312_vm2, %v15990_v0  ;;  %1340 = vst.msk [vmem:[#allocation2 + $0x2fc] sm:$0x1] %vm1312_vm2, %v15990_v0 }
 0x12e   : > { %1343 = vst.msk [vmem:[#allocation2 + $0x318] sm:$0x1] %vm1312_vm2, %v15990_v0  ;;  %1346 = vst.msk [vmem:[#allocation2 + $0x334] sm:$0x1] %vm1312_vm2, %v15990_v0 }
 0x12f   : > { %1349 = vst.msk [vmem:[#allocation2 + $0x350] sm:$0x1] %vm1312_vm2, %v15990_v0  ;;  %1352 = vst.msk [vmem:[#allocation2 + $0x36c] sm:$0x1] %vm1312_vm2, %v15990_v0 }
 0x130   : > { %1355 = vst.msk [vmem:[#allocation2 + $0x388] sm:$0x1] %vm1312_vm2, %v15990_v0  ;;  %1358 = vst.msk [vmem:[#allocation2 + $0x3a4] sm:$0x1] %vm1312_vm2, %v15990_v0 }
 0x131   : > { %1360 = vst.msk [vmem:[#allocation2 + $0x208] sm:$0xe] %vm1359_vm3, %v15990_v0  ;;  %1363 = vst.msk [vmem:[#allocation2 + $0x224] sm:$0xe] %vm1359_vm3, %v15990_v0 }
 0x132   : > { %1366 = vst.msk [vmem:[#allocation2 + $0x240] sm:$0xe] %vm1359_vm3, %v15990_v0  ;;  %1369 = vst.msk [vmem:[#allocation2 + $0x25c] sm:$0xe] %vm1359_vm3, %v15990_v0 }
 0x133   : > { %1372 = vst.msk [vmem:[#allocation2 + $0x278] sm:$0xe] %vm1359_vm3, %v15990_v0  ;;  %1375 = vst.msk [vmem:[#allocation2 + $0x294] sm:$0xe] %vm1359_vm3, %v15990_v0 }
 0x134   : > { %1378 = vst.msk [vmem:[#allocation2 + $0x2b0] sm:$0xe] %vm1359_vm3, %v15990_v0  ;;  %1381 = vst.msk [vmem:[#allocation2 + $0x2cc] sm:$0xe] %vm1359_vm3, %v15990_v0 }
 0x135   : > { %1384 = vst.msk [vmem:[#allocation2 + $0x2e8] sm:$0xe] %vm1359_vm3, %v15990_v0  ;;  %1387 = vst.msk [vmem:[#allocation2 + $0x304] sm:$0xe] %vm1359_vm3, %v15990_v0 }
 0x136   : > { %1390 = vst.msk [vmem:[#allocation2 + $0x320] sm:$0xe] %vm1359_vm3, %v15990_v0  ;;  %1393 = vst.msk [vmem:[#allocation2 + $0x33c] sm:$0xe] %vm1359_vm3, %v15990_v0 }
 0x137   : > { %1396 = vst.msk [vmem:[#allocation2 + $0x358] sm:$0xe] %vm1359_vm3, %v15990_v0  ;;  %1399 = vst.msk [vmem:[#allocation2 + $0x374] sm:$0xe] %vm1359_vm3, %v15990_v0 }
 0x138   : > { %1402 = vst.msk [vmem:[#allocation2 + $0x390] sm:$0xe] %vm1359_vm3, %v15990_v0  ;;  %1405 = vst.msk [vmem:[#allocation2 + $0x3ac] sm:$0xe] %vm1359_vm3, %v15990_v0  ;;  %v11030_v0 = vld [vmem:[#allocation2 + $0x448] sm:$0xfc]  }
 0x139   : > { %v10904_v9 = vld [vmem:[#allocation2 + $0x17c] ss:$0 sps:$4 sm:$0x11]   ;;  %1603 = vst.msk [vmem:[#allocation2 + $0x200] sm:$0xe] %vm1359_vm3, %v1475_v10  ;;  %v1492_v10 = vrot.slane %v1415_v63, 7 }
 0x13a   : > { %v2217_v16 = vrot.slane %v10904_v9, 7  ;;  %v10906_v20 = vld [vmem:[#allocation2 + $0x198] ss:$0 sps:$4 sm:$0x11]   ;;  %1604 = vst.msk [vmem:[#allocation2 + $0x204] sm:$0xf] %vm1054_vm1, %v1478_v29 }
 0x13b   : > { %v10908_v26 = vld [vmem:[#allocation2 + $0x1b4] ss:$0 sps:$4 sm:$0x11]   ;;  %v2220_v27 = vrot.slane %v10906_v20, 7  ;;  %1605 = vst.msk [vmem:[#allocation2 + $0x208] sm:$0x1] %vm1312_vm2, %v1479_v45 }
 0x13c   : > { %v2218_v23 = vsel %vm1472_vm4, %v2216_v11, %v2217_v16  ;;  %v10909_v28 = vld [vmem:[#allocation2 + $0x160] ss:$0 sps:$4 sm:$0x11]   ;;  %v2223_v32 = vrot.slane %v10908_v26, 7  ;;  %1606 = vst.msk [vmem:[#allocation2 + $0x21c] sm:$0xe] %vm1359_vm3, %v1480_v48  ;;  %v1488_v16 = vsel %vm12815_vm6, %v1486_v4, %v1487_v62 }
 0x13d   : > { %2267 = vrot.lane.b32.xlu1 %v2218_v23, %s11875_s24  ;;  %v2214_v35 = vrot.slane %v10909_v28, 7  ;;  %v10911_v37 = vld [vmem:[#allocation2 + $0x1d0] ss:$0 sps:$4 sm:$0x11]   ;;  %v2221_v38 = vsel %vm1472_vm4, %v2219_v24, %v2220_v27  ;;  %1609 = vst.msk [vmem:[#allocation2 + $0x238] sm:$0xe] %vm1359_vm3, %v1485_v56  ;;  %v1493_v27 = vsel %vm12815_vm6, %v1491_v17, %v1492_v10 }
 0x13e   : > { %v2226_v42 = vrot.slane %v10911_v37, 7  ;;  %v12841_v44 = vld [vmem:[#allocation2 + $0x1ec] ss:$0 sps:$4 sm:$0x11]   ;;  %v2224_v53 = vsel %vm1472_vm4, %v2222_v31, %v2223_v32  ;;  %1607 = vst.msk [vmem:[#allocation2 + $0x220] sm:$0xf] %vm1054_vm1, %v1483_v2 }
 0x13f   : > { %v2229_v50 = vrot.slane %v12841_v44, 7  ;;  %v2215_v58 = vsel %vm1472_vm4, %v2213_v15, %v2214_v35  ;;  %1608 = vst.msk [vmem:[#allocation2 + $0x224] sm:$0x1] %vm1312_vm2, %v1484_v61  ;;  %v1489_v9 = vrot.slane %v1487_v62, 4  ;;  %v1495_v11 = vrot.slane %v1416_v6, 7 }
 0x140   : > { %v1718_v46 = vld [vmem:[#allocation2 + $0x200] sm:$0xe]  ;;  %v2227_v59 = vsel %vm1472_vm4, %v12838_v41, %v2226_v42  ;;  %2263 = vrot.lane.b32.xlu0 %v2215_v58, %s11875_s24  ;;  %1612 = vst.msk [vmem:[#allocation2 + $0x254] sm:$0xe] %vm1359_vm3, %v1490_v5  ;;  %v1500_v20 = vrot.slane %v1418_v14, 7  ;;  %v1494_v22 = vrot.slane %v1492_v10, 4 }
 0x141   : > { %2271 = vrot.lane.b32.xlu1 %v2221_v38, %s11875_s24  ;;  %v12858_v60 = vld [vmem:[#allocation2 + $0x204] sm:$0xf]  ;;  %1610 = vst.msk [vmem:[#allocation2 + $0x23c] sm:$0xf] %vm1054_vm1, %v1488_v16  ;;  %v1496_v23 = vrot.slane %v1495_v11, 4  ;;  %v1499_v24 = vrot.slane %v1497_v12, 4  ;;  %v2230_v36 = vsel %vm1472_vm4, %v12845_v49, %v2229_v50 }
 0x142   : > { %v9786_v1 = vcombine.low %v1718_v46, %v12858_v60  ;;  %1611 = vst.msk [vmem:[#allocation2 + $0x240] sm:$0x1] %vm1312_vm2, %v1489_v9  ;;  %v1420_v26 = vld [vmem:[%s12093_s13 + $0x30] sm:$0xf]  ;;  %v1501_v28 = vrot.slane %v1500_v20, 4  ;;  %v1504_v35 = vrot.slane %v1502_v25, 4 }
 0x143   : > { %1615 = vst.msk [vmem:[#allocation2 + $0x270] sm:$0xe] %vm1359_vm3, %v1495_v11  ;;  %1618 = vst.msk [vmem:[#allocation2 + $0x28c] sm:$0xe] %vm1359_vm3, %v1500_v20  ;;  %v1421_v29 = vld [vmem:[%s12093_s13 + $0x34] sm:$0xf]  ;;  %v1498_v33 = vsel %vm12815_vm6, %v1496_v23, %v1497_v12 }
 0x144   : > { %v12872_v15 = vrot.slane %v9786_v1, 7  ;;  %v1505_v30 = vrot.slane %v1420_v26, 7  ;;  %v1422_v31 = vld [vmem:[%s12093_s13 + $0x38] sm:$0xf]  ;;  %1613 = vst.msk [vmem:[#allocation2 + $0x258] sm:$0xf] %vm1054_vm1, %v1493_v27  ;;  %2277 = vrot.lane.b32.xlu0 %v12838_v41, %s11875_s24  ;;  %v1503_v38 = vsel %vm12815_vm6, %v1501_v28, %v1502_v25 }
 0x145   : > { %2275 = vrot.lane.b32.xlu1 %v2224_v53, %s11875_s24  ;;  %v10915_v32 = vld [vmem:[#allocation2 + $0x208] ss:$0 sps:$4 sm:$0x11]   ;;  %1614 = vst.msk [vmem:[#allocation2 + $0x25c] sm:$0x1] %vm1312_vm2, %v1494_v22  ;;  %v1507_v42 = vrot.slane %v1421_v29, 7 }
 0x146   : > { %1617 = vst.msk [vmem:[#allocation2 + $0x278] sm:$0x1] %vm1312_vm2, %v1499_v24  ;;  %v1721_v37 = vld [vmem:[#allocation2 + $0x21c] sm:$0xe]  ;;  %v1506_v39 = vrot.slane %v1505_v30, 4  ;;  %v2232_v44 = vrot.slane %v10915_v32, 7 }
 0x147   : > { %1616 = vst.msk [vmem:[#allocation2 + $0x274] sm:$0xf] %vm1054_vm1, %v1498_v33  ;;  %v1724_v45 = vld [vmem:[#allocation2 + $0x238] sm:$0xe]  ;;  %1619 = vst.msk [vmem:[#allocation2 + $0x290] sm:$0xf] %vm1054_vm1, %v1503_v38 }
 0x148   : > { %1621 = vst.msk [vmem:[#allocation2 + $0x2a8] sm:$0xe] %vm1359_vm3, %v1505_v30  ;;  %v1510_v41 = vrot.slane %v1422_v31, 7  ;;  %v1512_v46 = vrot.slane %v1423_v43, 7  ;;  %v12904_v47 = vld [vmem:[#allocation2 + $0x220] sm:$0xf]  ;;  %v1508_v48 = vsel %vm12815_vm6, %v1506_v39, %v1507_v42  ;;  %2281 = vrot.lane.b32.xlu0 %v12845_v49, %s11875_s24  ;;  %v2233_v54 = vsel %vm1472_vm4, %v12872_v15, %v2232_v44 }
 0x149   : > { %2279 = vrot.lane.b32.xlu1 %v2227_v59, %s11875_s24  ;;  %1620 = vst.msk [vmem:[#allocation2 + $0x294] sm:$0x1] %vm1312_vm2, %v1504_v35  ;;  %v1509_v50 = vrot.slane %v1507_v42, 4  ;;  %v9788_v51 = vcombine.low %v1721_v37, %v12904_v47  ;;  %v10917_v52 = vld [vmem:[#allocation2 + $0x224] ss:$0 sps:$4 sm:$0x11]  }
 0x14a   : > { %1622 = vst.msk [vmem:[#allocation2 + $0x2ac] sm:$0xf] %vm1054_vm1, %v1508_v48  ;;  %v1511_v53 = vrot.slane %v1510_v41, 4  ;;  %v12916_v55 = vld [vmem:[#allocation2 + $0x23c] sm:$0xf]  ;;  %v2235_v58 = vrot.slane %v10917_v52, 7 }
 0x14b   : > { %1624 = vst.msk [vmem:[#allocation2 + $0x2c4] sm:$0xe] %vm1359_vm3, %v1510_v41  ;;  %v1727_v56 = vld [vmem:[#allocation2 + $0x254] sm:$0xe]  ;;  %v2234_v57 = vrot.slane %v9788_v51, 7  ;;  %v9790_v59 = vcombine.low %v1724_v45, %v12916_v55  ;;  %v1514_v6 = vrot.slane %v1512_v46, 4 }
 0x14c   : > { %1623 = vst.msk [vmem:[#allocation2 + $0x2b0] sm:$0x1] %vm1312_vm2, %v1509_v50  ;;  %v10919_v61 = vld [vmem:[#allocation2 + $0x240] ss:$0 sps:$4 sm:$0x11]   ;;  %v1513_v62 = vsel %vm12815_vm6, %v1511_v53, %v1512_v46  ;;  %2285 = vrot.lane.b32.xlu0 %v12872_v15, %s11875_s24 }
 0x14d   : > { %2283 = vrot.lane.b32.xlu1 %v2230_v36, %s11875_s24  ;;  %v12922_v63 = vld [vmem:[#allocation2 + $0x258] sm:$0xf]  ;;  %1625 = vst.msk [vmem:[#allocation2 + $0x2c8] sm:$0xf] %vm1054_vm1, %v1513_v62  ;;  %v2236_v2 = vsel %vm1472_vm4, %v2234_v57, %v2235_v58  ;;  %v2237_v4 = vrot.slane %v9790_v59, 7  ;;  %v2238_v5 = vrot.slane %v10919_v61, 7 }
 0x14e   : > { %v9792_v49 = vcombine.low %v1727_v56, %v12922_v63  ;;  %v10921_v1 = vld [vmem:[#allocation2 + $0x25c] ss:$0 sps:$4 sm:$0x11]   ;;  %v1730_v8 = vld [vmem:[#allocation2 + $0x270] sm:$0xe] }
 0x14f   : > { %v12930_v9 = vld [vmem:[#allocation2 + $0x274] sm:$0xf]  ;;  %v10923_v10 = vld [vmem:[#allocation2 + $0x278] ss:$0 sps:$4 sm:$0x11]   ;;  %v2241_v12 = vrot.slane %v10921_v1, 7  ;;  %v2239_v14 = vsel %vm1472_vm4, %v2237_v4, %v2238_v5 }
 0x150   : > { %1626 = vst.msk [vmem:[#allocation2 + $0x2cc] sm:$0x1] %vm1312_vm2, %v1514_v6  ;;  %v2240_v11 = vrot.slane %v9792_v49, 7  ;;  %2289 = vrot.lane.b32.xlu0 %v2234_v57, %s11875_s24  ;;  %v9794_v15 = vcombine.low %v1730_v8, %v12930_v9  ;;  %v1733_v16 = vld [vmem:[#allocation2 + $0x28c] sm:$0xe]  ;;  %v2244_v18 = vrot.slane %v10923_v10, 7 }
 0x151   : > { %2287 = vrot.lane.b32.xlu1 %v2233_v54, %s11875_s24  ;;  %v12937_v17 = vld [vmem:[#allocation2 + $0x290] sm:$0xf]  ;;  %v10925_v20 = vld [vmem:[#allocation2 + $0x294] ss:$0 sps:$4 sm:$0x11]  }
 0x152   : > { %v1424_v22 = vld [vmem:[%s12093_s13 + $0x40] sm:$0xf]  ;;  %v1425_v23 = vld [vmem:[%s12093_s13 + $0x44] sm:$0xf]  ;;  %v9796_v24 = vcombine.low %v1733_v16, %v12937_v17  ;;  %v1736_v25 = vld [vmem:[#allocation2 + $0x2a8] sm:$0xe]  ;;  %v2242_v29 = vsel %vm1472_vm4, %v2240_v11, %v2241_v12 }
 0x153   : > { %v1515_v26 = vrot.slane %v1424_v22, 7  ;;  %v1517_v27 = vrot.slane %v1425_v23, 7  ;;  %v1426_v28 = vld [vmem:[%s12093_s13 + $0x48] sm:$0xf]  ;;  %v2243_v30 = vrot.slane %v9794_v15, 7  ;;  %v2247_v45 = vrot.slane %v10925_v20, 7 }
 0x154   : > { %2293 = vrot.lane.b32.xlu0 %v2237_v4, %s11875_s24  ;;  %v12946_v31 = vld [vmem:[#allocation2 + $0x2ac] sm:$0xf]  ;;  %v1427_v32 = vld [vmem:[%s12093_s13 + $0x4c] sm:$0xf]  ;;  %v1520_v33 = vrot.slane %v1426_v28, 7  ;;  %v2246_v39 = vrot.slane %v9796_v24, 7 }
 0x155   : > { %2291 = vrot.lane.b32.xlu1 %v2236_v2, %s11875_s24  ;;  %v1516_v35 = vrot.slane %v1515_v26, 4  ;;  %1627 = vst.msk [vmem:[#allocation2 + $0x2e0] sm:$0xe] %vm1359_vm3, %v1515_v26  ;;  %v1519_v36 = vrot.slane %v1517_v27, 4  ;;  %v1522_v38 = vrot.slane %v1427_v32, 7  ;;  %v9798_v42 = vcombine.low %v1736_v25, %v12946_v31 }
 0x156   : > { %v1521_v37 = vrot.slane %v1520_v33, 4  ;;  %1630 = vst.msk [vmem:[#allocation2 + $0x2fc] sm:$0xe] %vm1359_vm3, %v1520_v33  ;;  %v2245_v44 = vsel %vm1472_vm4, %v2243_v30, %v2244_v18  ;;  %v10927_v41 = vld [vmem:[#allocation2 + $0x2b0] ss:$0 sps:$4 sm:$0x11]   ;;  %v2248_v53 = vsel %vm1472_vm4, %v2246_v39, %v2247_v45 }
 0x157   : > { %v1518_v43 = vsel %vm12815_vm6, %v1516_v35, %v1517_v27  ;;  %1629 = vst.msk [vmem:[#allocation2 + $0x2e8] sm:$0x1] %vm1312_vm2, %v1519_v36  ;;  %v1524_v48 = vrot.slane %v1522_v38, 4  ;;  %v1739_v50 = vld [vmem:[#allocation2 + $0x2c4] sm:$0xe]  ;;  %v2249_v52 = vrot.slane %v9798_v42, 7 }
 0x158   : > { %2297 = vrot.lane.b32.xlu0 %v2240_v11, %s11875_s24  ;;  %1628 = vst.msk [vmem:[#allocation2 + $0x2e4] sm:$0xf] %vm1054_vm1, %v1518_v43  ;;  %v1523_v46 = vsel %vm12815_vm6, %v1521_v37, %v1522_v38  ;;  %v12961_v51 = vld [vmem:[#allocation2 + $0x2c8] sm:$0xf]  ;;  %v2250_v54 = vrot.slane %v10927_v41, 7 }
 0x159   : > { %2295 = vrot.lane.b32.xlu1 %v2239_v14, %s11875_s24  ;;  %1631 = vst.msk [vmem:[#allocation2 + $0x300] sm:$0xf] %vm1054_vm1, %v1523_v46  ;;  %v9800_v56 = vcombine.low %v1739_v50, %v12961_v51  ;;  %v10929_v57 = vld [vmem:[#allocation2 + $0x2cc] ss:$0 sps:$4 sm:$0x11]  }
 0x15a   : > { %1632 = vst.msk [vmem:[#allocation2 + $0x304] sm:$0x1] %vm1312_vm2, %v1524_v48  ;;  %v2251_v61 = vsel %vm1472_vm4, %v2249_v52, %v2250_v54  ;;  %v2253_v49 = vrot.slane %v10929_v57, 7  ;;  %v1749_v14 = vld [vmem:[#allocation2 + $0x17c] sm:$0xf] }
 0x15b   : > { %v2252_v62 = vrot.slane %v9800_v56, 7  ;;  %v1748_v15 = vld [vmem:[#allocation2 + $0x160] sm:$0xf]  ;;  %v9807_v22 = vcombine.low %v12804_v3, %v1749_v14  ;;  %v1751_v25 = vld [vmem:[#allocation2 + $0x1b4] sm:$0xf] }
 0x15c   : > { %2301 = vrot.lane.b32.xlu0 %v2243_v30, %s11875_s24  ;;  %v1742_v58 = vld [vmem:[#allocation2 + $0x2e0] sm:$0xe]  ;;  %v9806_v23 = vcombine.low %v12808_v7, %v1748_v15  ;;  %v1750_v26 = vld [vmem:[#allocation2 + $0x198] sm:$0xf]  ;;  %v1753_v30 = vld [vmem:[#allocation2 + $0x1ec] sm:$0xf] }
 0x15d   : > { %2299 = vrot.lane.b32.xlu1 %v2242_v29, %s11875_s24  ;;  %v1745_v4 = vld [vmem:[#allocation2 + $0x2fc] sm:$0xe]  ;;  %v2254_v8 = vsel %vm1472_vm4, %v2252_v62, %v2253_v49  ;;  %v2374_v27 = vrot.slane %v9807_v22, 6  ;;  %v9809_v29 = vcombine.low %v12821_v21, %v1751_v25  ;;  %v9808_v3 = vcombine.low %v12811_v13, %v1750_v26  ;;  %v1752_v7 = vld [vmem:[#allocation2 + $0x1d0] sm:$0xf] }
 0x15e   : > { %v10931_v2 = vld [vmem:[#allocation2 + $0x2e8] ss:$0 sps:$4 sm:$0x11]   ;;  %v2373_v28 = vrot.slane %v9806_v23, 6  ;;  %v9811_v33 = vcombine.low %v12836_v40, %v1753_v30  ;;  %v1755_v35 = vld [vmem:[#allocation2 + $0x224] sm:$0xf]  ;;  %v9810_v37 = vcombine.low %v12829_v34, %v1752_v7 }
 0x15f   : > { %v12970_v59 = vld [vmem:[#allocation2 + $0x2e4] sm:$0xf]  ;;  %v2256_v11 = vrot.slane %v10931_v2, 7  ;;  %v2376_v32 = vrot.slane %v9809_v29, 6  ;;  %v2375_v36 = vrot.slane %v9808_v3, 6  ;;  %v9813_v13 = vcombine.low %v12904_v47, %v1755_v35 }
 0x160   : > { %2305 = vrot.lane.b32.xlu0 %v2246_v39, %s11875_s24  ;;  %v9802_v1 = vcombine.low %v1742_v58, %v12970_v59  ;;  %v12975_v5 = vld [vmem:[#allocation2 + $0x300] sm:$0xf]  ;;  %v1754_v38 = vld [vmem:[#allocation2 + $0x208] sm:$0xf]  ;;  %v2378_v21 = vrot.slane %v9811_v33, 6  ;;  %v2377_v42 = vrot.slane %v9810_v37, 6 }
 0x161   : > { %2303 = vrot.lane.b32.xlu1 %v2245_v44, %s11875_s24  ;;  %v10933_v6 = vld [vmem:[#allocation2 + $0x304] ss:$0 sps:$4 sm:$0x11]   ;;  %v9804_v12 = vcombine.low %v1745_v4, %v12975_v5  ;;  %v1757_v39 = vld [vmem:[#allocation2 + $0x25c] sm:$0xf]  ;;  %v9812_v43 = vcombine.low %v12858_v60, %v1754_v38  ;;  %v2380_v45 = vrot.slane %v9813_v13, 6 }
 0x162   : > { %v2255_v10 = vrot.slane %v9802_v1, 7  ;;  %v2259_v20 = vrot.slane %v10933_v6, 7  ;;  %v1756_v44 = vld [vmem:[#allocation2 + $0x240] sm:$0xf]  ;;  %v1759_v40 = vld [vmem:[#allocation2 + $0x294] sm:$0xf]  ;;  %v9815_v34 = vcombine.low %v12922_v63, %v1757_v39 }
 0x163   : > { %v2258_v18 = vrot.slane %v9804_v12, 7  ;;  %v2379_v41 = vrot.slane %v9812_v43, 6  ;;  %v9814_v47 = vcombine.low %v12916_v55, %v1756_v44  ;;  %v9817_v46 = vcombine.low %v12937_v17, %v1759_v40  ;;  %v1758_v48 = vld [vmem:[#allocation2 + $0x278] sm:$0xf]  ;;  %v1761_v50 = vld [vmem:[#allocation2 + $0x2cc] sm:$0xf] }
 0x164   : > { %2309 = vrot.lane.b32.xlu0 %v2249_v52, %s11875_s24  ;;  %v2257_v16 = vsel %vm1472_vm4, %v2255_v10, %v2256_v11  ;;  %v2382_v60 = vrot.slane %v9815_v34, 6  ;;  %v1760_v54 = vld [vmem:[#allocation2 + $0x2b0] sm:$0xf]  ;;  %v1428_v56 = vld [vmem:[%s12093_s13 + $0x50] sm:$0xf]  ;;  %v9819_v55 = vcombine.low %v12961_v51, %v1761_v50 }
 0x165   : > { %2307 = vrot.lane.b32.xlu1 %v2248_v53, %s11875_s24  ;;  %v2260_v24 = vsel %vm1472_vm4, %v2258_v18, %v2259_v20  ;;  %v2381_v52 = vrot.slane %v9814_v47, 6  ;;  %v9816_v53 = vcombine.low %v12930_v9, %v1758_v48  ;;  %v2384_v63 = vrot.slane %v9817_v46, 6  ;;  %v1429_v57 = vld [vmem:[%s12093_s13 + $0x54] sm:$0xf]  ;;  %v1762_v1 = vld [vmem:[#allocation2 + $0x2e8] sm:$0xf] }
 0x166   : > { %v1525_v17 = vrot.slane %v1428_v56, 7  ;;  %v1527_v58 = vrot.slane %v1429_v57, 7  ;;  %v1763_v49 = vld [vmem:[#allocation2 + $0x304] sm:$0xf]  ;;  %v1430_v4 = vld [vmem:[%s12093_s13 + $0x58] sm:$0xf]  ;;  %v9820_v14 = vcombine.low %v12970_v59, %v1762_v1 }
 0x167   : > { %v1431_v6 = vld [vmem:[%s12093_s13 + $0x5c] sm:$0xf]  ;;  %v2386_v51 = vrot.slane %v9819_v55, 6  ;;  %v1433_v20 = vld [vmem:[%s12093_s13 + $0x64] sm:$0xf] }
 0x168   : > { %2313 = vrot.lane.b32.xlu0 %v2252_v62, %s11875_s24  ;;  %v9818_v62 = vcombine.low %v12946_v31, %v1760_v54  ;;  %v1526_v9 = vrot.slane %v1525_v17, 4  ;;  %v1529_v2 = vrot.slane %v1527_v58, 4  ;;  %1633 = vst.msk [vmem:[#allocation2 + $0x318] sm:$0xe] %vm1359_vm3, %v1525_v17  ;;  %v1532_v31 = vrot.slane %v1431_v6, 7  ;;  %v13073_v17 = vpop.permute.xlu1 %2265 }
 0x169   : > { %2311 = vrot.lane.b32.xlu1 %v2251_v61, %s11875_s24  ;;  %v2383_v61 = vrot.slane %v9816_v53, 6  ;;  %v1537_v59 = vrot.slane %v1433_v20, 7  ;;  %v1435_v29 = vld [vmem:[%s12093_s13 + $0x6c] sm:$0xf]  ;;  %v1437_v13 = vld [vmem:[%s12093_s13 + $0x74] sm:$0xf] }
 0x16a   : > { %v1528_v11 = vsel %vm12815_vm6, %v1526_v9, %v1527_v58  ;;  %1635 = vst.msk [vmem:[#allocation2 + $0x320] sm:$0x1] %vm1312_vm2, %v1529_v2  ;;  %v2385_v12 = vrot.slane %v9818_v62, 6  ;;  %v10935_v3 = vld [vmem:[#allocation2 + $0x204] ss:$0 sps:$4 sm:$0x33]   ;;  %v13075_v58 = vpop.permute.xlu0 %2261 }
 0x16b   : > { %1634 = vst.msk [vmem:[#allocation2 + $0x31c] sm:$0xf] %vm1054_vm1, %v1528_v11  ;;  %v1539_v26 = vrot.slane %v1537_v59, 4  ;;  %v10936_v7 = vld [vmem:[#allocation2 + $0x1fc] sm:$0xfc]   ;;  %v1547_v43 = vrot.slane %v1437_v13, 7 }
 0x16c   : > { %2317 = vrot.lane.b32.xlu0 %v2255_v10, %s11875_s24  ;;  %v9821_v10 = vcombine.low %v12975_v5, %v1763_v49  ;;  %v10937_v35 = vld [vmem:[#allocation2 + $0x220] ss:$0 sps:$4 sm:$0x33]   ;;  %v10938_v38 = vld [vmem:[#allocation2 + $0x218] sm:$0xfc]  }
 0x16d   : > { %2315 = vrot.lane.b32.xlu1 %v2254_v8, %s11875_s24  ;;  %v1530_v8 = vrot.slane %v1430_v4, 7  ;;  %1641 = vst.msk [vmem:[#allocation2 + $0x358] sm:$0x1] %vm1312_vm2, %v1539_v26  ;;  %v10939_v39 = vld [vmem:[#allocation2 + $0x23c] ss:$0 sps:$4 sm:$0x33]  }
 0x16e   : > { %v2388_v23 = vrot.slane %v9821_v10, 6  ;;  %v10940_v44 = vld [vmem:[#allocation2 + $0x234] sm:$0xfc]   ;;  %v1549_v34 = vrot.slane %v1547_v43, 4  ;;  %v1438_v47 = vld [vmem:[%s12093_s13 + $0x78] sm:$0xf]  ;;  %v13081_v49 = vpop.permute.xlu0 %2269 }
 0x16f   : > { %v1531_v15 = vrot.slane %v1530_v8, 4  ;;  %1636 = vst.msk [vmem:[#allocation2 + $0x334] sm:$0xe] %vm1359_vm3, %v1530_v8  ;;  %v10942_v46 = vld [vmem:[#allocation2 + $0x250] sm:$0xfc]   ;;  %v1550_v48 = vrot.slane %v1438_v47, 7 }
 0x170   : > { %2321 = vrot.lane.b32.xlu0 %v2258_v18, %s11875_s24  ;;  %v1432_v18 = vld [vmem:[%s12093_s13 + $0x60] sm:$0xf]  ;;  %1647 = vst.msk [vmem:[#allocation2 + $0x390] sm:$0x1] %vm1312_vm2, %v1549_v34  ;;  %v1439_v50 = vld [vmem:[%s12093_s13 + $0x7c] sm:$0xf] }
 0x171   : > { %2319 = vrot.lane.b32.xlu1 %v2257_v16, %s11875_s24  ;;  %v1534_v16 = vrot.slane %v1532_v31, 4  ;;  %v1533_v5 = vsel %vm12815_vm6, %v1531_v15, %v1532_v31  ;;  %v1535_v22 = vrot.slane %v1432_v18, 7  ;;  %1648 = vst.msk [vmem:[#allocation2 + $0x3a4] sm:$0xe] %vm1359_vm3, %v1550_v48  ;;  %v10944_v56 = vld [vmem:[#allocation2 + $0x26c] sm:$0xfc]  }
 0x172   : > { %1637 = vst.msk [vmem:[#allocation2 + $0x338] sm:$0xf] %vm1054_vm1, %v1533_v5  ;;  %v10943_v53 = vld [vmem:[#allocation2 + $0x274] ss:$0 sps:$4 sm:$0x33]   ;;  %v13087_v4 = vpop.permute.xlu0 %2273 }
 0x173   : > { %1638 = vst.msk [vmem:[#allocation2 + $0x33c] sm:$0x1] %vm1312_vm2, %v1534_v16  ;;  %v1536_v25 = vrot.slane %v1535_v22, 4  ;;  %v10947_v57 = vld [vmem:[#allocation2 + $0x290] ss:$0 sps:$4 sm:$0x33]  }
 0x174   : > { %2389 = vrot.lane.b32.xlu0 %v2373_v28, %s11876_s7  ;;  %1639 = vst.msk [vmem:[#allocation2 + $0x350] sm:$0xe] %vm1359_vm3, %v1535_v22  ;;  %v1434_v28 = vld [vmem:[%s12093_s13 + $0x68] sm:$0xf]  ;;  %v10948_v55 = vld [vmem:[#allocation2 + $0x288] sm:$0xfc]  }
 0x175   : > { %2323 = vrot.lane.b32.xlu1 %v2260_v24, %s11875_s24  ;;  %v2387_v24 = vrot.slane %v9820_v14, 6  ;;  %v1540_v30 = vrot.slane %v1434_v28, 7  ;;  %v10951_v19 = vld [vmem:[#allocation2 + $0x2ac] ss:$0 sps:$4 sm:$0x33]  }
 0x176   : > { %v10955_v1 = vld [vmem:[#allocation2 + $0x2c8] ss:$0 sps:$4 sm:$0x33]   ;;  %v10956_v9 = vld [vmem:[#allocation2 + $0x2c0] sm:$0xfc]  }
 0x177   : > { %v1541_v33 = vrot.slane %v1540_v30, 4  ;;  %1642 = vst.msk [vmem:[#allocation2 + $0x36c] sm:$0xe] %vm1359_vm3, %v1540_v30  ;;  %v10959_v6 = vld [vmem:[#allocation2 + $0x2e4] ss:$0 sps:$4 sm:$0x33]  }
 0x178   : > { %2393 = vrot.lane.b32.xlu0 %v2375_v36, %s11876_s7  ;;  %v10960_v8 = vld [vmem:[#allocation2 + $0x2dc] sm:$0xfc]   ;;  %v10967_v15 = vld [vmem:[#allocation2 + $0x31c] ss:$0 sps:$4 sm:$0x33]  }
 0x179   : > { %2391 = vrot.lane.b32.xlu1 %v2374_v27, %s11876_s7  ;;  %v1538_v27 = vsel %vm12815_vm6, %v1536_v25, %v1537_v59  ;;  %v10963_v11 = vld [vmem:[#allocation2 + $0x300] ss:$0 sps:$4 sm:$0x33]   ;;  %v10964_v31 = vld [vmem:[#allocation2 + $0x2f8] sm:$0xfc]  }
 0x17a   : > { %1640 = vst.msk [vmem:[#allocation2 + $0x354] sm:$0xf] %vm1054_vm1, %v1538_v27  ;;  %v10968_v16 = vld [vmem:[#allocation2 + $0x314] sm:$0xfc]   ;;  %v11000_v47 = vld [vmem:[#allocation2 + $0x2dc] sm:$0xfc]  }
 0x17b   : > { %v10971_v20 = vld [vmem:[#allocation2 + $0x338] ss:$0 sps:$4 sm:$0x33]   ;;  %v10972_v22 = vld [vmem:[#allocation2 + $0x330] sm:$0xfc]  }
 0x17c   : > { %2397 = vrot.lane.b32.xlu0 %v2377_v42, %s11876_s7  ;;  %v10976_v25 = vld [vmem:[#allocation2 + $0x34c] sm:$0xfc]   ;;  %v10991_v13 = vld [vmem:[#allocation2 + $0x2ac] ss:$0 sps:$4 sm:$0x33]  }
 0x17d   : > { %2395 = vrot.lane.b32.xlu1 %v2376_v32, %s11876_s7  ;;  %v1542_v32 = vrot.slane %v1435_v29, 7 }
 0x17e   : > { %v10980_v29 = vld [vmem:[#allocation2 + $0x368] sm:$0xfc]  }
 0x17f   : > { %v1544_v36 = vrot.slane %v1542_v32, 4  ;;  %v1543_v37 = vsel %vm12815_vm6, %v1541_v33, %v1542_v32 }
 0x180   : > { %2401 = vrot.lane.b32.xlu0 %v2379_v41, %s11876_s7  ;;  %1643 = vst.msk [vmem:[#allocation2 + $0x370] sm:$0xf] %vm1054_vm1, %v1543_v37  ;;  %v10988_v37 = vld [vmem:[#allocation2 + $0x3a0] sm:$0xfc]  }
 0x181   : > { %2399 = vrot.lane.b32.xlu1 %v2378_v21, %s11876_s7  ;;  %1644 = vst.msk [vmem:[#allocation2 + $0x374] sm:$0x1] %vm1312_vm2, %v1544_v36  ;;  %v1436_v21 = vld [vmem:[%s12093_s13 + $0x70] sm:$0xf] }
 0x182   : > { %v1545_v42 = vrot.slane %v1436_v21, 7 }
 0x184   : > { %2405 = vrot.lane.b32.xlu0 %v2381_v52, %s11876_s7  ;;  %v1546_v40 = vrot.slane %v1545_v42, 4  ;;  %1645 = vst.msk [vmem:[#allocation2 + $0x388] sm:$0xe] %vm1359_vm3, %v1545_v42  ;;  %v1552_v52 = vrot.slane %v1439_v50, 7 }
 0x185   : > { %2403 = vrot.lane.b32.xlu1 %v2380_v45, %s11876_s7  ;;  %v10941_v45 = vld [vmem:[#allocation2 + $0x258] ss:$0 sps:$4 sm:$0x33]   ;;  %v11003_v50 = vld [vmem:[#allocation2 + $0x300] ss:$0 sps:$4 sm:$0x33]  }
 0x186   : > { %v1548_v41 = vsel %vm12815_vm6, %v1546_v40, %v1547_v43  ;;  %v10996_v40 = vld [vmem:[#allocation2 + $0x2c0] sm:$0xfc]  }
 0x187   : > { %1646 = vst.msk [vmem:[#allocation2 + $0x38c] sm:$0xf] %vm1054_vm1, %v1548_v41  ;;  %v10979_v28 = vld [vmem:[#allocation2 + $0x370] ss:$0 sps:$4 sm:$0x33]  }
 0x188   : > { %2409 = vrot.lane.b32.xlu0 %v2383_v61, %s11876_s7  ;;  %v10952_v61 = vld [vmem:[#allocation2 + $0x2a4] sm:$0xfc]   ;;  %v10999_v41 = vld [vmem:[#allocation2 + $0x2e4] ss:$0 sps:$4 sm:$0x33]  }
 0x189   : > { %2407 = vrot.lane.b32.xlu1 %v2382_v60, %s11876_s7  ;;  %v1551_v60 = vrot.slane %v1550_v48, 4 }
 0x18b   : > { %v1553_v54 = vsel %vm12815_vm6, %v1551_v60, %v1552_v52  ;;  %v10984_v32 = vld [vmem:[#allocation2 + $0x384] sm:$0xfc]   ;;  %v11004_v60 = vld [vmem:[#allocation2 + $0x2f8] sm:$0xfc]  }
 0x18c   : > { %2413 = vrot.lane.b32.xlu0 %v2385_v12, %s11876_s7  ;;  %1649 = vst.msk [vmem:[#allocation2 + $0x3a8] sm:$0xf] %vm1054_vm1, %v1553_v54  ;;  %v11007_v54 = vld [vmem:[#allocation2 + $0x31c] ss:$0 sps:$4 sm:$0x33]  }
 0x18d   : > { %2411 = vrot.lane.b32.xlu1 %v2384_v63, %s11876_s7  ;;  %v1554_v63 = vrot.slane %v1552_v52, 4 }
 0x18f   : > { %1650 = vst.msk [vmem:[#allocation2 + $0x3ac] sm:$0x1] %vm1312_vm2, %v1554_v63  ;;  %v11008_v63 = vld [vmem:[#allocation2 + $0x314] sm:$0xfc]  }
 0x190   : > { %2417 = vrot.lane.b32.xlu0 %v2387_v24, %s11876_s7  ;;  %v10975_v24 = vld [vmem:[#allocation2 + $0x354] ss:$0 sps:$4 sm:$0x33]  }
 0x191   : > { %2415 = vrot.lane.b32.xlu1 %v2386_v51, %s11876_s7 }
 0x193   : > { %v10987_v36 = vld [vmem:[#allocation2 + $0x3a8] ss:$0 sps:$4 sm:$0x33]  }
 0x194   : > { %2549 = vrot.lane.b32.xlu0 %v10936_v7, %s11877_s11  ;;  %v10983_v7 = vld [vmem:[#allocation2 + $0x38c] ss:$0 sps:$4 sm:$0x33]  }
 0x195   : > { %2419 = vrot.lane.b32.xlu1 %v2388_v23, %s11876_s7 }
 0x198   : > { %2553 = vrot.lane.b32.xlu0 %v10938_v38, %s11877_s11 }
 0x199   : > { %2551 = vrot.lane.b32.xlu1 %v10935_v3, %s11877_s11 }
 0x19c   : > { %2557 = vrot.lane.b32.xlu0 %v10940_v44, %s11877_s11  ;;  %v10995_v44 = vld [vmem:[#allocation2 + $0x2c8] ss:$0 sps:$4 sm:$0x33]  }
 0x19d   : > { %2555 = vrot.lane.b32.xlu1 %v10937_v35, %s11877_s11 }
 0x1a0   : > { %2561 = vrot.lane.b32.xlu0 %v10942_v46, %s11877_s11 }
 0x1a1   : > { %2559 = vrot.lane.b32.xlu1 %v10939_v39, %s11877_s11  ;;  %v10992_v39 = vld [vmem:[#allocation2 + $0x2a4] sm:$0xfc]  }
 0x1a4   : > { %2565 = vrot.lane.b32.xlu0 %v10944_v56, %s11877_s11 }
 0x1a5   : > { %2563 = vrot.lane.b32.xlu1 %v10941_v45, %s11877_s11 }
 0x1a8   : > { %2569 = vrot.lane.b32.xlu0 %v10948_v55, %s11877_s11  ;;  %v11009_v55 = vld [vmem:[#allocation2 + $0x338] ss:$0 sps:$4 sm:$0x33]  }
 0x1a9   : > { %2567 = vrot.lane.b32.xlu1 %v10943_v53, %s11877_s11 }
 0x1ac   : > { %2573 = vrot.lane.b32.xlu0 %v10952_v61, %s11877_s11 }
 0x1ad   : > { %2571 = vrot.lane.b32.xlu1 %v10947_v57, %s11877_s11 }
 0x1af   : > { %v13079_v62 = vpop.permute.xlu1 %2267 }
 0x1b0   : > { %2577 = vrot.lane.b32.xlu0 %v10956_v9, %s11877_s11  ;;  %v11011_v9 = vld [vmem:[#allocation2 + $0x354] ss:$0 sps:$4 sm:$0x33]  }
 0x1b1   : > { %2575 = vrot.lane.b32.xlu1 %v10951_v19, %s11877_s11  ;;  %v11010_v19 = vld [vmem:[#allocation2 + $0x330] sm:$0xfc]  }
 0x1b2   : > { %v13093_v10 = vpop.permute.xlu0 %2263 }
 0x1b3   : > { %v13085_v2 = vpop.permute.xlu1 %2271 }
 0x1b4   : > { %2581 = vrot.lane.b32.xlu0 %v10960_v8, %s11877_s11 }
 0x1b5   : > { %2579 = vrot.lane.b32.xlu1 %v10955_v1, %s11877_s11 }
 0x1b6   : > { %v13099_v14 = vpop.permute.xlu0 %2277 }
 0x1b7   : > { %v13091_v51 = vpop.permute.xlu1 %2275 }
 0x1b8   : > { %2585 = vrot.lane.b32.xlu0 %v10964_v31, %s11877_s11  ;;  %v11013_v31 = vld [vmem:[#allocation2 + $0x370] ss:$0 sps:$4 sm:$0x33]  }
 0x1b9   : > { %2583 = vrot.lane.b32.xlu1 %v10959_v6, %s11877_s11  ;;  %v11012_v6 = vld [vmem:[#allocation2 + $0x34c] sm:$0xfc]  }
 0x1ba   : > { %v13105_v5 = vpop.permute.xlu0 %2281 }
 0x1bb   : > { %v13097_v12 = vpop.permute.xlu1 %2279  ;;  %16027 = vst [vmem:[#allocation19_spill] sm:$0xff] %v13105_v5 }
 0x1bc   : > { %2589 = vrot.lane.b32.xlu0 %v10968_v16, %s11877_s11 }
 0x1bd   : > { %2587 = vrot.lane.b32.xlu1 %v10963_v11, %s11877_s11 }
 0x1be   : > { %v13111_v59 = vpop.permute.xlu0 %2285 }
 0x1bf   : > { %v13103_v18 = vpop.permute.xlu1 %2283  ;;  %16029 = vst [vmem:[#allocation21_spill] sm:$0xff] %v13111_v59  ;;  %v13333_v59 = vld [vmem:[#allocation2 + $0x3e0] sm:$0xf] }
 0x1c0   : > { %16026 = vst [vmem:[#allocation18_spill] sm:$0xff] %v13103_v18  ;;  %2593 = vrot.lane.b32.xlu0 %v10972_v22, %s11877_s11  ;;  %v11015_v22 = vld [vmem:[#allocation2 + $0x38c] ss:$0 sps:$4 sm:$0x33]   ;;  %v11245_v18 = vld [vmem:[%s12093_s13 + $0x70] sm:$0xff]  }
 0x1c1   : > { %2591 = vrot.lane.b32.xlu1 %v10967_v15, %s11877_s11  ;;  %v11014_v15 = vld [vmem:[#allocation2 + $0x368] sm:$0xfc]  }
 0x1c2   : > { %v13117_v27 = vpop.permute.xlu0 %2289 }
 0x1c3   : > { %v13109_v23 = vpop.permute.xlu1 %2287  ;;  %16031 = vst [vmem:[#allocation23_spill] sm:$0xff] %v13117_v27 }
 0x1c4   : > { %16028 = vst [vmem:[#allocation20_spill] sm:$0xff] %v13109_v23  ;;  %2597 = vrot.lane.b32.xlu0 %v10976_v25, %s11877_s11  ;;  %v13342_v23 = vld [vmem:[#allocation2 + $0x3fc] sm:$0xf] }
 0x1c5   : > { %2595 = vrot.lane.b32.xlu1 %v10971_v20, %s11877_s11 }
 0x1c6   : > { %v13123_v30 = vpop.permute.xlu0 %2293 }
 0x1c7   : > { %v13115_v26 = vpop.permute.xlu1 %2291  ;;  %16033 = vst [vmem:[#allocation25_spill] sm:$0xff] %v13123_v30  ;;  %v11046_v30 = vld [vmem:[#allocation2 + $0x374] ss:$0 sps:$4 sm:$0x11]  }
 0x1c8   : > { %16030 = vst [vmem:[#allocation22_spill] sm:$0xff] %v13115_v26  ;;  %2601 = vrot.lane.b32.xlu0 %v10980_v29, %s11877_s11  ;;  %v11017_v29 = vld [vmem:[#allocation2 + $0x3a8] ss:$0 sps:$4 sm:$0x33]  }
 0x1c9   : > { %2599 = vrot.lane.b32.xlu1 %v10975_v24, %s11877_s11  ;;  %v11016_v24 = vld [vmem:[#allocation2 + $0x384] sm:$0xfc]   ;;  %v11050_v26 = vld [vmem:[#allocation2 + $0x3ac] ss:$0 sps:$4 sm:$0x11]  }
 0x1ca   : > { %v13129_v35 = vpop.permute.xlu0 %2297 }
 0x1cb   : > { %v13121_v3 = vpop.permute.xlu1 %2295  ;;  %16035 = vst [vmem:[#allocation27_spill] sm:$0xff] %v13129_v35  ;;  %v13291_v35 = vld [vmem:[#allocation2 + $0x370] sm:$0xf] }
 0x1cc   : > { %16032 = vst [vmem:[#allocation24_spill] sm:$0xff] %v13121_v3  ;;  %2605 = vrot.lane.b32.xlu0 %v10984_v32, %s11877_s11 }
 0x1cd   : > { %2603 = vrot.lane.b32.xlu1 %v10979_v28, %s11877_s11 }
 0x1ce   : > { %v13135_v21 = vpop.permute.xlu0 %2301 }
 0x1cf   : > { %v13127_v33 = vpop.permute.xlu1 %2299  ;;  %16037 = vst [vmem:[#allocation29_spill] sm:$0xff] %v13135_v21 }
 0x1d0   : > { %16034 = vst [vmem:[#allocation26_spill] sm:$0xff] %v13127_v33  ;;  %2609 = vrot.lane.b32.xlu0 %v10988_v37, %s11877_s11  ;;  %v11019_v37 = vld [vmem:[#allocation2 + $0x3c4] ss:$0 sps:$4 sm:$0x33]  }
 0x1d1   : > { %2607 = vrot.lane.b32.xlu1 %v10983_v7, %s11877_s11  ;;  %v11018_v7 = vld [vmem:[#allocation2 + $0x3a0] sm:$0xfc]  }
 0x1d2   : > { %v13141_v43 = vpop.permute.xlu0 %2305  ;;  %v11125_v33 = vld [vmem:[%s12093_s13 + $0x10] sm:$0xff]  }
 0x1d3   : > { %v13133_v38 = vpop.permute.xlu1 %2303  ;;  %16039 = vst [vmem:[#allocation31_spill] sm:$0xff] %v13141_v43  ;;  %v16059_v43 = vmov 0  }
 0x1d4   : > { %16036 = vst [vmem:[#allocation28_spill] sm:$0xff] %v13133_v38  ;;  %2837 = vrot.lane.b32.xlu0 %v10992_v39, %s11875_s24 }
 0x1d5   : > { %2611 = vrot.lane.b32.xlu1 %v10987_v36, %s11877_s11 }
 0x1d6   : > { %v13147_v34 = vpop.permute.xlu0 %2309 }
 0x1d7   : > { %v13139_v42 = vpop.permute.xlu1 %2307  ;;  %16041 = vst [vmem:[#allocation33_spill] sm:$0xff] %v13147_v34 }
 0x1d8   : > { %16038 = vst [vmem:[#allocation30_spill] sm:$0xff] %v13139_v42  ;;  %2841 = vrot.lane.b32.xlu0 %v10996_v40, %s11875_s24  ;;  %v11021_v40 = vld [vmem:[#allocation2 + $0x3e0] ss:$0 sps:$4 sm:$0x33]   ;;  %v11120_v42 = vld [vmem:[%s12093_s13 + $0x8] sm:$0xff]  }
 0x1d9   : > { %2839 = vrot.lane.b32.xlu1 %v10991_v13, %s11875_s24  ;;  %v11020_v13 = vld [vmem:[#allocation2 + $0x3bc] sm:$0xfc]  }
 0x1da   : > { %v13153_v48 = vpop.permute.xlu0 %2313 }
 0x1db   : > { %v13145_v45 = vpop.permute.xlu1 %2311  ;;  %16043 = vst [vmem:[#allocation35_spill] sm:$0xff] %v13153_v48  ;;  %v11036_v48 = vld [vmem:[#allocation2 + $0x2e8] ss:$0 sps:$4 sm:$0x11]  }
 0x1dc   : > { %16040 = vst [vmem:[#allocation32_spill] sm:$0xff] %v13145_v45  ;;  %2845 = vrot.lane.b32.xlu0 %v11000_v47, %s11875_s24  ;;  %v13248_v45 = vld [vmem:[#allocation2 + $0x300] sm:$0xf] }
 0x1dd   : > { %2843 = vrot.lane.b32.xlu1 %v10995_v44, %s11875_s24 }
 0x1de   : > { %v13159_v53 = vpop.permute.xlu0 %2317 }
 0x1df   : > { %v13151_v46 = vpop.permute.xlu1 %2315  ;;  %16045 = vst [vmem:[#allocation37_spill] sm:$0xff] %v13159_v53  ;;  %v13235_v53 = vld [vmem:[#allocation2 + $0x2e4] sm:$0xf] }
 0x1e0   : > { %16042 = vst [vmem:[#allocation34_spill] sm:$0xff] %v13151_v46  ;;  %2849 = vrot.lane.b32.xlu0 %v11004_v60, %s11875_s24 }
 0x1e1   : > { %2847 = vrot.lane.b32.xlu1 %v10999_v41, %s11875_s24  ;;  %v11022_v41 = vld [vmem:[#allocation2 + $0x3d8] sm:$0xfc]  }
 0x1e2   : > { %v13165_v57 = vpop.permute.xlu0 %2321 }
 0x1e3   : > { %v13157_v52 = vpop.permute.xlu1 %2319  ;;  %16047 = vst [vmem:[#allocation39_spill] sm:$0xff] %v13165_v57  ;;  %v11105_v57 = vld [vmem:[#allocation8 + $0x24] ss:$16 sps:$4 sm:$0xff]  }
 0x1e4   : > { %16044 = vst [vmem:[#allocation36_spill] sm:$0xff] %v13157_v52  ;;  %2853 = vrot.lane.b32.xlu0 %v11008_v63, %s11875_s24  ;;  %580 = vmatprep.subr.bf16.mxu0 %v11105_v57 }
 0x1e5   : > { %2851 = vrot.lane.b32.xlu1 %v11003_v50, %s11875_s24  ;;  %v11023_v50 = vld [vmem:[#allocation2 + $0x3fc] ss:$0 sps:$4 sm:$0x33]   ;;  %10802 = vmatprep.subr.bf16.mxu1 %v11105_v57  ;;  %v1902_v57 = vld [vmem:[#allocation2 + $0x2fc] sm:$0xe] }
 0x1e6   : > { %v13171_v1 = vpop.permute.xlu0 %2389 }
 0x1e7   : > { %v13163_v56 = vpop.permute.xlu1 %2323 }
 0x1e8   : > { %16046 = vst [vmem:[#allocation38_spill] sm:$0xff] %v13163_v56  ;;  %2857 = vrot.lane.b32.xlu0 %v11010_v19, %s11875_s24 }
 0x1e9   : > { %2855 = vrot.lane.b32.xlu1 %v11007_v54, %s11875_s24  ;;  %v11024_v54 = vld [vmem:[#allocation2 + $0x3f4] sm:$0xfc]  }
 0x1ea   : > { %v13177_v11 = vpop.permute.xlu0 %2393 }
 0x1eb   : > { %v13169_v61 = vpop.permute.xlu1 %2391 }
 0x1ec   : > { %2861 = vrot.lane.b32.xlu0 %v11012_v6, %s11875_s24  ;;  %v1893_v6 = vld [vmem:[#allocation2 + $0x2a8] sm:$0xe] }
 0x1ed   : > { %2859 = vrot.lane.b32.xlu1 %v11009_v55, %s11875_s24  ;;  %v11025_v55 = vld [vmem:[#allocation2 + $0x418] ss:$0 sps:$4 sm:$0x33]  }
 0x1ee   : > { %v13183_v20 = vpop.permute.xlu0 %2397 }
 0x1ef   : > { %v13175_v8 = vpop.permute.xlu1 %2395 }
 0x1f0   : > { %2865 = vrot.lane.b32.xlu0 %v11014_v15, %s11875_s24 }
 0x1f1   : > { %2863 = vrot.lane.b32.xlu1 %v11011_v9, %s11875_s24  ;;  %v11026_v9 = vld [vmem:[#allocation2 + $0x410] sm:$0xfc]  }
 0x1f2   : > { %v13189_v28 = vpop.permute.xlu0 %2401 }
 0x1f3   : > { %v13181_v16 = vpop.permute.xlu1 %2399  ;;  %16050 = vst [vmem:[#allocation42_spill] sm:$0xff] %v13189_v28  ;;  %v11141_v28 = vld [vmem:[#allocation9 + $0x30] sm:$0xff]  }
 0x1f4   : > { %16048 = vst [vmem:[#allocation40_spill] sm:$0xff] %v13181_v16  ;;  %2869 = vrot.lane.b32.xlu0 %v11016_v24, %s11875_s24 }
 0x1f5   : > { %2867 = vrot.lane.b32.xlu1 %v11013_v31, %s11875_s24  ;;  %v13217_v31 = vld [vmem:[#allocation2 + $0x2ac] sm:$0xf] }
 0x1f6   : > { %v13195_v36 = vpop.permute.xlu0 %2405 }
 0x1f7   : > { %v13187_v25 = vpop.permute.xlu1 %2403  ;;  %16052 = vst [vmem:[#allocation44_spill] sm:$0xff] %v13195_v36 }
 0x1f8   : > { %16049 = vst [vmem:[#allocation41_spill] sm:$0xff] %v13187_v25  ;;  %2873 = vrot.lane.b32.xlu0 %v11018_v7, %s11875_s24  ;;  %v9902_v7 = vcombine.low %v1893_v6, %v13217_v31  ;;  %v11107_v6 = vld [vmem:[#allocation8 + $0x20] ss:$16 sps:$4 sm:$0xff]   ;;  %v13300_v25 = vld [vmem:[#allocation2 + $0x38c] sm:$0xf] }
 0x1f9   : > { %2871 = vrot.lane.b32.xlu1 %v11015_v22, %s11875_s24  ;;  %v11027_v22 = vld [vmem:[#allocation2 + $0x434] ss:$0 sps:$4 sm:$0x33]   ;;  %581 = vmatpush1.bf16.msra.mxu0 %v11107_v6 }
 0x1fa   : > { %v13201_v44 = vpop.permute.xlu0 %2409  ;;  %v3029_v56 = vrot.slane %v9902_v7, 7  ;;  %10804 = vmatpush1.bf16.msra.mxu1 %v11107_v6  ;;  %v9908_v6 = vcombine.low %v1902_v57, %v13248_v45 }
 0x1fb   : > { %v13193_v32 = vpop.permute.xlu1 %2407  ;;  %16054 = vst [vmem:[#allocation46_spill] sm:$0xff] %v13201_v44 }
 0x1fc   : > { %16051 = vst [vmem:[#allocation43_spill] sm:$0xff] %v13193_v32  ;;  %2877 = vrot.lane.b32.xlu0 %v11020_v13, %s11875_s24  ;;  %v1896_v13 = vld [vmem:[#allocation2 + $0x2c4] sm:$0xe]  ;;  %v11042_v32 = vld [vmem:[#allocation2 + $0x33c] ss:$0 sps:$4 sm:$0x11]  }
 0x1fd   : > { %2875 = vrot.lane.b32.xlu1 %v11017_v29, %s11875_s24  ;;  %v11028_v29 = vld [vmem:[#allocation2 + $0x42c] sm:$0xfc]  }
 0x1fe   : > { %v13207_v60 = vpop.permute.xlu0 %2413 }
 0x1ff   : > { %v13199_v39 = vpop.permute.xlu1 %2411  ;;  %16056 = vst [vmem:[#allocation48_spill] sm:$0xff] %v13207_v60  ;;  %v11115_v60 = vld [vmem:[%s12093_s13] sm:$0xff]  }
 0x200   : > { %16053 = vst [vmem:[#allocation45_spill] sm:$0xff] %v13199_v39  ;;  %2881 = vrot.lane.b32.xlu0 %v11022_v41, %s11875_s24  ;;  %v11029_v41 = vld [vmem:[#allocation2 + $0x450] ss:$0 sps:$4 sm:$0x33]   ;;  %v13256_v39 = vld [vmem:[#allocation2 + $0x31c] sm:$0xf] }
 0x201   : > { %2879 = vrot.lane.b32.xlu1 %v11019_v37, %s11875_s24  ;;  %v11032_v37 = vld [vmem:[#allocation2 + $0x2b0] ss:$0 sps:$4 sm:$0x11]  }
 0x202   : > { %v13213_v19 = vpop.permute.xlu0 %2417 }
 0x203   : > { %v13205_v47 = vpop.permute.xlu1 %2415  ;;  %16058 = vst [vmem:[#allocation50_spill] sm:$0xff] %v13213_v19  ;;  %v1899_v19 = vld [vmem:[#allocation2 + $0x2e0] sm:$0xe] }
 0x204   : > { %16055 = vst [vmem:[#allocation47_spill] sm:$0xff] %v13205_v47  ;;  %2885 = vrot.lane.b32.xlu0 %v11024_v54, %s11875_s24  ;;  %v9906_v7 = vcombine.low %v1899_v19, %v13235_v53  ;;  %v11038_v19 = vld [vmem:[#allocation2 + $0x304] ss:$0 sps:$4 sm:$0x11]  }
 0x205   : > { %2883 = vrot.lane.b32.xlu1 %v11021_v40, %s11875_s24  ;;  %v3039_v57 = vrot.slane %v11038_v19, 7 }
 0x206   : > { %v13221_v24 = vpop.permute.xlu0 %2549 }
 0x207   : > { %v13211_v63 = vpop.permute.xlu1 %2419 }
 0x208   : > { %16057 = vst [vmem:[#allocation49_spill] sm:$0xff] %v13211_v63  ;;  %2889 = vrot.lane.b32.xlu0 %v11026_v9, %s11875_s24  ;;  %v11034_v63 = vld [vmem:[#allocation2 + $0x2cc] ss:$0 sps:$4 sm:$0x11]  }
 0x209   : > { %2887 = vrot.lane.b32.xlu1 %v11023_v50, %s11875_s24  ;;  %v13228_v50 = vld [vmem:[#allocation2 + $0x2c8] sm:$0xf]  ;;  %v3033_v46 = vrot.slane %v11034_v63, 7 }
 0x20a   : > { %v13230_v54 = vpop.permute.xlu0 %2553  ;;  %v9904_v9 = vcombine.low %v1896_v13, %v13228_v50 }
 0x20b   : > { %v13219_v15 = vpop.permute.xlu1 %2551 }
 0x20c   : > { %2893 = vrot.lane.b32.xlu0 %v11028_v29, %s11875_s24  ;;  %v11112_v29 = vld [vmem:[#allocation8] ss:$16 sps:$4 sm:$0xff]   ;;  %v3032_v13 = vrot.slane %v9904_v9, 7  ;;  %v1905_v9 = vld [vmem:[#allocation2 + $0x318] sm:$0xe] }
 0x20d   : > { %2891 = vrot.lane.b32.xlu1 %v11025_v55, %s11875_s24  ;;  %v3030_v55 = vrot.slane %v11032_v37, 7 }
 0x20e   : > { %v13239_v47 = vpop.permute.xlu0 %2557  ;;  %v3034_v63 = vsel %vm1472_vm4, %v3032_v13, %v3033_v46  ;;  %v13266_v46 = vld [vmem:[#allocation2 + $0x338] sm:$0xf] }
 0x20f   : > { %v13226_v40 = vpop.permute.xlu1 %2555  ;;  %v3031_v37 = vsel %vm1472_vm4, %v3029_v56, %v3030_v55  ;;  %v3036_v55 = vrot.slane %v11036_v48, 7  ;;  %v9910_v48 = vcombine.low %v1905_v9, %v13256_v39 }
 0x210   : > { %2897 = vrot.lane.b32.xlu0 %v11030_v0, %s11875_s24  ;;  %v3035_v0 = vrot.slane %v9906_v7, 7  ;;  %v1908_v7 = vld [vmem:[#allocation2 + $0x334] sm:$0xe] }
 0x211   : > { %2895 = vrot.lane.b32.xlu1 %v11027_v22, %s11875_s24  ;;  %v11110_v22 = vld [vmem:[#allocation8 + $0x4] ss:$16 sps:$4 sm:$0xff]   ;;  %v9912_v38 = vcombine.low %v1908_v7, %v13266_v46 }
 0x212   : > { %582 = vmatprep.subr.bf16.mxu0 %v11110_v22  ;;  %10803 = vmatprep.subr.bf16.mxu1 %v11110_v22 }
 0x213   : > { %v13237_v52 = vpop.permute.xlu1 %2559  ;;  %583 = vmatpush1.bf16.msra.mxu0 %v11112_v29  ;;  %10805 = vmatpush1.bf16.msra.mxu1 %v11112_v29 }
 0x214   : > { %3077 = vrot.lane.b32.xlu0 %v3029_v56, %s11876_s7  ;;  %v3037_v56 = vsel %vm1472_vm4, %v3035_v0, %v3036_v55  ;;  %v1911_v55 = vld [vmem:[#allocation2 + $0x350] sm:$0xe] }
 0x215   : > { %2899 = vrot.lane.b32.xlu1 %v11029_v41, %s11875_s24  ;;  %v13250_v41 = vpop.permute.xlu0 %2561 }
 0x216   : > { %9710 = vmatmul.mubr.msk.bf16.vlgmr.msra.gmra.mxu0 %vm519_vm7, %v11115_v60  ;;  %v11040_v60 = vld [vmem:[#allocation2 + $0x320] ss:$0 sps:$4 sm:$0x11]  }
 0x217   : > { %v13246_v34 = vpop.permute.xlu1 %2563  ;;  %610 = vmatprep.mubr.bf16.mxu0 %v16059_v43 }
 0x218   : > { %3081 = vrot.lane.b32.xlu0 %v3032_v13, %s11876_s7  ;;  %v3042_v13 = vrot.slane %v11040_v60, 7  ;;  %v3045_v60 = vrot.slane %v11042_v32, 7 }
 0x219   : > { %3079 = vrot.lane.b32.xlu1 %v3031_v37, %s11876_s7  ;;  %v13262_v29 = vpop.permute.xlu0 %2565  ;;  %v3038_v37 = vrot.slane %v9908_v6, 7  ;;  %v13282_v6 = vld [vmem:[#allocation2 + $0x354] sm:$0xf] }
 0x21a   : > { %16060 = vst [vmem:[#allocation51_spill] sm:$0xff] %v13262_v29  ;;  %v11255_v29 = vld [vmem:[#allocation8 + $0x28] ss:$16 sps:$4 sm:$0xff]  }
 0x21b   : > { %v13259_v22 = vpop.permute.xlu1 %2567  ;;  %v3040_v9 = vsel %vm1472_vm4, %v3038_v37, %v3039_v57 }
 0x21c   : > { %3085 = vrot.lane.b32.xlu0 %v3035_v0, %s11876_s7  ;;  %v1914_v0 = vld [vmem:[#allocation2 + $0x36c] sm:$0xe] }
 0x21d   : > { %3083 = vrot.lane.b32.xlu1 %v3034_v63, %s11876_s7  ;;  %v13273_v21 = vpop.permute.xlu0 %2569  ;;  %v3041_v63 = vrot.slane %v9910_v48, 7  ;;  %v11044_v48 = vld [vmem:[#allocation2 + $0x358] ss:$0 sps:$4 sm:$0x11]  }
 0x21e   : > { %16062 = vst [vmem:[#allocation53_spill] sm:$0xff] %v13273_v21  ;;  %9711 = vmatmul.mubr.msk.bf16.gmra.mxu0 %vm519_vm7, %v11120_v42  ;;  %v9914_v42 = vcombine.low %v1911_v55, %v13282_v6  ;;  %v13368_v21 = vld [vmem:[#allocation2 + $0x434] sm:$0xf] }
 0x21f   : > { %v13271_v44 = vpop.permute.xlu1 %2571  ;;  %620 = vmatprep.mubr.bf16.mxu0 %v16059_v43  ;;  %v3043_v57 = vsel %vm1472_vm4, %v3041_v63, %v3042_v13  ;;  %v3048_v13 = vrot.slane %v11044_v48, 7  ;;  %v11130_v48 = vld [vmem:[%s12093_s13 + $0x18] sm:$0xff]  }
 0x220   : > { %16061 = vst [vmem:[#allocation52_spill] sm:$0xff] %v13271_v44  ;;  %3089 = vrot.lane.b32.xlu0 %v3038_v37, %s11876_s7  ;;  %v3047_v37 = vrot.slane %v9914_v42, 7  ;;  %v11153_v44 = vld [vmem:[%s12093_s13 + $0x30] sm:$0xff]  }
 0x221   : > { %3087 = vrot.lane.b32.xlu1 %v3037_v56, %s11876_s7  ;;  %v13285_v7 = vpop.permute.xlu0 %2573  ;;  %v3044_v56 = vrot.slane %v9912_v38, 7  ;;  %v1917_v38 = vld [vmem:[#allocation2 + $0x388] sm:$0xe] }
 0x222   : > { %16064 = vst [vmem:[#allocation55_spill] sm:$0xff] %v13285_v7  ;;  %v11052_v7 = vld [vmem:[#allocation2 + $0x3c8] ss:$0 sps:$4 sm:$0x11]  }
 0x223   : > { %v13280_v19 = vpop.permute.xlu1 %2575  ;;  %v3046_v32 = vsel %vm1472_vm4, %v3044_v56, %v3045_v60  ;;  %v11048_v60 = vld [vmem:[#allocation2 + $0x390] ss:$0 sps:$4 sm:$0x11]  }
 0x224   : > { %16063 = vst [vmem:[#allocation54_spill] sm:$0xff] %v13280_v19  ;;  %3093 = vrot.lane.b32.xlu0 %v3041_v63, %s11876_s7  ;;  %v3049_v63 = vsel %vm1472_vm4, %v3047_v37, %v3048_v13  ;;  %v11136_v13 = vld [vmem:[#allocation9 + $0x78] sm:$0xff]   ;;  %v11140_v19 = vld [vmem:[#allocation9 + $0x70] sm:$0xff]  }
 0x225   : > { %3091 = vrot.lane.b32.xlu1 %v3040_v9, %s11876_s7  ;;  %v13296_v3 = vpop.permute.xlu0 %2577  ;;  %v9916_v9 = vcombine.low %v1914_v0, %v13291_v35  ;;  %10466 = vmatprep.subr.bf16.mxu0 %v11136_v13 }
 0x226   : > { %16066 = vst [vmem:[#allocation57_spill] sm:$0xff] %v13296_v3  ;;  %9712 = vmatmul.mubr.msk.bf16.gmra.mxu0 %vm519_vm7, %v11125_v33  ;;  %v1920_v33 = vld [vmem:[#allocation2 + $0x3a4] sm:$0xe] }
 0x227   : > { %v13294_v36 = vpop.permute.xlu1 %2579  ;;  %630 = vmatprep.mubr.bf16.mxu0 %v16059_v43  ;;  %v3050_v0 = vrot.slane %v9916_v9, 7  ;;  %v13322_v9 = vld [vmem:[#allocation2 + $0x3c4] sm:$0xf] }
 0x228   : > { %16065 = vst [vmem:[#allocation56_spill] sm:$0xff] %v13294_v36  ;;  %v3051_v36 = vrot.slane %v11046_v30, 7  ;;  %3097 = vrot.lane.b32.xlu0 %v3044_v56, %s11876_s7  ;;  %v3054_v56 = vrot.slane %v11048_v60, 7 }
 0x229   : > { %3095 = vrot.lane.b32.xlu1 %v3043_v57, %s11876_s7  ;;  %v13308_v3 = vpop.permute.xlu0 %2581  ;;  %v9918_v57 = vcombine.low %v1917_v38, %v13300_v25  ;;  %v1923_v38 = vld [vmem:[#allocation2 + $0x3c0] sm:$0xe] }
 0x22a   : > { %16068 = vst [vmem:[#allocation59_spill] sm:$0xff] %v13308_v3  ;;  %v3052_v30 = vsel %vm1472_vm4, %v3050_v0, %v3051_v36  ;;  %v1929_v36 = vld [vmem:[#allocation2 + $0x3f8] sm:$0xe] }
 0x22b   : > { %v13305_v55 = vpop.permute.xlu1 %2583  ;;  %v3053_v3 = vrot.slane %v9918_v57, 7  ;;  %v1926_v57 = vld [vmem:[#allocation2 + $0x3dc] sm:$0xe] }
 0x22c   : > { %16067 = vst [vmem:[#allocation58_spill] sm:$0xff] %v13305_v55  ;;  %v13317_v55 = vld [vmem:[#allocation2 + $0x3a8] sm:$0xf]  ;;  %3101 = vrot.lane.b32.xlu0 %v3047_v37, %s11876_s7  ;;  %v11135_v37 = vld [vmem:[%s12093_s13 + $0x20] sm:$0xff]  }
 0x22d   : > { %3099 = vrot.lane.b32.xlu1 %v3046_v32, %s11876_s7  ;;  %v13319_v27 = vpop.permute.xlu0 %2585  ;;  %v9920_v32 = vcombine.low %v1920_v33, %v13317_v55  ;;  %v3055_v60 = vsel %vm1472_vm4, %v3053_v3, %v3054_v56  ;;  %v3057_v33 = vrot.slane %v11050_v26, 7  ;;  %v3060_v56 = vrot.slane %v11052_v7, 7  ;;  %v11149_v7 = vld [vmem:[#allocation9 + $0x60] sm:$0xff]  }
 0x22e   : > { %16070 = vst [vmem:[#allocation61_spill] sm:$0xff] %v13319_v27  ;;  %9713 = vmatmul.mubr.msk.bf16.gmra.mxu0 %vm519_vm7, %v11130_v48 }
 0x22f   : > { %v13315_v42 = vpop.permute.xlu1 %2587  ;;  %640 = vmatprep.mubr.bf16.mxu0 %v16059_v43  ;;  %v3056_v48 = vrot.slane %v9920_v32, 7  ;;  %v9926_v32 = vcombine.low %v1929_v36, %v13342_v23 }
 0x230   : > { %16069 = vst [vmem:[#allocation60_spill] sm:$0xff] %v13315_v42  ;;  %3105 = vrot.lane.b32.xlu0 %v3050_v0, %s11876_s7  ;;  %v11054_v0 = vld [vmem:[#allocation2 + $0x3e4] ss:$0 sps:$4 sm:$0x11]  }
 0x231   : > { %3103 = vrot.lane.b32.xlu1 %v3049_v63, %s11876_s7  ;;  %v11137_v63 = vld [vmem:[#allocation9 + $0x38] sm:$0xff]   ;;  %v13331_v27 = vpop.permute.xlu0 %2589  ;;  %v3058_v26 = vsel %vm1472_vm4, %v3056_v48, %v3057_v33  ;;  %v13360_v33 = vld [vmem:[#allocation2 + $0x418] sm:$0xf] }
 0x232   : > { %16072 = vst [vmem:[#allocation63_spill] sm:$0xff] %v13331_v27  ;;  %10467 = vmatpush3.bf16.msra.mxu0 %v11137_v63  ;;  %v11056_v63 = vld [vmem:[#allocation2 + $0x400] ss:$0 sps:$4 sm:$0x11]  }
 0x233   : > { %v13328_v42 = vpop.permute.xlu1 %2591  ;;  %10468 = vmatprep.subr.bf16.mxu0 %v11140_v19  ;;  %v11145_v19 = vld [vmem:[#allocation9 + $0x68] sm:$0xff]  }
 0x234   : > { %16071 = vst [vmem:[#allocation62_spill] sm:$0xff] %v13328_v42  ;;  %v9922_v42 = vcombine.low %v1923_v38, %v13322_v9  ;;  %3109 = vrot.lane.b32.xlu0 %v3053_v3, %s11876_s7  ;;  %v3063_v3 = vrot.slane %v11054_v0, 7  ;;  %v11150_v0 = vld [vmem:[#allocation9 + $0x20] sm:$0xff]  }
 0x235   : > { %3107 = vrot.lane.b32.xlu1 %v3052_v30, %s11876_s7  ;;  %v13344_v13 = vpop.permute.xlu0 %2593  ;;  %v9924_v30 = vcombine.low %v1926_v57, %v13333_v59 }
 0x236   : > { %16074 = vst [vmem:[#allocation65_spill] sm:$0xff] %v13344_v13  ;;  %10469 = vmatpush3.bf16.msra.mxu0 %v11141_v28  ;;  %v3059_v38 = vrot.slane %v9922_v42, 7  ;;  %v1932_v42 = vld [vmem:[#allocation2 + $0x414] sm:$0xe] }
 0x237   : > { %v13340_v27 = vpop.permute.xlu1 %2595  ;;  %9714 = vmatmul.mubr.msk.bf16.gmra.mxu0 %vm519_vm7, %v11135_v37  ;;  %v3062_v28 = vrot.slane %v9924_v30, 7  ;;  %10470 = vmatprep.subr.bf16.mxu0 %v11145_v19  ;;  %v3065_v37 = vrot.slane %v9926_v32, 7  ;;  %v1935_v19 = vld [vmem:[#allocation2 + $0x430] sm:$0xe]  ;;  %v1938_v32 = vld [vmem:[#allocation2 + $0x44c] sm:$0xe] }
 0x238   : > { %16073 = vst [vmem:[#allocation64_spill] sm:$0xff] %v13340_v27  ;;  %650 = vmatprep.mubr.bf16.mxu0 %v16059_v43  ;;  %3113 = vrot.lane.b32.xlu0 %v3056_v48, %s11876_s7  ;;  %v3061_v36 = vsel %vm1472_vm4, %v3059_v38, %v3060_v56  ;;  %v9928_v56 = vcombine.low %v1932_v42, %v13360_v33 }
 0x239   : > { %3111 = vrot.lane.b32.xlu1 %v3055_v60, %s11876_s7  ;;  %v13355_v57 = vpop.permute.xlu0 %2597  ;;  %v11146_v60 = vld [vmem:[#allocation9 + $0x28] sm:$0xff]   ;;  %v3064_v48 = vsel %vm1472_vm4, %v3062_v28, %v3063_v3  ;;  %v11155_v3 = vld [vmem:[#allocation9 + $0x18] sm:$0xff]  }
 0x23a   : > { %16076 = vst [vmem:[#allocation67_spill] sm:$0xff] %v13355_v57  ;;  %10471 = vmatpush3.bf16.msra.mxu0 %v11146_v60  ;;  %v3066_v57 = vrot.slane %v11056_v63, 7  ;;  %v13373_v60 = vld [vmem:[#allocation2 + $0x450] sm:$0xf] }
 0x23b   : > { %v13352_v13 = vpop.permute.xlu1 %2599  ;;  %10472 = vmatprep.subr.bf16.mxu0 %v11149_v7  ;;  %v11062_v7 = vld [vmem:[#allocation2 + $0x438] ss:$0 sps:$4 sm:$0x11]   ;;  %v9932_v16 = vcombine.low %v1938_v32, %v13373_v60  ;;  %v11164_v32 = vld [vmem:[#allocation9 + $0x8] sm:$0xff]  }
 0x23c   : > { %16075 = vst [vmem:[#allocation66_spill] sm:$0xff] %v13352_v13  ;;  %v11144_v13 = vld [vmem:[%s12093_s13 + $0x28] sm:$0xff]   ;;  %3117 = vrot.lane.b32.xlu0 %v3059_v38, %s11876_s7  ;;  %v9930_v38 = vcombine.low %v1935_v19, %v13368_v21  ;;  %v3067_v42 = vsel %vm1472_vm4, %v3065_v37, %v3066_v57 }
 0x23d   : > { %3115 = vrot.lane.b32.xlu1 %v3058_v26, %s11876_s7  ;;  %v13365_v30 = vpop.permute.xlu0 %2601  ;;  %v11059_v26 = vld [vmem:[#allocation2 + $0x41c] ss:$0 sps:$4 sm:$0x11]  }
 0x23e   : > { %16078 = vst [vmem:[#allocation69_spill] sm:$0xff] %v13365_v30  ;;  %10473 = vmatpush3.bf16.msra.mxu0 %v11150_v0  ;;  %v11154_v30 = vld [vmem:[#allocation9 + $0x58] sm:$0xff]   ;;  %v3071_v19 = vrot.slane %v9930_v38, 7 }
 0x23f   : > { %v13363_v27 = vpop.permute.xlu1 %2603  ;;  %9715 = vmatmul.mubr.msk.bf16.gmra.mxu0 %vm519_vm7, %v11144_v13  ;;  %v3069_v13 = vrot.slane %v11059_v26, 7  ;;  %10474 = vmatprep.subr.bf16.mxu0 %v11154_v30  ;;  %v11065_v26 = vld [vmem:[#allocation2 + $0x454] ss:$0 sps:$4 sm:$0x11]   ;;  %v11163_v30 = vld [vmem:[#allocation9 + $0x48] sm:$0xff]  }
 0x240   : > { %16077 = vst [vmem:[#allocation68_spill] sm:$0xff] %v13363_v27  ;;  %660 = vmatprep.mubr.bf16.mxu0 %v16059_v43  ;;  %3121 = vrot.lane.b32.xlu0 %v3062_v28, %s11876_s7  ;;  %v3068_v27 = vrot.slane %v9928_v56, 7  ;;  %v3072_v28 = vrot.slane %v11062_v7, 7  ;;  %v3074_v56 = vrot.slane %v9932_v16, 7  ;;  %v1942_v38 = vld [vmem:[#allocation2 + $0x2cc] sm:$0xf] }
 0x241   : > { %3119 = vrot.lane.b32.xlu1 %v3061_v36, %s11876_s7  ;;  %v13379_v36 = vpop.permute.xlu0 %2605  ;;  %v1941_v7 = vld [vmem:[#allocation2 + $0x2b0] sm:$0xf]  ;;  %v1944_v16 = vld [vmem:[#allocation2 + $0x304] sm:$0xf] }
 0x242   : > { %16080 = vst [vmem:[#allocation71_spill] sm:$0xff] %v13379_v36  ;;  %10475 = vmatpush3.bf16.msra.mxu0 %v11155_v3  ;;  %v11159_v36 = vld [vmem:[#allocation9 + $0x10] sm:$0xff]   ;;  %v3070_v57 = vsel %vm1472_vm4, %v3068_v27, %v3069_v13  ;;  %v11167_v13 = vld [vmem:[#allocation9 + $0x40] sm:$0xff]  }
 0x243   : > { %v13376_v63 = vpop.permute.xlu1 %2607  ;;  %v11162_v3 = vld [vmem:[%s12093_s13 + $0x38] sm:$0xff]  }
 0x244   : > { %16079 = vst [vmem:[#allocation70_spill] sm:$0xff] %v13376_v63  ;;  %v11158_v63 = vld [vmem:[#allocation9 + $0x50] sm:$0xff]   ;;  %3125 = vrot.lane.b32.xlu0 %v3065_v37, %s11876_s7  ;;  %v3073_v37 = vsel %vm1472_vm4, %v3071_v19, %v3072_v28 }
 0x245   : > { %3123 = vrot.lane.b32.xlu1 %v3064_v48, %s11876_s7  ;;  %v13389_v5 = vpop.permute.xlu0 %2609  ;;  %10476 = vmatprep.subr.bf16.mxu0 %v11158_v63 }
 0x246   : > { %16082 = vst [vmem:[#allocation73_spill] sm:$0xff] %v13389_v5  ;;  %10477 = vmatpush3.bf16.msra.mxu0 %v11159_v36  ;;  %v1943_v36 = vld [vmem:[#allocation2 + $0x2e8] sm:$0xf] }
 0x247   : > { %v13386_v0 = vpop.permute.xlu1 %2611  ;;  %9716 = vmatmul.mubr.msk.bf16.gmra.mxu0 %vm519_vm7, %v11153_v44  ;;  %10478 = vmatprep.subr.bf16.mxu0 %v11163_v30  ;;  %v3075_v44 = vrot.slane %v11065_v26, 7  ;;  %v9935_v30 = vcombine.low %v13228_v50, %v1942_v38  ;;  %v1946_v50 = vld [vmem:[#allocation2 + $0x33c] sm:$0xf] }
 0x248   : > { %16081 = vst [vmem:[#allocation72_spill] sm:$0xff] %v13386_v0  ;;  %670 = vmatprep.mubr.bf16.mxu0 %v16059_v43  ;;  %3129 = vrot.lane.b32.xlu0 %v3068_v27, %s11876_s7  ;;  %v11168_v27 = vld [vmem:[#allocation9] sm:$0xff]   ;;  %v9937_v0 = vcombine.low %v13248_v45, %v1944_v16 }
 0x249   : > { %3127 = vrot.lane.b32.xlu1 %v3067_v42, %s11876_s7  ;;  %v13398_v63 = vpop.permute.xlu0 %2837  ;;  %v3076_v28 = vsel %vm1472_vm4, %v3074_v56, %v3075_v44  ;;  %v1948_v16 = vld [vmem:[#allocation2 + $0x374] sm:$0xf] }
 0x24a   : > { %10479 = vmatpush3.bf16.msra.mxu0 %v11164_v32 }
 0x24b   : > { %v13395_v48 = vpop.permute.xlu1 %2839  ;;  %10480 = vmatprep.subr.bf16.mxu0 %v11167_v13 }
 0x24c   : > { %3133 = vrot.lane.b32.xlu0 %v3071_v19, %s11876_s7 }
 0x24d   : > { %3131 = vrot.lane.b32.xlu1 %v3070_v57, %s11876_s7  ;;  %v13406_v5 = vpop.permute.xlu0 %2841  ;;  %v9934_v57 = vcombine.low %v13217_v31, %v1941_v7  ;;  %v3190_v31 = vrot.slane %v9935_v30, 6  ;;  %v1945_v7 = vld [vmem:[#allocation2 + $0x320] sm:$0xf] }
 0x24e   : > { %10481 = vmatpush3.bf16.msra.mxu0 %v11168_v27  ;;  %v9939_v27 = vcombine.low %v13266_v46, %v1946_v50  ;;  %v9938_v45 = vcombine.low %v13256_v39, %v1945_v7  ;;  %v1949_v46 = vld [vmem:[#allocation2 + $0x390] sm:$0xf] }
 0x24f   : > { %v13404_v42 = vpop.permute.xlu1 %2843  ;;  %9717 = vmatmul.mubr.msk.bf16.gmra.mxu0 %vm519_vm7, %v11162_v3  ;;  %v3189_v38 = vrot.slane %v9934_v57, 6  ;;  %v3192_v3 = vrot.slane %v9937_v0, 6 }
 0x250   : > { %3137 = vrot.lane.b32.xlu0 %v3074_v56, %s11876_s7  ;;  %v3194_v56 = vrot.slane %v9939_v27, 6  ;;  %v3193_v57 = vrot.slane %v9938_v45, 6  ;;  %v9942_v27 = vcombine.low %v13300_v25, %v1949_v46  ;;  %v1952_v45 = vld [vmem:[#allocation2 + $0x3e4] sm:$0xf]  ;;  %v1953_v25 = vld [vmem:[#allocation2 + $0x400] sm:$0xf] }
 0x251   : > { %3135 = vrot.lane.b32.xlu1 %v3073_v37, %s11876_s7  ;;  %v13416_v32 = vpop.permute.xlu0 %2845  ;;  %v9936_v37 = vcombine.low %v13235_v53, %v1943_v36  ;;  %v1947_v53 = vld [vmem:[#allocation2 + $0x358] sm:$0xf]  ;;  %v1956_v46 = vld [vmem:[#allocation2 + $0x454] sm:$0xf] }
 0x252   : > { %v9940_v0 = vcombine.low %v13282_v6, %v1947_v53  ;;  %v9945_v53 = vcombine.low %v13333_v59, %v1952_v45  ;;  %v11091_v45 = vld [vmem:[#allocation2 + $0xb0] sm:$0xfe]  }
 0x253   : > { %v13414_v26 = vpop.permute.xlu1 %2847  ;;  %v3191_v13 = vrot.slane %v9936_v37, 6  ;;  %v1950_v37 = vld [vmem:[#allocation2 + $0x3ac] sm:$0xf] }
 0x254   : > { %3205 = vrot.lane.b32.xlu0 %v3189_v38, %s11877_s11  ;;  %v3195_v38 = vrot.slane %v9940_v0, 6  ;;  %v9943_v7 = vcombine.low %v13317_v55, %v1950_v37  ;;  %v1954_v0 = vld [vmem:[#allocation2 + $0x41c] sm:$0xf] }
 0x255   : > { %3139 = vrot.lane.b32.xlu1 %v3076_v28, %s11876_s7  ;;  %v13424_v44 = vpop.permute.xlu0 %2849  ;;  %v9941_v28 = vcombine.low %v13291_v35, %v1948_v16  ;;  %v1951_v35 = vld [vmem:[#allocation2 + $0x3c8] sm:$0xf]  ;;  %v3197_v16 = vrot.slane %v9942_v27, 6  ;;  %v9947_v59 = vcombine.low %v13360_v33, %v1954_v0  ;;  %v4896_v0 = vrot.slane %v11091_v45, 6 }
 0x257   : > { %v13422_v19 = vpop.permute.xlu1 %2851 }
 0x258   : > { %3209 = vrot.lane.b32.xlu0 %v3191_v13, %s11877_s11  ;;  %v3198_v13 = vrot.slane %v9943_v7, 6  ;;  %v9949_v7 = vcombine.low %v13373_v60, %v1956_v46  ;;  %v11095_v60 = vld [vmem:[#allocation2 + $0xd4] ss:$0 sps:$4 sm:$0x11]  }
 0x259   : > { %3207 = vrot.lane.b32.xlu1 %v3190_v31, %s11877_s11  ;;  %v13432_v30 = vpop.permute.xlu0 %2853  ;;  %v3196_v31 = vrot.slane %v9941_v28, 6  ;;  %v9944_v28 = vcombine.low %v13322_v9, %v1951_v35  ;;  %v9946_v9 = vcombine.low %v13342_v23, %v1953_v25  ;;  %v3202_v35 = vrot.slane %v9947_v59, 6  ;;  %v11094_v25 = vld [vmem:[#allocation2 + $0xcc] sm:$0xfe]  }
 0x25a   : > { %v11098_v46 = vld [vmem:[#allocation2 + $0xf0] ss:$0 sps:$4 sm:$0x11]  }
 0x25b   : > { %v13430_v36 = vpop.permute.xlu1 %2855  ;;  %v3199_v37 = vrot.slane %v9944_v28, 6  ;;  %v3201_v33 = vrot.slane %v9946_v9, 6  ;;  %v4899_v9 = vrot.slane %v11094_v25, 6 }
 0x25c   : > { %3213 = vrot.lane.b32.xlu0 %v3193_v57, %s11877_s11  ;;  %v3200_v57 = vrot.slane %v9945_v53, 6  ;;  %v3204_v53 = vrot.slane %v9949_v7, 6  ;;  %v4900_v7 = vrot.slane %v11095_v60, 6  ;;  %v11104_v60 = vld [vmem:[#allocation2 + $0x128] ss:$0 sps:$4 sm:$0x11]  }
 0x25d   : > { %3211 = vrot.lane.b32.xlu1 %v3192_v3, %s11877_s11  ;;  %v13440_v50 = vpop.permute.xlu0 %2857 }
 0x25e   : > { %16084 = vst [vmem:[#allocation75_spill] sm:$0xff] %v13440_v50 }
 0x25f   : > { %v13438_v39 = vpop.permute.xlu1 %2859 }
 0x260   : > { %16083 = vst [vmem:[#allocation74_spill] sm:$0xff] %v13438_v39  ;;  %3217 = vrot.lane.b32.xlu0 %v3195_v38, %s11877_s11  ;;  %v11132_v39 = vld [vmem:[#allocation2 + $0x224] ss:$0 sps:$4 sm:$0x11]  }
 0x261   : > { %3215 = vrot.lane.b32.xlu1 %v3194_v56, %s11877_s11  ;;  %v13448_v3 = vpop.permute.xlu0 %2861 }
 0x262   : > { %16086 = vst [vmem:[#allocation77_spill] sm:$0xff] %v13448_v3  ;;  %v11131_v3 = vld [vmem:[#allocation2 + $0x21c] sm:$0xfe]  }
 0x263   : > { %v13446_v6 = vpop.permute.xlu1 %2863 }
 0x264   : > { %16085 = vst [vmem:[#allocation76_spill] sm:$0xff] %v13446_v6  ;;  %v1955_v6 = vld [vmem:[#allocation2 + $0x438] sm:$0xf]  ;;  %3221 = vrot.lane.b32.xlu0 %v3197_v16, %s11877_s11 }
 0x265   : > { %3219 = vrot.lane.b32.xlu1 %v3196_v31, %s11877_s11  ;;  %v13456_v56 = vpop.permute.xlu0 %2865  ;;  %v9948_v27 = vcombine.low %v13368_v21, %v1955_v6 }
 0x266   : > { %16088 = vst [vmem:[#allocation79_spill] sm:$0xff] %v13456_v56  ;;  %v11127_v56 = vld [vmem:[#allocation2 + $0x1ec] ss:$0 sps:$4 sm:$0x11]  }
 0x267   : > { %v13454_v55 = vpop.permute.xlu1 %2867  ;;  %v3203_v28 = vrot.slane %v9948_v27, 6 }
 0x268   : > { %16087 = vst [vmem:[#allocation78_spill] sm:$0xff] %v13454_v55  ;;  %3225 = vrot.lane.b32.xlu0 %v3199_v37, %s11877_s11  ;;  %v11097_v37 = vld [vmem:[#allocation2 + $0xe8] sm:$0xfe]  }
 0x269   : > { %3223 = vrot.lane.b32.xlu1 %v3198_v13, %s11877_s11  ;;  %v13464_v38 = vpop.permute.xlu0 %2869  ;;  %v11092_v13 = vld [vmem:[#allocation2 + $0xb8] ss:$0 sps:$4 sm:$0x11]   ;;  %v4902_v45 = vrot.slane %v11097_v37, 6 }
 0x26a   : > { %16090 = vst [vmem:[#allocation81_spill] sm:$0xff] %v13464_v38  ;;  %v11191_v38 = vld [vmem:[%s12093_s13 + $0x40] sm:$0xff]   ;;  %v4897_v21 = vrot.slane %v11092_v13, 6  ;;  %v11200_v13 = vld [vmem:[%s12093_s13 + $0x48] sm:$0xff]  }
 0x26b   : > { %v13462_v31 = vpop.permute.xlu1 %2871  ;;  %9718 = vmatmul.mubr.msk.bf16.vlgmr.msra.gmra.mxu1 %vm519_vm7, %v11191_v38 }
 0x26c   : > { %16089 = vst [vmem:[#allocation80_spill] sm:$0xff] %v13462_v31  ;;  %3229 = vrot.lane.b32.xlu0 %v3201_v33, %s11877_s11  ;;  %690 = vmatprep.mubr.bf16.mxu1 %v16059_v43  ;;  %v4898_v59 = vsel %vm4895_vm8, %v4896_v0, %v4897_v21  ;;  %v4903_v33 = vrot.slane %v11098_v46, 6  ;;  %v11103_v21 = vld [vmem:[#allocation2 + $0x120] sm:$0xfe]   ;;  %v11236_v31 = vld [vmem:[%s12093_s13 + $0x68] sm:$0xff]  }
 0x26d   : > { %3227 = vrot.lane.b32.xlu1 %v3200_v57, %s11877_s11  ;;  %v13472_v23 = vpop.permute.xlu0 %2873 }
 0x26e   : > { %16092 = vst [vmem:[#allocation83_spill] sm:$0xff] %v13472_v23  ;;  %v4904_v37 = vsel %vm4895_vm8, %v4902_v45, %v4903_v33  ;;  %v11114_v33 = vld [vmem:[#allocation2 + $0x160] ss:$0 sps:$4 sm:$0x11]   ;;  %v11126_v23 = vld [vmem:[#allocation2 + $0x1e4] sm:$0xfe]  }
 0x26f   : > { %v13470_v16 = vpop.permute.xlu1 %2875 }
 0x270   : > { %16091 = vst [vmem:[#allocation82_spill] sm:$0xff] %v13470_v16  ;;  %3233 = vrot.lane.b32.xlu0 %v3203_v28, %s11877_s11  ;;  %v11122_v16 = vld [vmem:[#allocation2 + $0x1b4] ss:$0 sps:$4 sm:$0x11]  }
 0x271   : > { %3231 = vrot.lane.b32.xlu1 %v3202_v35, %s11877_s11  ;;  %v13481_v57 = vpop.permute.xlu0 %2877  ;;  %v11100_v35 = vld [vmem:[#allocation2 + $0x104] sm:$0xfe]  }
 0x272   : > { %16094 = vst [vmem:[#allocation85_spill] sm:$0xff] %v13481_v57  ;;  %v11101_v57 = vld [vmem:[#allocation2 + $0x10c] ss:$0 sps:$4 sm:$0x11]  }
 0x273   : > { %v13478_v6 = vpop.permute.xlu1 %2879  ;;  %9719 = vmatmul.mubr.msk.bf16.gmra.mxu1 %vm519_vm7, %v11200_v13  ;;  %v4906_v46 = vrot.slane %v11101_v57, 6  ;;  %v4908_v13 = vrot.slane %v11103_v21, 6 }
 0x274   : > { %16093 = vst [vmem:[#allocation84_spill] sm:$0xff] %v13478_v6  ;;  %4944 = vrot.lane.b32.xlu0 %v4896_v0, %s11875_s24  ;;  %700 = vmatprep.mubr.bf16.mxu1 %v16059_v43  ;;  %v4905_v0 = vrot.slane %v11100_v35, 6  ;;  %v11113_v35 = vld [vmem:[#allocation2 + $0x158] sm:$0xfe]  }
 0x275   : > { %3235 = vrot.lane.b32.xlu1 %v3204_v53, %s11877_s11  ;;  %v13488_v38 = vpop.permute.xlu0 %2881  ;;  %v4901_v53 = vsel %vm4895_vm8, %v4899_v9, %v4900_v7 }
 0x276   : > { %16096 = vst [vmem:[#allocation87_spill] sm:$0xff] %v13488_v38  ;;  %v11209_v38 = vld [vmem:[%s12093_s13 + $0x50] sm:$0xff]  }
 0x277   : > { %v13486_v27 = vpop.permute.xlu1 %2883 }
 0x278   : > { %16095 = vst [vmem:[#allocation86_spill] sm:$0xff] %v13486_v27  ;;  %4948 = vrot.lane.b32.xlu0 %v4899_v9, %s11875_s24  ;;  %v11109_v27 = vld [vmem:[#allocation2 + $0x144] ss:$0 sps:$4 sm:$0x11]  }
 0x279   : > { %4946 = vrot.lane.b32.xlu1 %v4898_v59, %s11875_s24  ;;  %v13498_v25 = vpop.permute.xlu0 %2885 }
 0x27a   : > { %16098 = vst [vmem:[#allocation89_spill] sm:$0xff] %v13498_v25  ;;  %v4909_v25 = vrot.slane %v11104_v60, 6  ;;  %v4912_v60 = vrot.slane %v11109_v27, 6 }
 0x27b   : > { %v13495_v28 = vpop.permute.xlu1 %2887  ;;  %9720 = vmatmul.mubr.msk.bf16.gmra.mxu1 %vm519_vm7, %v11209_v38  ;;  %v4914_v38 = vrot.slane %v11113_v35, 6 }
 0x27c   : > { %16097 = vst [vmem:[#allocation88_spill] sm:$0xff] %v13495_v28  ;;  %v11108_v28 = vld [vmem:[#allocation2 + $0x13c] sm:$0xfe]   ;;  %4952 = vrot.lane.b32.xlu0 %v4902_v45, %s11875_s24  ;;  %710 = vmatprep.mubr.bf16.mxu1 %v16059_v43  ;;  %v4910_v21 = vsel %vm4895_vm8, %v4908_v13, %v4909_v25  ;;  %v11118_v25 = vld [vmem:[#allocation2 + $0x190] sm:$0xfe]  }
 0x27d   : > { %4950 = vrot.lane.b32.xlu1 %v4901_v53, %s11875_s24  ;;  %v13505_v7 = vpop.permute.xlu0 %2889  ;;  %v4907_v53 = vsel %vm4895_vm8, %v4905_v0, %v4906_v46  ;;  %v4911_v45 = vrot.slane %v11108_v28, 6 }
 0x27e   : > { %16100 = vst [vmem:[#allocation91_spill] sm:$0xff] %v13505_v7  ;;  %v11218_v7 = vld [vmem:[%s12093_s13 + $0x58] sm:$0xff]  }
 0x27f   : > { %v13503_v59 = vpop.permute.xlu1 %2891 }
 0x280   : > { %16099 = vst [vmem:[#allocation90_spill] sm:$0xff] %v13503_v59  ;;  %4956 = vrot.lane.b32.xlu0 %v4905_v0, %s11875_s24  ;;  %v11117_v59 = vld [vmem:[#allocation2 + $0x17c] ss:$0 sps:$4 sm:$0x11]  }
 0x281   : > { %4954 = vrot.lane.b32.xlu1 %v4904_v37, %s11875_s24  ;;  %v13515_v57 = vpop.permute.xlu0 %2893  ;;  %v11119_v0 = vld [vmem:[#allocation2 + $0x198] ss:$0 sps:$4 sm:$0x11]  }
 0x282   : > { %16102 = vst [vmem:[#allocation93_spill] sm:$0xff] %v13515_v57  ;;  %v4915_v57 = vrot.slane %v11114_v33, 6  ;;  %v4918_v33 = vrot.slane %v11117_v59, 6  ;;  %v4921_v6 = vrot.slane %v11119_v0, 6  ;;  %v4924_v0 = vrot.slane %v11122_v16, 6 }
 0x283   : > { %v13512_v9 = vpop.permute.xlu1 %2895  ;;  %9721 = vmatmul.mubr.msk.bf16.gmra.mxu1 %vm519_vm7, %v11218_v7  ;;  %v4920_v7 = vrot.slane %v11118_v25, 6 }
 0x284   : > { %16101 = vst [vmem:[#allocation92_spill] sm:$0xff] %v13512_v9  ;;  %v11116_v9 = vld [vmem:[#allocation2 + $0x174] sm:$0xfe]   ;;  %4960 = vrot.lane.b32.xlu0 %v4908_v13, %s11875_s24  ;;  %720 = vmatprep.mubr.bf16.mxu1 %v16059_v43  ;;  %v4916_v35 = vsel %vm4895_vm8, %v4914_v38, %v4915_v57  ;;  %v11123_v57 = vld [vmem:[#allocation2 + $0x1c8] sm:$0xfe]  }
 0x285   : > { %4958 = vrot.lane.b32.xlu1 %v4907_v53, %s11875_s24  ;;  %v13522_v46 = vpop.permute.xlu0 %2897  ;;  %v4913_v53 = vsel %vm4895_vm8, %v4911_v45, %v4912_v60  ;;  %v4917_v13 = vrot.slane %v11116_v9, 6  ;;  %v4922_v25 = vsel %vm4895_vm8, %v4920_v7, %v4921_v6 }
 0x286   : > { %16104 = vst [vmem:[#allocation95_spill] sm:$0xff] %v13522_v46  ;;  %v11121_v46 = vld [vmem:[#allocation2 + $0x1ac] sm:$0xfe]  }
 0x287   : > { %v13520_v37 = vpop.permute.xlu1 %2899 }
 0x288   : > { %16103 = vst [vmem:[#allocation94_spill] sm:$0xff] %v13520_v37  ;;  %4964 = vrot.lane.b32.xlu0 %v4911_v45, %s11875_s24  ;;  %v11227_v37 = vld [vmem:[%s12093_s13 + $0x60] sm:$0xff]  }
 0x289   : > { %4962 = vrot.lane.b32.xlu1 %v4910_v21, %s11875_s24  ;;  %v13532_v27 = vpop.permute.xlu0 %3077  ;;  %v11124_v45 = vld [vmem:[#allocation2 + $0x1d0] ss:$0 sps:$4 sm:$0x11]  }
 0x28a   : > { %v4927_v55 = vrot.slane %v11124_v45, 6  ;;  %v4930_v45 = vrot.slane %v11127_v56, 6 }
 0x28b   : > { %v13529_v28 = vpop.permute.xlu1 %3079  ;;  %9722 = vmatmul.mubr.msk.bf16.gmra.mxu1 %vm519_vm7, %v11227_v37  ;;  %v4926_v37 = vrot.slane %v11123_v57, 6 }
 0x28c   : > { %4968 = vrot.lane.b32.xlu0 %v4914_v38, %s11875_s24  ;;  %730 = vmatprep.mubr.bf16.mxu1 %v16059_v43  ;;  %v4923_v38 = vrot.slane %v11121_v46, 6  ;;  %v11128_v46 = vld [vmem:[#allocation2 + $0x200] sm:$0xfe]  }
 0x28d   : > { %4966 = vrot.lane.b32.xlu1 %v4913_v53, %s11875_s24  ;;  %v13539_v60 = vpop.permute.xlu0 %3081  ;;  %v4919_v53 = vsel %vm4895_vm8, %v4917_v13, %v4918_v33  ;;  %v4928_v57 = vsel %vm4895_vm8, %v4926_v37, %v4927_v55 }
 0x28f   : > { %v13537_v21 = vpop.permute.xlu1 %3083 }
 0x290   : > { %4972 = vrot.lane.b32.xlu0 %v4917_v13, %s11875_s24  ;;  %v11129_v13 = vld [vmem:[#allocation2 + $0x208] ss:$0 sps:$4 sm:$0x11]  }
 0x291   : > { %4970 = vrot.lane.b32.xlu1 %v4916_v35, %s11875_s24  ;;  %v13549_v59 = vpop.permute.xlu0 %3085  ;;  %v4933_v50 = vrot.slane %v11129_v13, 6  ;;  %v4936_v13 = vrot.slane %v11132_v39, 6 }
 0x293   : > { %v13546_v9 = vpop.permute.xlu1 %3087  ;;  %9723 = vmatmul.mubr.msk.bf16.gmra.mxu1 %vm519_vm7, %v11236_v31  ;;  %v4932_v31 = vrot.slane %v11128_v46, 6 }
 0x294   : > { %4976 = vrot.lane.b32.xlu0 %v4920_v7, %s11875_s24  ;;  %740 = vmatprep.mubr.bf16.mxu1 %v16059_v43  ;;  %v4929_v7 = vrot.slane %v11126_v23, 6  ;;  %v11133_v23 = vld [vmem:[#allocation2 + $0x238] sm:$0xfe]  }
 0x295   : > { %4974 = vrot.lane.b32.xlu1 %v4919_v53, %s11875_s24  ;;  %v13556_v33 = vpop.permute.xlu0 %3089  ;;  %v4925_v53 = vsel %vm4895_vm8, %v4923_v38, %v4924_v0  ;;  %v4934_v46 = vsel %vm4895_vm8, %v4932_v31, %v4933_v50  ;;  %v11257_v50 = vld [vmem:[#allocation8 + $0x2c] ss:$16 sps:$4 sm:$0xff]  }
 0x296   : > { %773 = vmatprep.subr.bf16.mxu1 %v11257_v50  ;;  %v11148_v50 = vld [vmem:[#allocation2 + $0xd8] ss:$0 sps:$4 sm:$0x77]  }
 0x297   : > { %v13554_v35 = vpop.permute.xlu1 %3091  ;;  %774 = vmatpush1.bf16.msra.mxu1 %v11255_v29 }
 0x298   : > { %4980 = vrot.lane.b32.xlu0 %v4923_v38, %s11875_s24  ;;  %v11134_v38 = vld [vmem:[#allocation2 + $0x240] ss:$0 sps:$4 sm:$0x11]  }
 0x299   : > { %4978 = vrot.lane.b32.xlu1 %v4922_v25, %s11875_s24  ;;  %v13566_v16 = vpop.permute.xlu0 %3093 }
 0x29b   : > { %v13563_v6 = vpop.permute.xlu1 %3095  ;;  %9724 = vmatmul.mubr.msk.bf16.gmra.mxu1 %vm519_vm7, %v11245_v18  ;;  %v11138_v18 = vld [vmem:[#allocation2 + $0x254] sm:$0xfe]  }
 0x29c   : > { %4984 = vrot.lane.b32.xlu0 %v4926_v37, %s11875_s24  ;;  %750 = vmatprep.mubr.bf16.mxu1 %v16059_v43  ;;  %v4935_v37 = vrot.slane %v11131_v3, 6 }
 0x29d   : > { %4982 = vrot.lane.b32.xlu1 %v4925_v53, %s11875_s24  ;;  %v13573_v0 = vpop.permute.xlu0 %3097  ;;  %v4931_v53 = vsel %vm4895_vm8, %v4929_v7, %v4930_v45 }
 0x29e   : > { %16106 = vst [vmem:[#allocation97_spill] sm:$0xff] %v13573_v0  ;;  %v11254_v0 = vld [vmem:[%s12093_s13 + $0x78] sm:$0xff]  }
 0x29f   : > { %v13571_v25 = vpop.permute.xlu1 %3099 }
 0x2a0   : > { %16105 = vst [vmem:[#allocation96_spill] sm:$0xff] %v13571_v25  ;;  %4988 = vrot.lane.b32.xlu0 %v4929_v7, %s11875_s24  ;;  %v4939_v25 = vrot.slane %v11134_v38, 6  ;;  %v4937_v7 = vsel %vm4895_vm8, %v4935_v37, %v4936_v13  ;;  %v11143_v13 = vld [vmem:[#allocation2 + $0xbc] ss:$0 sps:$4 sm:$0x77]  }
 0x2a1   : > { %4986 = vrot.lane.b32.xlu1 %v4928_v57, %s11875_s24  ;;  %v13583_v56 = vpop.permute.xlu0 %3101 }
 0x2a2   : > { %16108 = vst [vmem:[#allocation99_spill] sm:$0xff] %v13583_v56  ;;  %v4938_v56 = vrot.slane %v11133_v23, 6  ;;  %v11260_v23 = vld [vmem:[#allocation8 + $0x8] ss:$16 sps:$4 sm:$0xff]  }
 0x2a3   : > { %v13580_v55 = vpop.permute.xlu1 %3103  ;;  %9725 = vmatmul.mubr.msk.bf16.gmra.mxu1 %vm519_vm7, %v11254_v0 }
 0x2a4   : > { %16107 = vst [vmem:[#allocation98_spill] sm:$0xff] %v13580_v55  ;;  %v11139_v55 = vld [vmem:[#allocation2 + $0x25c] ss:$0 sps:$4 sm:$0x11]   ;;  %4992 = vrot.lane.b32.xlu0 %v4932_v31, %s11875_s24  ;;  %793 = vmatprep.mubr.bf16.mxu1 %v16059_v43  ;;  %v11262_v31 = vld [vmem:[#allocation8 + $0xc] ss:$16 sps:$4 sm:$0xff]   ;;  %v4940_v0 = vsel %vm4895_vm8, %v4938_v56, %v4939_v25 }
 0x2a5   : > { %4990 = vrot.lane.b32.xlu1 %v4931_v53, %s11875_s24  ;;  %v13590_v45 = vpop.permute.xlu0 %3105  ;;  %v4941_v53 = vrot.slane %v11138_v18, 6  ;;  %775 = vmatprep.subr.bf16.mxu1 %v11262_v31  ;;  %v11635_v25 = vld [vmem:[%s12093_s13] sm:$0xff]  }
 0x2a6   : > { %776 = vmatpush1.bf16.msra.mxu1 %v11260_v23 }
 0x2a7   : > { %v13588_v57 = vpop.permute.xlu1 %3107 }
 0x2a8   : > { %16109 = vst [vmem:[#allocation100_spill] sm:$0xff] %v13588_v57  ;;  %v4942_v57 = vrot.slane %v11139_v55, 6  ;;  %4996 = vrot.lane.b32.xlu0 %v4935_v37, %s11875_s24  ;;  %v11142_v37 = vld [vmem:[#allocation2 + $0xb4] sm:$0xf8]  }
 0x2a9   : > { %4994 = vrot.lane.b32.xlu1 %v4934_v46, %s11875_s24  ;;  %v13600_v3 = vpop.permute.xlu0 %3109 }
 0x2aa   : > { %16110 = vst [vmem:[#allocation101_spill] sm:$0xff] %v13600_v3  ;;  %v4943_v55 = vsel %vm4895_vm8, %v4941_v53, %v4942_v57  ;;  %v11147_v57 = vld [vmem:[#allocation2 + $0xd0] sm:$0xf8]   ;;  %v11637_v3 = vld [vmem:[%s12093_s13 + $0x10] sm:$0xff]  }
 0x2ab   : > { %v13597_v39 = vpop.permute.xlu1 %3111  ;;  %9726 = vmatmul.mubr.msk.bf16.vlgmr.msra.gmra.mxu1 %vm519_vm7, %v11635_v25  ;;  %v10946_v25 = vld [vmem:[#allocation2 + $0x154] sm:$0xfc]  }
 0x2ac   : > { %5000 = vrot.lane.b32.xlu0 %v4938_v56, %s11875_s24  ;;  %803 = vmatprep.mubr.bf16.mxu1 %v16059_v43 }
 0x2ad   : > { %4998 = vrot.lane.b32.xlu1 %v4937_v7, %s11875_s24  ;;  %v13607_v46 = vpop.permute.xlu0 %3113 }
 0x2ae   : > { %16112 = vst [vmem:[#allocation103_spill] sm:$0xff] %v13607_v46  ;;  %v3239_v46 = vsel %vm519_vm7, %v10946_v25, %v13075_v58 }
 0x2af   : > { %v13605_v38 = vpop.permute.xlu1 %3115 }
 0x2b0   : > { %16111 = vst [vmem:[#allocation102_spill] sm:$0xff] %v13605_v38  ;;  %5004 = vrot.lane.b32.xlu0 %v4941_v53, %s11875_s24  ;;  %v11152_v53 = vld [vmem:[#allocation2 + $0xf4] ss:$0 sps:$4 sm:$0x77]  }
 0x2b1   : > { %5002 = vrot.lane.b32.xlu1 %v4940_v0, %s11875_s24  ;;  %v13614_v18 = vpop.permute.xlu0 %3117  ;;  %v11636_v0 = vld [vmem:[%s12093_s13 + $0x8] sm:$0xff]  }
 0x2b2   : > { %16114 = vst [vmem:[#allocation105_spill] sm:$0xff] %v13614_v18 }
 0x2b3   : > { %v13612_v29 = vpop.permute.xlu1 %3119  ;;  %9727 = vmatmul.mubr.msk.bf16.gmra.mxu1 %vm519_vm7, %v11636_v0 }
 0x2b4   : > { %16113 = vst [vmem:[#allocation104_spill] sm:$0xff] %v13612_v29  ;;  %5136 = vrot.lane.b32.xlu0 %v11142_v37, %s11876_s7  ;;  %813 = vmatprep.mubr.bf16.mxu1 %v16059_v43  ;;  %v13644_v29 = vld [vmem:[#allocation2 + $0x23c] sm:$0xff]  }
 0x2b5   : > { %5006 = vrot.lane.b32.xlu1 %v4943_v55, %s11875_s24  ;;  %v13623_v56 = vpop.permute.xlu0 %3121  ;;  %v11057_v55 = vld [vmem:[#allocation2 + $0x204] sm:$0xff]  }
 0x2b6   : > { %16116 = vst [vmem:[#allocation107_spill] sm:$0xff] %v13623_v56  ;;  %v10958_v56 = vld [vmem:[#allocation2 + $0x15c] ss:$0 sps:$4 sm:$0x33]   ;;  %v2693_v0 = vrot.slane %v11057_v55, 6 }
 0x2b7   : > { %v13621_v7 = vpop.permute.xlu1 %3123  ;;  %v3242_v18 = vsel %vm519_vm7, %v10958_v56, %v13093_v10  ;;  %v3335_v10 = vsel %vm3333_vm9, %v3239_v46, %v13171_v1  ;;  %v10949_v56 = vld [vmem:[#allocation2 + $0x178] ss:$0 sps:$4 sm:$0x33]   ;;  %v11166_v46 = vld [vmem:[#allocation2 + $0x148] ss:$0 sps:$4 sm:$0x77]  }
 0x2b8   : > { %16115 = vst [vmem:[#allocation106_spill] sm:$0xff] %v13621_v7  ;;  %5140 = vrot.lane.b32.xlu0 %v11147_v57, %s11876_s7  ;;  %v11060_v7 = vld [vmem:[#allocation2 + $0x220] sm:$0xff]   ;;  %v3336_v55 = vsel %vm3333_vm9, %v3242_v18, %v13171_v1  ;;  %v3384_v58 = vsel %vm3382_vm10, %v3335_v10, %v13221_v24 }
 0x2b9   : > { %5138 = vrot.lane.b32.xlu1 %v11143_v13, %s11876_s7  ;;  %v13629_v31 = vpop.permute.xlu0 %3125  ;;  %v11151_v13 = vld [vmem:[#allocation2 + $0xec] sm:$0xf8]   ;;  %v2694_v57 = vrot.slane %v11060_v7, 6  ;;  %v3386_v7 = vsel %vm3382_vm10, %v3336_v55, %v13219_v15  ;;  %v3704_v1 = vrot.slane %v3384_v58, 2  ;;  %v11165_v15 = vld [vmem:[#allocation2 + $0x140] sm:$0xf8]   ;;  %v3449_v55 = vsel %vm519_vm7, %v2693_v0, %v13398_v63 }
 0x2ba   : > { %16118 = vst [vmem:[#allocation109_spill] sm:$0xff] %v13629_v31  ;;  %v11157_v31 = vld [vmem:[#allocation2 + $0x110] ss:$0 sps:$4 sm:$0x77]   ;;  %v3705_v25 = vrot.slane %v3386_v7, 2 }
 0x2bb   : > { %v13627_v23 = vpop.permute.xlu1 %3127  ;;  %9728 = vmatmul.mubr.msk.bf16.gmra.mxu1 %vm519_vm7, %v11637_v3  ;;  %v2695_v3 = vrot.slane %v13644_v29, 6  ;;  %v3454_v24 = vsel %vm519_vm7, %v2694_v57, %v13406_v5  ;;  %v3451_v29 = vsel %vm519_vm7, %v2693_v0, %v13395_v48  ;;  %v11170_v7 = vld [vmem:[#allocation2 + $0x164] ss:$0 sps:$4 sm:$0x77]   ;;  %v11169_v63 = vld [vmem:[#allocation2 + $0x15c] sm:$0xf8]  }
 0x2bc   : > { %16117 = vst [vmem:[#allocation108_spill] sm:$0xff] %v13627_v23  ;;  %5144 = vrot.lane.b32.xlu0 %v11151_v13, %s11876_s7  ;;  %823 = vmatprep.mubr.bf16.mxu1 %v16059_v43  ;;  %v3532_v10 = vsel %vm3333_vm9, %v3454_v24, %v13539_v60  ;;  %v3530_v5 = vsel %vm3333_vm9, %v3451_v29, %v13529_v28  ;;  %v11638_v0 = vld [vmem:[%s12093_s13 + $0x18] sm:$0xff]  }
 0x2bd   : > { %5142 = vrot.lane.b32.xlu1 %v11148_v50, %s11876_s7  ;;  %v13638_v23 = vpop.permute.xlu0 %3129  ;;  %v11156_v50 = vld [vmem:[#allocation2 + $0x108] sm:$0xf8]   ;;  %v3248_v28 = vsel %vm519_vm7, %v10949_v56, %v13079_v62 }
 0x2be   : > { %16120 = vst [vmem:[#allocation111_spill] sm:$0xff] %v13638_v23  ;;  %v11160_v23 = vld [vmem:[#allocation2 + $0x124] sm:$0xf8]  }
 0x2bf   : > { %v13636_v37 = vpop.permute.xlu1 %3131 }
 0x2c0   : > { %16119 = vst [vmem:[#allocation110_spill] sm:$0xff] %v13636_v37  ;;  %v11161_v37 = vld [vmem:[#allocation2 + $0x12c] ss:$0 sps:$4 sm:$0x77]   ;;  %5148 = vrot.lane.b32.xlu0 %v11156_v50, %s11876_s7  ;;  %v10945_v50 = vld [vmem:[#allocation2 + $0x170] sm:$0xfc]  }
 0x2c1   : > { %5146 = vrot.lane.b32.xlu1 %v11152_v53, %s11876_s7  ;;  %v13652_v53 = vpop.permute.xlu0 %3133 }
 0x2c3   : > { %v13646_v38 = vpop.permute.xlu1 %3135  ;;  %9729 = vmatmul.mubr.msk.bf16.gmra.mxu1 %vm519_vm7, %v11638_v0 }
 0x2c4   : > { %5152 = vrot.lane.b32.xlu0 %v11160_v23, %s11876_s7  ;;  %v3528_v23 = vsel %vm3333_vm9, %v3449_v55, %v13532_v27  ;;  %833 = vmatprep.mubr.bf16.mxu1 %v16059_v43  ;;  %v3245_v55 = vsel %vm519_vm7, %v10945_v50, %v13073_v17  ;;  %v3461_v50 = vsel %vm519_vm7, %v2695_v3, %v13414_v26  ;;  %v11171_v26 = vld [vmem:[#allocation2 + $0x178] sm:$0xf8]  }
 0x2c5   : > { %5150 = vrot.lane.b32.xlu1 %v11157_v31, %s11876_s7  ;;  %v13668_v13 = vpop.permute.xlu0 %3137  ;;  %v3456_v31 = vsel %vm519_vm7, %v2694_v57, %v13404_v42 }
 0x2c7   : > { %v13665_v18 = vpop.permute.xlu1 %3139 }
 0x2c8   : > { %5156 = vrot.lane.b32.xlu0 %v11165_v15, %s11876_s7  ;;  %v3706_v15 = vsel %vm3703_vm11, %v3704_v1, %v3705_v25  ;;  %v954_v1 = vlaneseq }
 0x2c9   : > { %5154 = vrot.lane.b32.xlu1 %v11161_v37, %s11876_s7  ;;  %v3534_v37 = vsel %vm3333_vm9, %v3456_v31, %v13537_v21  ;;  %v3206_v58 = vpop.permute.xlu0 %3205 }
 0x2ca   : > { %v3592_v60 = vsel %vm3382_vm10, %v3528_v23, %v3206_v58  ;;  %v3593_v24 = vsel %vm3382_vm10, %v3530_v5, %v3206_v58  ;;  %v11066_v5 = vld [vmem:[#allocation2 + $0x258] sm:$0xff]   ;;  %v3459_v23 = vsel %vm519_vm7, %v2695_v3, %v13416_v32  ;;  %v10950_v32 = vld [vmem:[#allocation2 + $0x18c] sm:$0xfc]  }
 0x2cb   : > { %v3208_v42 = vpop.permute.xlu1 %3207  ;;  %v3707_v27 = vrot.slane %v3592_v60, 2  ;;  %v3708_v29 = vrot.slane %v3593_v24, 2  ;;  %v3536_v25 = vsel %vm3333_vm9, %v3459_v23, %v13549_v59  ;;  %v2696_v58 = vrot.slane %v11066_v5, 6  ;;  %v11174_v60 = vld [vmem:[#allocation2 + $0x19c] ss:$0 sps:$4 sm:$0x77]  }
 0x2cc   : > { %v3595_v57 = vsel %vm3382_vm10, %v3532_v10, %v3208_v42  ;;  %v3596_v48 = vsel %vm3382_vm10, %v3534_v37, %v3208_v42  ;;  %v3339_v37 = vsel %vm3333_vm9, %v3248_v28, %v13169_v61  ;;  %5160 = vrot.lane.b32.xlu0 %v11169_v63, %s11876_s7  ;;  %v13730_v59 = vshrl.u32 %v954_v1, 7  ;;  %v11639_v63 = vld [vmem:[%s12093_s13 + $0x20] sm:$0xff]  }
 0x2cd   : > { %v3713_v21 = vrot.slane %v3595_v57, 2  ;;  %v3714_v31 = vrot.slane %v3596_v48, 2  ;;  %5158 = vrot.lane.b32.xlu1 %v11166_v46, %s11876_s7  ;;  %v3338_v46 = vsel %vm3333_vm9, %v3245_v55, %v13169_v61  ;;  %v3390_v42 = vsel %vm3382_vm10, %v3339_v37, %v13226_v40  ;;  %v3210_v62 = vpop.permute.xlu0 %3209  ;;  %v11172_v61 = vld [vmem:[#allocation2 + $0x180] ss:$0 sps:$4 sm:$0x77]   ;;  %9730 = vmatmul.mubr.msk.bf16.gmra.mxu1 %vm519_vm7, %v11639_v63 }
 0x2ce   : > { %v3709_v56 = vsel %vm3703_vm11, %v3707_v27, %v3708_v29  ;;  %v3388_v17 = vsel %vm3382_vm10, %v3338_v46, %v13230_v54  ;;  %v10953_v40 = vld [vmem:[#allocation2 + $0x194] ss:$0 sps:$4 sm:$0x33]   ;;  %v3538_v57 = vsel %vm3333_vm9, %v3461_v50, %v13546_v9  ;;  %v3598_v3 = vsel %vm3382_vm10, %v3536_v25, %v3210_v62  ;;  %16121 = vst [vmem:[#allocation112_spill] sm:$0xff] %v13730_v59  ;;  %v11177_v63 = vld [vmem:[#allocation2 + $0x1cc] sm:$0xf8]  }
 0x2cf   : > { %v13703_v10 = vpop.permute.xlu1 %3211  ;;  %3992 = vmatprep.mubr.bf16.mxu0 %v3709_v56  ;;  %v3715_v54 = vsel %vm3703_vm11, %v3713_v21, %v3714_v31  ;;  %v3711_v9 = vrot.slane %v3390_v42, 2  ;;  %v3710_v21 = vrot.slane %v3388_v17, 2  ;;  %v11173_v31 = vld [vmem:[#allocation2 + $0x194] sm:$0xf8]   ;;  %843 = vmatprep.mubr.bf16.mxu1 %v16059_v43  ;;  %v3254_v24 = vsel %vm519_vm7, %v10953_v40, %v13085_v2  ;;  %v319_v5 = vld [vmem:[#allocation11] sm:$0xf] }
 0x2d0   : > { %3993 = vmatmul.mubr.bf16.vlgmr.msra.gmra.mxu0 %v3706_v15  ;;  %v3719_v28 = vrot.slane %v3598_v3, 2  ;;  %5164 = vrot.lane.b32.xlu0 %v11171_v26, %s11876_s7  ;;  %v956_v29 = vsub.s32 0, %v13730_v59  ;;  %v3251_v55 = vsel %vm519_vm7, %v10950_v32, %v13081_v49  ;;  %v3342_v37 = vsel %vm3333_vm9, %v3254_v24, %v13177_v11  ;;  %v11069_v46 = vld [vmem:[#allocation2 + $0x274] sm:$0xff]   ;;  %v10954_v17 = vld [vmem:[#allocation2 + $0x1a8] sm:$0xfc]  }
 0x2d1   : > { %5162 = vrot.lane.b32.xlu1 %v11170_v7, %s11876_s7  ;;  %v3599_v7 = vsel %vm3382_vm10, %v3538_v57, %v3210_v62  ;;  %4000 = vmatprep.mubr.bf16.mxu0 %v3715_v54  ;;  %v13728_v0 = vpop.permute.xlu0 %3213  ;;  %v3341_v62 = vsel %vm3333_vm9, %v3251_v55, %v13177_v11  ;;  %v3394_v2 = vsel %vm3382_vm10, %v3342_v37, %v13237_v52  ;;  %v11176_v52 = vld [vmem:[#allocation2 + $0x1b8] ss:$0 sps:$4 sm:$0x77]   ;;  %v2697_v25 = vrot.slane %v11069_v46, 6 }
 0x2d2   : > { %v3720_v27 = vrot.slane %v3599_v7, 2  ;;  %v13752_v15 = vrot.slane %v319_v5, %v956_v29  ;;  %v3392_v49 = vsel %vm3382_vm10, %v3341_v62, %v13239_v47  ;;  %v3466_v50 = vsel %vm519_vm7, %v2696_v58, %v13422_v19  ;;  %v11175_v19 = vld [vmem:[#allocation2 + $0x1b0] sm:$0xf8]   ;;  %v10961_v46 = vld [vmem:[#allocation2 + $0x1cc] ss:$0 sps:$4 sm:$0x33]  }
 0x2d3   : > { %v13726_v48 = vpop.permute.xlu1 %3215  ;;  %v3464_v23 = vsel %vm519_vm7, %v2696_v58, %v13424_v44  ;;  %v3712_v11 = vsel %vm3703_vm11, %v3710_v21, %v3711_v9  ;;  %v3542_v40 = vsel %vm3333_vm9, %v3466_v50, %v13554_v35  ;;  %v11178_v1 = vld [vmem:[#allocation2 + $0x1d4] ss:$0 sps:$4 sm:$0x77]   ;;  %v3717_v32 = vrot.slane %v3394_v2, 2  ;;  %v11640_v58 = vld [vmem:[%s12093_s13 + $0x28] sm:$0xff]  }
 0x2d4   : > { %v3540_v57 = vsel %vm3333_vm9, %v3464_v23, %v13556_v33  ;;  %5168 = vrot.lane.b32.xlu0 %v11173_v31, %s11876_s7  ;;  %v3721_v47 = vsel %vm3703_vm11, %v3719_v28, %v3720_v27  ;;  %v3602_v26 = vsel %vm3382_vm10, %v3542_v40, %v13703_v10  ;;  %v3716_v3 = vrot.slane %v3392_v49, 2  ;;  %v13791_v29 = vld [vmem:[#allocation2 + $0x290] sm:$0xff]   ;;  %v10962_v50 = vld [vmem:[#allocation2 + $0x1c4] sm:$0xfc]  }
 0x2d5   : > { %5166 = vrot.lane.b32.xlu1 %v11172_v61, %s11876_s7  ;;  %v13750_v56 = vpop.permute.xlu0 %3217  ;;  %v10957_v61 = vld [vmem:[#allocation2 + $0x1b0] ss:$0 sps:$4 sm:$0x33]   ;;  %v3601_v54 = vsel %vm3382_vm10, %v3540_v57, %v13703_v10  ;;  %9731 = vmatmul.mubr.msk.bf16.gmra.mxu1 %vm519_vm7, %v11640_v58  ;;  %v3726_v31 = vrot.slane %v3602_v26, 2  ;;  %v3257_v28 = vsel %vm519_vm7, %v10954_v17, %v13087_v4  ;;  %v3471_v17 = vsel %vm519_vm7, %v2697_v25, %v13430_v36  ;;  %v11179_v36 = vld [vmem:[#allocation2 + $0x1e8] sm:$0xf8]  }
 0x2d6   : > { %v602_v44 = vpop.f32.mrf.mxu0  ;;  %853 = vmatprep.mubr.bf16.mxu1 %v16059_v43  ;;  %v3260_v10 = vsel %vm519_vm7, %v10957_v61, %v13091_v51  ;;  %v3725_v21 = vrot.slane %v3601_v54, 2  ;;  %v3344_v51 = vsel %vm3333_vm9, %v3257_v28, %v13175_v8  ;;  %v11180_v49 = vld [vmem:[#allocation2 + $0x1f0] ss:$0 sps:$4 sm:$0x77]   ;;  %v3546_v23 = vsel %vm3333_vm9, %v3471_v17, %v13563_v6  ;;  %v11641_v26 = vld [vmem:[%s12093_s13 + $0x30] sm:$0xff]  }
 0x2d7   : > { %v13744_v42 = vpop.permute.xlu1 %3219  ;;  %v958_v33 = vadd.f32 %v13752_v15, %v602_v44  ;;  %v3345_v27 = vsel %vm3333_vm9, %v3260_v10, %v13175_v8  ;;  %v3396_v2 = vsel %vm3382_vm10, %v3344_v51, %v13250_v41  ;;  %v3469_v8 = vsel %vm519_vm7, %v2697_v25, %v13432_v30  ;;  %v11182_v57 = vld [vmem:[#allocation2 + $0x20c] ss:$0 sps:$4 sm:$0x77]   ;;  %v11186_v17 = vld [vmem:[#allocation2 + $0x228] ss:$0 sps:$4 sm:$0x77]  }
 0x2d8   : > { %4001 = vmatmul.mubr.bf16.gmra.mxu0 %v3712_v11  ;;  %v13778_v9 = vpop.f32.mrf.mxu0  ;;  %5172 = vrot.lane.b32.xlu0 %v11175_v19, %s11876_s7  ;;  %v3398_v5 = vsel %vm3382_vm10, %v3345_v27, %v13246_v34  ;;  %v3718_v34 = vsel %vm3703_vm11, %v3716_v3, %v3717_v32  ;;  %v3544_v11 = vsel %vm3333_vm9, %v3469_v8, %v13566_v16  ;;  %v2698_v61 = vrot.slane %v13791_v29, 6  ;;  %v13867_v8 = vld [vmem:[#allocation2 + $0x2c8] sm:$0xff]  }
 0x2d9   : > { %5170 = vrot.lane.b32.xlu1 %v11174_v60, %s11876_s7  ;;  %4008 = vmatprep.mubr.bf16.mxu0 %v3721_v47  ;;  %v13776_v7 = vpop.permute.xlu0 %3221  ;;  %v990_v60 = vmax.f32 %v958_v33, 0.0  ;;  %v3727_v41 = vsel %vm3703_vm11, %v3725_v21, %v3726_v31  ;;  %v3604_v40 = vsel %vm3382_vm10, %v3544_v11, %v13728_v0  ;;  %v3605_v6 = vsel %vm3382_vm10, %v3546_v23, %v13728_v0  ;;  %v13840_v33 = vld [vmem:[#allocation2 + $0x2ac] sm:$0xff]  }
 0x2da   : > { %v606_v24 = vpop.f32.mrf.mxu0  ;;  %v3723_v19 = vrot.slane %v3398_v5, 2  ;;  %v3722_v44 = vrot.slane %v3396_v2, 2  ;;  %v3266_v0 = vsel %vm519_vm7, %v10961_v46, %v13097_v12  ;;  %v3731_v32 = vrot.slane %v3604_v40, 2  ;;  %v16123_v46 = vld [vmem:[#allocation74_spill] sm:$0xff]  ;;  %v16124_v5 = vld [vmem:[#allocation75_spill] sm:$0xff] }
 0x2db   : > { %v13772_v35 = vpop.permute.xlu1 %3223  ;;  %v959_v37 = vadd.f32 %v13752_v15, %v606_v24  ;;  %1022 = vst [vmem:[%s13802_s17 + $0x8] sm:$0xff] %v990_v60  ;;  %v3732_v3 = vrot.slane %v3605_v6, 2  ;;  %v3263_v10 = vsel %vm519_vm7, %v10962_v50, %v13099_v14  ;;  %v3348_v21 = vsel %vm3333_vm9, %v3266_v0, %v13183_v20  ;;  %v10965_v24 = vld [vmem:[#allocation2 + $0x1e8] ss:$0 sps:$4 sm:$0x33]   ;;  %v16122_v14 = vld [vmem:[#allocation51_spill] sm:$0xff] }
 0x2dc   : > { %v13805_v4 = vpop.f32.mrf.mxu0  ;;  %5176 = vrot.lane.b32.xlu0 %v11177_v63, %s11876_s7  ;;  %v3347_v12 = vsel %vm3333_vm9, %v3263_v10, %v13183_v20  ;;  %v3402_v28 = vsel %vm3382_vm10, %v3348_v21, %v13259_v22  ;;  %v3476_v51 = vsel %vm519_vm7, %v2698_v61, %v16123_v46  ;;  %v3474_v2 = vsel %vm519_vm7, %v2698_v61, %v16124_v5  ;;  %v10966_v22 = vld [vmem:[#allocation2 + $0x1e0] sm:$0xfc]   ;;  %v16126_v50 = vld [vmem:[#allocation97_spill] sm:$0xff]  ;;  %v16127_v0 = vld [vmem:[#allocation18_spill] sm:$0xff] }
 0x2dd   : > { %5174 = vrot.lane.b32.xlu1 %v11176_v52, %s11876_s7  ;;  %v13800_v62 = vpop.permute.xlu0 %3225  ;;  %v991_v30 = vmax.f32 %v959_v37, 0.0  ;;  %9732 = vmatmul.mubr.msk.bf16.gmra.mxu1 %vm519_vm7, %v11641_v26  ;;  %v3400_v37 = vsel %vm3382_vm10, %v3347_v12, %v16122_v14  ;;  %v3724_v20 = vsel %vm3703_vm11, %v3722_v44, %v3723_v19  ;;  %v3548_v23 = vsel %vm3333_vm9, %v3474_v2, %v16126_v50  ;;  %v11189_v12 = vld [vmem:[#allocation2 + $0x23c] sm:$0xf8]   ;;  %v16130_v46 = vld [vmem:[#allocation77_spill] sm:$0xff]  ;;  %v13904_v5 = vld [vmem:[#allocation2 + $0x2e4] sm:$0xff]  }
 0x2de   : > { %v612_v52 = vpop.f32.mrf.mxu0  ;;  %863 = vmatprep.mubr.bf16.mxu1 %v16059_v43  ;;  %v3733_v11 = vsel %vm3703_vm11, %v3731_v32, %v3732_v3  ;;  %v3607_v61 = vsel %vm3382_vm10, %v3548_v23, %v13726_v48  ;;  %v3728_v19 = vrot.slane %v3400_v37, 2  ;;  %v10969_v32 = vld [vmem:[#allocation2 + $0x204] ss:$0 sps:$4 sm:$0x33]   ;;  %v2700_v10 = vrot.slane %v13867_v8, 6 }
 0x2df   : > { %v13793_v55 = vpop.permute.xlu1 %3227  ;;  %v960_v47 = vadd.f32 %v13752_v15, %v612_v52  ;;  %1023 = vst [vmem:[%s13802_s17 + $0x30] sm:$0xff] %v991_v30  ;;  %v2699_v52 = vrot.slane %v13840_v33, 6  ;;  %v3272_v33 = vsel %vm519_vm7, %v10965_v24, %v16127_v0  ;;  %v3737_v21 = vrot.slane %v3607_v61, 2  ;;  %v16129_v24 = vld [vmem:[#allocation40_spill] sm:$0xff]  ;;  %v16133_v23 = vld [vmem:[#allocation99_spill] sm:$0xff]  ;;  %v16134_v61 = vld [vmem:[#allocation53_spill] sm:$0xff] }
 0x2e0   : > { %4009 = vmatmul.mubr.bf16.gmra.mxu0 %v3718_v34  ;;  %v13832_v54 = vpop.f32.mrf.mxu0  ;;  %5180 = vrot.lane.b32.xlu0 %v11179_v36, %s11876_s7  ;;  %v16125_v34 = vld [vmem:[#allocation96_spill] sm:$0xff]  ;;  %v3351_v37 = vsel %vm3333_vm9, %v3272_v33, %v16129_v24  ;;  %v11195_v33 = vld [vmem:[#allocation2 + $0x260] ss:$0 sps:$4 sm:$0x77]  }
 0x2e1   : > { %5178 = vrot.lane.b32.xlu1 %v11178_v1, %s11876_s7  ;;  %4016 = vmatprep.mubr.bf16.mxu0 %v3727_v41  ;;  %v13829_v25 = vpop.permute.xlu0 %3229  ;;  %v11181_v1 = vld [vmem:[#allocation2 + $0x204] sm:$0xf8]   ;;  %v992_v58 = vmax.f32 %v960_v47, 0.0  ;;  %v3729_v47 = vrot.slane %v3402_v28, 2 }
 0x2e2   : > { %v616_v63 = vpop.f32.mrf.mxu0  ;;  %v11185_v41 = vld [vmem:[#allocation2 + $0x220] sm:$0xf8]   ;;  %v11204_v8 = vld [vmem:[#allocation2 + $0x21c] ss:$0 sps:$4 sm:$0x77]  }
 0x2e3   : > { %v13826_v16 = vpop.permute.xlu1 %3231  ;;  %v961_v60 = vadd.f32 %v13752_v15, %v616_v63  ;;  %1024 = vst [vmem:[%s13802_s17 + $0x58] sm:$0xff] %v992_v58  ;;  %v16128_v58 = vld [vmem:[#allocation19_spill] sm:$0xff] }
 0x2e4   : > { %v13857_v29 = vpop.f32.mrf.mxu0  ;;  %5184 = vrot.lane.b32.xlu0 %v11181_v1, %s11876_s7  ;;  %v11642_v1 = vld [vmem:[%s12093_s13 + $0x38] sm:$0xff]   ;;  %v3269_v63 = vsel %vm519_vm7, %v10966_v22, %v16128_v58 }
 0x2e5   : > { %5182 = vrot.lane.b32.xlu1 %v11180_v49, %s11876_s7  ;;  %v13854_v27 = vpop.permute.xlu0 %3233  ;;  %v3550_v49 = vsel %vm3333_vm9, %v3476_v51, %v16125_v34  ;;  %v993_v36 = vmax.f32 %v961_v60, 0.0  ;;  %9733 = vmatmul.mubr.msk.bf16.gmra.mxu1 %vm519_vm7, %v11642_v1  ;;  %v3350_v14 = vsel %vm3333_vm9, %v3269_v63, %v16129_v24  ;;  %v3479_v51 = vsel %vm519_vm7, %v2699_v52, %v16130_v46  ;;  %v16131_v22 = vld [vmem:[#allocation52_spill] sm:$0xff]  ;;  %v16137_v46 = vld [vmem:[#allocation42_spill] sm:$0xff] }
 0x2e6   : > { %v622_v30 = vpop.f32.mrf.mxu0  ;;  %v3608_v40 = vsel %vm3382_vm10, %v3550_v49, %v13726_v48  ;;  %v11190_v48 = vld [vmem:[#allocation2 + $0x244] ss:$0 sps:$4 sm:$0x77]   ;;  %873 = vmatprep.mubr.bf16.mxu1 %v16059_v43  ;;  %v3406_v34 = vsel %vm3382_vm10, %v3351_v37, %v16131_v22  ;;  %v16132_v49 = vld [vmem:[#allocation76_spill] sm:$0xff]  ;;  %v11643_v22 = vld [vmem:[%s12093_s13 + $0x40] sm:$0xff]  }
 0x2e7   : > { %v13847_v31 = vpop.permute.xlu1 %3235  ;;  %1025 = vst [vmem:[%s13802_s17 + $0x80] sm:$0xff] %v993_v36  ;;  %v3738_v60 = vrot.slane %v3608_v40, 2  ;;  %v3481_v50 = vsel %vm519_vm7, %v2699_v52, %v16132_v49  ;;  %v3730_v36 = vsel %vm3703_vm11, %v3728_v19, %v3729_v47  ;;  %v3404_v40 = vsel %vm3382_vm10, %v3350_v14, %v16134_v61  ;;  %v11194_v52 = vld [vmem:[#allocation2 + $0x258] sm:$0xf8]   ;;  %v16136_v63 = vld [vmem:[#allocation20_spill] sm:$0xff] }
 0x2e8   : > { %4017 = vmatmul.mubr.bf16.gmra.mxu0 %v3724_v20  ;;  %v13886_v26 = vpop.f32.mrf.mxu0  ;;  %5188 = vrot.lane.b32.xlu0 %v11185_v41, %s11876_s7  ;;  %v3735_v24 = vrot.slane %v3406_v34, 2  ;;  %v2701_v14 = vrot.slane %v13904_v5, 6  ;;  %v11199_v37 = vld [vmem:[#allocation2 + $0x200] ss:$0 sps:$4 sm:$0x77]   ;;  %v16138_v34 = vld [vmem:[#allocation54_spill] sm:$0xff] }
 0x2e9   : > { %5186 = vrot.lane.b32.xlu1 %v11182_v57, %s11876_s7  ;;  %4024 = vmatprep.mubr.bf16.mxu0 %v3733_v11  ;;  %v962_v57 = vadd.f32 %v13752_v15, %v622_v30  ;;  %v13883_v44 = vpop.permute.xlu0 %4944  ;;  %v3552_v11 = vsel %vm3333_vm9, %v3479_v51, %v16133_v23  ;;  %v3739_v19 = vsel %vm3703_vm11, %v3737_v21, %v3738_v60  ;;  %v3734_v51 = vrot.slane %v3404_v40, 2  ;;  %v16140_v61 = vld [vmem:[#allocation79_spill] sm:$0xff] }
 0x2ea   : > { %v626_v28 = vpop.f32.mrf.mxu0  ;;  %v3610_v0 = vsel %vm3382_vm10, %v3552_v11, %v13750_v56  ;;  %v16139_v11 = vld [vmem:[#allocation21_spill] sm:$0xff]  ;;  %v3484_v40 = vsel %vm519_vm7, %v2700_v10, %v16140_v61 }
 0x2eb   : > { %v13880_v6 = vpop.permute.xlu1 %4946  ;;  %v994_v3 = vmax.f32 %v962_v57, 0.0  ;;  %v963_v20 = vadd.f32 %v13752_v15, %v626_v28  ;;  %v16135_v57 = vld [vmem:[#allocation98_spill] sm:$0xff]  ;;  %v3278_v28 = vsel %vm519_vm7, %v10969_v32, %v16136_v63  ;;  %v3743_v21 = vrot.slane %v3610_v0, 2 }
 0x2ec   : > { %v13919_v30 = vpop.f32.mrf.mxu0  ;;  %v3554_v1 = vsel %vm3333_vm9, %v3481_v50, %v16135_v57  ;;  %5192 = vrot.lane.b32.xlu0 %v11189_v12, %s11876_s7  ;;  %v3354_v12 = vsel %vm3333_vm9, %v3278_v28, %v16137_v46  ;;  %v3556_v0 = vsel %vm3333_vm9, %v3484_v40, %v13590_v45  ;;  %v16143_v63 = vld [vmem:[#allocation78_spill] sm:$0xff] }
 0x2ed   : > { %5190 = vrot.lane.b32.xlu1 %v11186_v17, %s11876_s7  ;;  %1026 = vst [vmem:[%s13802_s17 + $0xa8] sm:$0xff] %v994_v3  ;;  %v10970_v17 = vld [vmem:[#allocation2 + $0x1fc] sm:$0xfc]   ;;  %v13916_v41 = vpop.permute.xlu0 %4948  ;;  %v995_v3 = vmax.f32 %v963_v20, 0.0  ;;  %v3611_v47 = vsel %vm3382_vm10, %v3554_v1, %v13750_v56  ;;  %9734 = vmatmul.mubr.msk.bf16.gmra.mxu1 %vm519_vm7, %v11643_v22  ;;  %v13949_v49 = vsel %vm3382_vm10, %v3354_v12, %v16138_v34  ;;  %v16145_v12 = vld [vmem:[#allocation100_spill] sm:$0xff] }
 0x2ee   : > { %v632_v58 = vpop.f32.mrf.mxu0  ;;  %v11198_v20 = vld [vmem:[#allocation2 + $0x1f8] sm:$0xf8]   ;;  %v3744_v50 = vrot.slane %v3611_v47, 2  ;;  %883 = vmatprep.mubr.bf16.mxu1 %v16059_v43  ;;  %v3741_v47 = vrot.slane %v13949_v49, 2  ;;  %v3613_v28 = vsel %vm3382_vm10, %v3556_v0, %v13744_v42  ;;  %v3736_v34 = vsel %vm3703_vm11, %v3734_v51, %v3735_v24 }
 0x2ef   : > { %v13906_v2 = vpop.permute.xlu1 %4950  ;;  %1027 = vst [vmem:[%s13802_s17 + $0xd0] sm:$0xff] %v995_v3  ;;  %v964_v56 = vadd.f32 %v13752_v15, %v632_v58  ;;  %v11203_v49 = vld [vmem:[#allocation2 + $0x214] sm:$0xf8]   ;;  %v3749_v40 = vrot.slane %v3613_v28, 2  ;;  %v16150_v28 = vld [vmem:[#allocation41_spill] sm:$0xff] }
 0x2f0   : > { %4025 = vmatmul.mubr.bf16.gmra.mxu0 %v3730_v36  ;;  %v13943_v32 = vpop.f32.mrf.mxu0  ;;  %v3275_v36 = vsel %vm519_vm7, %v10970_v17, %v16139_v11  ;;  %5196 = vrot.lane.b32.xlu0 %v11194_v52, %s11876_s7  ;;  %v10973_v17 = vld [vmem:[#allocation2 + $0x220] ss:$0 sps:$4 sm:$0x33]   ;;  %v3486_v52 = vsel %vm519_vm7, %v2700_v10, %v16143_v63  ;;  %v3745_v11 = vsel %vm3703_vm11, %v3743_v21, %v3744_v50 }
 0x2f1   : > { %5194 = vrot.lane.b32.xlu1 %v11190_v48, %s11876_s7  ;;  %4032 = vmatprep.mubr.bf16.mxu0 %v3739_v19  ;;  %v13941_v60 = vpop.permute.xlu0 %4952  ;;  %v996_v23 = vmax.f32 %v964_v56, 0.0  ;;  %v3353_v1 = vsel %vm3333_vm9, %v3275_v36, %v16137_v46  ;;  %v16142_v19 = vld [vmem:[#allocation55_spill] sm:$0xff]  ;;  %v3558_v22 = vsel %vm3333_vm9, %v3486_v52, %v16145_v12 }
 0x2f2   : > { %v636_v57 = vpop.f32.mrf.mxu0  ;;  %v3408_v58 = vsel %vm3382_vm10, %v3353_v1, %v16142_v19  ;;  %v10974_v46 = vld [vmem:[#allocation2 + $0x218] sm:$0xfc]   ;;  %v3614_v10 = vsel %vm3382_vm10, %v3558_v22, %v13744_v42  ;;  %v11207_v1 = vld [vmem:[#allocation2 + $0x230] sm:$0xf8]   ;;  %v13999_v21 = vld [vmem:[#allocation2 + $0x300] sm:$0xff]  }
 0x2f3   : > { %v13935_v48 = vpop.permute.xlu1 %4954  ;;  %1028 = vst [vmem:[%s13802_s17 + $0xf8] sm:$0xff] %v996_v23  ;;  %v965_v3 = vadd.f32 %v13752_v15, %v636_v57  ;;  %v3740_v61 = vrot.slane %v3408_v58, 2  ;;  %v3750_v50 = vrot.slane %v3614_v10, 2  ;;  %v16149_v63 = vld [vmem:[#allocation23_spill] sm:$0xff] }
 0x2f4   : > { %v13979_v56 = vpop.f32.mrf.mxu0  ;;  %5328 = vrot.lane.b32.xlu0 %v11198_v20, %s11877_s11  ;;  %v11644_v20 = vld [vmem:[%s12093_s13 + $0x48] sm:$0xff]   ;;  %v3281_v52 = vsel %vm519_vm7, %v10974_v46, %v16149_v63  ;;  %v11212_v63 = vld [vmem:[#allocation2 + $0x24c] sm:$0xf8]  }
 0x2f5   : > { %5198 = vrot.lane.b32.xlu1 %v11195_v33, %s11876_s7  ;;  %v13977_v45 = vpop.permute.xlu0 %4956  ;;  %v997_v23 = vmax.f32 %v965_v3, 0.0  ;;  %9735 = vmatmul.mubr.msk.bf16.gmra.mxu1 %vm519_vm7, %v11644_v20  ;;  %v16148_v3 = vld [vmem:[#allocation22_spill] sm:$0xff]  ;;  %v3356_v10 = vsel %vm3333_vm9, %v3281_v52, %v16150_v28  ;;  %v3742_v46 = vsel %vm3703_vm11, %v3740_v61, %v3741_v47  ;;  %v11213_v47 = vld [vmem:[#allocation2 + $0x254] ss:$0 sps:$4 sm:$0x77]   ;;  %v3751_v5 = vsel %vm3703_vm11, %v3749_v40, %v3750_v50  ;;  %v11645_v50 = vld [vmem:[%s12093_s13 + $0x50] sm:$0xff]  }
 0x2f6   : > { %16144 = vst [vmem:[#allocation74_spill] sm:$0xff] %v13977_v45  ;;  %893 = vmatprep.mubr.bf16.mxu1 %v16059_v43  ;;  %v3284_v19 = vsel %vm519_vm7, %v10973_v17, %v16148_v3  ;;  %v16152_v17 = vld [vmem:[#allocation56_spill] sm:$0xff]  ;;  %v11005_v45 = vld [vmem:[#allocation2 + $0x300] ss:$0 sps:$4 sm:$0x33]  }
 0x2f7   : > { %v13964_v33 = vpop.permute.xlu1 %4958  ;;  %v642_v36 = vpop.f32.mrf.mxu0  ;;  %1029 = vst [vmem:[%s13802_s17 + $0x120] sm:$0xff] %v997_v23  ;;  %v3357_v12 = vsel %vm3333_vm9, %v3284_v19, %v16150_v28  ;;  %v10978_v23 = vld [vmem:[#allocation2 + $0x234] sm:$0xfc]   ;;  %v16156_v19 = vld [vmem:[#allocation81_spill] sm:$0xff] }
 0x2f8   : > { %16141 = vst [vmem:[#allocation51_spill] sm:$0xff] %v13964_v33  ;;  %4033 = vmatmul.mubr.bf16.gmra.mxu0 %v3736_v34  ;;  %v966_v24 = vadd.f32 %v13752_v15, %v642_v36  ;;  %5332 = vrot.lane.b32.xlu0 %v11203_v49, %s11877_s11  ;;  %v3414_v49 = vsel %vm3382_vm10, %v3357_v12, %v16152_v17  ;;  %v16157_v28 = vld [vmem:[#allocation101_spill] sm:$0xff]  ;;  %v11273_v33 = vld [vmem:[#allocation2 + $0x400] ss:$0 sps:$4 sm:$0x11]  }
 0x2f9   : > { %5330 = vrot.lane.b32.xlu1 %v11199_v37, %s11877_s11  ;;  %4040 = vmatprep.mubr.bf16.mxu0 %v3745_v11  ;;  %v11208_v37 = vld [vmem:[#allocation2 + $0x238] ss:$0 sps:$4 sm:$0x77]   ;;  %v13993_v51 = vpop.permute.xlu0 %4960  ;;  %v13995_v42 = vpop.f32.mrf.mxu0 }
 0x2fa   : > { %16147 = vst [vmem:[#allocation96_spill] sm:$0xff] %v13993_v51  ;;  %v998_v0 = vmax.f32 %v966_v24, 0.0  ;;  %v16154_v24 = vld [vmem:[#allocation57_spill] sm:$0xff] }
 0x2fb   : > { %v13989_v57 = vpop.permute.xlu1 %4962  ;;  %v646_v58 = vpop.f32.mrf.mxu0  ;;  %v3412_v20 = vsel %vm3382_vm10, %v3356_v10, %v16154_v24  ;;  %v3747_v24 = vrot.slane %v3414_v49, 2 }
 0x2fc   : > { %16146 = vst [vmem:[#allocation75_spill] sm:$0xff] %v13989_v57  ;;  %1030 = vst [vmem:[%s13802_s17 + $0x148] sm:$0xff] %v998_v0  ;;  %v967_v34 = vadd.f32 %v13752_v15, %v646_v58  ;;  %v16155_v0 = vld [vmem:[#allocation80_spill] sm:$0xff]  ;;  %v3489_v58 = vsel %vm519_vm7, %v2701_v14, %v16156_v19  ;;  %5336 = vrot.lane.b32.xlu0 %v11207_v1, %s11877_s11  ;;  %v3746_v1 = vrot.slane %v3412_v20, 2  ;;  %v16161_v19 = vld [vmem:[#allocation25_spill] sm:$0xff] }
 0x2fd   : > { %5334 = vrot.lane.b32.xlu1 %v11204_v8, %s11877_s11  ;;  %v10977_v8 = vld [vmem:[#allocation2 + $0x23c] ss:$0 sps:$4 sm:$0x33]   ;;  %v14018_v11 = vpop.permute.xlu0 %4964  ;;  %v14021_v36 = vpop.f32.mrf.mxu0  ;;  %v3491_v3 = vsel %vm519_vm7, %v2701_v14, %v16155_v0  ;;  %v3560_v12 = vsel %vm3333_vm9, %v3489_v58, %v16157_v28  ;;  %v2702_v14 = vrot.slane %v13999_v21, 6  ;;  %9736 = vmatmul.mubr.msk.bf16.gmra.mxu1 %vm519_vm7, %v11645_v50  ;;  %v16160_v0 = vld [vmem:[#allocation24_spill] sm:$0xff]  ;;  %v3287_v49 = vsel %vm519_vm7, %v10978_v23, %v16161_v19 }
 0x2fe   : > { %16153 = vst [vmem:[#allocation18_spill] sm:$0xff] %v14018_v11  ;;  %v999_v61 = vmax.f32 %v967_v34, 0.0  ;;  %v3562_v52 = vsel %vm3333_vm9, %v3491_v3, %v13597_v39  ;;  %v11217_v21 = vld [vmem:[#allocation2 + $0x270] ss:$0 sps:$4 sm:$0x77]   ;;  %903 = vmatprep.mubr.bf16.mxu1 %v16059_v43  ;;  %v3290_v3 = vsel %vm519_vm7, %v10977_v8, %v16160_v0  ;;  %v16162_v28 = vld [vmem:[#allocation44_spill] sm:$0xff] }
 0x2ff   : > { %v14010_v22 = vpop.permute.xlu1 %4966  ;;  %v652_v10 = vpop.f32.mrf.mxu0  ;;  %v3617_v34 = vsel %vm3382_vm10, %v3562_v52, %v13776_v7  ;;  %v16166_v0 = vld [vmem:[#allocation82_spill] sm:$0xff] }
 0x300   : > { %16151 = vst [vmem:[#allocation97_spill] sm:$0xff] %v14010_v22  ;;  %4041 = vmatmul.mubr.bf16.gmra.mxu0 %v3742_v46  ;;  %1031 = vst [vmem:[%s13802_s17 + $0x170] sm:$0xff] %v999_v61  ;;  %v968_v17 = vadd.f32 %v13752_v15, %v652_v10  ;;  %v3756_v58 = vrot.slane %v3617_v34, 2  ;;  %5340 = vrot.lane.b32.xlu0 %v11212_v63, %s11877_s11  ;;  %v11216_v61 = vld [vmem:[#allocation2 + $0x268] sm:$0xf8]   ;;  %v16165_v63 = vld [vmem:[#allocation58_spill] sm:$0xff]  ;;  %v3496_v19 = vsel %vm519_vm7, %v2702_v14, %v16166_v0 }
 0x301   : > { %5338 = vrot.lane.b32.xlu1 %v11208_v37, %s11877_s11  ;;  %v3616_v37 = vsel %vm3382_vm10, %v3560_v12, %v13776_v7  ;;  %4048 = vmatprep.mubr.bf16.mxu0 %v3751_v5  ;;  %v14049_v46 = vpop.permute.xlu0 %4968  ;;  %v14051_v40 = vpop.f32.mrf.mxu0  ;;  %v3360_v12 = vsel %vm3333_vm9, %v3290_v3, %v16162_v28  ;;  %v16163_v5 = vld [vmem:[#allocation83_spill] sm:$0xff]  ;;  %v10982_v34 = vld [vmem:[#allocation2 + $0x250] sm:$0xfc]   ;;  %v16214_v22 = vld [vmem:[#allocation48_spill] sm:$0xff] }
 0x302   : > { %16159 = vst [vmem:[#allocation40_spill] sm:$0xff] %v14049_v46  ;;  %v1000_v7 = vmax.f32 %v968_v17, 0.0  ;;  %v3755_v20 = vrot.slane %v3616_v37, 2  ;;  %v3494_v10 = vsel %vm519_vm7, %v2702_v14, %v16163_v5  ;;  %v11087_v17 = vld [vmem:[#allocation2 + $0x31c] sm:$0xff]   ;;  %v3418_v50 = vsel %vm3382_vm10, %v3360_v12, %v16165_v63  ;;  %v11221_v14 = vld [vmem:[#allocation2 + $0x284] sm:$0xf8]  }
 0x303   : > { %v14045_v39 = vpop.permute.xlu1 %4970  ;;  %v656_v52 = vpop.f32.mrf.mxu0  ;;  %v10981_v37 = vld [vmem:[#allocation2 + $0x258] ss:$0 sps:$4 sm:$0x33]   ;;  %v3748_v5 = vsel %vm3703_vm11, %v3746_v1, %v3747_v24  ;;  %v2703_v0 = vrot.slane %v11087_v17, 6 }
 0x304   : > { %16158 = vst [vmem:[#allocation19_spill] sm:$0xff] %v14045_v39  ;;  %1032 = vst [vmem:[%s13802_s17 + $0x198] sm:$0xff] %v1000_v7  ;;  %v969_v23 = vadd.f32 %v13752_v15, %v656_v52  ;;  %v16169_v7 = vld [vmem:[#allocation59_spill] sm:$0xff]  ;;  %5344 = vrot.lane.b32.xlu0 %v11216_v61, %s11877_s11  ;;  %v3757_v1 = vsel %vm3703_vm11, %v3755_v20, %v3756_v58  ;;  %v11646_v61 = vld [vmem:[%s12093_s13 + $0x58] sm:$0xff]  }
 0x305   : > { %5342 = vrot.lane.b32.xlu1 %v11213_v47, %s11877_s11  ;;  %v3359_v47 = vsel %vm3333_vm9, %v3287_v49, %v16162_v28  ;;  %v16167_v49 = vld [vmem:[#allocation103_spill] sm:$0xff]  ;;  %v14078_v28 = vpop.permute.xlu0 %4972  ;;  %v14081_v46 = vpop.f32.mrf.mxu0  ;;  %9737 = vmatmul.mubr.msk.bf16.gmra.mxu1 %vm519_vm7, %v11646_v61 }
 0x306   : > { %v3564_v3 = vsel %vm3333_vm9, %v3494_v10, %v16167_v49  ;;  %16168 = vst [vmem:[#allocation52_spill] sm:$0xff] %v14078_v28  ;;  %v3416_v52 = vsel %vm3382_vm10, %v3359_v47, %v16169_v7  ;;  %v11222_v10 = vld [vmem:[#allocation2 + $0x28c] ss:$0 sps:$4 sm:$0x77]   ;;  %v1001_v63 = vmax.f32 %v969_v23, 0.0  ;;  %v14104_v20 = vld [vmem:[#allocation2 + $0x338] sm:$0xff]   ;;  %913 = vmatprep.mubr.bf16.mxu1 %v16059_v43 }
 0x307   : > { %v14068_v8 = vpop.permute.xlu1 %4974  ;;  %v3619_v12 = vsel %vm3382_vm10, %v3564_v3, %v13772_v35  ;;  %v662_v47 = vpop.f32.mrf.mxu0  ;;  %v11226_v49 = vld [vmem:[#allocation2 + $0x2a8] ss:$0 sps:$4 sm:$0x77]   ;;  %v3752_v23 = vrot.slane %v3416_v52, 2  ;;  %v16174_v52 = vld [vmem:[#allocation27_spill] sm:$0xff] }
 0x308   : > { %16164 = vst [vmem:[#allocation77_spill] sm:$0xff] %v14068_v8  ;;  %v16170_v8 = vld [vmem:[#allocation102_spill] sm:$0xff]  ;;  %4049 = vmatmul.mubr.bf16.gmra.mxu0 %v3748_v5  ;;  %1033 = vst [vmem:[%s13802_s17 + $0x1c0] sm:$0xff] %v1001_v63  ;;  %v3761_v3 = vrot.slane %v3619_v12, 2  ;;  %v3293_v12 = vsel %vm519_vm7, %v10982_v34, %v16174_v52  ;;  %5348 = vrot.lane.b32.xlu0 %v11221_v14, %s11877_s11  ;;  %v16179_v14 = vld [vmem:[#allocation85_spill] sm:$0xff] }
 0x309   : > { %v3566_v39 = vsel %vm3333_vm9, %v3496_v19, %v16170_v8  ;;  %5346 = vrot.lane.b32.xlu1 %v11217_v21, %s11877_s11  ;;  %v3753_v8 = vrot.slane %v3418_v50, 2  ;;  %4056 = vmatprep.mubr.bf16.mxu0 %v3757_v1  ;;  %v970_v21 = vadd.f32 %v13752_v15, %v662_v47  ;;  %v14098_v7 = vpop.permute.xlu0 %4976  ;;  %v16173_v50 = vld [vmem:[#allocation26_spill] sm:$0xff]  ;;  %v16175_v1 = vld [vmem:[#allocation43_spill] sm:$0xff]  ;;  %v3499_v52 = vsel %vm519_vm7, %v2703_v0, %v16179_v14  ;;  %v16182_v28 = vld [vmem:[#allocation104_spill] sm:$0xff] }
 0x30a   : > { %v3620_v24 = vsel %vm3382_vm10, %v3566_v39, %v13772_v35  ;;  %16172 = vst [vmem:[#allocation99_spill] sm:$0xff] %v14098_v7  ;;  %v11225_v35 = vld [vmem:[#allocation2 + $0x2a0] sm:$0xf8]   ;;  %v14100_v39 = vpop.f32.mrf.mxu0  ;;  %v3296_v5 = vsel %vm519_vm7, %v10981_v37, %v16173_v50  ;;  %v3362_v47 = vsel %vm3333_vm9, %v3293_v12, %v16175_v1  ;;  %v11330_v14 = vld [vmem:[#allocation9 + $0xb8] sm:$0xff]  }
 0x30b   : > { %v14094_v19 = vpop.permute.xlu1 %4978  ;;  %v3762_v58 = vrot.slane %v3620_v24, 2  ;;  %v1002_v17 = vmax.f32 %v970_v21, 0.0  ;;  %v3363_v24 = vsel %vm3333_vm9, %v3296_v5, %v16175_v1  ;;  %v10985_v21 = vld [vmem:[#allocation2 + $0x274] ss:$0 sps:$4 sm:$0x33]   ;;  %v16177_v7 = vld [vmem:[#allocation60_spill] sm:$0xff]  ;;  %v3754_v12 = vsel %vm3703_vm11, %v3752_v23, %v3753_v8 }
 0x30c   : > { %16171 = vst [vmem:[#allocation76_spill] sm:$0xff] %v14094_v19  ;;  %v666_v63 = vpop.f32.mrf.mxu0  ;;  %v3422_v37 = vsel %vm3382_vm10, %v3363_v24, %v16177_v7  ;;  %v16178_v50 = vld [vmem:[#allocation84_spill] sm:$0xff]  ;;  %v11231_v5 = vld [vmem:[#allocation2 + $0x2c4] ss:$0 sps:$4 sm:$0x77]   ;;  %v16183_v24 = vld [vmem:[#allocation105_spill] sm:$0xff]  ;;  %5352 = vrot.lane.b32.xlu0 %v11225_v35, %s11877_s11 }
 0x30d   : > { %5350 = vrot.lane.b32.xlu1 %v11222_v10, %s11877_s11  ;;  %1034 = vst [vmem:[%s13802_s17 + $0x1e8] sm:$0xff] %v1002_v17  ;;  %v971_v10 = vadd.f32 %v13752_v15, %v666_v63  ;;  %v3501_v34 = vsel %vm519_vm7, %v2703_v0, %v16178_v50  ;;  %v14127_v19 = vpop.permute.xlu0 %4980  ;;  %v11329_v17 = vld [vmem:[#allocation9 + $0xf8] sm:$0xff]   ;;  %v3568_v50 = vsel %vm3333_vm9, %v3499_v52, %v16183_v24  ;;  %v11235_v52 = vld [vmem:[#allocation2 + $0x2e0] ss:$0 sps:$4 sm:$0x77]  }
 0x30e   : > { %16180 = vst [vmem:[#allocation98_spill] sm:$0xff] %v14127_v19  ;;  %v14130_v1 = vpop.f32.mrf.mxu0  ;;  %v3570_v7 = vsel %vm3333_vm9, %v3501_v34, %v16182_v28  ;;  %v10986_v19 = vld [vmem:[#allocation2 + $0x26c] sm:$0xfc]   ;;  %v3622_v8 = vsel %vm3382_vm10, %v3568_v50, %v13800_v62  ;;  %v3763_v28 = vsel %vm3703_vm11, %v3761_v3, %v3762_v58  ;;  %v3759_v34 = vrot.slane %v3422_v37, 2  ;;  %10578 = vmatprep.subr.bf16.mxu1 %v11329_v17  ;;  %v11234_v35 = vld [vmem:[#allocation2 + $0x2d8] sm:$0xf8]  }
 0x30f   : > { %v14117_v61 = vpop.permute.xlu1 %4982  ;;  %v1003_v0 = vmax.f32 %v971_v10, 0.0  ;;  %v3623_v23 = vsel %vm3382_vm10, %v3570_v7, %v13800_v62  ;;  %v11647_v3 = vld [vmem:[%s12093_s13 + $0x60] sm:$0xff]   ;;  %v11333_v58 = vld [vmem:[#allocation9 + $0xf0] sm:$0xff]   ;;  %10579 = vmatpush3.bf16.msra.mxu1 %v11330_v14 }
 0x310   : > { %16176 = vst [vmem:[#allocation53_spill] sm:$0xff] %v14117_v61  ;;  %v16181_v61 = vld [vmem:[#allocation61_spill] sm:$0xff]  ;;  %4057 = vmatmul.mubr.bf16.gmra.mxu0 %v3754_v12  ;;  %9738 = vmatmul.mubr.msk.bf16.gmra.mxu1 %vm519_vm7, %v11647_v3  ;;  %v3768_v37 = vrot.slane %v3623_v23, 2  ;;  %v16190_v23 = vld [vmem:[#allocation62_spill] sm:$0xff] }
 0x311   : > { %v3420_v63 = vsel %vm3382_vm10, %v3362_v47, %v16181_v61  ;;  %5354 = vrot.lane.b32.xlu1 %v11226_v49, %s11877_s11  ;;  %v11230_v47 = vld [vmem:[#allocation2 + $0x2bc] sm:$0xf8]   ;;  %v672_v61 = vpop.f32.mrf.mxu0  ;;  %v2704_v49 = vrot.slane %v14104_v20, 6  ;;  %4064 = vmatprep.mubr.bf16.mxu0 %v3763_v28  ;;  %1035 = vst [vmem:[%s13802_s17 + $0x210] sm:$0xff] %v1003_v0  ;;  %v14150_v7 = vpop.permute.xlu0 %4984  ;;  %v3767_v20 = vrot.slane %v3622_v8, 2  ;;  %v16186_v28 = vld [vmem:[#allocation28_spill] sm:$0xff] }
 0x312   : > { %v972_v24 = vadd.f32 %v13752_v15, %v672_v61  ;;  %v3758_v62 = vrot.slane %v3420_v63, 2  ;;  %16185 = vst [vmem:[#allocation42_spill] sm:$0xff] %v14150_v7  ;;  %v11334_v0 = vld [vmem:[#allocation9 + $0xb0] sm:$0xff]   ;;  %v3302_v17 = vsel %vm519_vm7, %v10985_v21, %v16186_v28  ;;  %5356 = vrot.lane.b32.xlu0 %v11230_v47, %s11877_s11  ;;  %10580 = vmatprep.subr.bf16.mxu1 %v11333_v58  ;;  %v16187_v61 = vld [vmem:[#allocation29_spill] sm:$0xff]  ;;  %v16188_v7 = vld [vmem:[#allocation46_spill] sm:$0xff] }
 0x313   : > { %v14146_v10 = vpop.permute.xlu1 %4986  ;;  %v14152_v12 = vpop.f32.mrf.mxu0  ;;  %v3366_v3 = vsel %vm3333_vm9, %v3302_v17, %v16188_v7  ;;  %923 = vmatprep.mubr.bf16.mxu1 %v16059_v43  ;;  %v10989_v14 = vld [vmem:[#allocation2 + $0x290] ss:$0 sps:$4 sm:$0x33]   ;;  %v11337_v28 = vld [vmem:[#allocation9 + $0xe8] sm:$0xff]   ;;  %10581 = vmatpush3.bf16.msra.mxu1 %v11334_v0 }
 0x314   : > { %16184 = vst [vmem:[#allocation20_spill] sm:$0xff] %v14146_v10  ;;  %v1004_v50 = vmax.f32 %v972_v24, 0.0  ;;  %v3299_v10 = vsel %vm519_vm7, %v10986_v19, %v16187_v61  ;;  %v3426_v47 = vsel %vm3382_vm10, %v3366_v3, %v16190_v23  ;;  %v14173_v24 = vld [vmem:[#allocation2 + $0x354] sm:$0xff]   ;;  %v3760_v58 = vsel %vm3703_vm11, %v3758_v62, %v3759_v34  ;;  %v16192_v17 = vld [vmem:[#allocation63_spill] sm:$0xff]  ;;  %v11339_v23 = vld [vmem:[#allocation9 + $0x178] sm:$0xff]   ;;  %10582 = vmatprep.subr.bf16.mxu1 %v11337_v28 }
 0x315   : > { %5358 = vrot.lane.b32.xlu1 %v11231_v5, %s11877_s11  ;;  %v676_v63 = vpop.f32.mrf.mxu0  ;;  %v3365_v21 = vsel %vm3333_vm9, %v3299_v10, %v16188_v7  ;;  %v14175_v19 = vpop.permute.xlu0 %4988  ;;  %v11240_v10 = vld [vmem:[#allocation2 + $0x2fc] ss:$0 sps:$4 sm:$0x77]   ;;  %v16196_v62 = vld [vmem:[#allocation107_spill] sm:$0xff]  ;;  %10690 = vmatprep.subr.bf16.mxu0 %v11339_v23  ;;  %v16201_v23 = vld [vmem:[#allocation45_spill] sm:$0xff] }
 0x316   : > { %1036 = vst [vmem:[%s13802_s17 + $0x238] sm:$0xff] %v1004_v50  ;;  %v973_v5 = vadd.f32 %v13752_v15, %v676_v63  ;;  %16191 = vst [vmem:[#allocation21_spill] sm:$0xff] %v14175_v19  ;;  %v3424_v50 = vsel %vm3382_vm10, %v3365_v21, %v16192_v17  ;;  %v16193_v63 = vld [vmem:[#allocation86_spill] sm:$0xff]  ;;  %5360 = vrot.lane.b32.xlu0 %v11234_v35, %s11877_s11  ;;  %v10990_v17 = vld [vmem:[#allocation2 + $0x288] sm:$0xfc]  }
 0x317   : > { %v14164_v8 = vpop.permute.xlu1 %4990  ;;  %v3506_v61 = vsel %vm519_vm7, %v2704_v49, %v16193_v63  ;;  %v11338_v3 = vld [vmem:[#allocation9 + $0xa8] sm:$0xff]   ;;  %v3764_v35 = vrot.slane %v3424_v50, 2 }
 0x318   : > { %16189 = vst [vmem:[#allocation54_spill] sm:$0xff] %v14164_v8  ;;  %v16194_v8 = vld [vmem:[#allocation87_spill] sm:$0xff]  ;;  %v1005_v7 = vmax.f32 %v973_v5, 0.0  ;;  %v16195_v19 = vld [vmem:[#allocation106_spill] sm:$0xff]  ;;  %4065 = vmatmul.mubr.bf16.gmra.mxu0 %v3760_v58  ;;  %v2705_v58 = vrot.slane %v14173_v24, 6  ;;  %10583 = vmatpush3.bf16.msra.mxu1 %v11338_v3 }
 0x319   : > { %v3504_v11 = vsel %vm519_vm7, %v2704_v49, %v16194_v8  ;;  %5362 = vrot.lane.b32.xlu1 %v11235_v52, %s11877_s11  ;;  %v3574_v34 = vsel %vm3333_vm9, %v3506_v61, %v16195_v19  ;;  %v3769_v49 = vsel %vm3703_vm11, %v3767_v20, %v3768_v37  ;;  %v11239_v8 = vld [vmem:[#allocation2 + $0x2f4] sm:$0xf8]   ;;  %v11340_v52 = vld [vmem:[#allocation9 + $0x138] sm:$0xff]   ;;  %v14199_v63 = vpop.permute.xlu0 %4992 }
 0x31a   : > { %v3572_v21 = vsel %vm3333_vm9, %v3504_v11, %v16196_v62  ;;  %v3626_v5 = vsel %vm3382_vm10, %v3574_v34, %v13793_v55  ;;  %4072 = vmatprep.mubr.bf16.mxu0 %v3769_v49  ;;  %1037 = vst [vmem:[%s13802_s17 + $0x260] sm:$0xff] %v1005_v7  ;;  %v3765_v11 = vrot.slane %v3426_v47, 2  ;;  %16198 = vst [vmem:[#allocation55_spill] sm:$0xff] %v14199_v63  ;;  %v11648_v20 = vld [vmem:[%s12093_s13 + $0x68] sm:$0xff]   ;;  %v11346_v34 = vld [vmem:[#allocation9 + $0x170] sm:$0xff]   ;;  %5364 = vrot.lane.b32.xlu0 %v11239_v8, %s11877_s11 }
 0x31b   : > { %v3625_v0 = vsel %vm3382_vm10, %v3572_v21, %v13793_v55  ;;  %v14195_v19 = vpop.permute.xlu1 %4994  ;;  %9739 = vmatmul.mubr.msk.bf16.gmra.mxu1 %vm519_vm7, %v11648_v20  ;;  %v11344_v37 = vld [vmem:[#allocation9 + $0xe0] sm:$0xff]   ;;  %v3774_v50 = vrot.slane %v3626_v5, 2  ;;  %10691 = vmatpush3.bf16.msra.mxu0 %v11340_v52  ;;  %v16200_v7 = vld [vmem:[#allocation31_spill] sm:$0xff]  ;;  %v16203_v8 = vld [vmem:[#allocation64_spill] sm:$0xff] }
 0x31c   : > { %16197 = vst [vmem:[#allocation79_spill] sm:$0xff] %v14195_v19  ;;  %v11244_v61 = vld [vmem:[#allocation2 + $0x318] ss:$0 sps:$4 sm:$0x77]   ;;  %v3773_v47 = vrot.slane %v3625_v0, 2  ;;  %v3305_v21 = vsel %vm519_vm7, %v10990_v17, %v16200_v7  ;;  %10584 = vmatprep.subr.bf16.mxu1 %v11344_v37  ;;  %10692 = vmatprep.subr.bf16.mxu0 %v11346_v34  ;;  %v11347_v20 = vld [vmem:[#allocation9 + $0x130] sm:$0xff]  }
 0x31d   : > { %5366 = vrot.lane.b32.xlu1 %v11240_v10, %s11877_s11  ;;  %v11345_v55 = vld [vmem:[#allocation9 + $0xa0] sm:$0xff]   ;;  %v3368_v0 = vsel %vm3333_vm9, %v3305_v21, %v16201_v23  ;;  %933 = vmatprep.mubr.bf16.mxu1 %v16059_v43  ;;  %v11352_v37 = vld [vmem:[#allocation9 + $0xd8] sm:$0xff]  }
 0x31e   : > { %v16199_v62 = vld [vmem:[#allocation30_spill] sm:$0xff]  ;;  %v16204_v5 = vld [vmem:[#allocation89_spill] sm:$0xff]  ;;  %v10994_v34 = vld [vmem:[#allocation2 + $0x2a4] sm:$0xfc]   ;;  %10585 = vmatpush3.bf16.msra.mxu1 %v11345_v55 }
 0x31f   : > { %v3308_v28 = vsel %vm519_vm7, %v10989_v14, %v16199_v62  ;;  %v11243_v24 = vld [vmem:[#allocation2 + $0x310] sm:$0xf8]   ;;  %v14213_v3 = vpop.permute.xlu1 %4998  ;;  %v10993_v14 = vld [vmem:[#allocation2 + $0x2ac] ss:$0 sps:$4 sm:$0x33]   ;;  %v3509_v17 = vsel %vm519_vm7, %v2705_v58, %v16204_v5  ;;  %v14223_v62 = vpop.permute.xlu0 %4996  ;;  %10693 = vmatpush3.bf16.msra.mxu0 %v11347_v20  ;;  %10586 = vmatprep.subr.bf16.mxu1 %v11352_v37  ;;  %v11362_v20 = vld [vmem:[#allocation9 + $0x90] sm:$0xff]  }
 0x320   : > { %v3369_v49 = vsel %vm3333_vm9, %v3308_v28, %v16201_v23  ;;  %v14211_v10 = vld [vmem:[#allocation2 + $0x370] sm:$0xff]   ;;  %16202 = vst [vmem:[#allocation78_spill] sm:$0xff] %v14213_v3  ;;  %16205 = vst [vmem:[#allocation100_spill] sm:$0xff] %v14223_v62  ;;  %v3766_v28 = vsel %vm3703_vm11, %v3764_v35, %v3765_v11  ;;  %v16207_v63 = vld [vmem:[#allocation88_spill] sm:$0xff]  ;;  %5368 = vrot.lane.b32.xlu0 %v11243_v24, %s11877_s11 }
 0x321   : > { %v14219_v52 = vsel %vm3382_vm10, %v3369_v49, %v16203_v8  ;;  %v16206_v7 = vld [vmem:[#allocation65_spill] sm:$0xff]  ;;  %v3511_v21 = vsel %vm519_vm7, %v2705_v58, %v16207_v63  ;;  %5370 = vrot.lane.b32.xlu1 %v11244_v61, %s11877_s11  ;;  %v16209_v62 = vld [vmem:[#allocation108_spill] sm:$0xff]  ;;  %4073 = vmatmul.mubr.bf16.gmra.mxu0 %v3766_v28  ;;  %v3775_v58 = vsel %vm3703_vm11, %v3773_v47, %v3774_v50  ;;  %v2706_v55 = vrot.slane %v14211_v10, 6  ;;  %v11357_v24 = vld [vmem:[#allocation9 + $0x128] sm:$0xff]  }
 0x322   : > { %v3428_v3 = vsel %vm3382_vm10, %v3368_v0, %v16206_v7  ;;  %v16208_v23 = vld [vmem:[#allocation109_spill] sm:$0xff]  ;;  %v3578_v11 = vsel %vm3333_vm9, %v3511_v21, %v16209_v62  ;;  %v11354_v0 = vld [vmem:[#allocation9 + $0x168] sm:$0xff]   ;;  %v3771_v61 = vrot.slane %v14219_v52, 2  ;;  %4080 = vmatprep.mubr.bf16.mxu0 %v3775_v58  ;;  %v11361_v52 = vld [vmem:[#allocation9 + $0xd0] sm:$0xff]  }
 0x323   : > { %v3576_v49 = vsel %vm3333_vm9, %v3509_v17, %v16208_v23  ;;  %v11249_v8 = vld [vmem:[#allocation2 + $0x334] ss:$0 sps:$4 sm:$0x77]   ;;  %v11353_v5 = vld [vmem:[#allocation9 + $0x98] sm:$0xff]   ;;  %v3629_v62 = vsel %vm3382_vm10, %v3578_v11, %v13829_v25  ;;  %v14248_v7 = vpop.permute.xlu1 %5002  ;;  %v14250_v21 = vpop.permute.xlu0 %5000  ;;  %v11649_v50 = vld [vmem:[%s12093_s13 + $0x70] sm:$0xff]   ;;  %v3770_v19 = vrot.slane %v3428_v3, 2  ;;  %10694 = vmatprep.subr.bf16.mxu0 %v11354_v0 }
 0x324   : > { %v14238_v35 = vsel %vm3382_vm10, %v3576_v49, %v13829_v25  ;;  %v11248_v63 = vld [vmem:[#allocation2 + $0x32c] sm:$0xf8]   ;;  %16210 = vst [vmem:[#allocation22_spill] sm:$0xff] %v14248_v7  ;;  %16211 = vst [vmem:[#allocation23_spill] sm:$0xff] %v14250_v21  ;;  %9740 = vmatmul.mubr.msk.bf16.gmra.mxu1 %vm519_vm7, %v11649_v50  ;;  %v16212_v10 = vld [vmem:[#allocation32_spill] sm:$0xff]  ;;  %v3780_v50 = vrot.slane %v3629_v62, 2  ;;  %10695 = vmatpush3.bf16.msra.mxu0 %v11357_v24 }
 0x325   : > { %v14244_v17 = vld [vmem:[#allocation2 + $0x38c] sm:$0xff]   ;;  %v3314_v23 = vsel %vm519_vm7, %v10993_v14, %v16212_v10  ;;  %v10997_v49 = vld [vmem:[#allocation2 + $0x2c8] ss:$0 sps:$4 sm:$0x33]   ;;  %v3779_v25 = vrot.slane %v14238_v35, 2  ;;  %5374 = vrot.lane.b32.xlu1 %v11249_v8, %s11877_s11  ;;  %10587 = vmatpush3.bf16.msra.mxu1 %v11353_v5  ;;  %v16215_v35 = vld [vmem:[#allocation66_spill] sm:$0xff] }
 0x326   : > { %v11252_v28 = vld [vmem:[#allocation2 + $0x348] sm:$0xf8]   ;;  %v11253_v47 = vld [vmem:[#allocation2 + $0x350] ss:$0 sps:$4 sm:$0x77]   ;;  %v11363_v11 = vld [vmem:[#allocation9 + $0x160] sm:$0xff]   ;;  %v3372_v37 = vsel %vm3333_vm9, %v3314_v23, %v16214_v22  ;;  %5372 = vrot.lane.b32.xlu0 %v11248_v63, %s11877_s11  ;;  %10588 = vmatprep.subr.bf16.mxu1 %v11361_v52  ;;  %v3772_v52 = vsel %vm3703_vm11, %v3770_v19, %v3771_v61 }
 0x327   : > { %v16213_v58 = vld [vmem:[#allocation33_spill] sm:$0xff]  ;;  %v10998_v7 = vld [vmem:[#allocation2 + $0x2c0] sm:$0xfc]   ;;  %v14267_v8 = vsel %vm3382_vm10, %v3372_v37, %v16215_v35  ;;  %v14269_v5 = vpop.permute.xlu1 %5006  ;;  %v14276_v63 = vpop.permute.xlu0 %5004  ;;  %v11259_v0 = vld [vmem:[#allocation2 + $0x36c] ss:$0 sps:$4 sm:$0x77]   ;;  %10696 = vmatprep.subr.bf16.mxu0 %v11363_v11  ;;  %943 = vmatprep.mubr.bf16.mxu1 %v16059_v43  ;;  %v3781_v19 = vsel %vm3703_vm11, %v3779_v25, %v3780_v50 }
 0x328   : > { %v3311_v21 = vsel %vm519_vm7, %v10994_v34, %v16213_v58  ;;  %v11364_v14 = vld [vmem:[#allocation9 + $0x120] sm:$0xff]   ;;  %16216 = vst [vmem:[#allocation41_spill] sm:$0xff] %v14269_v5  ;;  %v16217_v34 = vld [vmem:[#allocation67_spill] sm:$0xff]  ;;  %16218 = vst [vmem:[#allocation56_spill] sm:$0xff] %v14276_v63  ;;  %v3777_v11 = vrot.slane %v14267_v8, 2 }
 0x329   : > { %v3371_v3 = vsel %vm3333_vm9, %v3311_v21, %v16214_v22  ;;  %v11367_v22 = vld [vmem:[#allocation9 + $0xc8] sm:$0xff]   ;;  %5378 = vrot.lane.b32.xlu1 %v11253_v47, %s11877_s11  ;;  %v14285_v37 = vld [vmem:[#allocation2 + $0x350] sm:$0xfe]   ;;  %10589 = vmatpush3.bf16.msra.mxu1 %v11362_v20  ;;  %v11258_v61 = vld [vmem:[#allocation2 + $0x364] sm:$0xf8]  }
 0x32a   : > { %v14273_v10 = vsel %vm3382_vm10, %v3371_v3, %v16217_v34  ;;  %v16219_v21 = vld [vmem:[#allocation90_spill] sm:$0xff]  ;;  %v16220_v58 = vld [vmem:[#allocation91_spill] sm:$0xff]  ;;  %v14288_v34 = vld [vmem:[#allocation2 + $0x3a8] sm:$0xff]   ;;  %5376 = vrot.lane.b32.xlu0 %v11252_v28, %s11877_s11  ;;  %4081 = vmatmul.mubr.bf16.gmra.mxu0 %v3772_v52 }
 0x32b   : > { %v3516_v23 = vsel %vm519_vm7, %v2706_v55, %v16219_v21  ;;  %v3514_v24 = vsel %vm519_vm7, %v2706_v55, %v16220_v58  ;;  %v11266_v3 = vld [vmem:[#allocation2 + $0x358] ss:$0 sps:$4 sm:$0x11]   ;;  %v11368_v35 = vld [vmem:[#allocation9 + $0x88] sm:$0xff]   ;;  %v11369_v55 = vld [vmem:[#allocation9 + $0x158] sm:$0xff]   ;;  %v3776_v8 = vrot.slane %v14273_v10, 2  ;;  %4088 = vmatprep.mubr.bf16.mxu0 %v3781_v19  ;;  %10697 = vmatpush3.bf16.msra.mxu0 %v11364_v14 }
 0x32c   : > { %v16221_v43 = vld [vmem:[#allocation110_spill] sm:$0xff]  ;;  %v16222_v21 = vld [vmem:[#allocation111_spill] sm:$0xff]  ;;  %v11370_v28 = vld [vmem:[#allocation9 + $0x118] sm:$0xff]   ;;  %10590 = vmatprep.subr.bf16.mxu1 %v11367_v22  ;;  %v5841_v19 = vrot.slane %v11266_v3, 6  ;;  %10698 = vmatprep.subr.bf16.mxu0 %v11369_v55  ;;  %v16229_v55 = vrot.slane %v14244_v17, 6 }
 0x32d   : > { %v3582_v62 = vsel %vm3333_vm9, %v3516_v23, %v16221_v43  ;;  %v3580_v63 = vsel %vm3333_vm9, %v3514_v24, %v16222_v21  ;;  %v16223_v47 = vld [vmem:[#allocation34_spill] sm:$0xff]  ;;  %v14303_v24 = vpop.permute.xlu1 %5138  ;;  %v16224_v25 = vld [vmem:[#allocation35_spill] sm:$0xff]  ;;  %v11263_v10 = vld [vmem:[#allocation2 + $0x348] sm:$0xf8]   ;;  %5382 = vrot.lane.b32.xlu1 %v11259_v0, %s11877_s11  ;;  %10591 = vmatpush3.bf16.msra.mxu1 %v11368_v35  ;;  %v2708_v35 = vrot.slane %v14288_v34, 6 }
 0x32e   : > { %v3320_v20 = vsel %vm519_vm7, %v10997_v49, %v16223_v47  ;;  %v3631_v58 = vsel %vm3382_vm10, %v3580_v63, %v13826_v16  ;;  %v3632_v23 = vsel %vm3382_vm10, %v3582_v62, %v13826_v16  ;;  %v3317_v50 = vsel %vm519_vm7, %v10998_v7, %v16224_v25  ;;  %v16225_v52 = vld [vmem:[#allocation47_spill] sm:$0xff]  ;;  %v14309_v49 = vpop.permute.xlu0 %5136  ;;  %v11264_v21 = vld [vmem:[#allocation2 + $0x350] ss:$0 sps:$4 sm:$0x77]   ;;  %v11650_v47 = vld [vmem:[%s12093_s13 + $0x78] sm:$0xff]   ;;  %5380 = vrot.lane.b32.xlu0 %v11258_v61, %s11877_s11  ;;  %s11793_s13 = scalar_lea.vmem %s11792_s12, 40960 }
 0x32f   : > { %v3375_v43 = vsel %vm3333_vm9, %v3320_v20, %v16225_v52  ;;  %9741 = vmatmul.mubr.msk.bf16.gmra.mxu1 %vm519_vm7, %v11650_v47  ;;  %v11373_v16 = vld [vmem:[#allocation9 + $0xc0] sm:$0xff]   ;;  %v3374_v62 = vsel %vm3333_vm9, %v3317_v50, %v16225_v52  ;;  %v16226_v14 = vld [vmem:[#allocation68_spill] sm:$0xff]  ;;  %v5840_v7 = vrot.slane %v14285_v37, 6  ;;  %v3785_v57 = vrot.slane %v3631_v58, 2  ;;  %10699 = vmatpush3.bf16.msra.mxu0 %v11370_v28  ;;  %v11002_v37 = vld [vmem:[#allocation2 + $0x2dc] sm:$0xfc]   ;;  %p11795_p12 = scmp.lt.s32.totalorder %s11793_s13, %s11787_s6 }
 0x330   : > { %v14317_v63 = vsel %vm3382_vm10, %v3375_v43, %v16226_v14  ;;  %v14321_v20 = vld [vmem:[#allocation2 + $0x8] sm:$0xfe]   ;;  %v11374_v25 = vld [vmem:[#allocation9 + $0x80] sm:$0xff]   ;;  %v3786_v50 = vrot.slane %v3632_v23, 2  ;;  %10592 = vmatprep.subr.bf16.mxu1 %v11373_v16  ;;  %v16231_v16 = vmov %v16229_v55 }
 0x331   : > { %v11375_v5 = vld [vmem:[#allocation9 + $0x150] sm:$0xff]   ;;  %v16227_v47 = vld [vmem:[#allocation69_spill] sm:$0xff]  ;;  %v14328_v43 = vpop.permute.xlu1 %5142  ;;  %v3783_v3 = vrot.slane %v14317_v63, 2  ;;  %5650 = vrot.lane.b32.xlu1 %v11264_v21, %s11875_s24  ;;  %v5842_v34 = vsel %vm4895_vm8, %v5840_v7, %v5841_v19  ;;  %10593 = vmatpush3.bf16.msra.mxu1 %v11374_v25  ;;  %p11796_p4 = por %p11795_p12, %p11794_p9 }
 0x332   : > { %v14325_v22 = vsel %vm3382_vm10, %v3374_v62, %v16227_v47  ;;  %v11001_v52 = vld [vmem:[#allocation2 + $0x2e4] ss:$0 sps:$4 sm:$0x33]   ;;  %v14332_v14 = vpop.permute.xlu0 %5140  ;;  %v3778_v62 = vsel %vm3703_vm11, %v3776_v8, %v3777_v11  ;;  %10700 = vmatprep.subr.bf16.mxu0 %v11375_v5  ;;  %v16228_v61 = vld [vmem:[#allocation92_spill] sm:$0xff]  ;;  %v16230_v28 = vld [vmem:[#allocation93_spill] sm:$0xff]  ;;  %5648 = vrot.lane.b32.xlu0 %v11263_v10, %s11875_s24  ;;  %v3787_v17 = vsel %vm3703_vm11, %v3785_v57, %v3786_v50 }
 0x333   : > { %v11379_v0 = vld [vmem:[#allocation9 + $0x110] sm:$0xff]   ;;  %v3782_v58 = vrot.slane %v14325_v22, 2  ;;  %v3521_v23 = vsel %vm519_vm7, %v16229_v55, %v16228_v61  ;;  %v3519_v47 = vsel %vm519_vm7, %v16231_v16, %v16230_v28  ;;  %v11271_v63 = vld [vmem:[#allocation2 + $0x10] ss:$0 sps:$4 sm:$0x11]   ;;  %v11382_v11 = vld [vmem:[#allocation9 + $0x148] sm:$0xff]   ;;  %4089 = vmatmul.mubr.bf16.gmra.mxu0 %v3778_v62  ;;  %v682_v61 = vpop.f32.mrf.mxu1  ;;  %p11797_p6 = pnand %p11796_p4, %p11790_p3 }
 0x334   : > { %v3586_v5 = vsel %vm3333_vm9, %v3521_v23, %v13646_v38  ;;  %v3584_v8 = vsel %vm3333_vm9, %v3519_v47, %v13652_v53  ;;  %v14352_v22 = vld [vmem:[#allocation2 + $0x3f8] sm:$0xfe]   ;;  %4096 = vmatprep.mubr.bf16.mxu0 %v3787_v17  ;;  %v7753_v53 = vrot.slane %v14321_v20, 1  ;;  %10701 = vmatpush3.bf16.msra.mxu0 %v11379_v0  ;;  %v14363_v50 = vld [vmem:[#allocation2 + $0x10] sm:$0xfc]   ;;  %v16233_v23 = vld [vmem:[#allocation36_spill] sm:$0xff] }
 0x335   : > { %v3634_v21 = vsel %vm3382_vm10, %v3584_v8, %v13854_v27  ;;  %v3635_v19 = vsel %vm3382_vm10, %v3586_v5, %v13854_v27  ;;  %v14358_v25 = vpop.permute.xlu1 %5146  ;;  %v11268_v38 = vld [vmem:[#allocation2 + $0x35c] ss:$0 sps:$4 sm:$0x77]   ;;  %v11267_v57 = vld [vmem:[#allocation2 + $0x354] sm:$0xf8]   ;;  %10702 = vmatprep.subr.bf16.mxu0 %v11382_v11  ;;  %v14365_v55 = vpop.f32.mrf.mxu1  ;;  %v3326_v28 = vsel %vm519_vm7, %v11001_v52, %v16233_v23  ;;  %5890 = vrot.lane.b32.xlu1 %v5842_v34, %s11876_s7  ;;  %v7754_v27 = vrot.slane %v11271_v63, 1 }
 0x336   : > { %16232 = vst [vmem:[#allocation57_spill] sm:$0xff] %v14358_v25  ;;  %v11383_v10 = vld [vmem:[#allocation9 + $0x108] sm:$0xff]   ;;  %v14361_v62 = vpop.permute.xlu0 %5144  ;;  %v11275_v16 = vld [vmem:[#allocation2 + $0x18] ss:$0 sps:$4 sm:$0x33]   ;;  %v16234_v20 = vld [vmem:[#allocation37_spill] sm:$0xff]  ;;  %5888 = vrot.lane.b32.xlu0 %v5840_v7, %s11876_s7  ;;  %v3784_v7 = vsel %vm3703_vm11, %v3782_v58, %v3783_v3  ;;  %v974_v3 = vadd.f32 %v13752_v15, %v682_v61 }
 0x337   : > { %v11387_v47 = vld [vmem:[#allocation9 + $0x140] sm:$0xff]   ;;  %v3323_v0 = vsel %vm519_vm7, %v11002_v37, %v16234_v20  ;;  %v3791_v17 = vrot.slane %v3634_v21, 2  ;;  %v3792_v51 = vrot.slane %v3635_v19, 2  ;;  %v686_v11 = vpop.f32.mrf.mxu1  ;;  %v11006_v20 = vld [vmem:[#allocation2 + $0x2f8] sm:$0xfc]   ;;  %v8569_v25 = vrot.slane %v14352_v22, 1 }
 0x338   : > { %v16235_v5 = vld [vmem:[#allocation50_spill] sm:$0xff]  ;;  %10703 = vmatpush3.bf16.msra.mxu0 %v11383_v10  ;;  %v16240_v10 = vld [vmem:[#allocation95_spill] sm:$0xff] }
 0x339   : > { %v3378_v8 = vsel %vm3333_vm9, %v3326_v28, %v16235_v5  ;;  %v3377_v52 = vsel %vm3333_vm9, %v3323_v0, %v16235_v5  ;;  %v16236_v34 = vld [vmem:[#allocation70_spill] sm:$0xff]  ;;  %v14381_v23 = vpop.permute.xlu1 %5150  ;;  %v16238_v28 = vld [vmem:[#allocation71_spill] sm:$0xff]  ;;  %v7961_v0 = vrot.slane %v14363_v50, 2  ;;  %10704 = vmatprep.subr.bf16.mxu0 %v11387_v47  ;;  %v14390_v5 = vpop.f32.mrf.mxu1  ;;  %6082 = vrot.lane.b32.xlu1 %v11268_v38, %s11877_s11  ;;  %v3793_v50 = vsel %vm3703_vm11, %v3791_v17, %v3792_v51 }
 0x33a   : > { %v14379_v63 = vsel %vm3382_vm10, %v3378_v8, %v16236_v34  ;;  %16237 = vst [vmem:[#allocation80_spill] sm:$0xff] %v14381_v23  ;;  %v11388_v37 = vld [vmem:[#allocation9 + $0x100] sm:$0xff]   ;;  %v3440_v21 = vsel %vm3382_vm10, %v3377_v52, %v16238_v28  ;;  %v14385_v19 = vpop.permute.xlu0 %5148  ;;  %v3524_v23 = vsel %vm519_vm7, %v2708_v35, %v16240_v10  ;;  %v7755_v52 = vsel %vm7752_vm12, %v7753_v53, %v7754_v27  ;;  %v11276_v28 = vld [vmem:[#allocation2 + $0x400] sm:$0xfc]  }
 0x33b   : > { %v16239_v8 = vld [vmem:[#allocation94_spill] sm:$0xff]  ;;  %v3588_v22 = vsel %vm3333_vm9, %v3524_v23, %v13668_v13  ;;  %6080 = vrot.lane.b32.xlu0 %v11267_v57, %s11877_s11  ;;  %4097 = vmatmul.mubr.bf16.gmra.mxu0 %v3784_v7  ;;  %v8570_v53 = vrot.slane %v11273_v33, 1  ;;  %v11277_v13 = vld [vmem:[#allocation2 + $0x408] ss:$0 sps:$4 sm:$0x33]   ;;  %v1006_v27 = vmax.f32 %v974_v3, 0.0 }
 0x33c   : > { %v3526_v34 = vsel %vm519_vm7, %v2708_v35, %v16239_v8  ;;  %v11269_v47 = vld [vmem:[#allocation2 + $0x3f0] sm:$0xff]   ;;  %v7962_v35 = vrot.slane %v11275_v16, 2  ;;  %v692_v8 = vpop.f32.mrf.mxu1  ;;  %v3637_v38 = vsel %vm3382_vm10, %v3588_v22, %v13847_v31  ;;  %4104 = vmatprep.mubr.bf16.mxu0 %v3793_v50  ;;  %10705 = vmatpush3.bf16.msra.mxu0 %v11388_v37  ;;  %v3789_v57 = vrot.slane %v14379_v63, 2  ;;  %v16244_v33 = vld [vmem:[#allocation39_spill] sm:$0xff]  ;;  %v16247_v50 = vld [vmem:[#allocation72_spill] sm:$0xff] }
 0x33d   : > { %v3590_v58 = vsel %vm3333_vm9, %v3526_v34, %v13665_v18  ;;  %v14409_v18 = vpop.permute.xlu1 %5154  ;;  %v16243_v17 = vld [vmem:[#allocation38_spill] sm:$0xff]  ;;  %v3788_v7 = vrot.slane %v3440_v21, 2  ;;  %7801 = vrot.lane.b32.xlu1 %v7755_v52, %s11875_s24  ;;  %1038 = vst [vmem:[%s13802_s17 + $0x288] sm:$0xff] %v1006_v27  ;;  %v975_v34 = vadd.f32 %v13752_v15, %v686_v11  ;;  %v3329_v10 = vsel %vm519_vm7, %v11006_v20, %v16244_v33  ;;  %v16245_v22 = vld [vmem:[#allocation49_spill] sm:$0xff] }
 0x33e   : > { %v3638_v61 = vsel %vm3382_vm10, %v3590_v58, %v13847_v31  ;;  %16241 = vst [vmem:[#allocation81_spill] sm:$0xff] %v14409_v18  ;;  %v14412_v51 = vpop.permute.xlu0 %5152  ;;  %v14414_v16 = vpop.f32.mrf.mxu1  ;;  %v3332_v23 = vsel %vm519_vm7, %v11005_v45, %v16243_v17  ;;  %v8777_v31 = vrot.slane %v11276_v28, 2  ;;  %v3797_v37 = vrot.slane %v3637_v38, 2 }
 0x33f   : > { %16242 = vst [vmem:[#allocation101_spill] sm:$0xff] %v14412_v51  ;;  %v3798_v3 = vrot.slane %v3638_v61, 2  ;;  %8409 = vrot.lane.b32.xlu0 %v11269_v47, %s11875_s24  ;;  %v7963_v63 = vsel %vm3703_vm11, %v7961_v0, %v7962_v35  ;;  %v3381_v45 = vsel %vm3333_vm9, %v3332_v23, %v16245_v22  ;;  %v8571_v52 = vsel %vm7752_vm12, %v8569_v25, %v8570_v53  ;;  %v11278_v0 = vld [vmem:[#allocation2 + $0x1f8] sm:$0xff]   ;;  %v16249_v61 = vld [vmem:[#allocation73_spill] sm:$0xff] }
 0x340   : > { %v696_v58 = vpop.f32.mrf.mxu1  ;;  %v8778_v28 = vrot.slane %v11277_v13, 2  ;;  %v1007_v11 = vmax.f32 %v975_v34, 0.0  ;;  %v3380_v20 = vsel %vm3333_vm9, %v3329_v10, %v16245_v22  ;;  %v3446_v38 = vsel %vm3382_vm10, %v3381_v45, %v16247_v50  ;;  %v11281_v53 = vld [vmem:[#allocation2 + $0x36c] sm:$0xfe]   ;;  %v11279_v45 = vld [vmem:[#allocation2 + $0x364] sm:$0xf8]  }
 0x341   : > { %v14427_v21 = vpop.permute.xlu1 %5158  ;;  %v3444_v27 = vsel %vm3382_vm10, %v3380_v20, %v16249_v61  ;;  %8009 = vrot.lane.b32.xlu1 %v7963_v63, %s11876_s7  ;;  %v3790_v25 = vsel %vm3703_vm11, %v3788_v7, %v3789_v57  ;;  %v976_v13 = vadd.f32 %v13752_v15, %v692_v8  ;;  %v3799_v17 = vsel %vm3703_vm11, %v3797_v37, %v3798_v3  ;;  %v11282_v23 = vld [vmem:[#allocation2 + $0x374] ss:$0 sps:$4 sm:$0x11]   ;;  %v11280_v8 = vld [vmem:[#allocation2 + $0x36c] ss:$0 sps:$4 sm:$0x77]  }
 0x342   : > { %16246 = vst [vmem:[#allocation24_spill] sm:$0xff] %v14427_v21  ;;  %v14434_v47 = vpop.permute.xlu0 %5156  ;;  %v14436_v35 = vpop.f32.mrf.mxu1  ;;  %1039 = vst [vmem:[%s13802_s17 + $0x2b0] sm:$0xff] %v1007_v11  ;;  %v3795_v33 = vrot.slane %v3446_v38, 2  ;;  %v8779_v63 = vsel %vm3703_vm11, %v8777_v31, %v8778_v28  ;;  %v3794_v57 = vrot.slane %v3444_v27, 2  ;;  %v977_v37 = vadd.f32 %v13752_v15, %v696_v58  ;;  %v11286_v38 = vld [vmem:[#allocation2 + $0x24] sm:$0xfe]  }
 0x343   : > { %16248 = vst [vmem:[#allocation25_spill] sm:$0xff] %v14434_v47  ;;  %8617 = vrot.lane.b32.xlu0 %v8571_v52, %s11876_s7  ;;  %4105 = vmatmul.mubr.bf16.gmra.mxu0 %v3790_v25  ;;  %v1008_v22 = vmax.f32 %v976_v13, 0.0  ;;  %v5843_v3 = vrot.slane %v11281_v53, 6  ;;  %v5844_v52 = vrot.slane %v11282_v23, 6  ;;  %v11288_v53 = vld [vmem:[#allocation2 + $0x414] sm:$0xfe]  }
 0x344   : > { %v702_v34 = vpop.f32.mrf.mxu1  ;;  %4112 = vmatprep.mubr.bf16.mxu0 %v3799_v17  ;;  %v1009_v28 = vmax.f32 %v977_v37, 0.0  ;;  %v11287_v61 = vld [vmem:[#allocation2 + $0x2c] ss:$0 sps:$4 sm:$0x11]   ;;  %v7756_v37 = vrot.slane %v11286_v38, 1 }
 0x345   : > { %v14446_v10 = vpop.permute.xlu1 %5162  ;;  %8121 = vrot.lane.b32.xlu1 %v11278_v0, %s11877_s11  ;;  %1040 = vst [vmem:[%s13802_s17 + $0x2d8] sm:$0xff] %v1008_v22  ;;  %v3796_v0 = vsel %vm3703_vm11, %v3794_v57, %v3795_v33  ;;  %v978_v58 = vadd.f32 %v13752_v15, %v702_v34  ;;  %v5845_v25 = vsel %vm4895_vm8, %v5843_v3, %v5844_v52  ;;  %v11284_v23 = vld [vmem:[#allocation2 + $0x378] ss:$0 sps:$4 sm:$0x77]   ;;  %v7757_v33 = vrot.slane %v11287_v61, 1  ;;  %v11285_v38 = vld [vmem:[#allocation2 + $0x40c] sm:$0xff]  }
 0x346   : > { %16250 = vst [vmem:[#allocation44_spill] sm:$0xff] %v14446_v10  ;;  %v14449_v7 = vpop.permute.xlu0 %5160  ;;  %v14451_v11 = vpop.f32.mrf.mxu1  ;;  %1041 = vst [vmem:[%s13802_s17 + $0x300] sm:$0xff] %v1009_v28  ;;  %v11290_v57 = vld [vmem:[#allocation2 + $0x2c] sm:$0xfc]   ;;  %v8572_v61 = vrot.slane %v11288_v53, 1 }
 0x347   : > { %16251 = vst [vmem:[#allocation83_spill] sm:$0xff] %v14449_v7  ;;  %8825 = vrot.lane.b32.xlu0 %v8779_v63, %s11877_s11  ;;  %v1010_v63 = vmax.f32 %v978_v58, 0.0  ;;  %v11289_v34 = vld [vmem:[#allocation2 + $0x41c] ss:$0 sps:$4 sm:$0x11]   ;;  %v11301_v21 = vld [vmem:[#allocation2 + $0x428] sm:$0xff]  }
 0x348   : > { %v706_v20 = vpop.f32.mrf.mxu1  ;;  %v11293_v53 = vld [vmem:[#allocation2 + $0x424] ss:$0 sps:$4 sm:$0x33]   ;;  %v11304_v47 = vld [vmem:[#allocation2 + $0x430] sm:$0xfe]  }
 0x349   : > { %v14457_v31 = vpop.permute.xlu1 %5166  ;;  %5654 = vrot.lane.b32.xlu1 %v11280_v8, %s11875_s24  ;;  %v11283_v8 = vld [vmem:[#allocation2 + $0x370] sm:$0xf8]   ;;  %1042 = vst [vmem:[%s13802_s17 + $0x328] sm:$0xff] %v1010_v63  ;;  %v979_v52 = vadd.f32 %v13752_v15, %v706_v20  ;;  %v8573_v63 = vrot.slane %v11289_v34, 1  ;;  %v8781_v34 = vrot.slane %v11293_v53, 2 }
 0x34a   : > { %16252 = vst [vmem:[#allocation58_spill] sm:$0xff] %v14457_v31  ;;  %v14459_v50 = vpop.permute.xlu0 %5164  ;;  %v14461_v27 = vpop.f32.mrf.mxu1  ;;  %v11296_v53 = vld [vmem:[#allocation2 + $0x388] ss:$0 sps:$4 sm:$0x77]  }
 0x34b   : > { %16253 = vst [vmem:[#allocation82_spill] sm:$0xff] %v14459_v50  ;;  %5652 = vrot.lane.b32.xlu0 %v11279_v45, %s11875_s24  ;;  %4113 = vmatmul.mubr.bf16.gmra.mxu0 %v3796_v0  ;;  %v11291_v45 = vld [vmem:[#allocation2 + $0x34] ss:$0 sps:$4 sm:$0x33]   ;;  %v7964_v50 = vrot.slane %v11290_v57, 2 }
 0x34c   : > { %v712_v13 = vpop.f32.mrf.mxu1 }
 0x34d   : > { %v14469_v17 = vpop.permute.xlu1 %5170  ;;  %5894 = vrot.lane.b32.xlu1 %v5845_v25, %s11876_s7  ;;  %v11292_v25 = vld [vmem:[#allocation2 + $0x41c] sm:$0xfc]   ;;  %v980_v20 = vadd.f32 %v13752_v15, %v712_v13 }
 0x34e   : > { %16254 = vst [vmem:[#allocation103_spill] sm:$0xff] %v14469_v17  ;;  %v14471_v22 = vpop.permute.xlu0 %5168  ;;  %v14473_v28 = vpop.f32.mrf.mxu1 }
 0x34f   : > { %16255 = vst [vmem:[#allocation59_spill] sm:$0xff] %v14471_v22  ;;  %16256 = vst [vmem:[#allocation102_spill] sm:$0xff] %v14473_v28  ;;  %5892 = vrot.lane.b32.xlu0 %v5843_v3, %s11876_s7  ;;  %v1011_v22 = vmax.f32 %v979_v52, 0.0  ;;  %v7758_v3 = vsel %vm7752_vm12, %v7756_v37, %v7757_v33  ;;  %v7965_v52 = vrot.slane %v11291_v45, 2  ;;  %v1012_v57 = vmax.f32 %v980_v20, 0.0 }
 0x350   : > { %v716_v0 = vpop.f32.mrf.mxu1  ;;  %v8574_v33 = vsel %vm7752_vm12, %v8572_v61, %v8573_v63 }
 0x351   : > { %v14479_v58 = vpop.permute.xlu1 %5174  ;;  %6086 = vrot.lane.b32.xlu1 %v11284_v23, %s11877_s11  ;;  %1043 = vst [vmem:[%s13802_s17 + $0x350] sm:$0xff] %v1011_v22  ;;  %1044 = vst [vmem:[%s13802_s17 + $0x378] sm:$0xff] %v1012_v57  ;;  %v981_v13 = vadd.f32 %v13752_v15, %v716_v0  ;;  %v7966_v23 = vsel %vm3703_vm11, %v7964_v50, %v7965_v52  ;;  %v8780_v22 = vrot.slane %v11292_v25, 2  ;;  %v11297_v0 = vld [vmem:[#allocation2 + $0x388] sm:$0xfe]  }
 0x352   : > { %16257 = vst [vmem:[#allocation26_spill] sm:$0xff] %v14479_v58  ;;  %v14481_v17 = vpop.permute.xlu0 %5172  ;;  %v14483_v31 = vpop.f32.mrf.mxu1 }
 0x353   : > { %16258 = vst [vmem:[#allocation27_spill] sm:$0xff] %v14481_v17  ;;  %16259 = vst [vmem:[#allocation43_spill] sm:$0xff] %v14483_v31  ;;  %6084 = vrot.lane.b32.xlu0 %v11283_v8, %s11877_s11  ;;  %v1013_v45 = vmax.f32 %v981_v13, 0.0  ;;  %v8782_v61 = vsel %vm3703_vm11, %v8780_v22, %v8781_v34 }
 0x354   : > { %v722_v58 = vpop.f32.mrf.mxu1 }
 0x355   : > { %v14490_v17 = vpop.permute.xlu1 %5178  ;;  %7803 = vrot.lane.b32.xlu1 %v7758_v3, %s11875_s24  ;;  %v11298_v3 = vld [vmem:[#allocation2 + $0x390] ss:$0 sps:$4 sm:$0x11]   ;;  %1045 = vst [vmem:[%s13802_s17 + $0x3a0] sm:$0xff] %v1013_v45  ;;  %v982_v50 = vadd.f32 %v13752_v15, %v722_v58  ;;  %v5846_v45 = vrot.slane %v11297_v0, 6 }
 0x356   : > { %16260 = vst [vmem:[#allocation60_spill] sm:$0xff] %v14490_v17  ;;  %v14492_v7 = vpop.permute.xlu0 %5176  ;;  %v14494_v10 = vpop.f32.mrf.mxu1  ;;  %v11294_v17 = vld [vmem:[#allocation2 + $0x214] sm:$0xff]  }
 0x357   : > { %16261 = vst [vmem:[#allocation84_spill] sm:$0xff] %v14492_v7  ;;  %16262 = vst [vmem:[#allocation85_spill] sm:$0xff] %v14494_v10  ;;  %8411 = vrot.lane.b32.xlu0 %v11285_v38, %s11875_s24  ;;  %v1014_v63 = vmax.f32 %v982_v50, 0.0  ;;  %v11299_v7 = vld [vmem:[#allocation2 + $0x38c] sm:$0xf8]  }
 0x358   : > { %v726_v8 = vpop.f32.mrf.mxu1 }
 0x359   : > { %v14501_v37 = vpop.permute.xlu1 %5182  ;;  %8011 = vrot.lane.b32.xlu1 %v7966_v23, %s11876_s7  ;;  %v11295_v23 = vld [vmem:[#allocation2 + $0x380] sm:$0xf8]   ;;  %1046 = vst [vmem:[%s13802_s17 + $0x3c8] sm:$0xff] %v1014_v63  ;;  %v983_v58 = vadd.f32 %v13752_v15, %v726_v8  ;;  %v11300_v63 = vld [vmem:[#allocation2 + $0x394] ss:$0 sps:$4 sm:$0x77]  }
 0x35a   : > { %16263 = vst [vmem:[#allocation61_spill] sm:$0xff] %v14501_v37  ;;  %v14504_v20 = vpop.permute.xlu0 %5180  ;;  %v14506_v57 = vpop.f32.mrf.mxu1 }
 0x35b   : > { %16264 = vst [vmem:[#allocation104_spill] sm:$0xff] %v14504_v20  ;;  %16265 = vst [vmem:[#allocation105_spill] sm:$0xff] %v14506_v57  ;;  %8619 = vrot.lane.b32.xlu0 %v8574_v33, %s11876_s7  ;;  %v5847_v20 = vrot.slane %v11298_v3, 6  ;;  %v11302_v33 = vld [vmem:[#allocation2 + $0x40] sm:$0xfe]   ;;  %v1015_v34 = vmax.f32 %v983_v58, 0.0 }
 0x35c   : > { %v732_v38 = vpop.f32.mrf.mxu1  ;;  %v7759_v3 = vrot.slane %v11302_v33, 1  ;;  %v11305_v58 = vld [vmem:[#allocation2 + $0x438] ss:$0 sps:$4 sm:$0x11]  }
 0x35d   : > { %v14512_v25 = vpop.permute.xlu1 %5186  ;;  %8123 = vrot.lane.b32.xlu1 %v11294_v17, %s11877_s11  ;;  %1047 = vst [vmem:[%s13802_s17 + $0x3f0] sm:$0xff] %v1015_v34  ;;  %v984_v17 = vadd.f32 %v13752_v15, %v732_v38  ;;  %v5848_v8 = vsel %vm4895_vm8, %v5846_v45, %v5847_v20  ;;  %v11307_v34 = vld [vmem:[#allocation2 + $0x50] ss:$0 sps:$4 sm:$0x33]  }
 0x35e   : > { %16266 = vst [vmem:[#allocation28_spill] sm:$0xff] %v14512_v25  ;;  %v14515_v52 = vpop.permute.xlu0 %5184  ;;  %v14517_v13 = vpop.f32.mrf.mxu1  ;;  %v11325_v57 = vld [vmem:[#allocation2 + $0x45c] ss:$0 sps:$4 sm:$0x33]  }
 0x35f   : > { %16267 = vst [vmem:[#allocation29_spill] sm:$0xff] %v14515_v52  ;;  %16268 = vst [vmem:[#allocation46_spill] sm:$0xff] %v14517_v13  ;;  %8827 = vrot.lane.b32.xlu0 %v8782_v61, %s11877_s11  ;;  %v11303_v52 = vld [vmem:[#allocation2 + $0x48] ss:$0 sps:$4 sm:$0x11]  }
 0x360   : > { %v736_v25 = vpop.f32.mrf.mxu1  ;;  %v7760_v38 = vrot.slane %v11303_v52, 1 }
 0x361   : > { %v14523_v22 = vpop.permute.xlu1 %5190  ;;  %5658 = vrot.lane.b32.xlu1 %v11296_v53, %s11875_s24  ;;  %v985_v20 = vadd.f32 %v13752_v15, %v736_v25 }
 0x362   : > { %16269 = vst [vmem:[#allocation62_spill] sm:$0xff] %v14523_v22  ;;  %v14525_v50 = vpop.permute.xlu0 %5188  ;;  %v14527_v37 = vpop.f32.mrf.mxu1 }
 0x363   : > { %16270 = vst [vmem:[#allocation63_spill] sm:$0xff] %v14525_v50  ;;  %16271 = vst [vmem:[#allocation86_spill] sm:$0xff] %v14527_v37  ;;  %5656 = vrot.lane.b32.xlu0 %v11295_v23, %s11875_s24  ;;  %v1016_v50 = vmax.f32 %v984_v17, 0.0  ;;  %v11306_v23 = vld [vmem:[#allocation2 + $0x48] sm:$0xfc]   ;;  %v1017_v17 = vmax.f32 %v985_v20, 0.0 }
 0x364   : > { %v742_v0 = vpop.f32.mrf.mxu1  ;;  %v8575_v37 = vrot.slane %v11304_v47, 1  ;;  %v7967_v52 = vrot.slane %v11306_v23, 2  ;;  %v11309_v47 = vld [vmem:[#allocation2 + $0x440] ss:$0 sps:$4 sm:$0x33]  }
 0x365   : > { %v14534_v61 = vpop.permute.xlu1 %5194  ;;  %5898 = vrot.lane.b32.xlu1 %v5848_v8, %s11876_s7  ;;  %1048 = vst [vmem:[%s13802_s17 + $0x418] sm:$0xff] %v1016_v50  ;;  %v7968_v50 = vrot.slane %v11307_v34, 2  ;;  %1049 = vst [vmem:[%s13802_s17 + $0x440] sm:$0xff] %v1017_v17  ;;  %v986_v25 = vadd.f32 %v13752_v15, %v742_v0  ;;  %v11308_v8 = vld [vmem:[#allocation2 + $0x438] sm:$0xfc]   ;;  %v8784_v34 = vrot.slane %v11309_v47, 2 }
 0x366   : > { %16272 = vst [vmem:[#allocation87_spill] sm:$0xff] %v14534_v61  ;;  %v14536_v22 = vpop.permute.xlu0 %5192  ;;  %v14538_v53 = vpop.f32.mrf.mxu1 }
 0x367   : > { %16273 = vst [vmem:[#allocation106_spill] sm:$0xff] %v14536_v22  ;;  %16274 = vst [vmem:[#allocation107_spill] sm:$0xff] %v14538_v53  ;;  %5896 = vrot.lane.b32.xlu0 %v5846_v45, %s11876_s7  ;;  %v8576_v53 = vrot.slane %v11305_v58, 1  ;;  %v7761_v45 = vsel %vm7752_vm12, %v7759_v3, %v7760_v38  ;;  %v1018_v58 = vmax.f32 %v986_v25, 0.0  ;;  %v8783_v3 = vrot.slane %v11308_v8, 2 }
 0x368   : > { %v746_v33 = vpop.f32.mrf.mxu1 }
 0x369   : > { %v14544_v61 = vpop.permute.xlu1 %5198  ;;  %6090 = vrot.lane.b32.xlu1 %v11300_v63, %s11877_s11  ;;  %1050 = vst [vmem:[%s13802_s17 + $0x468] sm:$0xff] %v1018_v58  ;;  %v987_v0 = vadd.f32 %v13752_v15, %v746_v33  ;;  %v8577_v23 = vsel %vm7752_vm12, %v8575_v37, %v8576_v53  ;;  %v11313_v33 = vld [vmem:[#allocation2 + $0x3a4] sm:$0xfe]   ;;  %v8785_v37 = vsel %vm3703_vm11, %v8783_v3, %v8784_v34  ;;  %v11312_v58 = vld [vmem:[#allocation2 + $0x3a4] ss:$0 sps:$4 sm:$0x77]  }
 0x36a   : > { %16275 = vst [vmem:[#allocation30_spill] sm:$0xff] %v14544_v61  ;;  %v14546_v22 = vpop.permute.xlu0 %5196  ;;  %v14548_v51 = vpop.f32.mrf.mxu1 }
 0x36b   : > { %16276 = vst [vmem:[#allocation31_spill] sm:$0xff] %v14546_v22  ;;  %16277 = vst [vmem:[#allocation45_spill] sm:$0xff] %v14548_v51  ;;  %6088 = vrot.lane.b32.xlu0 %v11299_v7, %s11877_s11  ;;  %v7969_v7 = vsel %vm3703_vm11, %v7967_v52, %v7968_v50  ;;  %v1019_v17 = vmax.f32 %v987_v0, 0.0  ;;  %v11314_v52 = vld [vmem:[#allocation2 + $0x3ac] ss:$0 sps:$4 sm:$0x11]  }
 0x36c   : > { %v752_v20 = vpop.f32.mrf.mxu1 }
 0x36d   : > { %v14555_v22 = vpop.permute.xlu1 %5330  ;;  %7805 = vrot.lane.b32.xlu1 %v7761_v45, %s11875_s24  ;;  %v11310_v45 = vld [vmem:[#allocation2 + $0x230] sm:$0xff]   ;;  %1051 = vst [vmem:[%s13802_s17 + $0x490] sm:$0xff] %v1019_v17 }
 0x36e   : > { %v14557_v61 = vpop.permute.xlu0 %5328  ;;  %v14559_v51 = vpop.f32.mrf.mxu1 }
 0x36f   : > { %16278 = vst [vmem:[#allocation64_spill] sm:$0xff] %v14559_v51  ;;  %8413 = vrot.lane.b32.xlu0 %v11301_v21, %s11875_s24  ;;  %v988_v21 = vadd.f32 %v13752_v15, %v752_v20  ;;  %v11311_v20 = vld [vmem:[#allocation2 + $0x39c] sm:$0xf8]  }
 0x370   : > { %v756_v63 = vpop.f32.mrf.mxu1 }
 0x371   : > { %v14566_v38 = vpop.permute.xlu1 %5334  ;;  %8013 = vrot.lane.b32.xlu1 %v7969_v7, %s11876_s7  ;;  %v1020_v53 = vmax.f32 %v988_v21, 0.0  ;;  %v989_v0 = vadd.f32 %v13752_v15, %v756_v63  ;;  %v5849_v7 = vrot.slane %v11313_v33, 6  ;;  %v11318_v63 = vld [vmem:[#allocation2 + $0x5c] sm:$0xfe]  }
 0x372   : > { %v14569_v25 = vpop.permute.xlu0 %5332  ;;  %v14571_v51 = vpop.f32.mrf.mxu1 }
 0x373   : > { %16279 = vst [vmem:[#allocation89_spill] sm:$0xff] %v14571_v51  ;;  %8621 = vrot.lane.b32.xlu0 %v8577_v23, %s11876_s7  ;;  %1052 = vst [vmem:[%s13802_s17 + $0x4b8] sm:$0xff] %v1020_v53  ;;  %v5850_v23 = vrot.slane %v11314_v52, 6  ;;  %v1021_v34 = vmax.f32 %v989_v0, 0.0  ;;  %v11315_v53 = vld [vmem:[#allocation2 + $0x3a8] sm:$0xf8]  }
 0x374   : > { %v14582_v47 = vpop.f32.mrf.mxu1  ;;  %v11316_v52 = vld [vmem:[#allocation2 + $0x3b0] ss:$0 sps:$4 sm:$0x77]   ;;  %v11323_v0 = vld [vmem:[#allocation2 + $0x6c] ss:$0 sps:$4 sm:$0x33]  }
 0x375   : > { %v14577_v50 = vpop.permute.xlu1 %5338  ;;  %16280 = vst [vmem:[#allocation65_spill] sm:$0xff] %v14582_v47  ;;  %8125 = vrot.lane.b32.xlu1 %v11310_v45, %s11877_s11  ;;  %v11319_v47 = vld [vmem:[#allocation2 + $0x64] ss:$0 sps:$4 sm:$0x11]   ;;  %1053 = vst [vmem:[%s13802_s17 + $0x4e0] sm:$0xff] %v1021_v34  ;;  %v5851_v15 = vsel %vm4895_vm8, %v5849_v7, %v5850_v23  ;;  %v7971_v18 = vrot.slane %v11323_v0, 2 }
 0x376   : > { %v14580_v8 = vpop.permute.xlu0 %5336  ;;  %v14588_v17 = vpop.f32.mrf.mxu1  ;;  %v7763_v34 = vrot.slane %v11319_v47, 1  ;;  %v8787_v0 = vrot.slane %v11325_v57, 2 }
 0x377   : > { %8829 = vrot.lane.b32.xlu0 %v8785_v37, %s11877_s11  ;;  %16281 = vst [vmem:[#allocation88_spill] sm:$0xff] %v14588_v17  ;;  %v11322_v17 = vld [vmem:[#allocation2 + $0x64] sm:$0xfc]  }
 0x378   : > { %v14598_v45 = vpop.f32.mrf.mxu1 }
 0x379   : > { %v14590_v3 = vpop.permute.xlu1 %5342  ;;  %5662 = vrot.lane.b32.xlu1 %v11312_v58, %s11875_s24  ;;  %16283 = vst [vmem:[#allocation108_spill] sm:$0xff] %v14598_v45  ;;  %v7762_v58 = vrot.slane %v11318_v63, 1  ;;  %v11321_v45 = vld [vmem:[#allocation2 + $0x454] ss:$0 sps:$4 sm:$0x11]  }
 0x37a   : > { %v14592_v21 = vpop.permute.xlu0 %5340  ;;  %v14606_v51 = vpop.f32.mrf.mxu1 }
 0x37b   : > { %16282 = vst [vmem:[#allocation109_spill] sm:$0xff] %v14592_v21  ;;  %5660 = vrot.lane.b32.xlu0 %v11311_v20, %s11875_s24  ;;  %v11320_v20 = vld [vmem:[#allocation2 + $0x44c] sm:$0xfe]   ;;  %16286 = vst [vmem:[#allocation48_spill] sm:$0xff] %v14606_v51 }
 0x37c   : > { %v14615_v47 = vpop.f32.mrf.mxu1  ;;  %v8578_v51 = vrot.slane %v11320_v20, 1  ;;  %v11332_v20 = vld [vmem:[#allocation2 + $0x3c8] ss:$0 sps:$4 sm:$0x11]  }
 0x37d   : > { %v14600_v33 = vpop.permute.xlu1 %5346  ;;  %5902 = vrot.lane.b32.xlu1 %v5851_v15, %s11876_s7  ;;  %v11324_v15 = vld [vmem:[#allocation2 + $0x454] sm:$0xfc]   ;;  %16289 = vst [vmem:[#allocation90_spill] sm:$0xff] %v14615_v47 }
 0x37e   : > { %16284 = vst [vmem:[#allocation32_spill] sm:$0xff] %v14600_v33  ;;  %v14602_v37 = vpop.permute.xlu0 %5344  ;;  %v7970_v33 = vrot.slane %v11322_v17, 2 }
 0x37f   : > { %16285 = vst [vmem:[#allocation33_spill] sm:$0xff] %v14602_v37  ;;  %5900 = vrot.lane.b32.xlu0 %v5849_v7, %s11876_s7  ;;  %v11317_v37 = vld [vmem:[#allocation2 + $0x444] sm:$0xff]   ;;  %v7764_v7 = vsel %vm7752_vm12, %v7762_v58, %v7763_v34 }
 0x380   : > { %v7972_v17 = vsel %vm3703_vm11, %v7970_v33, %v7971_v18 }
 0x381   : > { %v14608_v23 = vpop.permute.xlu1 %5350  ;;  %6094 = vrot.lane.b32.xlu1 %v11316_v52, %s11877_s11  ;;  %v8786_v52 = vrot.slane %v11324_v15, 2  ;;  %v11327_v15 = vld [vmem:[#allocation2 + $0x3b8] sm:$0xf8]  }
 0x382   : > { %16287 = vst [vmem:[#allocation66_spill] sm:$0xff] %v14608_v23  ;;  %v14610_v13 = vpop.permute.xlu0 %5348  ;;  %v8579_v23 = vrot.slane %v11321_v45, 1  ;;  %v11326_v45 = vld [vmem:[#allocation2 + $0x24c] sm:$0xff]  }
 0x383   : > { %16288 = vst [vmem:[#allocation67_spill] sm:$0xff] %v14610_v13  ;;  %6092 = vrot.lane.b32.xlu0 %v11315_v53, %s11877_s11  ;;  %v14624_v53 = vpop.f32.mrf.mxu1  ;;  %v8788_v57 = vsel %vm3703_vm11, %v8786_v52, %v8787_v0  ;;  %v4155_v52 = vsub.s32 1, %v13730_v59  ;;  %v11343_v0 = vld [vmem:[#allocation2 + $0x80] ss:$0 sps:$4 sm:$0x11]  }
 0x384   : > { %16292 = vst [vmem:[#allocation111_spill] sm:$0xff] %v14624_v53  ;;  %v8580_v34 = vsel %vm7752_vm12, %v8578_v51, %v8579_v23  ;;  %v11328_v51 = vld [vmem:[#allocation2 + $0x3c0] ss:$0 sps:$4 sm:$0x77]   ;;  %v14642_v23 = vpop.f32.mrf.mxu0  ;;  %v5853_v53 = vrot.slane %v11332_v20, 6 }
 0x385   : > { %v14617_v63 = vpop.permute.xlu1 %5354  ;;  %7807 = vrot.lane.b32.xlu1 %v7764_v7, %s11875_s24  ;;  %v11331_v7 = vld [vmem:[#allocation2 + $0x3c0] sm:$0xfe]   ;;  %v11651_v59 = vld [vmem:[#allocation11] sm:$0xf] }
 0x386   : > { %16290 = vst [vmem:[#allocation91_spill] sm:$0xff] %v14617_v63  ;;  %v14619_v10 = vpop.permute.xlu0 %5352  ;;  %v14660_v13 = vrot.slane %v11651_v59, %v4155_v52 }
 0x387   : > { %16291 = vst [vmem:[#allocation110_spill] sm:$0xff] %v14619_v10  ;;  %8415 = vrot.lane.b32.xlu0 %v11317_v37, %s11875_s24  ;;  %v14633_v37 = vpop.f32.mrf.mxu1 }
 0x388   : > { %16295 = vst [vmem:[#allocation47_spill] sm:$0xff] %v14633_v37 }
 0x389   : > { %v14626_v58 = vpop.permute.xlu1 %5358  ;;  %8015 = vrot.lane.b32.xlu1 %v7972_v17, %s11876_s7  ;;  %v5852_v17 = vrot.slane %v11331_v7, 6  ;;  %v11336_v7 = vld [vmem:[#allocation2 + $0x3cc] ss:$0 sps:$4 sm:$0x77]  }
 0x38a   : > { %16293 = vst [vmem:[#allocation34_spill] sm:$0xff] %v14626_v58  ;;  %v14629_v47 = vpop.permute.xlu0 %5356  ;;  %v11335_v58 = vld [vmem:[#allocation2 + $0x3c4] sm:$0xf8]  }
 0x38b   : > { %16294 = vst [vmem:[#allocation35_spill] sm:$0xff] %v14629_v47  ;;  %8623 = vrot.lane.b32.xlu0 %v8580_v34, %s11876_s7  ;;  %v14644_v34 = vpop.f32.mrf.mxu1 }
 0x38c   : > { %16298 = vst [vmem:[#allocation92_spill] sm:$0xff] %v14644_v34  ;;  %v11348_v34 = vld [vmem:[#allocation2 + $0x468] sm:$0xfe]  }
 0x38d   : > { %v14635_v18 = vpop.permute.xlu1 %5362  ;;  %8127 = vrot.lane.b32.xlu1 %v11326_v45, %s11877_s11 }
 0x38e   : > { %16296 = vst [vmem:[#allocation68_spill] sm:$0xff] %v14635_v18  ;;  %v14638_v33 = vpop.permute.xlu0 %5360  ;;  %v11342_v18 = vld [vmem:[#allocation2 + $0x78] sm:$0xfe]  }
 0x38f   : > { %16297 = vst [vmem:[#allocation69_spill] sm:$0xff] %v14638_v33  ;;  %8831 = vrot.lane.b32.xlu0 %v8788_v57, %s11877_s11  ;;  %v5854_v57 = vsel %vm4895_vm8, %v5852_v17, %v5853_v53  ;;  %v14654_v33 = vpop.f32.mrf.mxu1  ;;  %v7765_v10 = vrot.slane %v11342_v18, 1  ;;  %v11351_v53 = vld [vmem:[#allocation2 + $0x88] ss:$0 sps:$4 sm:$0x33]  }
 0x390   : > { %v10482_v45 = vpop.f32.mrf.mxu0  ;;  %16301 = vst [vmem:[#allocation37_spill] sm:$0xff] %v14654_v33 }
 0x391   : > { %v14646_v47 = vpop.permute.xlu1 %5366  ;;  %5666 = vrot.lane.b32.xlu1 %v11328_v51, %s11875_s24  ;;  %v11349_v51 = vld [vmem:[#allocation2 + $0x470] ss:$0 sps:$4 sm:$0x11]   ;;  %v14664_v31 = vpop.f32.mrf.mxu1 }
 0x392   : > { %16299 = vst [vmem:[#allocation93_spill] sm:$0xff] %v14646_v47  ;;  %v14648_v37 = vpop.permute.xlu0 %5364  ;;  %16304 = vst [vmem:[#allocation71_spill] sm:$0xff] %v14664_v31 }
 0x393   : > { %16300 = vst [vmem:[#allocation36_spill] sm:$0xff] %v14648_v37  ;;  %5664 = vrot.lane.b32.xlu0 %v11327_v15, %s11875_s24  ;;  %v10483_v37 = vpop.f32.mrf.mxu0  ;;  %v7766_v15 = vrot.slane %v11343_v0, 1  ;;  %v11341_v0 = vld [vmem:[#allocation2 + $0x460] sm:$0xff]   ;;  %v14675_v21 = vpop.f32.mrf.mxu1 }
 0x394   : > { %v10484_v63 = vadd.f32 %v10483_v37, %v10482_v45  ;;  %v8581_v45 = vrot.slane %v11348_v34, 1 }
 0x395   : > { %v14656_v20 = vpop.permute.xlu1 %5370  ;;  %5906 = vrot.lane.b32.xlu1 %v5854_v57, %s11876_s7  ;;  %v10485_v33 = vpop.f32.mrf.mxu0  ;;  %v7767_v31 = vsel %vm7752_vm12, %v7765_v10, %v7766_v15 }
 0x396   : > { %16302 = vst [vmem:[#allocation50_spill] sm:$0xff] %v14656_v20  ;;  %v14658_v47 = vpop.permute.xlu0 %5368  ;;  %v11350_v20 = vld [vmem:[#allocation2 + $0x80] sm:$0xfc]   ;;  %v14688_v15 = vpop.f32.mrf.mxu1 }
 0x397   : > { %16303 = vst [vmem:[#allocation70_spill] sm:$0xff] %v14658_v47  ;;  %5904 = vrot.lane.b32.xlu0 %v5852_v17, %s11876_s7  ;;  %v4121_v47 = vadd.f32 %v10484_v63, %v13778_v9  ;;  %v10486_v37 = vpop.f32.mrf.mxu0  ;;  %v8582_v17 = vrot.slane %v11349_v51, 1  ;;  %v7973_v9 = vrot.slane %v11350_v20, 2  ;;  %v7974_v63 = vrot.slane %v11351_v53, 2  ;;  %16309 = vst [vmem:[#allocation49_spill] sm:$0xff] %v14688_v15 }
 0x398   : > { %v10487_v52 = vadd.f32 %v10486_v37, %v10485_v33 }
 0x399   : > { %v14667_v28 = vpop.permute.xlu1 %5374  ;;  %v4157_v59 = vadd.f32 %v14660_v13, %v4121_v47  ;;  %6098 = vrot.lane.b32.xlu1 %v11336_v7, %s11877_s11  ;;  %v10488_v57 = vpop.f32.mrf.mxu0  ;;  %v11359_v7 = vld [vmem:[#allocation2 + $0x478] ss:$0 sps:$4 sm:$0x33]   ;;  %v8583_v20 = vsel %vm7752_vm12, %v8581_v45, %v8582_v17 }
 0x39a   : > { %16305 = vst [vmem:[#allocation94_spill] sm:$0xff] %v14667_v28  ;;  %v14669_v18 = vpop.permute.xlu0 %5372  ;;  %v11358_v28 = vld [vmem:[#allocation2 + $0x470] sm:$0xfc]   ;;  %v4122_v47 = vadd.f32 %v10487_v52, %v13805_v4  ;;  %v7975_v4 = vsel %vm3703_vm11, %v7973_v9, %v7974_v63  ;;  %v11360_v9 = vld [vmem:[#allocation2 + $0x268] sm:$0xff]  }
 0x39b   : > { %16306 = vst [vmem:[#allocation95_spill] sm:$0xff] %v14669_v18  ;;  %6096 = vrot.lane.b32.xlu0 %v11335_v58, %s11877_s11  ;;  %v4189_v18 = vmax.f32 %v4157_v59, 0.0  ;;  %v10489_v34 = vpop.f32.mrf.mxu0  ;;  %v14701_v63 = vld [vmem:[#allocation2 + $0x208] sm:$0xfc]  }
 0x39c   : > { %v4158_v58 = vadd.f32 %v14660_v13, %v4122_v47  ;;  %v10490_v51 = vadd.f32 %v10489_v34, %v10488_v57  ;;  %v8790_v47 = vrot.slane %v11359_v7, 2  ;;  %v11183_v57 = vld [vmem:[#allocation2 + $0xa8] sm:$0xf8]   ;;  %v11184_v34 = vld [vmem:[#allocation2 + $0xb0] ss:$0 sps:$4 sm:$0x77]   ;;  %v14703_v7 = vpop.f32.mrf.mxu1 }
 0x39d   : > { %v14678_v33 = vpop.permute.xlu1 %5378  ;;  %4221 = vst [vmem:[%s13802_s17 + $0x10] sm:$0xff] %v4189_v18  ;;  %7809 = vrot.lane.b32.xlu1 %v7767_v31, %s11875_s24  ;;  %v10491_v10 = vpop.f32.mrf.mxu0  ;;  %v8789_v18 = vrot.slane %v11358_v28, 2  ;;  %16312 = vst [vmem:[#allocation113_spill] sm:$0xff] %v14703_v7  ;;  %v11366_v7 = vld [vmem:[#allocation2 + $0x3dc] ss:$0 sps:$4 sm:$0x77]  }
 0x39e   : > { %16307 = vst [vmem:[#allocation38_spill] sm:$0xff] %v14678_v33  ;;  %v14680_v37 = vpop.permute.xlu0 %5376  ;;  %v4190_v53 = vmax.f32 %v4158_v58, 0.0  ;;  %v4123_v59 = vadd.f32 %v10490_v51, %v13832_v54  ;;  %v11372_v54 = vld [vmem:[#allocation2 + $0x3e4] ss:$0 sps:$4 sm:$0x11]  }
 0x39f   : > { %16308 = vst [vmem:[#allocation39_spill] sm:$0xff] %v14680_v37  ;;  %8417 = vrot.lane.b32.xlu0 %v11341_v0, %s11875_s24  ;;  %v10492_v37 = vpop.f32.mrf.mxu0  ;;  %v14695_v0 = vld [vmem:[#allocation2 + $0x3dc] sm:$0xfe]   ;;  %v5856_v15 = vrot.slane %v11372_v54, 6  ;;  %v14742_v54 = vld [vmem:[#allocation2 + $0x484] sm:$0xfe]  }
 0x3a0   : > { %4222 = vst [vmem:[%s13802_s17 + $0x38] sm:$0xff] %v4190_v53  ;;  %v4159_v45 = vadd.f32 %v14660_v13, %v4123_v59  ;;  %v10493_v17 = vadd.f32 %v10492_v37, %v10491_v10  ;;  %v8791_v53 = vsel %vm3703_vm11, %v8789_v18, %v8790_v47  ;;  %v14707_v59 = vld [vmem:[#allocation2 + $0x9c] ss:$0 sps:$4 sm:$0x11]   ;;  %v6149_v18 = vsel %vm519_vm7, %v11184_v34, %v13880_v6 }
 0x3a1   : > { %v14691_v52 = vpop.permute.xlu1 %5382  ;;  %8017 = vrot.lane.b32.xlu1 %v7975_v4, %s11876_s7  ;;  %v10494_v28 = vpop.f32.mrf.mxu0  ;;  %v11356_v10 = vld [vmem:[#allocation2 + $0x20c] ss:$0 sps:$4 sm:$0x77]  }
 0x3a2   : > { %16310 = vst [vmem:[#allocation72_spill] sm:$0xff] %v14691_v52  ;;  %v14693_v31 = vpop.permute.xlu0 %5380  ;;  %v4191_v58 = vmax.f32 %v4159_v45, 0.0  ;;  %v4124_v51 = vadd.f32 %v10493_v17, %v13857_v29  ;;  %v14709_v52 = vld [vmem:[#allocation2 + $0x94] sm:$0xfe]   ;;  %v6146_v29 = vsel %vm519_vm7, %v11183_v57, %v13883_v44  ;;  %v5855_v17 = vrot.slane %v14695_v0, 6 }
 0x3a3   : > { %16311 = vst [vmem:[#allocation73_spill] sm:$0xff] %v14693_v31  ;;  %8625 = vrot.lane.b32.xlu0 %v8583_v20, %s11876_s7  ;;  %v10495_v4 = vpop.f32.mrf.mxu0  ;;  %v11365_v45 = vld [vmem:[#allocation2 + $0x3d4] sm:$0xf8]   ;;  %v6241_v6 = vsel %vm3333_vm9, %v6146_v29, %v14309_v49  ;;  %v6243_v57 = vsel %vm3333_vm9, %v6149_v18, %v14303_v24  ;;  %v14737_v49 = vld [vmem:[#allocation2 + $0x210] ss:$0 sps:$4 sm:$0x33]  }
 0x3a4   : > { %4223 = vst [vmem:[%s13802_s17 + $0x60] sm:$0xff] %v4191_v58  ;;  %v4160_v20 = vadd.f32 %v14660_v13, %v4124_v51  ;;  %v10496_v33 = vadd.f32 %v10495_v4, %v10494_v28  ;;  %v14720_v58 = vpop.f32.mrf.mxu1  ;;  %v11355_v51 = vld [vmem:[#allocation2 + $0x204] sm:$0xf8]   ;;  %v5857_v18 = vsel %vm4895_vm8, %v5855_v17, %v5856_v15 }
 0x3a5   : > { %v5651_v31 = vpop.permute.xlu1 %5650  ;;  %8129 = vrot.lane.b32.xlu1 %v11360_v9, %s11877_s11  ;;  %v10497_v47 = vpop.f32.mrf.mxu0  ;;  %16313 = vst [vmem:[#allocation114_spill] sm:$0xff] %v14720_v58  ;;  %v11380_v58 = vld [vmem:[#allocation2 + $0x3e0] sm:$0xf8]  }
 0x3a6   : > { %v5649_v37 = vpop.permute.xlu0 %5648  ;;  %v4192_v28 = vmax.f32 %v4160_v20, 0.0  ;;  %v4125_v9 = vadd.f32 %v10496_v33, %v13886_v26  ;;  %v6305_v20 = vsel %vm3382_vm10, %v6241_v6, %v14557_v61  ;;  %v6307_v26 = vsel %vm3382_vm10, %v6243_v57, %v14555_v22  ;;  %v14744_v61 = vld [vmem:[#allocation2 + $0x48c] ss:$0 sps:$4 sm:$0x11]   ;;  %v14746_v22 = vld [vmem:[#allocation2 + $0x9c] sm:$0xfc]  }
 0x3a7   : > { %8833 = vrot.lane.b32.xlu0 %v8791_v53, %s11877_s11  ;;  %v10498_v0 = vpop.f32.mrf.mxu0  ;;  %v6373_v24 = vsel %vm519_vm7, %v11356_v10, %v5651_v31  ;;  %v6658_v6 = vrot.slane %v6307_v26, 3 }
 0x3a8   : > { %4224 = vst [vmem:[%s13802_s17 + $0x88] sm:$0xff] %v4192_v28  ;;  %v4161_v33 = vadd.f32 %v14660_v13, %v4125_v9  ;;  %v10499_v44 = vadd.f32 %v10498_v0, %v10497_v47  ;;  %v14748_v28 = vpop.f32.mrf.mxu1 }
 0x3a9   : > { %v5891_v4 = vpop.permute.xlu1 %5890  ;;  %5670 = vrot.lane.b32.xlu1 %v11366_v7, %s11875_s24  ;;  %v10500_v29 = vpop.f32.mrf.mxu0  ;;  %16314 = vst [vmem:[#allocation115_spill] sm:$0xff] %v14748_v28  ;;  %v6370_v7 = vsel %vm519_vm7, %v11355_v51, %v5649_v37 }
 0x3aa   : > { %v5889_v34 = vpop.permute.xlu0 %5888  ;;  %v4193_v47 = vmax.f32 %v4161_v33, 0.0  ;;  %v6467_v9 = vsel %vm3333_vm9, %v6373_v24, %v5891_v4  ;;  %v4126_v31 = vadd.f32 %v10499_v44, %v13919_v30  ;;  %v11381_v30 = vld [vmem:[#allocation2 + $0x3e8] ss:$0 sps:$4 sm:$0x77]  }
 0x3ab   : > { %5668 = vrot.lane.b32.xlu0 %v11365_v45, %s11875_s24  ;;  %v6657_v45 = vrot.slane %v6305_v20, 3  ;;  %v6465_v15 = vsel %vm3333_vm9, %v6370_v7, %v5889_v34  ;;  %v10501_v53 = vpop.f32.mrf.mxu0  ;;  %v11392_v34 = vld [vmem:[#allocation2 + $0xa4] ss:$0 sps:$4 sm:$0x33]   ;;  %v14760_v20 = vpop.f32.mrf.mxu1  ;;  %v8282_v7 = vrot.slane %v14737_v49, 2 }
 0x3ac   : > { %4225 = vst [vmem:[%s13802_s17 + $0xb0] sm:$0xff] %v4193_v47  ;;  %v4162_v28 = vadd.f32 %v14660_v13, %v4126_v31  ;;  %v10502_v33 = vadd.f32 %v10501_v53, %v10500_v29  ;;  %v11378_v31 = vld [vmem:[#allocation2] sm:$0xff]  }
 0x3ad   : > { %v6083_v10 = vpop.permute.xlu1 %6082  ;;  %5910 = vrot.lane.b32.xlu1 %v5857_v18, %s11876_s7  ;;  %v10503_v44 = vpop.f32.mrf.mxu0  ;;  %v11384_v18 = vld [vmem:[#allocation2 + $0x47c] sm:$0xff]   ;;  %v6659_v49 = vsel %vm6656_vm13, %v6657_v45, %v6658_v6  ;;  %v16317_v45 = vrot.slane %v14701_v63, 2 }
 0x3ae   : > { %v6081_v57 = vpop.permute.xlu0 %6080  ;;  %v6531_v0 = vsel %vm3382_vm10, %v6467_v9, %v6083_v10  ;;  %v4194_v26 = vmax.f32 %v4162_v28, 0.0  ;;  %v4127_v24 = vadd.f32 %v10502_v33, %v13943_v32  ;;  %v8584_v10 = vrot.slane %v14742_v54, 1  ;;  %v14780_v33 = vpop.f32.mrf.mxu1 }
 0x3af   : > { %v6529_v37 = vsel %vm3382_vm10, %v6465_v15, %v6081_v57  ;;  %v6661_v51 = vrot.slane %v6531_v0, 3  ;;  %5908 = vrot.lane.b32.xlu0 %v5855_v17, %s11876_s7  ;;  %v10504_v53 = vpop.f32.mrf.mxu0  ;;  %v8585_v17 = vrot.slane %v14744_v61, 1  ;;  %v7976_v15 = vrot.slane %v14746_v22, 2  ;;  %v14768_v57 = vld [vmem:[#allocation2 + $0x48c] sm:$0xfc]  }
 0x3b0   : > { %v6660_v4 = vrot.slane %v6529_v37, 3  ;;  %4226 = vst [vmem:[%s13802_s17 + $0xd8] sm:$0xff] %v4194_v26  ;;  %v4163_v32 = vadd.f32 %v14660_v13, %v4127_v24  ;;  %v10505_v28 = vadd.f32 %v10504_v53, %v10503_v44  ;;  %v16315_v54 = vrot.slane %v14707_v59, 1 }
 0x3b1   : > { %v7802_v47 = vpop.permute.xlu1 %7801  ;;  %6102 = vrot.lane.b32.xlu1 %v11381_v30, %s11877_s11  ;;  %v10506_v0 = vpop.f32.mrf.mxu0  ;;  %v16316_v61 = vrot.slane %v14709_v52, 1  ;;  %v7977_v37 = vrot.slane %v11392_v34, 2  ;;  %v8586_v34 = vsel %vm7752_vm12, %v8584_v10, %v8585_v17  ;;  %v8792_v63 = vrot.slane %v14768_v57, 2  ;;  %v11397_v57 = vld [vmem:[#allocation2 + $0x284] sm:$0xff]  }
 0x3b2   : > { %v8410_v9 = vpop.permute.xlu0 %8409  ;;  %v6662_v29 = vsel %vm6656_vm13, %v6660_v4, %v6661_v51  ;;  %v11396_v51 = vld [vmem:[#allocation2 + $0x494] ss:$0 sps:$4 sm:$0x33]   ;;  %v4195_v4 = vmax.f32 %v4163_v32, 0.0  ;;  %v4128_v44 = vadd.f32 %v10505_v28, %v13979_v56  ;;  %v8859_v24 = vsel %vm519_vm7, %v11378_v31, %v7802_v47 }
 0x3b3   : > { %6946 = vmatprep.mubr.bf16.mxu1 %v6662_v29  ;;  %6100 = vrot.lane.b32.xlu0 %v11380_v58, %s11877_s11  ;;  %v7770_v22 = vsel %vm7752_vm12, %v16316_v61, %v16315_v54  ;;  %v8283_v58 = vsel %vm3703_vm11, %v16317_v45, %v8282_v7  ;;  %v10507_v26 = vpop.f32.mrf.mxu0  ;;  %v7978_v53 = vsel %vm3703_vm11, %v7976_v15, %v7977_v37  ;;  %v8793_v7 = vrot.slane %v11396_v51, 2  ;;  %v14794_v29 = vpop.f32.mrf.mxu1  ;;  %v11188_v47 = vld [vmem:[#allocation2 + $0xcc] ss:$0 sps:$4 sm:$0x77]   ;;  %v11187_v61 = vld [vmem:[#allocation2 + $0xc4] sm:$0xf8]  }
 0x3b4   : > { %6947 = vmatmul.mubr.bf16.vlgmr.msra.gmra.mxu1 %v6659_v49  ;;  %4227 = vst [vmem:[%s13802_s17 + $0x100] sm:$0xff] %v4195_v4  ;;  %v4164_v59 = vadd.f32 %v14660_v13, %v4128_v44  ;;  %v10508_v52 = vadd.f32 %v10507_v26, %v10506_v0  ;;  %v8987_v32 = vsel %vm519_vm7, %v8283_v58, %v8410_v9  ;;  %v11401_v54 = vld [vmem:[#allocation2 + $0x400] ss:$0 sps:$4 sm:$0x11]   ;;  %v14807_v51 = vld [vmem:[#allocation2 + $0x224] sm:$0xfc]  }
 0x3b5   : > { %v8010_v30 = vpop.permute.xlu1 %8009  ;;  %7811 = vrot.lane.b32.xlu1 %v7770_v22, %s11875_s24  ;;  %v10509_v56 = vpop.f32.mrf.mxu0  ;;  %v14810_v44 = vld [vmem:[#allocation2 + $0xb8] ss:$0 sps:$4 sm:$0x11]   ;;  %v8794_v26 = vsel %vm3703_vm11, %v8792_v63, %v8793_v7  ;;  %v5859_v7 = vrot.slane %v11401_v54, 6 }
 0x3b6   : > { %v8618_v6 = vpop.permute.xlu0 %8617  ;;  %v4196_v28 = vmax.f32 %v4164_v59, 0.0  ;;  %v8906_v49 = vsel %vm3333_vm9, %v8859_v24, %v8010_v30  ;;  %v4129_v10 = vadd.f32 %v10508_v52, %v13995_v42  ;;  %v14805_v42 = vld [vmem:[#allocation2 + $0x3f8] sm:$0xfe]   ;;  %v14812_v30 = vpop.f32.mrf.mxu1  ;;  %v11394_v52 = vld [vmem:[#allocation2 + $0x228] ss:$0 sps:$4 sm:$0x77]  }
 0x3b7   : > { %8419 = vrot.lane.b32.xlu0 %v11384_v18, %s11875_s24  ;;  %v9034_v31 = vsel %vm3333_vm9, %v8987_v32, %v8618_v6  ;;  %v10510_v0 = vpop.f32.mrf.mxu0  ;;  %v11399_v32 = vld [vmem:[#allocation2 + $0x3f8] ss:$0 sps:$4 sm:$0x77]   ;;  %v5858_v63 = vrot.slane %v14805_v42, 6 }
 0x3b8   : > { %4228 = vst [vmem:[%s13802_s17 + $0x128] sm:$0xff] %v4196_v28  ;;  %v4165_v22 = vadd.f32 %v14660_v13, %v4129_v10  ;;  %v10511_v9 = vadd.f32 %v10510_v0, %v10509_v56  ;;  %v14816_v56 = vld [vmem:[#allocation2 + $0xb0] sm:$0xfe]   ;;  %v6155_v28 = vsel %vm519_vm7, %v11188_v47, %v13906_v2  ;;  %v14825_v10 = vpop.f32.mrf.mxu1  ;;  %v8284_v2 = vrot.slane %v14807_v51, 2 }
 0x3b9   : > { %v8122_v17 = vpop.permute.xlu1 %8121  ;;  %8019 = vrot.lane.b32.xlu1 %v7978_v53, %s11876_s7  ;;  %v10512_v4 = vpop.f32.mrf.mxu0 }
 0x3ba   : > { %v8826_v18 = vpop.permute.xlu0 %8825  ;;  %v8938_v15 = vsel %vm3382_vm10, %v8906_v49, %v8122_v17  ;;  %v4197_v45 = vmax.f32 %v4165_v22, 0.0  ;;  %v4130_v58 = vadd.f32 %v10511_v9, %v14021_v36  ;;  %v11398_v49 = vld [vmem:[#allocation2 + $0x3f0] sm:$0xf8]   ;;  %v6152_v17 = vsel %vm519_vm7, %v11187_v61, %v13916_v41 }
 0x3bb   : > { %v9066_v37 = vsel %vm3382_vm10, %v9034_v31, %v8826_v18  ;;  %8627 = vrot.lane.b32.xlu0 %v8586_v34, %s11876_s7  ;;  %v10513_v24 = vpop.f32.mrf.mxu0  ;;  %v11393_v18 = vld [vmem:[#allocation2 + $0x220] sm:$0xf8]   ;;  %v6245_v47 = vsel %vm3333_vm9, %v6152_v17, %v14332_v14  ;;  %v7771_v9 = vrot.slane %v14816_v56, 1  ;;  %v14844_v14 = vld [vmem:[#allocation2 + $0x22c] ss:$0 sps:$4 sm:$0x33]  }
 0x3bc   : > { %9274 = vmatprep.mubr.bf16.mxu0 %v9066_v37  ;;  %4229 = vst [vmem:[%s13802_s17 + $0x150] sm:$0xff] %v4197_v45  ;;  %v4166_v34 = vadd.f32 %v14660_v13, %v4130_v58  ;;  %v10514_v53 = vadd.f32 %v10513_v24, %v10512_v4  ;;  %v7772_v37 = vrot.slane %v14810_v44, 1  ;;  %v6309_v41 = vsel %vm3382_vm10, %v6245_v47, %v14569_v25  ;;  %v14849_v58 = vld [vmem:[#allocation2 + $0x4a0] sm:$0xfe]  }
 0x3bd   : > { %9275 = vmatmul.mubr.bf16.vlgmr.msra.gmra.mxu0 %v8938_v15  ;;  %v5655_v6 = vpop.permute.xlu1 %5654  ;;  %8131 = vrot.lane.b32.xlu1 %v11397_v57, %s11877_s11  ;;  %v10515_v36 = vpop.f32.mrf.mxu0  ;;  %v6247_v57 = vsel %vm3333_vm9, %v6155_v28, %v14328_v43  ;;  %v5860_v45 = vsel %vm4895_vm8, %v5858_v63, %v5859_v7  ;;  %v14851_v25 = vld [vmem:[#allocation2 + $0x4a8] ss:$0 sps:$4 sm:$0x11]  }
 0x3be   : > { %v5653_v59 = vpop.permute.xlu0 %5652  ;;  %v4198_v31 = vmax.f32 %v4166_v34, 0.0  ;;  %v4131_v15 = vadd.f32 %v10514_v53, %v14051_v40  ;;  %v6311_v40 = vsel %vm3382_vm10, %v6247_v57, %v14566_v38  ;;  %v6379_v43 = vsel %vm519_vm7, %v11394_v52, %v5655_v6  ;;  %v14853_v38 = vld [vmem:[#allocation2 + $0xb8] sm:$0xfc]  }
 0x3bf   : > { %8835 = vrot.lane.b32.xlu0 %v8794_v26, %s11877_s11  ;;  %v10516_v22 = vpop.f32.mrf.mxu0  ;;  %v14855_v26 = vpop.f32.mrf.mxu1  ;;  %v6376_v24 = vsel %vm519_vm7, %v11393_v18, %v5653_v59  ;;  %v6664_v28 = vrot.slane %v6311_v40, 3 }
 0x3c0   : > { %4230 = vst [vmem:[%s13802_s17 + $0x178] sm:$0xff] %v4198_v31  ;;  %v4167_v61 = vadd.f32 %v14660_v13, %v4131_v15  ;;  %v10517_v42 = vadd.f32 %v10516_v22, %v10515_v36  ;;  %v11405_v31 = vld [vmem:[#allocation2 + $0x3fc] sm:$0xf8]  }
 0x3c1   : > { %v5895_v0 = vpop.permute.xlu1 %5894  ;;  %5674 = vrot.lane.b32.xlu1 %v11399_v32, %s11875_s24  ;;  %v10518_v4 = vpop.f32.mrf.mxu0  ;;  %v6663_v32 = vrot.slane %v6309_v41, 3 }
 0x3c2   : > { %v5893_v54 = vpop.permute.xlu0 %5892  ;;  %v4199_v34 = vmax.f32 %v4167_v61, 0.0  ;;  %v6471_v53 = vsel %vm3333_vm9, %v6379_v43, %v5895_v0  ;;  %v4132_v6 = vadd.f32 %v10517_v42, %v14081_v46  ;;  %v11406_v46 = vld [vmem:[#allocation2 + $0x404] ss:$0 sps:$4 sm:$0x77]   ;;  %v14867_v22 = vpop.f32.mrf.mxu1  ;;  %v8285_v61 = vrot.slane %v14844_v14, 2 }
 0x3c3   : > { %5672 = vrot.lane.b32.xlu0 %v11398_v49, %s11875_s24  ;;  %v6469_v36 = vsel %vm3333_vm9, %v6376_v24, %v5893_v54  ;;  %v10519_v17 = vpop.f32.mrf.mxu0  ;;  %v11413_v54 = vld [vmem:[#allocation2 + $0xc0] ss:$0 sps:$4 sm:$0x33]   ;;  %v6665_v14 = vsel %vm6656_vm13, %v6663_v32, %v6664_v28 }
 0x3c4   : > { %4231 = vst [vmem:[%s13802_s17 + $0x1a0] sm:$0xff] %v4199_v34  ;;  %v4168_v15 = vadd.f32 %v14660_v13, %v4132_v6  ;;  %v10520_v47 = vadd.f32 %v10519_v17, %v10518_v4  ;;  %v11404_v24 = vld [vmem:[#allocation2 + $0x1c] sm:$0xff]   ;;  %v7979_v6 = vrot.slane %v14853_v38, 2  ;;  %v11417_v38 = vld [vmem:[#allocation2 + $0x4b0] ss:$0 sps:$4 sm:$0x33]   ;;  %v8286_v32 = vsel %vm3703_vm11, %v8284_v2, %v8285_v61 }
 0x3c5   : > { %v6087_v52 = vpop.permute.xlu1 %6086  ;;  %5914 = vrot.lane.b32.xlu1 %v5860_v45, %s11876_s7  ;;  %v10521_v57 = vpop.f32.mrf.mxu0  ;;  %v11407_v34 = vld [vmem:[#allocation2 + $0x498] sm:$0xff]   ;;  %v8796_v2 = vrot.slane %v11417_v38, 2 }
 0x3c6   : > { %v6085_v49 = vpop.permute.xlu0 %6084  ;;  %v6535_v7 = vsel %vm3382_vm10, %v6471_v53, %v6087_v52  ;;  %v4200_v41 = vmax.f32 %v4168_v15, 0.0  ;;  %v4133_v40 = vadd.f32 %v10520_v47, %v14100_v39  ;;  %v8587_v53 = vrot.slane %v14849_v58, 1  ;;  %v14875_v52 = vld [vmem:[#allocation2 + $0x4a8] sm:$0xfc]  }
 0x3c7   : > { %v6533_v59 = vsel %vm3382_vm10, %v6469_v36, %v6085_v49  ;;  %v6667_v18 = vrot.slane %v6535_v7, 3  ;;  %5912 = vrot.lane.b32.xlu0 %v5858_v63, %s11876_s7  ;;  %v10522_v4 = vpop.f32.mrf.mxu0  ;;  %v8588_v63 = vrot.slane %v14851_v25, 1  ;;  %v7773_v58 = vsel %vm7752_vm12, %v7771_v9, %v7772_v37  ;;  %v14887_v7 = vpop.f32.mrf.mxu1 }
 0x3c8   : > { %v6666_v0 = vrot.slane %v6533_v59, 3  ;;  %4232 = vst [vmem:[%s13802_s17 + $0x1c8] sm:$0xff] %v4200_v41  ;;  %v4169_v39 = vadd.f32 %v14660_v13, %v4133_v40  ;;  %v10523_v36 = vadd.f32 %v10522_v4, %v10521_v57  ;;  %v7980_v25 = vrot.slane %v11413_v54, 2  ;;  %v11193_v40 = vld [vmem:[#allocation2 + $0xe8] ss:$0 sps:$4 sm:$0x77]  }
 0x3c9   : > { %v7804_v42 = vpop.permute.xlu1 %7803  ;;  %6106 = vrot.lane.b32.xlu1 %v11406_v46, %s11877_s11  ;;  %v10524_v49 = vpop.f32.mrf.mxu0  ;;  %v8589_v9 = vsel %vm7752_vm12, %v8587_v53, %v8588_v63  ;;  %v8795_v51 = vrot.slane %v14875_v52, 2  ;;  %v11192_v53 = vld [vmem:[#allocation2 + $0xe0] sm:$0xf8]  }
 0x3ca   : > { %v8412_v43 = vpop.permute.xlu0 %8411  ;;  %v6668_v45 = vsel %vm6656_vm13, %v6666_v0, %v6667_v18  ;;  %v4201_v17 = vmax.f32 %v4169_v39, 0.0  ;;  %v4134_v15 = vadd.f32 %v10523_v36, %v14130_v1  ;;  %v8862_v37 = vsel %vm519_vm7, %v11404_v24, %v7804_v42  ;;  %v14901_v47 = vpop.f32.mrf.mxu1  ;;  %v14914_v52 = vld [vmem:[#allocation2 + $0x240] sm:$0xfc]   ;;  %v14917_v36 = vld [vmem:[#allocation2 + $0xd4] ss:$0 sps:$4 sm:$0x11]  }
 0x3cb   : > { %6954 = vmatprep.mubr.bf16.mxu1 %v6668_v45  ;;  %6104 = vrot.lane.b32.xlu0 %v11405_v31, %s11877_s11  ;;  %v10525_v31 = vpop.f32.mrf.mxu0  ;;  %v7981_v18 = vsel %vm3703_vm11, %v7979_v6, %v7980_v25  ;;  %v8990_v46 = vsel %vm519_vm7, %v8286_v32, %v8412_v43  ;;  %v11418_v45 = vld [vmem:[#allocation2 + $0x2a0] sm:$0xff]   ;;  %v8797_v38 = vsel %vm3703_vm11, %v8795_v51, %v8796_v2  ;;  %v14923_v32 = vld [vmem:[#allocation2 + $0xcc] sm:$0xfe]  }
 0x3cc   : > { %6955 = vmatmul.mubr.bf16.gmra.mxu1 %v6665_v14  ;;  %4233 = vst [vmem:[%s13802_s17 + $0x1f0] sm:$0xff] %v4201_v17  ;;  %v4170_v44 = vadd.f32 %v14660_v13, %v4134_v15  ;;  %v10526_v56 = vadd.f32 %v10525_v31, %v10524_v49  ;;  %v14919_v14 = vpop.f32.mrf.mxu1  ;;  %v11415_v15 = vld [vmem:[#allocation2 + $0x244] ss:$0 sps:$4 sm:$0x77]   ;;  %v6158_v51 = vsel %vm519_vm7, %v11192_v53, %v13941_v60 }
 0x3cd   : > { %v8012_v59 = vpop.permute.xlu1 %8011  ;;  %7813 = vrot.lane.b32.xlu1 %v7773_v58, %s11875_s24  ;;  %v10527_v1 = vpop.f32.mrf.mxu0 }
 0x3ce   : > { %v8620_v28 = vpop.permute.xlu0 %8619  ;;  %v4202_v0 = vmax.f32 %v4170_v44, 0.0  ;;  %v8908_v57 = vsel %vm3333_vm9, %v8862_v37, %v8012_v59  ;;  %v4135_v54 = vadd.f32 %v10526_v56, %v14152_v12  ;;  %v14912_v12 = vld [vmem:[#allocation2 + $0x414] sm:$0xfe]   ;;  %v11420_v44 = vld [vmem:[#allocation2 + $0x414] ss:$0 sps:$4 sm:$0x77]   ;;  %v6161_v56 = vsel %vm519_vm7, %v11193_v40, %v13935_v48 }
 0x3cf   : > { %8421 = vrot.lane.b32.xlu0 %v11407_v34, %s11875_s24  ;;  %v9036_v61 = vsel %vm3333_vm9, %v8990_v46, %v8620_v28  ;;  %v10528_v24 = vpop.f32.mrf.mxu0  ;;  %v11422_v34 = vld [vmem:[#allocation2 + $0x41c] ss:$0 sps:$4 sm:$0x11]   ;;  %v5861_v37 = vrot.slane %v14912_v12, 6  ;;  %v11414_v46 = vld [vmem:[#allocation2 + $0x23c] sm:$0xf8]  }
 0x3d0   : > { %4234 = vst [vmem:[%s13802_s17 + $0x218] sm:$0xff] %v4202_v0  ;;  %v4171_v63 = vadd.f32 %v14660_v13, %v4135_v54  ;;  %v10529_v43 = vadd.f32 %v10528_v24, %v10527_v1  ;;  %v5862_v1 = vrot.slane %v11422_v34, 6  ;;  %v8287_v48 = vrot.slane %v14914_v52, 2 }
 0x3d1   : > { %v8124_v41 = vpop.permute.xlu1 %8123  ;;  %8021 = vrot.lane.b32.xlu1 %v7981_v18, %s11876_s7  ;;  %v10530_v39 = vpop.f32.mrf.mxu0  ;;  %v6249_v54 = vsel %vm3333_vm9, %v6158_v51, %v14361_v62  ;;  %v7774_v24 = vrot.slane %v14923_v32, 1  ;;  %v14951_v62 = vld [vmem:[#allocation2 + $0x248] ss:$0 sps:$4 sm:$0x33]  }
 0x3d2   : > { %v8828_v42 = vpop.permute.xlu0 %8827  ;;  %v8941_v4 = vsel %vm3382_vm10, %v8908_v57, %v8124_v41  ;;  %v4203_v49 = vmax.f32 %v4171_v63, 0.0  ;;  %v4136_v58 = vadd.f32 %v10529_v43, %v14642_v23  ;;  %v14932_v18 = vpop.f32.mrf.mxu1  ;;  %v16318_v41 = vld [vmem:[#allocation57_spill] sm:$0xff]  ;;  %v6313_v60 = vsel %vm3382_vm10, %v6249_v54, %v14580_v8  ;;  %v14958_v8 = vld [vmem:[#allocation2 + $0x4c4] ss:$0 sps:$4 sm:$0x11]  }
 0x3d3   : > { %v9069_v6 = vsel %vm3382_vm10, %v9036_v61, %v8828_v42  ;;  %8629 = vrot.lane.b32.xlu0 %v8589_v9, %s11876_s7  ;;  %v10531_v59 = vpop.f32.mrf.mxu0  ;;  %v11419_v9 = vld [vmem:[#allocation2 + $0x40c] sm:$0xf8]   ;;  %v6251_v40 = vsel %vm3333_vm9, %v6161_v56, %v16318_v41  ;;  %v5863_v43 = vsel %vm4895_vm8, %v5861_v37, %v5862_v1 }
 0x3d4   : > { %9282 = vmatprep.mubr.bf16.mxu0 %v9069_v6  ;;  %4235 = vst [vmem:[%s13802_s17 + $0x240] sm:$0xff] %v4203_v49  ;;  %v4172_v28 = vadd.f32 %v14660_v13, %v4136_v58  ;;  %v10532_v31 = vadd.f32 %v10531_v59, %v10530_v39  ;;  %v14956_v6 = vld [vmem:[#allocation2 + $0x4bc] sm:$0xfe]   ;;  %v14962_v12 = vpop.f32.mrf.mxu1 }
 0x3d5   : > { %9283 = vmatmul.mubr.bf16.gmra.mxu0 %v8941_v4  ;;  %v5659_v25 = vpop.permute.xlu1 %5658  ;;  %8133 = vrot.lane.b32.xlu1 %v11418_v45, %s11877_s11  ;;  %v10533_v23 = vpop.f32.mrf.mxu0  ;;  %v7775_v4 = vrot.slane %v14917_v36, 1 }
 0x3d6   : > { %v5657_v17 = vpop.permute.xlu0 %5656  ;;  %v4204_v2 = vmax.f32 %v4172_v28, 0.0  ;;  %v4137_v0 = vadd.f32 %v10532_v31, %v14365_v55  ;;  %v6315_v55 = vsel %vm3382_vm10, %v6251_v40, %v14577_v50  ;;  %v6385_v53 = vsel %vm519_vm7, %v11415_v15, %v5659_v25  ;;  %v14960_v50 = vld [vmem:[#allocation2 + $0xd4] sm:$0xfc]  }
 0x3d7   : > { %8837 = vrot.lane.b32.xlu0 %v8797_v38, %s11877_s11  ;;  %v10534_v42 = vpop.f32.mrf.mxu0  ;;  %v6382_v39 = vsel %vm519_vm7, %v11414_v46, %v5657_v17  ;;  %v6669_v15 = vrot.slane %v6313_v60, 3  ;;  %v6670_v59 = vrot.slane %v6315_v55, 3  ;;  %v8288_v40 = vrot.slane %v14951_v62, 2  ;;  %v11425_v60 = vld [vmem:[#allocation2 + $0x38] sm:$0xff]  }
 0x3d8   : > { %4236 = vst [vmem:[%s13802_s17 + $0x268] sm:$0xff] %v4204_v2  ;;  %v4173_v45 = vadd.f32 %v14660_v13, %v4137_v0  ;;  %v10535_v34 = vadd.f32 %v10534_v42, %v10533_v23  ;;  %v11426_v23 = vld [vmem:[#allocation2 + $0x418] sm:$0xf8]  }
 0x3d9   : > { %v5899_v57 = vpop.permute.xlu1 %5898  ;;  %5678 = vrot.lane.b32.xlu1 %v11420_v44, %s11875_s24  ;;  %v10536_v63 = vpop.f32.mrf.mxu0  ;;  %v11434_v0 = vld [vmem:[#allocation2 + $0xdc] ss:$0 sps:$4 sm:$0x33]   ;;  %v6671_v62 = vsel %vm6656_vm13, %v6669_v15, %v6670_v59  ;;  %v8289_v15 = vsel %vm3703_vm11, %v8287_v48, %v8288_v40 }
 0x3da   : > { %v5897_v61 = vpop.permute.xlu0 %5896  ;;  %v4205_v49 = vmax.f32 %v4173_v45, 0.0  ;;  %v6475_v58 = vsel %vm3333_vm9, %v6385_v53, %v5899_v57  ;;  %v4138_v25 = vadd.f32 %v10535_v34, %v14390_v5  ;;  %v11427_v5 = vld [vmem:[#allocation2 + $0x420] ss:$0 sps:$4 sm:$0x77]   ;;  %v14974_v57 = vpop.f32.mrf.mxu1  ;;  %v11428_v34 = vld [vmem:[#allocation2 + $0x4b4] sm:$0xff]   ;;  %v8590_v53 = vrot.slane %v14956_v6, 1 }
 0x3db   : > { %5676 = vrot.lane.b32.xlu0 %v11419_v9, %s11875_s24  ;;  %v6473_v28 = vsel %vm3333_vm9, %v6382_v39, %v5897_v61  ;;  %v10537_v56 = vpop.f32.mrf.mxu0  ;;  %v7776_v6 = vsel %vm7752_vm12, %v7774_v24, %v7775_v4 }
 0x3dc   : > { %4237 = vst [vmem:[%s13802_s17 + $0x290] sm:$0xff] %v4205_v49  ;;  %v4174_v9 = vadd.f32 %v14660_v13, %v4138_v25  ;;  %v10538_v51 = vadd.f32 %v10537_v56, %v10536_v63  ;;  %v7982_v63 = vrot.slane %v14960_v50, 2  ;;  %v11438_v50 = vld [vmem:[#allocation2 + $0x4cc] ss:$0 sps:$4 sm:$0x33]  }
 0x3dd   : > { %v6091_v38 = vpop.permute.xlu1 %6090  ;;  %5918 = vrot.lane.b32.xlu1 %v5863_v43, %s11876_s7  ;;  %v10539_v46 = vpop.f32.mrf.mxu0  ;;  %v11437_v43 = vld [vmem:[#allocation2 + $0x4c4] sm:$0xfc]   ;;  %v8799_v48 = vrot.slane %v11438_v50, 2 }
 0x3de   : > { %v6089_v31 = vpop.permute.xlu0 %6088  ;;  %v6539_v44 = vsel %vm3382_vm10, %v6475_v58, %v6091_v38  ;;  %v4206_v54 = vmax.f32 %v4174_v9, 0.0  ;;  %v4139_v41 = vadd.f32 %v10538_v51, %v14414_v16  ;;  %v14992_v58 = vpop.f32.mrf.mxu1 }
 0x3df   : > { %v6537_v17 = vsel %vm3382_vm10, %v6473_v28, %v6089_v31  ;;  %v6673_v1 = vrot.slane %v6539_v44, 3  ;;  %5916 = vrot.lane.b32.xlu0 %v5861_v37, %s11876_s7  ;;  %v10540_v55 = vpop.f32.mrf.mxu0  ;;  %v8591_v37 = vrot.slane %v14958_v8, 1  ;;  %v7983_v8 = vrot.slane %v11434_v0, 2 }
 0x3e0   : > { %v6672_v2 = vrot.slane %v6537_v17, 3  ;;  %4238 = vst [vmem:[%s13802_s17 + $0x2b8] sm:$0xff] %v4206_v54  ;;  %v4175_v39 = vadd.f32 %v14660_v13, %v4139_v41  ;;  %v10541_v16 = vadd.f32 %v10540_v55, %v10539_v46  ;;  %v8798_v44 = vrot.slane %v11437_v43, 2  ;;  %v15005_v56 = vpop.f32.mrf.mxu1  ;;  %v15016_v55 = vld [vmem:[#allocation2 + $0x430] sm:$0xfe]  }
 0x3e1   : > { %v7806_v61 = vpop.permute.xlu1 %7805  ;;  %6110 = vrot.lane.b32.xlu1 %v11427_v5, %s11877_s11  ;;  %v10542_v49 = vpop.f32.mrf.mxu0  ;;  %v8592_v24 = vsel %vm7752_vm12, %v8590_v53, %v8591_v37  ;;  %v7984_v52 = vsel %vm3703_vm11, %v7982_v63, %v7983_v8  ;;  %v16319_v53 = vld [vmem:[#allocation51_spill] sm:$0xff] }
 0x3e2   : > { %v8414_v42 = vpop.permute.xlu0 %8413  ;;  %v6674_v45 = vsel %vm6656_vm13, %v6672_v2, %v6673_v1  ;;  %v4207_v25 = vmax.f32 %v4175_v39, 0.0  ;;  %v4140_v38 = vadd.f32 %v10541_v16, %v14436_v35  ;;  %v8865_v4 = vsel %vm519_vm7, %v11425_v60, %v7806_v61  ;;  %v11196_v2 = vld [vmem:[#allocation2 + $0xfc] sm:$0xf8]  }
 0x3e3   : > { %6962 = vmatprep.mubr.bf16.mxu1 %v6674_v45  ;;  %6108 = vrot.lane.b32.xlu0 %v11426_v23, %s11877_s11  ;;  %v10543_v31 = vpop.f32.mrf.mxu0  ;;  %v11197_v23 = vld [vmem:[#allocation2 + $0x104] ss:$0 sps:$4 sm:$0x77]   ;;  %v8993_v9 = vsel %vm519_vm7, %v8289_v15, %v8414_v42  ;;  %v11439_v60 = vld [vmem:[#allocation2 + $0x2bc] sm:$0xff]   ;;  %v8800_v16 = vsel %vm3703_vm11, %v8798_v44, %v8799_v48 }
 0x3e4   : > { %6963 = vmatmul.mubr.bf16.gmra.mxu1 %v6671_v62  ;;  %4239 = vst [vmem:[%s13802_s17 + $0x2e0] sm:$0xff] %v4207_v25  ;;  %v4176_v36 = vadd.f32 %v14660_v13, %v4140_v38  ;;  %v10544_v32 = vadd.f32 %v10543_v31, %v10542_v49  ;;  %v11443_v45 = vld [vmem:[#allocation2 + $0x438] ss:$0 sps:$4 sm:$0x11]   ;;  %v6167_v37 = vsel %vm519_vm7, %v11197_v23, %v16319_v53  ;;  %v16320_v62 = vld [vmem:[#allocation80_spill] sm:$0xff] }
 0x3e5   : > { %v8014_v28 = vpop.permute.xlu1 %8013  ;;  %7815 = vrot.lane.b32.xlu1 %v7776_v6, %s11875_s24  ;;  %v10545_v35 = vpop.f32.mrf.mxu0  ;;  %v6255_v49 = vsel %vm3333_vm9, %v6167_v37, %v16320_v62  ;;  %v11436_v8 = vld [vmem:[#allocation2 + $0x260] ss:$0 sps:$4 sm:$0x77]   ;;  %v16321_v25 = vld [vmem:[#allocation74_spill] sm:$0xff] }
 0x3e6   : > { %v8622_v59 = vpop.permute.xlu0 %8621  ;;  %v4208_v17 = vmax.f32 %v4176_v36, 0.0  ;;  %v8910_v1 = vsel %vm3333_vm9, %v8865_v4, %v8014_v28  ;;  %v4141_v51 = vadd.f32 %v10544_v32, %v14451_v11  ;;  %v6164_v38 = vsel %vm519_vm7, %v11196_v2, %v16321_v25  ;;  %v11440_v32 = vld [vmem:[#allocation2 + $0x428] sm:$0xf8]   ;;  %v11435_v48 = vld [vmem:[#allocation2 + $0x258] sm:$0xf8]  }
 0x3e7   : > { %8423 = vrot.lane.b32.xlu0 %v11428_v34, %s11875_s24  ;;  %v9038_v46 = vsel %vm3333_vm9, %v8993_v9, %v8622_v59  ;;  %v10546_v54 = vpop.f32.mrf.mxu0  ;;  %v15019_v34 = vpop.f32.mrf.mxu1  ;;  %v15031_v28 = vsel %vm3382_vm10, %v6255_v49, %v14590_v3  ;;  %v11441_v59 = vld [vmem:[#allocation2 + $0x430] ss:$0 sps:$4 sm:$0x77]   ;;  %v6253_v31 = vsel %vm3333_vm9, %v6164_v38, %v14385_v19  ;;  %v5865_v4 = vrot.slane %v11443_v45, 6  ;;  %v16323_v23 = vld [vmem:[#allocation102_spill] sm:$0xff] }
 0x3e8   : > { %4240 = vst [vmem:[%s13802_s17 + $0x308] sm:$0xff] %v4208_v17  ;;  %v4177_v40 = vadd.f32 %v14660_v13, %v4141_v51  ;;  %v10547_v61 = vadd.f32 %v10546_v54, %v10545_v35  ;;  %v16322_v35 = vld [vmem:[#allocation109_spill] sm:$0xff]  ;;  %v6676_v19 = vrot.slane %v15031_v28, 3  ;;  %v15055_v54 = vld [vmem:[#allocation2 + $0x264] ss:$0 sps:$4 sm:$0x33]  }
 0x3e9   : > { %v8126_v5 = vpop.permute.xlu1 %8125  ;;  %8023 = vrot.lane.b32.xlu1 %v7984_v52, %s11876_s7  ;;  %v15040_v3 = vpop.f32.mrf.mxu1  ;;  %v15044_v52 = vsel %vm3382_vm10, %v6253_v31, %v16322_v35  ;;  %v15050_v2 = vld [vmem:[#allocation2 + $0xf0] ss:$0 sps:$4 sm:$0x11]   ;;  %v11448_v62 = vld [vmem:[#allocation2 + $0x43c] ss:$0 sps:$4 sm:$0x77]  }
 0x3ea   : > { %v8830_v0 = vpop.permute.xlu0 %8829  ;;  %v8944_v41 = vsel %vm3382_vm10, %v8910_v1, %v8126_v5  ;;  %v10548_v11 = vpop.f32.mrf.mxu0  ;;  %v4209_v63 = vmax.f32 %v4177_v40, 0.0  ;;  %v4142_v43 = vadd.f32 %v10547_v61, %v14461_v27  ;;  %v15048_v5 = vld [vmem:[#allocation2 + $0x25c] sm:$0xfc]   ;;  %v6675_v40 = vrot.slane %v15044_v52, 3  ;;  %v15072_v38 = vld [vmem:[#allocation2 + $0xf0] sm:$0xfc]  }
 0x3eb   : > { %v9072_v42 = vsel %vm3382_vm10, %v9038_v46, %v8830_v0  ;;  %8631 = vrot.lane.b32.xlu0 %v8592_v24, %s11876_s7  ;;  %v5864_v24 = vrot.slane %v15016_v55, 6  ;;  %v15061_v55 = vld [vmem:[#allocation2 + $0x4d8] sm:$0xfe]   ;;  %v15065_v45 = vpop.f32.mrf.mxu1  ;;  %v11455_v31 = vld [vmem:[#allocation2 + $0xf8] ss:$0 sps:$4 sm:$0x33]  }
 0x3ec   : > { %9290 = vmatprep.mubr.bf16.mxu0 %v9072_v42  ;;  %v10549_v50 = vpop.f32.mrf.mxu0  ;;  %4241 = vst [vmem:[%s13802_s17 + $0x330] sm:$0xff] %v4209_v63  ;;  %v4178_v27 = vadd.f32 %v14660_v13, %v4142_v43  ;;  %v16324_v43 = vld [vmem:[#allocation43_spill] sm:$0xff]  ;;  %v8290_v52 = vrot.slane %v15048_v5, 2  ;;  %v8593_v5 = vrot.slane %v15061_v55, 1 }
 0x3ed   : > { %9291 = vmatmul.mubr.bf16.gmra.mxu0 %v8944_v41  ;;  %v5663_v39 = vpop.permute.xlu1 %5662  ;;  %v10550_v15 = vadd.f32 %v10549_v50, %v10548_v11  ;;  %8135 = vrot.lane.b32.xlu1 %v11439_v60, %s11877_s11  ;;  %v11450_v41 = vld [vmem:[#allocation2 + $0xe8] sm:$0xfe]   ;;  %v5866_v60 = vsel %vm4895_vm8, %v5864_v24, %v5865_v4  ;;  %v15063_v11 = vld [vmem:[#allocation2 + $0x4e0] ss:$0 sps:$4 sm:$0x11]  }
 0x3ee   : > { %v5661_v6 = vpop.permute.xlu0 %5660  ;;  %v10551_v36 = vpop.f32.mrf.mxu0  ;;  %v4210_v44 = vmax.f32 %v4178_v27, 0.0  ;;  %v6391_v61 = vsel %vm519_vm7, %v11436_v8, %v5663_v39 }
 0x3ef   : > { %8839 = vrot.lane.b32.xlu0 %v8800_v16, %s11877_s11  ;;  %v4143_v9 = vadd.f32 %v10550_v15, %v16323_v23  ;;  %v6388_v53 = vsel %vm519_vm7, %v11435_v48, %v5661_v6  ;;  %v7777_v48 = vrot.slane %v11450_v41, 1  ;;  %v7778_v23 = vrot.slane %v15050_v2, 1 }
 0x3f0   : > { %v10552_v51 = vpop.f32.mrf.mxu0  ;;  %4242 = vst [vmem:[%s13802_s17 + $0x358] sm:$0xff] %v4210_v44  ;;  %v11447_v44 = vld [vmem:[#allocation2 + $0x434] sm:$0xf8]   ;;  %v8594_v41 = vrot.slane %v15063_v11, 1  ;;  %v7985_v2 = vrot.slane %v15072_v38, 2  ;;  %v16327_v38 = vld [vmem:[#allocation96_spill] sm:$0xff] }
 0x3f1   : > { %v5903_v17 = vpop.permute.xlu1 %5902  ;;  %v4179_v46 = vadd.f32 %v14660_v13, %v4143_v9  ;;  %v10553_v0 = vadd.f32 %v10552_v51, %v10551_v36  ;;  %5682 = vrot.lane.b32.xlu1 %v11441_v59, %s11875_s24  ;;  %v11201_v36 = vld [vmem:[#allocation2 + $0x118] sm:$0xf8]   ;;  %v15081_v9 = vpop.f32.mrf.mxu1  ;;  %v7779_v11 = vsel %vm7752_vm12, %v7777_v48, %v7778_v23 }
 0x3f2   : > { %v5901_v1 = vpop.permute.xlu0 %5900  ;;  %v6479_v63 = vsel %vm3333_vm9, %v6391_v61, %v5903_v17  ;;  %v6170_v28 = vsel %vm519_vm7, %v11201_v36, %v16327_v38 }
 0x3f3   : > { %5680 = vrot.lane.b32.xlu0 %v11440_v32, %s11875_s24  ;;  %v10554_v42 = vpop.f32.mrf.mxu0  ;;  %v4211_v37 = vmax.f32 %v4179_v46, 0.0  ;;  %v4144_v16 = vadd.f32 %v10553_v0, %v16324_v43  ;;  %v6477_v49 = vsel %vm3333_vm9, %v6388_v53, %v5901_v1  ;;  %v11202_v32 = vld [vmem:[#allocation2 + $0x120] ss:$0 sps:$4 sm:$0x77]   ;;  %v16325_v1 = vld [vmem:[#allocation85_spill] sm:$0xff]  ;;  %v8291_v46 = vrot.slane %v15055_v54, 2 }
 0x3f4   : > { %v11449_v53 = vld [vmem:[#allocation2 + $0x4d0] sm:$0xff]   ;;  %v6677_v54 = vsel %vm6656_vm13, %v6675_v40, %v6676_v19  ;;  %v7986_v43 = vrot.slane %v11455_v31, 2  ;;  %v16328_v19 = vld [vmem:[#allocation75_spill] sm:$0xff] }
 0x3f5   : > { %v6095_v39 = vpop.permute.xlu1 %6094  ;;  %v10555_v25 = vpop.f32.mrf.mxu0  ;;  %4243 = vst [vmem:[%s13802_s17 + $0x380] sm:$0xff] %v4211_v37  ;;  %v4180_v27 = vadd.f32 %v14660_v13, %v4144_v16  ;;  %5922 = vrot.lane.b32.xlu1 %v5866_v60, %s11876_s7  ;;  %v11459_v16 = vld [vmem:[#allocation2 + $0x4e8] ss:$0 sps:$4 sm:$0x33]   ;;  %v6173_v40 = vsel %vm519_vm7, %v11202_v32, %v16328_v19  ;;  %v16334_v19 = vld [vmem:[#allocation86_spill] sm:$0xff] }
 0x3f6   : > { %v6093_v8 = vpop.permute.xlu0 %6092  ;;  %v6543_v50 = vsel %vm3382_vm10, %v6479_v63, %v6095_v39  ;;  %v10556_v59 = vadd.f32 %v10555_v25, %v10554_v42  ;;  %v11446_v42 = vld [vmem:[#allocation2 + $0x54] sm:$0xff]   ;;  %v11458_v39 = vld [vmem:[#allocation2 + $0x4e0] sm:$0xfc]   ;;  %v8802_v23 = vrot.slane %v11459_v16, 2 }
 0x3f7   : > { %v6541_v6 = vsel %vm3382_vm10, %v6477_v49, %v6093_v8  ;;  %v6679_v15 = vrot.slane %v6543_v50, 3  ;;  %5920 = vrot.lane.b32.xlu0 %v5864_v24, %s11876_s7  ;;  %v10557_v35 = vpop.f32.mrf.mxu0  ;;  %v4212_v17 = vmax.f32 %v4180_v27, 0.0  ;;  %v15097_v49 = vpop.f32.mrf.mxu1  ;;  %v16326_v50 = vld [vmem:[#allocation105_spill] sm:$0xff]  ;;  %v8292_v27 = vsel %vm3703_vm11, %v8290_v52, %v8291_v46 }
 0x3f8   : > { %v6678_v4 = vrot.slane %v6541_v6, 3  ;;  %v4145_v51 = vadd.f32 %v10556_v59, %v16325_v1  ;;  %v16329_v59 = vld [vmem:[#allocation81_spill] sm:$0xff]  ;;  %v7987_v52 = vsel %vm3703_vm11, %v7985_v2, %v7986_v43  ;;  %v8801_v48 = vrot.slane %v11458_v39, 2 }
 0x3f9   : > { %v7808_v0 = vpop.permute.xlu1 %7807  ;;  %v10558_v60 = vpop.f32.mrf.mxu0  ;;  %4244 = vst [vmem:[%s13802_s17 + $0x3a8] sm:$0xff] %v4212_v17  ;;  %6114 = vrot.lane.b32.xlu1 %v11448_v62, %s11877_s11  ;;  %v6259_v31 = vsel %vm3333_vm9, %v6173_v40, %v16329_v59  ;;  %v15127_v43 = vld [vmem:[#allocation2 + $0x44c] sm:$0xfe]   ;;  %v11464_v16 = vld [vmem:[#allocation2 + $0x454] ss:$0 sps:$4 sm:$0x11]  }
 0x3fa   : > { %v8416_v61 = vpop.permute.xlu0 %8415  ;;  %v6680_v24 = vsel %vm6656_vm13, %v6678_v4, %v6679_v15  ;;  %v4181_v37 = vadd.f32 %v14660_v13, %v4145_v51  ;;  %v10559_v63 = vadd.f32 %v10558_v60, %v10557_v35  ;;  %v8868_v36 = vsel %vm519_vm7, %v11446_v42, %v7808_v0  ;;  %v15114_v17 = vpop.f32.mrf.mxu1  ;;  %v16330_v60 = vld [vmem:[#allocation46_spill] sm:$0xff]  ;;  %v16332_v42 = vld [vmem:[#allocation32_spill] sm:$0xff]  ;;  %v15144_v59 = vld [vmem:[#allocation2 + $0x280] ss:$0 sps:$4 sm:$0x33]  }
 0x3fb   : > { %6970 = vmatprep.mubr.bf16.mxu1 %v6680_v24  ;;  %6112 = vrot.lane.b32.xlu0 %v11447_v44, %s11877_s11  ;;  %v10560_v55 = vpop.f32.mrf.mxu0  ;;  %v8595_v44 = vsel %vm7752_vm12, %v8593_v5, %v8594_v41  ;;  %v8996_v1 = vsel %vm519_vm7, %v8292_v27, %v8416_v61  ;;  %v16331_v41 = vld [vmem:[#allocation101_spill] sm:$0xff]  ;;  %v11460_v61 = vld [vmem:[#allocation2 + $0x2d8] sm:$0xff]  }
 0x3fc   : > { %6971 = vmatmul.mubr.bf16.gmra.mxu1 %v6677_v54  ;;  %v4213_v8 = vmax.f32 %v4181_v37, 0.0  ;;  %v4146_v25 = vadd.f32 %v10559_v63, %v16326_v50  ;;  %v6257_v0 = vsel %vm3333_vm9, %v6170_v28, %v16331_v41  ;;  %v15140_v38 = vpop.f32.mrf.mxu1  ;;  %v16335_v41 = vld [vmem:[#allocation107_spill] sm:$0xff] }
 0x3fd   : > { %v8016_v62 = vpop.permute.xlu1 %8015  ;;  %v10561_v15 = vpop.f32.mrf.mxu0  ;;  %7817 = vrot.lane.b32.xlu1 %v7779_v11, %s11875_s24 }
 0x3fe   : > { %v8624_v6 = vpop.permute.xlu0 %8623  ;;  %4245 = vst [vmem:[%s13802_s17 + $0x3d0] sm:$0xff] %v4213_v8  ;;  %v4182_v4 = vadd.f32 %v14660_v13, %v4146_v25  ;;  %v10562_v35 = vadd.f32 %v10561_v15, %v10560_v55  ;;  %v8912_v46 = vsel %vm3333_vm9, %v8868_v36, %v8016_v62  ;;  %v16333_v55 = vld [vmem:[#allocation33_spill] sm:$0xff]  ;;  %v15138_v62 = vld [vmem:[#allocation2 + $0x278] sm:$0xfc]  }
 0x3ff   : > { %8425 = vrot.lane.b32.xlu0 %v11449_v53, %s11875_s24  ;;  %v10563_v32 = vpop.f32.mrf.mxu0  ;;  %v15123_v53 = vsel %vm3382_vm10, %v6259_v31, %v16332_v42  ;;  %v9040_v2 = vsel %vm3333_vm9, %v8996_v1, %v8624_v6  ;;  %v15131_v11 = vsel %vm3382_vm10, %v6257_v0, %v16333_v55  ;;  %v8803_v6 = vsel %vm3703_vm11, %v8801_v48, %v8802_v23  ;;  %v11462_v15 = vld [vmem:[#allocation2 + $0x44c] ss:$0 sps:$4 sm:$0x77]   ;;  %v11461_v1 = vld [vmem:[#allocation2 + $0x444] sm:$0xf8]  }
 0x400   : > { %v4214_v51 = vmax.f32 %v4182_v4, 0.0  ;;  %v4147_v24 = vadd.f32 %v10562_v35, %v16330_v60  ;;  %v6681_v31 = vrot.slane %v15131_v11, 3  ;;  %v6682_v4 = vrot.slane %v15123_v53, 3  ;;  %v15155_v60 = vpop.f32.mrf.mxu1  ;;  %v15163_v55 = vld [vmem:[#allocation2 + $0x4f4] sm:$0xfe]  }
 0x401   : > { %v8128_v5 = vpop.permute.xlu1 %8127  ;;  %v10564_v63 = vpop.f32.mrf.mxu0  ;;  %8025 = vrot.lane.b32.xlu1 %v7987_v52, %s11876_s7  ;;  %v5867_v48 = vrot.slane %v15127_v43, 6  ;;  %v5868_v23 = vrot.slane %v11464_v16, 6 }
 0x402   : > { %v8832_v37 = vpop.permute.xlu0 %8831  ;;  %v8947_v54 = vsel %vm3382_vm10, %v8912_v46, %v8128_v5  ;;  %4246 = vst [vmem:[%s13802_s17 + $0x3f8] sm:$0xff] %v4214_v51  ;;  %v4183_v39 = vadd.f32 %v14660_v13, %v4147_v24  ;;  %v10565_v8 = vadd.f32 %v10564_v63, %v10563_v32  ;;  %v15153_v46 = vld [vmem:[#allocation2 + $0x104] sm:$0xfe]   ;;  %v11456_v5 = vld [vmem:[#allocation2 + $0x274] sm:$0xf8]  }
 0x403   : > { %v9075_v50 = vsel %vm3382_vm10, %v9040_v2, %v8832_v37  ;;  %8633 = vrot.lane.b32.xlu0 %v8595_v44, %s11876_s7  ;;  %v10566_v25 = vpop.f32.mrf.mxu0  ;;  %v11457_v44 = vld [vmem:[#allocation2 + $0x27c] ss:$0 sps:$4 sm:$0x77]   ;;  %v8293_v2 = vrot.slane %v15138_v62, 2 }
 0x404   : > { %9298 = vmatprep.mubr.bf16.mxu0 %v9075_v50  ;;  %v4215_v28 = vmax.f32 %v4183_v39, 0.0  ;;  %v4148_v40 = vadd.f32 %v10565_v8, %v16334_v19  ;;  %v5869_v50 = vsel %vm4895_vm8, %v5867_v48, %v5868_v23  ;;  %v15171_v19 = vpop.f32.mrf.mxu1 }
 0x405   : > { %9299 = vmatmul.mubr.bf16.gmra.mxu0 %v8947_v54  ;;  %v5667_v27 = vpop.permute.xlu1 %5666  ;;  %v10567_v36 = vpop.f32.mrf.mxu0  ;;  %8137 = vrot.lane.b32.xlu1 %v11460_v61, %s11877_s11  ;;  %v8294_v54 = vrot.slane %v15144_v59, 2  ;;  %v11472_v61 = vld [vmem:[#allocation2 + $0x10c] ss:$0 sps:$4 sm:$0x11]  }
 0x406   : > { %v5665_v35 = vpop.permute.xlu0 %5664  ;;  %4247 = vst [vmem:[%s13802_s17 + $0x420] sm:$0xff] %v4215_v28  ;;  %v4184_v32 = vadd.f32 %v14660_v13, %v4148_v40  ;;  %v10568_v52 = vadd.f32 %v10567_v36, %v10566_v25  ;;  %v6397_v39 = vsel %vm519_vm7, %v11457_v44, %v5667_v27  ;;  %v7780_v25 = vrot.slane %v15153_v46, 1  ;;  %v15169_v28 = vld [vmem:[#allocation2 + $0x4fc] ss:$0 sps:$4 sm:$0x11]   ;;  %v16336_v36 = vld [vmem:[#allocation45_spill] sm:$0xff] }
 0x407   : > { %8841 = vrot.lane.b32.xlu0 %v8803_v6, %s11877_s11  ;;  %v10569_v51 = vpop.f32.mrf.mxu0  ;;  %v6394_v40 = vsel %vm519_vm7, %v11456_v5, %v5665_v35  ;;  %v11476_v44 = vld [vmem:[#allocation2 + $0x114] ss:$0 sps:$4 sm:$0x33]   ;;  %v8295_v53 = vsel %vm3703_vm11, %v8293_v2, %v8294_v54 }
 0x408   : > { %v4216_v24 = vmax.f32 %v4184_v32, 0.0  ;;  %v4149_v0 = vadd.f32 %v10568_v52, %v16335_v41  ;;  %v11468_v46 = vld [vmem:[#allocation2 + $0x450] sm:$0xf8]  }
 0x409   : > { %v5907_v42 = vpop.permute.xlu1 %5906  ;;  %v10570_v63 = vpop.f32.mrf.mxu0  ;;  %5686 = vrot.lane.b32.xlu1 %v11462_v15, %s11875_s24 }
 0x40a   : > { %v5905_v37 = vpop.permute.xlu0 %5904  ;;  %4248 = vst [vmem:[%s13802_s17 + $0x448] sm:$0xff] %v4216_v24  ;;  %v4185_v43 = vadd.f32 %v14660_v13, %v4149_v0  ;;  %v10571_v16 = vadd.f32 %v10570_v63, %v10569_v51  ;;  %v6483_v15 = vsel %vm3333_vm9, %v6397_v39, %v5907_v42  ;;  %v11475_v24 = vld [vmem:[#allocation2 + $0x10c] sm:$0xfc]   ;;  %v11469_v42 = vld [vmem:[#allocation2 + $0x458] ss:$0 sps:$4 sm:$0x77]  }
 0x40b   : > { %5684 = vrot.lane.b32.xlu0 %v11461_v1, %s11875_s24  ;;  %v10572_v8 = vpop.f32.mrf.mxu0  ;;  %v6481_v52 = vsel %vm3333_vm9, %v6394_v40, %v5905_v37  ;;  %v16337_v40 = vld [vmem:[#allocation64_spill] sm:$0xff] }
 0x40c   : > { %v4217_v6 = vmax.f32 %v4185_v43, 0.0  ;;  %v4150_v32 = vadd.f32 %v10571_v16, %v16336_v36  ;;  %v7781_v43 = vrot.slane %v11472_v61, 1  ;;  %v15183_v16 = vpop.f32.mrf.mxu1  ;;  %v8596_v36 = vrot.slane %v15163_v55, 1 }
 0x40d   : > { %v6099_v27 = vpop.permute.xlu1 %6098  ;;  %v10573_v51 = vpop.f32.mrf.mxu0  ;;  %5926 = vrot.lane.b32.xlu1 %v5869_v50, %s11876_s7  ;;  %v6683_v55 = vsel %vm6656_vm13, %v6681_v31, %v6682_v4  ;;  %v11206_v31 = vld [vmem:[#allocation2 + $0x13c] ss:$0 sps:$4 sm:$0x77]  }
 0x40e   : > { %v6097_v1 = vpop.permute.xlu0 %6096  ;;  %v6547_v23 = vsel %vm3382_vm10, %v6483_v15, %v6099_v27  ;;  %4249 = vst [vmem:[%s13802_s17 + $0x470] sm:$0xff] %v4217_v6  ;;  %v4186_v41 = vadd.f32 %v14660_v13, %v4150_v32  ;;  %v10574_v0 = vadd.f32 %v10573_v51, %v10572_v8  ;;  %v11467_v27 = vld [vmem:[#allocation2 + $0x70] sm:$0xff]  }
 0x40f   : > { %v6545_v35 = vsel %vm3382_vm10, %v6481_v52, %v6097_v1  ;;  %v6685_v5 = vrot.slane %v6547_v23, 3  ;;  %5924 = vrot.lane.b32.xlu0 %v5867_v48, %s11876_s7  ;;  %v10575_v37 = vpop.f32.mrf.mxu0  ;;  %v11470_v52 = vld [vmem:[#allocation2 + $0x4ec] sm:$0xff]   ;;  %v8597_v1 = vrot.slane %v15169_v28, 1  ;;  %v7988_v48 = vrot.slane %v11475_v24, 2  ;;  %v15199_v24 = vpop.f32.mrf.mxu1 }
 0x410   : > { %v6684_v63 = vrot.slane %v6545_v35, 3  ;;  %v4218_v39 = vmax.f32 %v4186_v41, 0.0  ;;  %v4151_v6 = vadd.f32 %v10574_v0, %v16337_v40  ;;  %v7989_v23 = vrot.slane %v11476_v44, 2  ;;  %v11479_v44 = vld [vmem:[#allocation2 + $0x4fc] sm:$0xfc]   ;;  %v16338_v35 = vld [vmem:[#allocation89_spill] sm:$0xff] }
 0x411   : > { %v7810_v15 = vpop.permute.xlu1 %7809  ;;  %v10576_v8 = vpop.f32.mrf.mxu0  ;;  %6118 = vrot.lane.b32.xlu1 %v11469_v42, %s11877_s11  ;;  %v7782_v28 = vsel %vm7752_vm12, %v7780_v25, %v7781_v43  ;;  %v8804_v42 = vrot.slane %v11479_v44, 2  ;;  %v11482_v44 = vld [vmem:[#allocation2 + $0x460] sm:$0xf8]  }
 0x412   : > { %v8418_v32 = vpop.permute.xlu0 %8417  ;;  %v6686_v50 = vsel %vm6656_vm13, %v6684_v63, %v6685_v5  ;;  %4250 = vst [vmem:[%s13802_s17 + $0x498] sm:$0xff] %v4218_v39  ;;  %v4187_v61 = vadd.f32 %v14660_v13, %v4151_v6  ;;  %v10577_v51 = vadd.f32 %v10576_v8, %v10575_v37  ;;  %v11480_v63 = vld [vmem:[#allocation2 + $0x504] ss:$0 sps:$4 sm:$0x33]   ;;  %v8871_v25 = vsel %vm519_vm7, %v11467_v27, %v7810_v15  ;;  %v15214_v62 = vpop.f32.mrf.mxu1  ;;  %v15220_v15 = vld [vmem:[#allocation2 + $0x468] sm:$0xfe]  }
 0x413   : > { %6978 = vmatprep.mubr.bf16.mxu1 %v6686_v50  ;;  %6116 = vrot.lane.b32.xlu0 %v11468_v46, %s11877_s11  ;;  %v8598_v46 = vsel %vm7752_vm12, %v8596_v36, %v8597_v1  ;;  %v7990_v59 = vsel %vm3703_vm11, %v7988_v48, %v7989_v23  ;;  %v8999_v2 = vsel %vm519_vm7, %v8295_v53, %v8418_v32  ;;  %v8805_v43 = vrot.slane %v11480_v63, 2  ;;  %v11481_v27 = vld [vmem:[#allocation2 + $0x2f4] sm:$0xff]   ;;  %v11485_v8 = vld [vmem:[#allocation2 + $0x470] ss:$0 sps:$4 sm:$0x11]  }
 0x414   : > { %6979 = vmatmul.mubr.bf16.gmra.mxu1 %v6683_v55  ;;  %v4219_v41 = vmax.f32 %v4187_v61, 0.0  ;;  %v4152_v5 = vadd.f32 %v10577_v51, %v16338_v35  ;;  %v11205_v32 = vld [vmem:[#allocation2 + $0x134] sm:$0xf8]   ;;  %v15226_v50 = vpop.f32.mrf.mxu1  ;;  %v16340_v61 = vld [vmem:[#allocation24_spill] sm:$0xff]  ;;  %v5870_v63 = vrot.slane %v15220_v15, 6  ;;  %v5871_v53 = vrot.slane %v11485_v8, 6 }
 0x415   : > { %v8018_v0 = vpop.permute.xlu1 %8017  ;;  %7819 = vrot.lane.b32.xlu1 %v7782_v28, %s11875_s24  ;;  %v8806_v23 = vsel %vm3703_vm11, %v8804_v42, %v8805_v43  ;;  %v11478_v28 = vld [vmem:[#allocation2 + $0x298] ss:$0 sps:$4 sm:$0x77]  }
 0x416   : > { %v8626_v11 = vpop.permute.xlu0 %8625  ;;  %4251 = vst [vmem:[%s13802_s17 + $0x4c0] sm:$0xff] %v4219_v41  ;;  %v4188_v4 = vadd.f32 %v14660_v13, %v4152_v5  ;;  %v8914_v37 = vsel %vm3333_vm9, %v8871_v25, %v8018_v0  ;;  %v11483_v41 = vld [vmem:[#allocation2 + $0x468] ss:$0 sps:$4 sm:$0x77]   ;;  %v16341_v35 = vld [vmem:[#allocation66_spill] sm:$0xff]  ;;  %v15242_v25 = vpop.f32.mrf.mxu1  ;;  %v5872_v15 = vsel %vm4895_vm8, %v5870_v63, %v5871_v53 }
 0x417   : > { %8427 = vrot.lane.b32.xlu0 %v11470_v52, %s11875_s24  ;;  %v9042_v39 = vsel %vm3333_vm9, %v8999_v2, %v8626_v11  ;;  %v16339_v52 = vld [vmem:[#allocation97_spill] sm:$0xff]  ;;  %v15237_v11 = vld [vmem:[#allocation2 + $0x294] sm:$0xfc]   ;;  %v11487_v2 = vld [vmem:[#allocation2 + $0x29c] ss:$0 sps:$4 sm:$0x33]  }
 0x418   : > { %v4220_v54 = vmax.f32 %v4188_v4, 0.0  ;;  %v6179_v1 = vsel %vm519_vm7, %v11206_v31, %v16339_v52  ;;  %v11477_v0 = vld [vmem:[#allocation2 + $0x290] sm:$0xf8]   ;;  %v15252_v8 = vpop.f32.mrf.mxu1  ;;  %v11497_v53 = vld [vmem:[#allocation2 + $0x130] ss:$0 sps:$4 sm:$0x33]  }
 0x419   : > { %v8130_v13 = vpop.permute.xlu1 %8129  ;;  %8027 = vrot.lane.b32.xlu1 %v7990_v59, %s11876_s7  ;;  %v6263_v51 = vsel %vm3333_vm9, %v6179_v1, %v16340_v61  ;;  %v16342_v31 = vld [vmem:[#allocation18_spill] sm:$0xff] }
 0x41a   : > { %v8834_v40 = vpop.permute.xlu0 %8833  ;;  %v8950_v6 = vsel %vm3382_vm10, %v8914_v37, %v8130_v13  ;;  %4252 = vst [vmem:[%s13802_s17 + $0x4e8] sm:$0xff] %v4220_v54  ;;  %v6327_v5 = vsel %vm3382_vm10, %v6263_v51, %v16341_v35  ;;  %v6176_v4 = vsel %vm519_vm7, %v11205_v32, %v16342_v31  ;;  %v11493_v54 = vld [vmem:[#allocation2 + $0x128] ss:$0 sps:$4 sm:$0x11]   ;;  %v16344_v37 = vld [vmem:[#allocation67_spill] sm:$0xff]  ;;  %v8296_v51 = vrot.slane %v15237_v11, 2 }
 0x41b   : > { %v9078_v36 = vsel %vm3382_vm10, %v9042_v39, %v8834_v40  ;;  %8635 = vrot.lane.b32.xlu0 %v8598_v46, %s11876_s7  ;;  %v16343_v46 = vld [vmem:[#allocation25_spill] sm:$0xff]  ;;  %v6688_v43 = vrot.slane %v6327_v5, 3  ;;  %v11492_v40 = vld [vmem:[#allocation2 + $0x120] sm:$0xfe]   ;;  %v8297_v35 = vrot.slane %v11487_v2, 2 }
 0x41c   : > { %9306 = vmatprep.mubr.bf16.mxu0 %v9078_v36  ;;  %v6261_v59 = vsel %vm3333_vm9, %v6176_v4, %v16343_v46  ;;  %v11494_v36 = vld [vmem:[#allocation2 + $0x510] sm:$0xfe]   ;;  %v11211_v32 = vld [vmem:[#allocation2 + $0x158] ss:$0 sps:$4 sm:$0x77]  }
 0x41d   : > { %9307 = vmatmul.mubr.bf16.gmra.mxu0 %v8950_v6  ;;  %v5671_v48 = vpop.permute.xlu1 %5670  ;;  %8139 = vrot.lane.b32.xlu1 %v11481_v27, %s11877_s11  ;;  %v6325_v13 = vsel %vm3382_vm10, %v6261_v59, %v16344_v37  ;;  %v11495_v27 = vld [vmem:[#allocation2 + $0x518] ss:$0 sps:$4 sm:$0x11]   ;;  %v11489_v5 = vld [vmem:[#allocation2 + $0x46c] sm:$0xf8]   ;;  %v7784_v59 = vrot.slane %v11493_v54, 1  ;;  %v15262_v37 = vpop.f32.mrf.mxu1 }
 0x41e   : > { %v5669_v55 = vpop.permute.xlu0 %5668  ;;  %v6403_v6 = vsel %vm519_vm7, %v11478_v28, %v5671_v48  ;;  %v6687_v52 = vrot.slane %v6325_v13, 3  ;;  %v11210_v31 = vld [vmem:[#allocation2 + $0x150] sm:$0xf8]   ;;  %v8599_v11 = vrot.slane %v11494_v36, 1  ;;  %v11500_v54 = vld [vmem:[#allocation2 + $0x518] sm:$0xfc]  }
 0x41f   : > { %8843 = vrot.lane.b32.xlu0 %v8806_v23, %s11877_s11  ;;  %v6400_v1 = vsel %vm519_vm7, %v11477_v0, %v5669_v55  ;;  %v11490_v55 = vld [vmem:[#allocation2 + $0x474] ss:$0 sps:$4 sm:$0x77]   ;;  %v7783_v0 = vrot.slane %v11492_v40, 1  ;;  %v11488_v2 = vld [vmem:[#allocation2 + $0x8c] sm:$0xff]  }
 0x420   : > { %v16346_v40 = vld [vmem:[#allocation44_spill] sm:$0xff] }
 0x421   : > { %v5911_v42 = vpop.permute.xlu1 %5910  ;;  %5690 = vrot.lane.b32.xlu1 %v11483_v41, %s11875_s24  ;;  %v11496_v41 = vld [vmem:[#allocation2 + $0x128] sm:$0xfc]  }
 0x422   : > { %v5909_v39 = vpop.permute.xlu0 %5908  ;;  %v6487_v23 = vsel %vm3333_vm9, %v6403_v6, %v5911_v42 }
 0x423   : > { %5688 = vrot.lane.b32.xlu0 %v11482_v44, %s11875_s24  ;;  %v6485_v48 = vsel %vm3333_vm9, %v6400_v1, %v5909_v39  ;;  %v11491_v1 = vld [vmem:[#allocation2 + $0x508] sm:$0xff]  }
 0x425   : > { %v6103_v61 = vpop.permute.xlu1 %6102  ;;  %5930 = vrot.lane.b32.xlu1 %v5872_v15, %s11876_s7 }
 0x426   : > { %v6101_v28 = vpop.permute.xlu0 %6100  ;;  %v6551_v44 = vsel %vm3382_vm10, %v6487_v23, %v6103_v61  ;;  %v8600_v23 = vrot.slane %v11495_v27, 1  ;;  %v7991_v61 = vrot.slane %v11496_v41, 2  ;;  %v15273_v27 = vpop.f32.mrf.mxu1  ;;  %v16347_v41 = vld [vmem:[#allocation40_spill] sm:$0xff] }
 0x427   : > { %v6549_v4 = vsel %vm3382_vm10, %v6485_v48, %v6101_v28  ;;  %v6691_v46 = vrot.slane %v6551_v44, 3  ;;  %5928 = vrot.lane.b32.xlu0 %v5870_v63, %s11876_s7  ;;  %v7992_v48 = vrot.slane %v11497_v53, 2  ;;  %v16345_v28 = vld [vmem:[#allocation19_spill] sm:$0xff]  ;;  %v6689_v63 = vsel %vm6656_vm13, %v6687_v52, %v6688_v43 }
 0x428   : > { %v6690_v42 = vrot.slane %v6549_v4, 3  ;;  %v6185_v15 = vsel %vm519_vm7, %v11211_v32, %v16345_v28  ;;  %v7785_v44 = vsel %vm7752_vm12, %v7783_v0, %v7784_v59  ;;  %v6182_v53 = vsel %vm519_vm7, %v11210_v31, %v16347_v41  ;;  %v16348_v32 = vld [vmem:[#allocation91_spill] sm:$0xff] }
 0x429   : > { %v7812_v13 = vpop.permute.xlu1 %7811  ;;  %6122 = vrot.lane.b32.xlu1 %v11490_v55, %s11877_s11  ;;  %v6267_v36 = vsel %vm3333_vm9, %v6185_v15, %v16346_v40  ;;  %v11501_v43 = vld [vmem:[#allocation2 + $0x520] ss:$0 sps:$4 sm:$0x33]   ;;  %v8601_v28 = vsel %vm7752_vm12, %v8599_v11, %v8600_v23  ;;  %v7993_v15 = vsel %vm3703_vm11, %v7991_v61, %v7992_v48  ;;  %v11506_v11 = vld [vmem:[#allocation2 + $0x48c] ss:$0 sps:$4 sm:$0x11]  }
 0x42a   : > { %v8420_v39 = vpop.permute.xlu0 %8419  ;;  %v6692_v6 = vsel %vm6656_vm13, %v6690_v42, %v6691_v46  ;;  %v15279_v4 = vsel %vm3382_vm10, %v6267_v36, %v16348_v32  ;;  %v16349_v52 = vld [vmem:[#allocation83_spill] sm:$0xff]  ;;  %v8298_v42 = vsel %vm3703_vm11, %v8296_v51, %v8297_v35  ;;  %v8874_v59 = vsel %vm519_vm7, %v11488_v2, %v7812_v13  ;;  %v11502_v61 = vld [vmem:[#allocation2 + $0x310] sm:$0xff]   ;;  %v15305_v48 = vld [vmem:[#allocation2 + $0x2b8] ss:$0 sps:$4 sm:$0x33]  }
 0x42b   : > { %6986 = vmatprep.mubr.bf16.mxu1 %v6692_v6  ;;  %6120 = vrot.lane.b32.xlu0 %v11489_v5, %s11877_s11  ;;  %v6265_v55 = vsel %vm3333_vm9, %v6182_v53, %v16349_v52  ;;  %v16350_v6 = vld [vmem:[#allocation110_spill] sm:$0xff]  ;;  %v9002_v51 = vsel %vm519_vm7, %v8298_v42, %v8420_v39  ;;  %v8807_v36 = vrot.slane %v11500_v54, 2  ;;  %v8808_v41 = vrot.slane %v11501_v43, 2  ;;  %v11504_v52 = vld [vmem:[#allocation2 + $0x484] ss:$0 sps:$4 sm:$0x77]  }
 0x42c   : > { %6987 = vmatmul.mubr.bf16.gmra.mxu1 %v6689_v63  ;;  %v15286_v0 = vsel %vm3382_vm10, %v6265_v55, %v16350_v6  ;;  %v15294_v63 = vpop.f32.mrf.mxu1  ;;  %v15303_v39 = vld [vmem:[#allocation2 + $0x2b0] sm:$0xfc]   ;;  %v11513_v54 = vld [vmem:[#allocation2 + $0x13c] sm:$0xfe]  }
 0x42d   : > { %v8020_v46 = vpop.permute.xlu1 %8019  ;;  %7821 = vrot.lane.b32.xlu1 %v7785_v44, %s11875_s24  ;;  %16351 = vst [vmem:[#allocation57_spill] sm:$0xff] %v15294_v63  ;;  %v8809_v43 = vsel %vm3703_vm11, %v8807_v36, %v8808_v41  ;;  %v11514_v55 = vld [vmem:[#allocation2 + $0x144] ss:$0 sps:$4 sm:$0x11]   ;;  %v8299_v36 = vrot.slane %v15303_v39, 2  ;;  %v8300_v41 = vrot.slane %v15305_v48, 2 }
 0x42e   : > { %v8628_v5 = vpop.permute.xlu0 %8627  ;;  %v8916_v35 = vsel %vm3333_vm9, %v8874_v59, %v8020_v46  ;;  %v15308_v32 = vpop.f32.mrf.mxu1  ;;  %v15311_v42 = vld [vmem:[#allocation2 + $0x534] ss:$0 sps:$4 sm:$0x11]   ;;  %v11515_v59 = vld [vmem:[#allocation2 + $0x52c] sm:$0xfe]  }
 0x42f   : > { %8429 = vrot.lane.b32.xlu0 %v11491_v1, %s11875_s24  ;;  %v9044_v53 = vsel %vm3333_vm9, %v9002_v51, %v8628_v5  ;;  %v11505_v1 = vld [vmem:[#allocation2 + $0x484] sm:$0xfe]   ;;  %16352 = vst [vmem:[#allocation51_spill] sm:$0xff] %v15308_v32  ;;  %v11499_v6 = vld [vmem:[#allocation2 + $0x2b4] ss:$0 sps:$4 sm:$0x77]  }
 0x430   : > { %v11503_v51 = vld [vmem:[#allocation2 + $0x47c] sm:$0xf8]   ;;  %v8602_v44 = vrot.slane %v11515_v59, 1  ;;  %v8603_v31 = vrot.slane %v15311_v42, 1 }
 0x431   : > { %v8132_v40 = vpop.permute.xlu1 %8131  ;;  %8029 = vrot.lane.b32.xlu1 %v7993_v15, %s11876_s7  ;;  %v11498_v15 = vld [vmem:[#allocation2 + $0x2ac] sm:$0xf8]   ;;  %v11518_v32 = vld [vmem:[#allocation2 + $0x14c] ss:$0 sps:$4 sm:$0x33]  }
 0x432   : > { %v8836_v13 = vpop.permute.xlu0 %8835  ;;  %v8953_v2 = vsel %vm3382_vm10, %v8916_v35, %v8132_v40  ;;  %v5874_v35 = vrot.slane %v11506_v11, 6  ;;  %v15315_v40 = vpop.f32.mrf.mxu1 }
 0x433   : > { %v9081_v23 = vsel %vm3382_vm10, %v9044_v53, %v8836_v13  ;;  %8637 = vrot.lane.b32.xlu0 %v8601_v28, %s11876_s7  ;;  %v5873_v28 = vrot.slane %v11505_v1, 6  ;;  %16353 = vst [vmem:[#allocation80_spill] sm:$0xff] %v15315_v40  ;;  %v7786_v13 = vrot.slane %v11513_v54, 1  ;;  %v11510_v40 = vld [vmem:[#allocation2 + $0x488] sm:$0xf8]  }
 0x434   : > { %9314 = vmatprep.mubr.bf16.mxu0 %v9081_v23 }
 0x435   : > { %9315 = vmatmul.mubr.bf16.gmra.mxu0 %v8953_v2  ;;  %v5675_v46 = vpop.permute.xlu1 %5674  ;;  %8141 = vrot.lane.b32.xlu1 %v11502_v61, %s11877_s11  ;;  %v7787_v2 = vrot.slane %v11514_v55, 1  ;;  %v11517_v61 = vld [vmem:[#allocation2 + $0x144] sm:$0xfc]   ;;  %v5875_v11 = vsel %vm4895_vm8, %v5873_v28, %v5874_v35  ;;  %v11511_v55 = vld [vmem:[#allocation2 + $0x490] ss:$0 sps:$4 sm:$0x77]  }
 0x436   : > { %v5673_v5 = vpop.permute.xlu0 %5672  ;;  %v6409_v1 = vsel %vm519_vm7, %v11499_v6, %v5675_v46 }
 0x437   : > { %8845 = vrot.lane.b32.xlu0 %v8809_v43, %s11877_s11  ;;  %v15324_v43 = vpop.f32.mrf.mxu1  ;;  %v6406_v39 = vsel %vm519_vm7, %v11498_v15, %v5673_v5  ;;  %v7995_v5 = vrot.slane %v11518_v32, 2  ;;  %v7788_v32 = vsel %vm7752_vm12, %v7786_v13, %v7787_v2 }
 0x438   : > { %16354 = vst [vmem:[#allocation74_spill] sm:$0xff] %v15324_v43  ;;  %v11509_v43 = vld [vmem:[#allocation2 + $0xa8] sm:$0xff]  }
 0x439   : > { %v5915_v53 = vpop.permute.xlu1 %5914  ;;  %5694 = vrot.lane.b32.xlu1 %v11504_v52, %s11875_s24  ;;  %v15333_v15 = vpop.f32.mrf.mxu1 }
 0x43a   : > { %v5913_v23 = vpop.permute.xlu0 %5912  ;;  %v6491_v48 = vsel %vm3333_vm9, %v6409_v1, %v5915_v53  ;;  %16355 = vst [vmem:[#allocation109_spill] sm:$0xff] %v15333_v15  ;;  %v11652_v15 = vld [vmem:[#allocation11] sm:$0xf] }
 0x43b   : > { %5692 = vrot.lane.b32.xlu0 %v11503_v51, %s11875_s24  ;;  %v6489_v42 = vsel %vm3333_vm9, %v6406_v39, %v5913_v23  ;;  %v7994_v51 = vrot.slane %v11517_v61, 2  ;;  %v11512_v39 = vld [vmem:[#allocation2 + $0x524] sm:$0xff]  }
 0x43d   : > { %v6107_v54 = vpop.permute.xlu1 %6106  ;;  %5934 = vrot.lane.b32.xlu1 %v5875_v11, %s11876_s7  ;;  %v16357_v11 = vrot.slane %v15286_v0, 3  ;;  %v8604_v0 = vsel %vm7752_vm12, %v8602_v44, %v8603_v31  ;;  %v11523_v44 = vld [vmem:[#allocation2 + $0x32c] sm:$0xff]  }
 0x43e   : > { %v6105_v59 = vpop.permute.xlu0 %6104  ;;  %v6555_v52 = vsel %vm3382_vm10, %v6491_v48, %v6107_v54  ;;  %v16356_v48 = vrot.slane %v15279_v4, 3  ;;  %v11522_v54 = vld [vmem:[#allocation2 + $0x53c] ss:$0 sps:$4 sm:$0x33]  }
 0x43f   : > { %v6553_v46 = vsel %vm3382_vm10, %v6489_v42, %v6105_v59  ;;  %v6697_v6 = vrot.slane %v6555_v52, 3  ;;  %5932 = vrot.lane.b32.xlu0 %v5873_v28, %s11876_s7  ;;  %v15344_v28 = vpop.f32.mrf.mxu1  ;;  %v11521_v59 = vld [vmem:[#allocation2 + $0x534] sm:$0xfc]   ;;  %v8301_v52 = vsel %vm3703_vm11, %v8299_v36, %v8300_v41  ;;  %v8811_v36 = vrot.slane %v11522_v54, 2  ;;  %v16361_v54 = vld [vmem:[#allocation77_spill] sm:$0xff] }
 0x440   : > { %v6696_v35 = vrot.slane %v6553_v46, 3  ;;  %v6695_v61 = vsel %vm6656_vm13, %v16357_v11, %v16356_v48  ;;  %16358 = vst [vmem:[#allocation102_spill] sm:$0xff] %v15344_v28 }
 0x441   : > { %v7814_v53 = vpop.permute.xlu1 %7813  ;;  %6126 = vrot.lane.b32.xlu1 %v11511_v55, %s11877_s11  ;;  %v15352_v55 = vpop.f32.mrf.mxu1 }
 0x442   : > { %v8422_v1 = vpop.permute.xlu0 %8421  ;;  %v6698_v23 = vsel %vm6656_vm13, %v6696_v35, %v6697_v6  ;;  %v8877_v4 = vsel %vm519_vm7, %v11509_v43, %v7814_v53  ;;  %16359 = vst [vmem:[#allocation43_spill] sm:$0xff] %v15352_v55  ;;  %v8810_v35 = vrot.slane %v11521_v59, 2  ;;  %v11214_v53 = vld [vmem:[#allocation2 + $0x16c] sm:$0xf8]  }
 0x443   : > { %6994 = vmatprep.mubr.bf16.mxu1 %v6698_v23  ;;  %6124 = vrot.lane.b32.xlu0 %v11510_v40, %s11877_s11  ;;  %v7996_v40 = vsel %vm3703_vm11, %v7994_v51, %v7995_v5  ;;  %v9005_v13 = vsel %vm519_vm7, %v8301_v52, %v8422_v1  ;;  %v11526_v51 = vld [vmem:[#allocation2 + $0x4a0] sm:$0xfe]   ;;  %v11527_v5 = vld [vmem:[#allocation2 + $0x4a8] ss:$0 sps:$4 sm:$0x11]   ;;  %v15361_v1 = vpop.f32.mrf.mxu1 }
 0x444   : > { %6995 = vmatmul.mubr.bf16.gmra.mxu1 %v6695_v61  ;;  %16360 = vst [vmem:[#allocation85_spill] sm:$0xff] %v15361_v1  ;;  %v8812_v11 = vsel %vm3703_vm11, %v8810_v35, %v8811_v36  ;;  %v11525_v59 = vld [vmem:[#allocation2 + $0x4a0] ss:$0 sps:$4 sm:$0x77]   ;;  %v16362_v52 = vld [vmem:[#allocation52_spill] sm:$0xff]  ;;  %v16365_v35 = vld [vmem:[#allocation82_spill] sm:$0xff] }
 0x445   : > { %v8022_v42 = vpop.permute.xlu1 %8021  ;;  %7823 = vrot.lane.b32.xlu1 %v7788_v32, %s11875_s24 }
 0x446   : > { %v8630_v46 = vpop.permute.xlu0 %8629  ;;  %v8918_v2 = vsel %vm3333_vm9, %v8877_v4, %v8022_v42  ;;  %v11520_v42 = vld [vmem:[#allocation2 + $0x2d0] ss:$0 sps:$4 sm:$0x77]   ;;  %v16363_v4 = vld [vmem:[#allocation58_spill] sm:$0xff] }
 0x447   : > { %8431 = vrot.lane.b32.xlu0 %v11512_v39, %s11875_s24  ;;  %v9046_v41 = vsel %vm3333_vm9, %v9005_v13, %v8630_v46  ;;  %v11215_v39 = vld [vmem:[#allocation2 + $0x174] ss:$0 sps:$4 sm:$0x77]   ;;  %v6188_v46 = vsel %vm519_vm7, %v11214_v53, %v16362_v52  ;;  %v5876_v13 = vrot.slane %v11526_v51, 6 }
 0x448   : > { %v6191_v32 = vsel %vm519_vm7, %v11215_v39, %v16361_v54  ;;  %v6269_v36 = vsel %vm3333_vm9, %v6188_v46, %v16365_v35  ;;  %v11534_v54 = vld [vmem:[#allocation2 + $0x158] sm:$0xfe]  }
 0x449   : > { %v8134_v6 = vpop.permute.xlu1 %8133  ;;  %8031 = vrot.lane.b32.xlu1 %v7996_v40, %s11876_s7  ;;  %v11524_v40 = vld [vmem:[#allocation2 + $0x498] sm:$0xf8]  }
 0x44a   : > { %v8838_v23 = vpop.permute.xlu0 %8837  ;;  %v8956_v43 = vsel %vm3382_vm10, %v8918_v2, %v8134_v6  ;;  %v5877_v2 = vrot.slane %v11527_v5, 6  ;;  %v15372_v6 = vpop.f32.mrf.mxu1 }
 0x44b   : > { %v9084_v31 = vsel %vm3382_vm10, %v9046_v41, %v8838_v23  ;;  %8639 = vrot.lane.b32.xlu0 %v8604_v0, %s11876_s7  ;;  %v6271_v0 = vsel %vm3333_vm9, %v6191_v32, %v16363_v4  ;;  %16364 = vst [vmem:[#allocation105_spill] sm:$0xff] %v15372_v6  ;;  %v16366_v41 = vld [vmem:[#allocation34_spill] sm:$0xff]  ;;  %v11535_v32 = vld [vmem:[#allocation2 + $0x160] ss:$0 sps:$4 sm:$0x11]  }
 0x44c   : > { %9322 = vmatprep.mubr.bf16.mxu0 %v9084_v31  ;;  %v6335_v23 = vsel %vm3382_vm10, %v6271_v0, %v16366_v41  ;;  %v16367_v31 = vld [vmem:[#allocation35_spill] sm:$0xff]  ;;  %v15384_v52 = vpop.f32.mrf.mxu1  ;;  %v11529_v41 = vld [vmem:[#allocation2 + $0x2d4] ss:$0 sps:$4 sm:$0x33]   ;;  %v7790_v6 = vrot.slane %v11535_v32, 1 }
 0x44d   : > { %9323 = vmatmul.mubr.bf16.gmra.mxu0 %v8956_v43  ;;  %v5679_v48 = vpop.permute.xlu1 %5678  ;;  %8143 = vrot.lane.b32.xlu1 %v11523_v44, %s11877_s11  ;;  %v11519_v43 = vld [vmem:[#allocation2 + $0x2c8] sm:$0xf8]   ;;  %v6333_v53 = vsel %vm3382_vm10, %v6269_v36, %v16367_v31  ;;  %v6700_v51 = vrot.slane %v6335_v23, 3  ;;  %16368 = vst [vmem:[#allocation96_spill] sm:$0xff] %v15384_v52 }
 0x44e   : > { %v5677_v61 = vpop.permute.xlu0 %5676  ;;  %v6415_v5 = vsel %vm519_vm7, %v11520_v42, %v5679_v48  ;;  %v6699_v46 = vrot.slane %v6333_v53, 3  ;;  %v11528_v36 = vld [vmem:[#allocation2 + $0x2cc] sm:$0xfc]   ;;  %v11531_v48 = vld [vmem:[#allocation2 + $0x4a4] sm:$0xf8]  }
 0x44f   : > { %8847 = vrot.lane.b32.xlu0 %v8812_v11, %s11877_s11  ;;  %v5878_v11 = vsel %vm4895_vm8, %v5876_v13, %v5877_v2  ;;  %v6412_v4 = vsel %vm519_vm7, %v11519_v43, %v5677_v61  ;;  %v11532_v42 = vld [vmem:[#allocation2 + $0x4ac] ss:$0 sps:$4 sm:$0x77]   ;;  %v11537_v43 = vld [vmem:[#allocation2 + $0x550] ss:$0 sps:$4 sm:$0x11]  }
 0x450   : > { %v11536_v61 = vld [vmem:[#allocation2 + $0x548] sm:$0xfe]   ;;  %v11538_v53 = vld [vmem:[#allocation2 + $0x160] sm:$0xfc]   ;;  %v6701_v32 = vsel %vm6656_vm13, %v6699_v46, %v6700_v51 }
 0x451   : > { %v5919_v39 = vpop.permute.xlu1 %5918  ;;  %5698 = vrot.lane.b32.xlu1 %v11525_v59, %s11875_s24 }
 0x452   : > { %v5917_v44 = vpop.permute.xlu0 %5916  ;;  %v6495_v0 = vsel %vm3333_vm9, %v6415_v5, %v5919_v39  ;;  %v11539_v5 = vld [vmem:[#allocation2 + $0x168] ss:$0 sps:$4 sm:$0x33]  }
 0x453   : > { %5696 = vrot.lane.b32.xlu0 %v11524_v40, %s11875_s24  ;;  %v6493_v31 = vsel %vm3333_vm9, %v6412_v4, %v5917_v44  ;;  %v7789_v40 = vrot.slane %v11534_v54, 1  ;;  %v15393_v44 = vpop.f32.mrf.mxu1 }
 0x454   : > { %16369 = vst [vmem:[#allocation75_spill] sm:$0xff] %v15393_v44 }
 0x455   : > { %v6111_v35 = vpop.permute.xlu1 %6110  ;;  %5938 = vrot.lane.b32.xlu1 %v5878_v11, %s11876_s7  ;;  %v7791_v11 = vsel %vm7752_vm12, %v7789_v40, %v7790_v6 }
 0x456   : > { %v6109_v59 = vpop.permute.xlu0 %6108  ;;  %v6559_v23 = vsel %vm3382_vm10, %v6495_v0, %v6111_v35  ;;  %v8302_v0 = vrot.slane %v11528_v36, 2  ;;  %v8303_v35 = vrot.slane %v11529_v41, 2  ;;  %v7998_v36 = vrot.slane %v11539_v5, 2  ;;  %v15400_v41 = vpop.f32.mrf.mxu1 }
 0x457   : > { %v6557_v2 = vsel %vm3382_vm10, %v6493_v31, %v6109_v59  ;;  %v6703_v52 = vrot.slane %v6559_v23, 3  ;;  %5936 = vrot.lane.b32.xlu0 %v5876_v13, %s11876_s7  ;;  %v11530_v31 = vld [vmem:[#allocation2 + $0xc4] sm:$0xff]   ;;  %v8605_v59 = vrot.slane %v11536_v61, 1  ;;  %v8606_v23 = vrot.slane %v11537_v43, 1  ;;  %16370 = vst [vmem:[#allocation81_spill] sm:$0xff] %v15400_v41 }
 0x458   : > { %v6702_v39 = vrot.slane %v6557_v2, 3  ;;  %v11533_v13 = vld [vmem:[#allocation2 + $0x540] sm:$0xff]   ;;  %v7997_v2 = vrot.slane %v11538_v53, 2 }
 0x459   : > { %v7816_v4 = vpop.permute.xlu1 %7815  ;;  %6130 = vrot.lane.b32.xlu1 %v11532_v42, %s11877_s11  ;;  %v8304_v42 = vsel %vm3703_vm11, %v8302_v0, %v8303_v35  ;;  %v8607_v51 = vsel %vm7752_vm12, %v8605_v59, %v8606_v23  ;;  %v11548_v59 = vld [vmem:[#allocation2 + $0x4c4] ss:$0 sps:$4 sm:$0x11]  }
 0x45a   : > { %v8424_v55 = vpop.permute.xlu0 %8423  ;;  %v6704_v54 = vsel %vm6656_vm13, %v6702_v39, %v6703_v52  ;;  %v11542_v52 = vld [vmem:[#allocation2 + $0x550] sm:$0xfc]   ;;  %v11543_v39 = vld [vmem:[#allocation2 + $0x558] ss:$0 sps:$4 sm:$0x33]   ;;  %v8880_v6 = vsel %vm519_vm7, %v11530_v31, %v7816_v4  ;;  %v7999_v46 = vsel %vm3703_vm11, %v7997_v2, %v7998_v36 }
 0x45b   : > { %7002 = vmatprep.mubr.bf16.mxu1 %v6704_v54  ;;  %6128 = vrot.lane.b32.xlu0 %v11531_v48, %s11877_s11  ;;  %v15408_v48 = vpop.f32.mrf.mxu1  ;;  %v9008_v40 = vsel %vm519_vm7, %v8304_v42, %v8424_v55  ;;  %v8813_v53 = vrot.slane %v11542_v52, 2  ;;  %v8814_v5 = vrot.slane %v11543_v39, 2  ;;  %v16373_v52 = vld [vmem:[#allocation76_spill] sm:$0xff] }
 0x45c   : > { %7003 = vmatmul.mubr.bf16.gmra.mxu1 %v6701_v32  ;;  %16371 = vst [vmem:[#allocation46_spill] sm:$0xff] %v15408_v48  ;;  %v11219_v32 = vld [vmem:[#allocation2 + $0x188] sm:$0xf8]  }
 0x45d   : > { %v8024_v44 = vpop.permute.xlu1 %8023  ;;  %7825 = vrot.lane.b32.xlu1 %v7791_v11, %s11875_s24  ;;  %v11220_v11 = vld [vmem:[#allocation2 + $0x190] ss:$0 sps:$4 sm:$0x77]   ;;  %v15417_v55 = vpop.f32.mrf.mxu1  ;;  %v8815_v2 = vsel %vm3703_vm11, %v8813_v53, %v8814_v5  ;;  %v11541_v42 = vld [vmem:[#allocation2 + $0x2ec] ss:$0 sps:$4 sm:$0x77]  }
 0x45e   : > { %v8632_v54 = vpop.permute.xlu0 %8631  ;;  %v8920_v61 = vsel %vm3333_vm9, %v8880_v6, %v8024_v44  ;;  %16372 = vst [vmem:[#allocation101_spill] sm:$0xff] %v15417_v55  ;;  %v11547_v44 = vld [vmem:[#allocation2 + $0x4bc] sm:$0xfe]   ;;  %v6197_v39 = vsel %vm519_vm7, %v11220_v11, %v16373_v52  ;;  %v5880_v5 = vrot.slane %v11548_v59, 6  ;;  %v16379_v52 = vld [vmem:[#allocation69_spill] sm:$0xff] }
 0x45f   : > { %8433 = vrot.lane.b32.xlu0 %v11533_v13, %s11875_s24  ;;  %v9048_v0 = vsel %vm3333_vm9, %v9008_v40, %v8632_v54  ;;  %v11544_v13 = vld [vmem:[#allocation2 + $0x348] sm:$0xff]   ;;  %v11546_v54 = vld [vmem:[#allocation2 + $0x4bc] ss:$0 sps:$4 sm:$0x77]   ;;  %v16374_v6 = vld [vmem:[#allocation99_spill] sm:$0xff]  ;;  %v5879_v53 = vrot.slane %v11547_v44, 6 }
 0x461   : > { %v8136_v43 = vpop.permute.xlu1 %8135  ;;  %8033 = vrot.lane.b32.xlu1 %v7999_v46, %s11876_s7  ;;  %v16375_v46 = vld [vmem:[#allocation103_spill] sm:$0xff]  ;;  %v5881_v59 = vsel %vm4895_vm8, %v5879_v53, %v5880_v5 }
 0x462   : > { %v8840_v35 = vpop.permute.xlu0 %8839  ;;  %v8959_v4 = vsel %vm3382_vm10, %v8920_v61, %v8136_v43  ;;  %v6275_v40 = vsel %vm3333_vm9, %v6197_v39, %v16375_v46  ;;  %v11545_v61 = vld [vmem:[#allocation2 + $0x4b4] sm:$0xf8]   ;;  %v15428_v43 = vpop.f32.mrf.mxu1  ;;  %v11556_v46 = vld [vmem:[#allocation2 + $0x17c] ss:$0 sps:$4 sm:$0x11]  }
 0x463   : > { %v9087_v31 = vsel %vm3382_vm10, %v9048_v0, %v8840_v35  ;;  %8641 = vrot.lane.b32.xlu0 %v8607_v51, %s11876_s7  ;;  %v6194_v51 = vsel %vm519_vm7, %v11219_v32, %v16374_v6  ;;  %16376 = vst [vmem:[#allocation32_spill] sm:$0xff] %v15428_v43  ;;  %v16377_v0 = vld [vmem:[#allocation59_spill] sm:$0xff]  ;;  %v11555_v39 = vld [vmem:[#allocation2 + $0x174] sm:$0xfe]   ;;  %v7793_v48 = vrot.slane %v11556_v46, 1 }
 0x464   : > { %9330 = vmatprep.mubr.bf16.mxu0 %v9087_v31  ;;  %v6273_v35 = vsel %vm3333_vm9, %v6194_v51, %v16377_v0  ;;  %v11540_v31 = vld [vmem:[#allocation2 + $0x2e4] sm:$0xf8]   ;;  %v15440_v51 = vpop.f32.mrf.mxu1  ;;  %v11550_v43 = vld [vmem:[#allocation2 + $0x2f0] ss:$0 sps:$4 sm:$0x33]  }
 0x465   : > { %9331 = vmatmul.mubr.bf16.gmra.mxu0 %v8959_v4  ;;  %v5683_v23 = vpop.permute.xlu1 %5682  ;;  %8145 = vrot.lane.b32.xlu1 %v11544_v13, %s11877_s11  ;;  %v16378_v4 = vld [vmem:[#allocation68_spill] sm:$0xff]  ;;  %v6337_v32 = vsel %vm3382_vm10, %v6273_v35, %v16379_v52  ;;  %16380 = vst [vmem:[#allocation33_spill] sm:$0xff] %v15440_v51 }
 0x466   : > { %v5681_v36 = vpop.permute.xlu0 %5680  ;;  %v6339_v11 = vsel %vm3382_vm10, %v6275_v40, %v16378_v4  ;;  %v6421_v44 = vsel %vm519_vm7, %v11541_v42, %v5683_v23  ;;  %v6705_v40 = vrot.slane %v6337_v32, 3  ;;  %v11549_v52 = vld [vmem:[#allocation2 + $0x2e8] sm:$0xfc]   ;;  %v11552_v23 = vld [vmem:[#allocation2 + $0x4c0] sm:$0xf8]   ;;  %v15449_v32 = vpop.f32.mrf.mxu1 }
 0x467   : > { %8849 = vrot.lane.b32.xlu0 %v8815_v2, %s11877_s11  ;;  %v6706_v2 = vrot.slane %v6339_v11, 3  ;;  %v6418_v0 = vsel %vm519_vm7, %v11540_v31, %v5681_v36  ;;  %v11553_v42 = vld [vmem:[#allocation2 + $0x4c8] ss:$0 sps:$4 sm:$0x77]   ;;  %16381 = vst [vmem:[#allocation86_spill] sm:$0xff] %v15449_v32  ;;  %v11551_v46 = vld [vmem:[#allocation2 + $0xe0] sm:$0xff]  }
 0x468   : > { %v11557_v36 = vld [vmem:[#allocation2 + $0x564] sm:$0xfe]   ;;  %v11558_v31 = vld [vmem:[#allocation2 + $0x56c] ss:$0 sps:$4 sm:$0x11]  }
 0x469   : > { %v5923_v13 = vpop.permute.xlu1 %5922  ;;  %5702 = vrot.lane.b32.xlu1 %v11546_v54, %s11875_s24 }
 0x46a   : > { %v5921_v6 = vpop.permute.xlu0 %5920  ;;  %v6499_v4 = vsel %vm3333_vm9, %v6421_v44, %v5923_v13  ;;  %v11560_v44 = vld [vmem:[#allocation2 + $0x184] ss:$0 sps:$4 sm:$0x33]  }
 0x46b   : > { %5700 = vrot.lane.b32.xlu0 %v11545_v61, %s11875_s24  ;;  %v6497_v55 = vsel %vm3333_vm9, %v6418_v0, %v5921_v6  ;;  %v7792_v61 = vrot.slane %v11555_v39, 1  ;;  %v11559_v6 = vld [vmem:[#allocation2 + $0x17c] sm:$0xfc]   ;;  %v8001_v1 = vrot.slane %v11560_v44, 2 }
 0x46c   : > { %v8000_v32 = vrot.slane %v11559_v6, 2 }
 0x46d   : > { %v6115_v35 = vpop.permute.xlu1 %6114  ;;  %5942 = vrot.lane.b32.xlu1 %v5881_v59, %s11876_s7  ;;  %v16382_v59 = vld [vmem:[#allocation112_spill] sm:$0xff] }
 0x46e   : > { %v6113_v54 = vpop.permute.xlu0 %6112  ;;  %v6563_v11 = vsel %vm3382_vm10, %v6499_v4, %v6115_v35  ;;  %v8305_v4 = vrot.slane %v11549_v52, 2  ;;  %v8306_v35 = vrot.slane %v11550_v43, 2  ;;  %v8608_v52 = vrot.slane %v11557_v36, 1 }
 0x46f   : > { %v6561_v5 = vsel %vm3382_vm10, %v6497_v55, %v6113_v54  ;;  %v6709_v51 = vrot.slane %v6563_v11, 3  ;;  %5940 = vrot.lane.b32.xlu0 %v5879_v53, %s11876_s7  ;;  %v6707_v55 = vsel %vm6656_vm13, %v6705_v40, %v6706_v2  ;;  %v7109_v54 = vsub.s32 2, %v16382_v59  ;;  %v11554_v11 = vld [vmem:[#allocation2 + $0x55c] sm:$0xff]  }
 0x470   : > { %v6708_v13 = vrot.slane %v6561_v5, 3  ;;  %v7794_v53 = vsel %vm7752_vm12, %v7792_v61, %v7793_v48  ;;  %v8609_v43 = vrot.slane %v11558_v31, 1  ;;  %v8002_v36 = vsel %vm3703_vm11, %v8000_v32, %v8001_v1 }
 0x471   : > { %v7818_v0 = vpop.permute.xlu1 %7817  ;;  %6134 = vrot.lane.b32.xlu1 %v11553_v42, %s11877_s11  ;;  %v8307_v42 = vsel %vm3703_vm11, %v8305_v4, %v8306_v35  ;;  %v15458_v63 = vrot.slane %v11652_v15, %v7109_v54  ;;  %v16383_v4 = vld [vmem:[#allocation65_spill] sm:$0xff]  ;;  %v9437_v32 = vsub.s32 3, %v16382_v59  ;;  %v11567_v59 = vld [vmem:[#allocation2 + $0x4d8] ss:$0 sps:$4 sm:$0x77]  }
 0x472   : > { %v8426_v41 = vpop.permute.xlu0 %8425  ;;  %v6710_v39 = vsel %vm6656_vm13, %v6708_v13, %v6709_v51  ;;  %v11563_v51 = vld [vmem:[#allocation2 + $0x56c] sm:$0xfc]   ;;  %v8883_v48 = vsel %vm519_vm7, %v11551_v46, %v7818_v0  ;;  %v8610_v61 = vsel %vm7752_vm12, %v8608_v52, %v8609_v43  ;;  %v15475_v43 = vld [vmem:[#allocation2 + $0x4d8] sm:$0xfe]  }
 0x473   : > { %7010 = vmatprep.mubr.bf16.mxu1 %v6710_v39  ;;  %6132 = vrot.lane.b32.xlu0 %v11552_v23, %s11877_s11  ;;  %v11564_v39 = vld [vmem:[#allocation2 + $0x574] ss:$0 sps:$4 sm:$0x33]   ;;  %v8816_v31 = vrot.slane %v11563_v51, 2  ;;  %v9011_v6 = vsel %vm519_vm7, %v8307_v42, %v8426_v41  ;;  %v11565_v41 = vld [vmem:[#allocation2 + $0x364] sm:$0xff]  }
 0x474   : > { %v10594_v5 = vpop.f32.mrf.mxu1  ;;  %7011 = vmatmul.mubr.bf16.gmra.mxu1 %v6707_v55  ;;  %v8817_v54 = vrot.slane %v11564_v39, 2  ;;  %v11223_v51 = vld [vmem:[#allocation2 + $0x1a4] sm:$0xf8]  }
 0x475   : > { %v8026_v13 = vpop.permute.xlu1 %8025  ;;  %7827 = vrot.lane.b32.xlu1 %v7794_v53, %s11875_s24  ;;  %v16384_v42 = vld [vmem:[#allocation108_spill] sm:$0xff] }
 0x476   : > { %v8634_v28 = vpop.permute.xlu0 %8633  ;;  %v10595_v2 = vpop.f32.mrf.mxu1  ;;  %v8922_v44 = vsel %vm3333_vm9, %v8883_v48, %v8026_v13  ;;  %v11224_v13 = vld [vmem:[#allocation2 + $0x1ac] ss:$0 sps:$4 sm:$0x77]  }
 0x477   : > { %v10596_v40 = vadd.f32 %v10595_v2, %v10594_v5  ;;  %8435 = vrot.lane.b32.xlu0 %v11554_v11, %s11875_s24  ;;  %v9050_v53 = vsel %vm3333_vm9, %v9011_v6, %v8634_v28  ;;  %v11569_v28 = vld [vmem:[#allocation2 + $0x4e0] ss:$0 sps:$4 sm:$0x11]   ;;  %v11562_v6 = vld [vmem:[#allocation2 + $0x308] ss:$0 sps:$4 sm:$0x77]  }
 0x478   : > { %v10597_v23 = vpop.f32.mrf.mxu1 }
 0x479   : > { %v7075_v35 = vadd.f32 %v10596_v40, %v16383_v4  ;;  %v8138_v55 = vpop.permute.xlu1 %8137  ;;  %8035 = vrot.lane.b32.xlu1 %v8002_v36, %s11876_s7 }
 0x47a   : > { %v8842_v5 = vpop.permute.xlu0 %8841  ;;  %v8962_v0 = vsel %vm3382_vm10, %v8922_v44, %v8138_v55  ;;  %v10598_v46 = vpop.f32.mrf.mxu1  ;;  %v11566_v55 = vld [vmem:[#allocation2 + $0x4d0] sm:$0xf8]  }
 0x47b   : > { %v7111_v11 = vadd.f32 %v15458_v63, %v7075_v35  ;;  %v10599_v52 = vadd.f32 %v10598_v46, %v10597_v23  ;;  %v9090_v1 = vsel %vm3382_vm10, %v9050_v53, %v8842_v5  ;;  %8643 = vrot.lane.b32.xlu0 %v8610_v61, %s11876_s7  ;;  %v8818_v23 = vsel %vm3703_vm11, %v8816_v31, %v8817_v54  ;;  %v16385_v31 = vld [vmem:[#allocation98_spill] sm:$0xff] }
 0x47c   : > { %9338 = vmatprep.mubr.bf16.mxu0 %v9090_v1  ;;  %v15482_v35 = vrot.slane %v11652_v15, %v9437_v32  ;;  %v5882_v53 = vrot.slane %v15475_v43, 6  ;;  %v5883_v5 = vrot.slane %v11569_v28, 6  ;;  %v6200_v54 = vsel %vm519_vm7, %v11223_v51, %v16385_v31  ;;  %v16388_v32 = vld [vmem:[#allocation26_spill] sm:$0xff]  ;;  %v16390_v28 = vld [vmem:[#allocation36_spill] sm:$0xff]  ;;  %v16391_v51 = vld [vmem:[#allocation93_spill] sm:$0xff] }
 0x47d   : > { %v7143_v39 = vmax.f32 %v7111_v11, 0.0  ;;  %v7076_v2 = vadd.f32 %v10599_v52, %v16384_v42  ;;  %v10706_v40 = vpop.f32.mrf.mxu0  ;;  %9339 = vmatmul.mubr.bf16.gmra.mxu0 %v8962_v0  ;;  %v5687_v48 = vpop.permute.xlu1 %5686  ;;  %8147 = vrot.lane.b32.xlu1 %v11565_v41, %s11877_s11  ;;  %v16386_v0 = vld [vmem:[#allocation53_spill] sm:$0xff]  ;;  %v11561_v52 = vld [vmem:[#allocation2 + $0x300] sm:$0xf8]  }
 0x47e   : > { %v5685_v36 = vpop.permute.xlu0 %5684  ;;  %v6203_v46 = vsel %vm519_vm7, %v11224_v13, %v16386_v0 }
 0x47f   : > { %7175 = vst [vmem:[%s13802_s17 + $0x18] sm:$0xff] %v7143_v39  ;;  %v7112_v61 = vadd.f32 %v15458_v63, %v7076_v2  ;;  %v10707_v44 = vpop.f32.mrf.mxu0  ;;  %8851 = vrot.lane.b32.xlu0 %v8818_v23, %s11877_s11  ;;  %v16387_v39 = vld [vmem:[#allocation27_spill] sm:$0xff]  ;;  %v6279_v42 = vsel %vm3333_vm9, %v6203_v46, %v16388_v32  ;;  %v16389_v2 = vld [vmem:[#allocation88_spill] sm:$0xff]  ;;  %v6424_v0 = vsel %vm519_vm7, %v11561_v52, %v5685_v36 }
 0x480   : > { %v10708_v4 = vadd.f32 %v10707_v44, %v10706_v40  ;;  %v6277_v15 = vsel %vm3333_vm9, %v6200_v54, %v16387_v39  ;;  %v6343_v44 = vsel %vm3382_vm10, %v6279_v42, %v16391_v51  ;;  %v16392_v42 = vld [vmem:[#allocation48_spill] sm:$0xff] }
 0x481   : > { %v7144_v11 = vmax.f32 %v7112_v61, 0.0  ;;  %v10709_v1 = vpop.f32.mrf.mxu0  ;;  %v5927_v41 = vpop.permute.xlu1 %5926  ;;  %v6341_v23 = vsel %vm3382_vm10, %v6277_v15, %v16390_v28  ;;  %5706 = vrot.lane.b32.xlu1 %v11567_v59, %s11875_s24  ;;  %v6427_v61 = vsel %vm519_vm7, %v11562_v6, %v5687_v48  ;;  %v11570_v15 = vld [vmem:[#allocation2 + $0x304] sm:$0xfc]  }
 0x482   : > { %v9403_v40 = vadd.f32 %v10708_v4, %v16389_v2  ;;  %v5925_v43 = vpop.permute.xlu0 %5924  ;;  %v5884_v4 = vsel %vm4895_vm8, %v5882_v53, %v5883_v5  ;;  %v6503_v46 = vsel %vm3333_vm9, %v6427_v61, %v5927_v41  ;;  %v11574_v2 = vld [vmem:[#allocation2 + $0x4e4] ss:$0 sps:$4 sm:$0x77]   ;;  %v6712_v5 = vrot.slane %v6343_v44, 3 }
 0x483   : > { %7176 = vst [vmem:[%s13802_s17 + $0x40] sm:$0xff] %v7144_v11  ;;  %v10710_v13 = vpop.f32.mrf.mxu0  ;;  %5704 = vrot.lane.b32.xlu0 %v11566_v55, %s11875_s24  ;;  %v11571_v11 = vld [vmem:[#allocation2 + $0x30c] ss:$0 sps:$4 sm:$0x33]   ;;  %v6501_v59 = vsel %vm3333_vm9, %v6424_v0, %v5925_v43  ;;  %v11578_v55 = vld [vmem:[#allocation2 + $0x190] sm:$0xfe]  }
 0x484   : > { %v9439_v31 = vadd.f32 %v15482_v35, %v9403_v40  ;;  %v10711_v54 = vadd.f32 %v10710_v13, %v10709_v1  ;;  %v6711_v40 = vrot.slane %v6341_v23, 3  ;;  %v11579_v41 = vld [vmem:[#allocation2 + $0x198] ss:$0 sps:$4 sm:$0x11]   ;;  %v11573_v43 = vld [vmem:[#allocation2 + $0x4dc] sm:$0xf8]  }
 0x485   : > { %v6119_v39 = vpop.permute.xlu1 %6118  ;;  %5946 = vrot.lane.b32.xlu1 %v5884_v4, %s11876_s7  ;;  %v8308_v13 = vrot.slane %v11570_v15, 2  ;;  %v11575_v0 = vld [vmem:[#allocation2 + $0x380] sm:$0xf8]  }
 0x486   : > { %v9471_v32 = vmax.f32 %v9439_v31, 0.0  ;;  %v9404_v48 = vadd.f32 %v10711_v54, %v16392_v42  ;;  %v6117_v6 = vpop.permute.xlu0 %6116  ;;  %v6567_v1 = vsel %vm3382_vm10, %v6503_v46, %v6119_v39  ;;  %v8309_v54 = vrot.slane %v11571_v11, 2  ;;  %v11576_v46 = vld [vmem:[#allocation2 + $0x388] ss:$0 sps:$4 sm:$0x77]   ;;  %v11572_v42 = vld [vmem:[#allocation2 + $0xfc] sm:$0xff]  }
 0x487   : > { %v6565_v36 = vsel %vm3382_vm10, %v6501_v59, %v6117_v6  ;;  %v6715_v52 = vrot.slane %v6567_v1, 3  ;;  %5944 = vrot.lane.b32.xlu0 %v5882_v53, %s11876_s7  ;;  %v7795_v39 = vrot.slane %v11578_v55, 1  ;;  %v6713_v4 = vsel %vm6656_vm13, %v6711_v40, %v6712_v5  ;;  %v11582_v59 = vld [vmem:[#allocation2 + $0x580] sm:$0xfe]   ;;  %v11584_v11 = vld [vmem:[#allocation2 + $0x198] sm:$0xfc]  }
 0x488   : > { %9503 = vst [vmem:[%s13802_s17 + $0x20] sm:$0xff] %v9471_v32  ;;  %v9440_v28 = vadd.f32 %v15482_v35, %v9404_v48  ;;  %v6714_v51 = vrot.slane %v6565_v36, 3  ;;  %v7796_v32 = vrot.slane %v11579_v41, 1  ;;  %v11583_v53 = vld [vmem:[#allocation2 + $0x588] ss:$0 sps:$4 sm:$0x11]   ;;  %v8310_v1 = vsel %vm3703_vm11, %v8308_v13, %v8309_v54 }
 0x489   : > { %v7820_v61 = vpop.permute.xlu1 %7819  ;;  %6138 = vrot.lane.b32.xlu1 %v11574_v2, %s11877_s11  ;;  %v11585_v48 = vld [vmem:[#allocation2 + $0x1a0] ss:$0 sps:$4 sm:$0x33]   ;;  %v8611_v40 = vrot.slane %v11582_v59, 1  ;;  %v16393_v54 = vld [vmem:[#allocation90_spill] sm:$0xff] }
 0x48a   : > { %v9472_v31 = vmax.f32 %v9440_v28, 0.0  ;;  %v8428_v23 = vpop.permute.xlu0 %8427  ;;  %v6716_v44 = vsel %vm6656_vm13, %v6714_v51, %v6715_v52  ;;  %v7797_v2 = vsel %vm7752_vm12, %v7795_v39, %v7796_v32  ;;  %v8886_v5 = vsel %vm519_vm7, %v11572_v42, %v7820_v61  ;;  %v11577_v28 = vld [vmem:[#allocation2 + $0x578] sm:$0xff]   ;;  %v11228_v42 = vld [vmem:[#allocation2 + $0x1c0] sm:$0xf8]  }
 0x48b   : > { %7018 = vmatprep.mubr.bf16.mxu1 %v6716_v44  ;;  %6136 = vrot.lane.b32.xlu0 %v11573_v43, %s11877_s11  ;;  %v8612_v51 = vrot.slane %v11583_v53, 1  ;;  %v8003_v43 = vrot.slane %v11584_v11, 2  ;;  %v9014_v44 = vsel %vm519_vm7, %v8310_v1, %v8428_v23 }
 0x48c   : > { %9504 = vst [vmem:[%s13802_s17 + $0x48] sm:$0xff] %v9472_v31  ;;  %v10600_v15 = vpop.f32.mrf.mxu1  ;;  %7019 = vmatmul.mubr.bf16.gmra.mxu1 %v6713_v4  ;;  %v8004_v31 = vrot.slane %v11585_v48, 2 }
 0x48d   : > { %v8028_v6 = vpop.permute.xlu1 %8027  ;;  %5386 = vrot.lane.b32.xlu1 %v11576_v46, %s11877_s11  ;;  %v11586_v46 = vld [vmem:[#allocation2 + $0x588] sm:$0xfc]   ;;  %v8613_v11 = vsel %vm7752_vm12, %v8611_v40, %v8612_v51  ;;  %v11594_v40 = vld [vmem:[#allocation2 + $0x4f4] sm:$0xfe]  }
 0x48e   : > { %v8636_v55 = vpop.permute.xlu0 %8635  ;;  %v10601_v36 = vpop.f32.mrf.mxu1  ;;  %v8924_v13 = vsel %vm3333_vm9, %v8886_v5, %v8028_v6  ;;  %v8005_v48 = vsel %vm3703_vm11, %v8003_v43, %v8004_v31  ;;  %v11229_v6 = vld [vmem:[#allocation2 + $0x1c8] ss:$0 sps:$4 sm:$0x77]   ;;  %v11581_v51 = vld [vmem:[#allocation2 + $0x324] ss:$0 sps:$4 sm:$0x77]  }
 0x48f   : > { %v10602_v52 = vadd.f32 %v10601_v36, %v10600_v15  ;;  %5384 = vrot.lane.b32.xlu0 %v11575_v0, %s11877_s11  ;;  %v11587_v36 = vld [vmem:[#allocation2 + $0x590] ss:$0 sps:$4 sm:$0x33]   ;;  %v9052_v39 = vsel %vm3333_vm9, %v9014_v44, %v8636_v55  ;;  %v16394_v55 = vld [vmem:[#allocation47_spill] sm:$0xff]  ;;  %v8819_v44 = vrot.slane %v11586_v46, 2  ;;  %v16396_v46 = vld [vmem:[#allocation20_spill] sm:$0xff] }
 0x490   : > { %v10603_v41 = vpop.f32.mrf.mxu1  ;;  %v11595_v31 = vld [vmem:[#allocation2 + $0x4fc] ss:$0 sps:$4 sm:$0x11]  }
 0x491   : > { %v7077_v4 = vadd.f32 %v10602_v52, %v16393_v54  ;;  %v8140_v15 = vpop.permute.xlu1 %8139  ;;  %7829 = vrot.lane.b32.xlu1 %v7797_v2, %s11875_s24  ;;  %v8820_v2 = vrot.slane %v11587_v36, 2  ;;  %v6209_v36 = vsel %vm519_vm7, %v11229_v6, %v16396_v46 }
 0x492   : > { %v8844_v32 = vpop.permute.xlu0 %8843  ;;  %v8965_v61 = vsel %vm3382_vm10, %v8924_v13, %v8140_v15  ;;  %v10604_v0 = vpop.f32.mrf.mxu1  ;;  %v16395_v15 = vld [vmem:[#allocation42_spill] sm:$0xff] }
 0x493   : > { %v7113_v59 = vadd.f32 %v15458_v63, %v7077_v4  ;;  %v10605_v53 = vadd.f32 %v10604_v0, %v10603_v41  ;;  %v9093_v23 = vsel %vm3382_vm10, %v9052_v39, %v8844_v32  ;;  %8437 = vrot.lane.b32.xlu0 %v11577_v28, %s11875_s24  ;;  %v11588_v28 = vld [vmem:[#allocation2 + $0x380] sm:$0xff]   ;;  %v6206_v39 = vsel %vm519_vm7, %v11228_v42, %v16395_v15  ;;  %v16401_v15 = vld [vmem:[#allocation50_spill] sm:$0xff] }
 0x494   : > { %9346 = vmatprep.mubr.bf16.mxu0 %v9093_v23  ;;  %v16397_v23 = vld [vmem:[#allocation84_spill] sm:$0xff] }
 0x495   : > { %v7145_v1 = vmax.f32 %v7113_v59, 0.0  ;;  %v7078_v52 = vadd.f32 %v10605_v53, %v16394_v55  ;;  %v10712_v5 = vpop.f32.mrf.mxu0  ;;  %9347 = vmatmul.mubr.bf16.gmra.mxu0 %v8965_v61  ;;  %v5691_v41 = vpop.permute.xlu1 %5690  ;;  %8037 = vrot.lane.b32.xlu1 %v8005_v48, %s11876_s7  ;;  %v11580_v61 = vld [vmem:[#allocation2 + $0x31c] sm:$0xf8]   ;;  %v8821_v53 = vsel %vm3703_vm11, %v8819_v44, %v8820_v2  ;;  %v6281_v48 = vsel %vm3333_vm9, %v6206_v39, %v16397_v23  ;;  %v11590_v44 = vld [vmem:[#allocation2 + $0x4f4] ss:$0 sps:$4 sm:$0x77]  }
 0x496   : > { %v5689_v13 = vpop.permute.xlu0 %5688  ;;  %v5885_v2 = vrot.slane %v11594_v40, 6  ;;  %v6433_v39 = vsel %vm519_vm7, %v11581_v51, %v5691_v41  ;;  %v5886_v23 = vrot.slane %v11595_v31, 6  ;;  %v11591_v51 = vld [vmem:[#allocation2 + $0x320] sm:$0xfc]  }
 0x497   : > { %7177 = vst [vmem:[%s13802_s17 + $0x68] sm:$0xff] %v7145_v1  ;;  %v7114_v54 = vadd.f32 %v15458_v63, %v7078_v52  ;;  %v10713_v4 = vpop.f32.mrf.mxu0  ;;  %8645 = vrot.lane.b32.xlu0 %v8613_v11, %s11876_s7  ;;  %v16398_v1 = vld [vmem:[#allocation60_spill] sm:$0xff]  ;;  %v16399_v11 = vld [vmem:[#allocation111_spill] sm:$0xff] }
 0x498   : > { %v10714_v43 = vadd.f32 %v10713_v4, %v10712_v5  ;;  %v6283_v55 = vsel %vm3333_vm9, %v6209_v36, %v16398_v1  ;;  %v16400_v4 = vld [vmem:[#allocation70_spill] sm:$0xff] }
 0x499   : > { %v7146_v32 = vmax.f32 %v7114_v54, 0.0  ;;  %v10715_v0 = vpop.f32.mrf.mxu0  ;;  %v5931_v59 = vpop.permute.xlu1 %5930  ;;  %v6345_v42 = vsel %vm3382_vm10, %v6281_v48, %v16400_v4  ;;  %v6347_v6 = vsel %vm3382_vm10, %v6283_v55, %v16401_v15  ;;  %8149 = vrot.lane.b32.xlu1 %v11588_v28, %s11877_s11  ;;  %v6430_v48 = vsel %vm519_vm7, %v11580_v61, %v5689_v13 }
 0x49a   : > { %v9405_v52 = vadd.f32 %v10714_v43, %v16399_v11  ;;  %v5929_v5 = vpop.permute.xlu0 %5928  ;;  %v11589_v43 = vld [vmem:[#allocation2 + $0x4ec] sm:$0xf8]   ;;  %v6507_v1 = vsel %vm3333_vm9, %v6433_v39, %v5931_v59  ;;  %v16402_v11 = vld [vmem:[#allocation92_spill] sm:$0xff]  ;;  %v5887_v59 = vsel %vm4895_vm8, %v5885_v2, %v5886_v23  ;;  %v8311_v39 = vrot.slane %v11591_v51, 2  ;;  %v11596_v23 = vld [vmem:[#allocation2 + $0x4f8] sm:$0xf8]  }
 0x49b   : > { %7178 = vst [vmem:[%s13802_s17 + $0x90] sm:$0xff] %v7146_v32  ;;  %v10716_v54 = vpop.f32.mrf.mxu0  ;;  %8853 = vrot.lane.b32.xlu0 %v8821_v53, %s11877_s11  ;;  %v6505_v28 = vsel %vm3333_vm9, %v6430_v48, %v5929_v5  ;;  %v6718_v53 = vrot.slane %v6347_v6, 3  ;;  %v11603_v48 = vld [vmem:[#allocation2 + $0x1ac] sm:$0xfe]  }
 0x49c   : > { %v9441_v46 = vadd.f32 %v15482_v35, %v9405_v52  ;;  %v10717_v36 = vadd.f32 %v10716_v54, %v10715_v0  ;;  %v11592_v0 = vld [vmem:[#allocation2 + $0x328] ss:$0 sps:$4 sm:$0x33]   ;;  %v6717_v52 = vrot.slane %v6345_v42, 3 }
 0x49d   : > { %v6123_v32 = vpop.permute.xlu1 %6122  ;;  %5710 = vrot.lane.b32.xlu1 %v11590_v44, %s11875_s24 }
 0x49e   : > { %v9473_v55 = vmax.f32 %v9441_v46, 0.0  ;;  %v9406_v40 = vadd.f32 %v10717_v36, %v16402_v11  ;;  %v6121_v4 = vpop.permute.xlu0 %6120  ;;  %v6571_v41 = vsel %vm3382_vm10, %v6507_v1, %v6123_v32  ;;  %v8312_v46 = vrot.slane %v11592_v0, 2  ;;  %v11597_v36 = vld [vmem:[#allocation2 + $0x500] ss:$0 sps:$4 sm:$0x77]   ;;  %v11593_v1 = vld [vmem:[#allocation2 + $0x118] sm:$0xff]  }
 0x49f   : > { %v6569_v31 = vsel %vm3382_vm10, %v6505_v28, %v6121_v4  ;;  %v6721_v15 = vrot.slane %v6571_v41, 3  ;;  %5708 = vrot.lane.b32.xlu0 %v11589_v43, %s11875_s24  ;;  %v6719_v44 = vsel %vm6656_vm13, %v6717_v52, %v6718_v53  ;;  %v11604_v32 = vld [vmem:[#allocation2 + $0x1b4] ss:$0 sps:$4 sm:$0x11]   ;;  %v11598_v4 = vld [vmem:[#allocation2 + $0x39c] sm:$0xf8]  }
 0x4a0   : > { %9505 = vst [vmem:[%s13802_s17 + $0x70] sm:$0xff] %v9473_v55  ;;  %v9442_v13 = vadd.f32 %v15482_v35, %v9406_v40  ;;  %v6720_v61 = vrot.slane %v6569_v31, 3  ;;  %v8313_v28 = vsel %vm3703_vm11, %v8311_v39, %v8312_v46  ;;  %v11599_v41 = vld [vmem:[#allocation2 + $0x3a4] ss:$0 sps:$4 sm:$0x77]   ;;  %v7798_v0 = vrot.slane %v11603_v48, 1 }
 0x4a1   : > { %v7822_v5 = vpop.permute.xlu1 %7821  ;;  %5950 = vrot.lane.b32.xlu1 %v5887_v59, %s11876_s7  ;;  %v11605_v52 = vld [vmem:[#allocation2 + $0x59c] sm:$0xfe]   ;;  %v11606_v53 = vld [vmem:[#allocation2 + $0x5a4] ss:$0 sps:$4 sm:$0x11]   ;;  %v16403_v39 = vld [vmem:[#allocation37_spill] sm:$0xff] }
 0x4a2   : > { %v9474_v54 = vmax.f32 %v9442_v13, 0.0  ;;  %v8430_v42 = vpop.permute.xlu0 %8429  ;;  %v6722_v6 = vsel %vm6656_vm13, %v6720_v61, %v6721_v15  ;;  %v8889_v31 = vsel %vm519_vm7, %v11593_v1, %v7822_v5  ;;  %v7799_v15 = vrot.slane %v11604_v32, 1  ;;  %v11607_v13 = vld [vmem:[#allocation2 + $0x1b4] sm:$0xfc]  }
 0x4a3   : > { %7026 = vmatprep.mubr.bf16.mxu1 %v6722_v6  ;;  %5948 = vrot.lane.b32.xlu0 %v5885_v2, %s11876_s7  ;;  %v11608_v61 = vld [vmem:[#allocation2 + $0x1bc] ss:$0 sps:$4 sm:$0x33]   ;;  %v9017_v59 = vsel %vm519_vm7, %v8313_v28, %v8430_v42  ;;  %v11233_v5 = vld [vmem:[#allocation2 + $0x1e4] ss:$0 sps:$4 sm:$0x77]  }
 0x4a4   : > { %9506 = vst [vmem:[%s13802_s17 + $0x98] sm:$0xff] %v9474_v54  ;;  %v10606_v43 = vpop.f32.mrf.mxu1  ;;  %7027 = vmatmul.mubr.bf16.gmra.mxu1 %v6719_v44  ;;  %v8614_v42 = vrot.slane %v11605_v52, 1  ;;  %v7800_v28 = vsel %vm7752_vm12, %v7798_v0, %v7799_v15  ;;  %v16404_v0 = vld [vmem:[#allocation54_spill] sm:$0xff]  ;;  %v11601_v15 = vld [vmem:[#allocation2 + $0x340] ss:$0 sps:$4 sm:$0x77]  }
 0x4a5   : > { %v8030_v55 = vpop.permute.xlu1 %8029  ;;  %6142 = vrot.lane.b32.xlu1 %v11597_v36, %s11877_s11 }
 0x4a6   : > { %v8638_v11 = vpop.permute.xlu0 %8637  ;;  %v10607_v40 = vpop.f32.mrf.mxu1  ;;  %v8926_v54 = vsel %vm3333_vm9, %v8889_v31, %v8030_v55  ;;  %v11602_v55 = vld [vmem:[#allocation2 + $0x594] sm:$0xff]  }
 0x4a7   : > { %v10608_v51 = vadd.f32 %v10607_v40, %v10606_v43  ;;  %6140 = vrot.lane.b32.xlu0 %v11596_v23, %s11877_s11  ;;  %v9054_v44 = vsel %vm3333_vm9, %v9017_v59, %v8638_v11  ;;  %v8615_v11 = vrot.slane %v11606_v53, 1  ;;  %v8006_v40 = vrot.slane %v11607_v13, 2 }
 0x4a8   : > { %v10609_v2 = vpop.f32.mrf.mxu1  ;;  %v6215_v53 = vsel %vm519_vm7, %v11233_v5, %v16404_v0 }
 0x4a9   : > { %v7079_v46 = vadd.f32 %v10608_v51, %v16403_v39  ;;  %v8142_v6 = vpop.permute.xlu1 %8141  ;;  %5390 = vrot.lane.b32.xlu1 %v11599_v41, %s11877_s11  ;;  %v8007_v51 = vrot.slane %v11608_v61, 2  ;;  %v11609_v41 = vld [vmem:[#allocation2 + $0x5a4] sm:$0xfc]   ;;  %v11610_v39 = vld [vmem:[#allocation2 + $0x5ac] ss:$0 sps:$4 sm:$0x33]  }
 0x4aa   : > { %v8846_v36 = vpop.permute.xlu0 %8845  ;;  %v8968_v48 = vsel %vm3382_vm10, %v8926_v54, %v8142_v6  ;;  %v10610_v43 = vpop.f32.mrf.mxu1 }
 0x4ab   : > { %v7115_v1 = vadd.f32 %v15458_v63, %v7079_v46  ;;  %v10611_v23 = vadd.f32 %v10610_v43, %v10609_v2  ;;  %v9096_v32 = vsel %vm3382_vm10, %v9054_v44, %v8846_v36  ;;  %5388 = vrot.lane.b32.xlu0 %v11598_v4, %s11877_s11  ;;  %v11232_v46 = vld [vmem:[#allocation2 + $0x1dc] sm:$0xf8]   ;;  %v8616_v43 = vsel %vm7752_vm12, %v8614_v42, %v8615_v11 }
 0x4ac   : > { %9354 = vmatprep.mubr.bf16.mxu0 %v9096_v32  ;;  %v11600_v44 = vld [vmem:[#allocation2 + $0x338] sm:$0xf8]   ;;  %v16405_v32 = vld [vmem:[#allocation21_spill] sm:$0xff] }
 0x4ad   : > { %v7147_v31 = vmax.f32 %v7115_v1, 0.0  ;;  %v7080_v59 = vadd.f32 %v10611_v23, %v14675_v21  ;;  %v10718_v54 = vpop.f32.mrf.mxu0  ;;  %9355 = vmatmul.mubr.bf16.gmra.mxu0 %v8968_v48  ;;  %v5695_v2 = vpop.permute.xlu1 %5694  ;;  %7831 = vrot.lane.b32.xlu1 %v7800_v28, %s11875_s24  ;;  %v8008_v21 = vsel %vm3703_vm11, %v8006_v40, %v8007_v51  ;;  %v8822_v1 = vrot.slane %v11609_v41, 2  ;;  %v16409_v51 = vld [vmem:[#allocation94_spill] sm:$0xff]  ;;  %v16410_v11 = vld [vmem:[#allocation95_spill] sm:$0xff] }
 0x4ae   : > { %v5693_v52 = vpop.permute.xlu0 %5692  ;;  %v8823_v23 = vrot.slane %v11610_v39, 2  ;;  %v6212_v28 = vsel %vm519_vm7, %v11232_v46, %v16405_v32  ;;  %v11611_v42 = vld [vmem:[#allocation2 + $0x39c] sm:$0xff]   ;;  %v6439_v39 = vsel %vm519_vm7, %v11601_v15, %v5695_v2 }
 0x4af   : > { %7179 = vst [vmem:[%s13802_s17 + $0xb8] sm:$0xff] %v7147_v31  ;;  %v7116_v4 = vadd.f32 %v15458_v63, %v7080_v59  ;;  %v10719_v6 = vpop.f32.mrf.mxu0  ;;  %8439 = vrot.lane.b32.xlu0 %v11602_v55, %s11875_s24  ;;  %v16406_v31 = vld [vmem:[#allocation61_spill] sm:$0xff]  ;;  %v16407_v59 = vld [vmem:[#allocation71_spill] sm:$0xff]  ;;  %v16408_v55 = vld [vmem:[#allocation104_spill] sm:$0xff] }
 0x4b0   : > { %v10720_v13 = vadd.f32 %v10719_v6, %v10718_v54  ;;  %v6287_v5 = vsel %vm3333_vm9, %v6215_v53, %v16406_v31  ;;  %v6285_v40 = vsel %vm3333_vm9, %v6212_v28, %v16408_v55  ;;  %v8824_v28 = vsel %vm3703_vm11, %v8822_v1, %v8823_v23  ;;  %v11612_v15 = vld [vmem:[#allocation2 + $0x33c] sm:$0xfc]  }
 0x4b1   : > { %v7148_v61 = vmax.f32 %v7116_v4, 0.0  ;;  %v10721_v36 = vpop.f32.mrf.mxu0  ;;  %v5935_v48 = vpop.permute.xlu1 %5934  ;;  %v6351_v4 = vsel %vm3382_vm10, %v6287_v5, %v16409_v51  ;;  %8039 = vrot.lane.b32.xlu1 %v8008_v21, %s11876_s7  ;;  %v6349_v41 = vsel %vm3382_vm10, %v6285_v40, %v16410_v11  ;;  %v16411_v5 = vld [vmem:[#allocation49_spill] sm:$0xff]  ;;  %v8314_v40 = vrot.slane %v11612_v15, 2 }
 0x4b2   : > { %v9407_v54 = vadd.f32 %v10720_v13, %v16407_v59  ;;  %v5933_v6 = vpop.permute.xlu0 %5932  ;;  %v6436_v13 = vsel %vm519_vm7, %v11600_v44, %v5693_v52  ;;  %v6511_v32 = vsel %vm3333_vm9, %v6439_v39, %v5935_v48 }
 0x4b3   : > { %7180 = vst [vmem:[%s13802_s17 + $0xe0] sm:$0xff] %v7148_v61  ;;  %v10722_v0 = vpop.f32.mrf.mxu0  ;;  %8647 = vrot.lane.b32.xlu0 %v8616_v43, %s11876_s7  ;;  %v6509_v31 = vsel %vm3333_vm9, %v6436_v13, %v5933_v6  ;;  %v6724_v43 = vrot.slane %v6351_v4, 3 }
 0x4b4   : > { %v9443_v46 = vadd.f32 %v15482_v35, %v9407_v54  ;;  %v10723_v53 = vadd.f32 %v10722_v0, %v10721_v36  ;;  %v11613_v36 = vld [vmem:[#allocation2 + $0x344] ss:$0 sps:$4 sm:$0x33]   ;;  %v6723_v54 = vrot.slane %v6349_v41, 3  ;;  %v11614_v41 = vld [vmem:[#allocation2 + $0x134] sm:$0xff]  }
 0x4b5   : > { %v6127_v61 = vpop.permute.xlu1 %6126  ;;  %8151 = vrot.lane.b32.xlu1 %v11611_v42, %s11877_s11  ;;  %v8315_v51 = vrot.slane %v11613_v36, 2 }
 0x4b6   : > { %v9475_v21 = vmax.f32 %v9443_v46, 0.0  ;;  %v9408_v59 = vadd.f32 %v10723_v53, %v16411_v5  ;;  %v6125_v55 = vpop.permute.xlu0 %6124  ;;  %v6575_v2 = vsel %vm3382_vm10, %v6511_v32, %v6127_v61  ;;  %v6725_v4 = vsel %vm6656_vm13, %v6723_v54, %v6724_v43  ;;  %v16412_v5 = vld [vmem:[#allocation113_spill] sm:$0xff] }
 0x4b7   : > { %v6573_v52 = vsel %vm3382_vm10, %v6509_v31, %v6125_v55  ;;  %v6727_v44 = vrot.slane %v6575_v2, 3  ;;  %8855 = vrot.lane.b32.xlu0 %v8824_v28, %s11877_s11  ;;  %v8316_v46 = vsel %vm3703_vm11, %v8314_v40, %v8315_v51 }
 0x4b8   : > { %9507 = vst [vmem:[%s13802_s17 + $0xc0] sm:$0xff] %v9475_v21  ;;  %v9444_v48 = vadd.f32 %v15482_v35, %v9408_v59  ;;  %v6726_v1 = vrot.slane %v6573_v52, 3 }
 0x4b9   : > { %v7824_v23 = vpop.permute.xlu1 %7823 }
 0x4ba   : > { %v9476_v6 = vmax.f32 %v9444_v48, 0.0  ;;  %v8432_v0 = vpop.permute.xlu0 %8431  ;;  %v6728_v11 = vsel %vm6656_vm13, %v6726_v1, %v6727_v44  ;;  %v8892_v61 = vsel %vm519_vm7, %v11614_v41, %v7824_v23  ;;  %v11238_v48 = vld [vmem:[#allocation2 + $0x200] ss:$0 sps:$4 sm:$0x77]  }
 0x4bb   : > { %7034 = vmatprep.mubr.bf16.mxu1 %v6728_v11  ;;  %v9020_v21 = vsel %vm519_vm7, %v8316_v46, %v8432_v0  ;;  %v16413_v23 = vld [vmem:[#allocation115_spill] sm:$0xff] }
 0x4bc   : > { %9508 = vst [vmem:[%s13802_s17 + $0xe8] sm:$0xff] %v9476_v6  ;;  %v10612_v39 = vpop.f32.mrf.mxu1  ;;  %7035 = vmatmul.mubr.bf16.gmra.mxu1 %v6725_v4  ;;  %v11237_v0 = vld [vmem:[#allocation2 + $0x1f8] sm:$0xf8]  }
 0x4bd   : > { %v8032_v42 = vpop.permute.xlu1 %8031  ;;  %v16414_v46 = vld [vmem:[#allocation79_spill] sm:$0xff] }
 0x4be   : > { %v8640_v53 = vpop.permute.xlu0 %8639  ;;  %v10613_v13 = vpop.f32.mrf.mxu1  ;;  %v8928_v31 = vsel %vm3333_vm9, %v8892_v61, %v8032_v42 }
 0x4bf   : > { %v10614_v32 = vadd.f32 %v10613_v13, %v10612_v39  ;;  %v9056_v2 = vsel %vm3333_vm9, %v9020_v21, %v8640_v53  ;;  %v11616_v39 = vld [vmem:[#allocation2 + $0x35c] ss:$0 sps:$4 sm:$0x77]   ;;  %v6221_v53 = vsel %vm519_vm7, %v11238_v48, %v16414_v46  ;;  %v16415_v21 = vld [vmem:[#allocation55_spill] sm:$0xff] }
 0x4c0   : > { %v10615_v28 = vpop.f32.mrf.mxu1  ;;  %v16420_v48 = vld [vmem:[#allocation39_spill] sm:$0xff] }
 0x4c1   : > { %v7081_v59 = vadd.f32 %v10614_v32, %v16412_v5  ;;  %v8144_v55 = vpop.permute.xlu1 %8143  ;;  %v11615_v32 = vld [vmem:[#allocation2 + $0x354] sm:$0xf8]   ;;  %v16416_v5 = vld [vmem:[#allocation28_spill] sm:$0xff] }
 0x4c2   : > { %v8848_v15 = vpop.permute.xlu0 %8847  ;;  %v8971_v36 = vsel %vm3382_vm10, %v8928_v31, %v8144_v55  ;;  %v10616_v54 = vpop.f32.mrf.mxu1  ;;  %v6218_v31 = vsel %vm519_vm7, %v11237_v0, %v16415_v21  ;;  %v16417_v55 = vld [vmem:[#allocation114_spill] sm:$0xff] }
 0x4c3   : > { %v7117_v43 = vadd.f32 %v15458_v63, %v7081_v59  ;;  %v10617_v52 = vadd.f32 %v10616_v54, %v10615_v28  ;;  %v9099_v44 = vsel %vm3382_vm10, %v9056_v2, %v8848_v15  ;;  %v6291_v59 = vsel %vm3333_vm9, %v6221_v53, %v16416_v5  ;;  %v11618_v5 = vld [vmem:[#allocation2 + $0x360] ss:$0 sps:$4 sm:$0x33]  }
 0x4c4   : > { %9362 = vmatprep.mubr.bf16.mxu0 %v9099_v44 }
 0x4c5   : > { %v7149_v1 = vmax.f32 %v7117_v43, 0.0  ;;  %v7082_v6 = vadd.f32 %v10617_v52, %v16413_v23  ;;  %v10724_v40 = vpop.f32.mrf.mxu0  ;;  %9363 = vmatmul.mubr.bf16.gmra.mxu0 %v8971_v36  ;;  %v5699_v51 = vpop.permute.xlu1 %5698  ;;  %v16418_v36 = vld [vmem:[#allocation29_spill] sm:$0xff]  ;;  %v16419_v43 = vld [vmem:[#allocation38_spill] sm:$0xff] }
 0x4c6   : > { %v5697_v11 = vpop.permute.xlu0 %5696  ;;  %v6289_v54 = vsel %vm3333_vm9, %v6218_v31, %v16418_v36  ;;  %v6355_v52 = vsel %vm3382_vm10, %v6291_v59, %v16419_v43  ;;  %v6445_v23 = vsel %vm519_vm7, %v11616_v39, %v5699_v51  ;;  %v11617_v31 = vld [vmem:[#allocation2 + $0x358] sm:$0xfc]   ;;  %v11619_v43 = vld [vmem:[#allocation2 + $0x150] sm:$0xff]  }
 0x4c7   : > { %7181 = vst [vmem:[%s13802_s17 + $0x108] sm:$0xff] %v7149_v1  ;;  %v7118_v4 = vadd.f32 %v15458_v63, %v7082_v6  ;;  %v10725_v41 = vpop.f32.mrf.mxu0  ;;  %v6353_v1 = vsel %vm3382_vm10, %v6289_v54, %v16420_v48  ;;  %v6442_v0 = vsel %vm519_vm7, %v11615_v32, %v5697_v11  ;;  %v6730_v39 = vrot.slane %v6355_v52, 3 }
 0x4c8   : > { %v10726_v42 = vadd.f32 %v10725_v41, %v10724_v40  ;;  %v6729_v51 = vrot.slane %v6353_v1, 3 }
 0x4c9   : > { %v7150_v13 = vmax.f32 %v7118_v4, 0.0  ;;  %v10727_v61 = vpop.f32.mrf.mxu0  ;;  %v5939_v28 = vpop.permute.xlu1 %5938 }
 0x4ca   : > { %v9409_v2 = vadd.f32 %v10726_v42, %v16417_v55  ;;  %v5937_v15 = vpop.permute.xlu0 %5936  ;;  %v6515_v4 = vsel %vm3333_vm9, %v6445_v23, %v5939_v28  ;;  %v6731_v54 = vsel %vm6656_vm13, %v6729_v51, %v6730_v39 }
 0x4cb   : > { %7182 = vst [vmem:[%s13802_s17 + $0x130] sm:$0xff] %v7150_v13  ;;  %v10728_v44 = vpop.f32.mrf.mxu0  ;;  %v6513_v46 = vsel %vm3333_vm9, %v6442_v0, %v5937_v15  ;;  %v8318_v15 = vrot.slane %v11618_v5, 2 }
 0x4cc   : > { %v9445_v6 = vadd.f32 %v15482_v35, %v9409_v2  ;;  %v10729_v40 = vadd.f32 %v10728_v44, %v10727_v61  ;;  %v8317_v2 = vrot.slane %v11617_v31, 2 }
 0x4cd   : > { %v6131_v41 = vpop.permute.xlu1 %6130 }
 0x4ce   : > { %v9477_v42 = vmax.f32 %v9445_v6, 0.0  ;;  %v9410_v53 = vadd.f32 %v10729_v40, %v14760_v20  ;;  %v6129_v13 = vpop.permute.xlu0 %6128  ;;  %v6579_v21 = vsel %vm3382_vm10, %v6515_v4, %v6131_v41  ;;  %v8319_v48 = vsel %vm3703_vm11, %v8317_v2, %v8318_v15 }
 0x4cf   : > { %v6577_v61 = vsel %vm3382_vm10, %v6513_v46, %v6129_v13  ;;  %v6733_v59 = vrot.slane %v6579_v21, 3 }
 0x4d0   : > { %9509 = vst [vmem:[%s13802_s17 + $0x110] sm:$0xff] %v9477_v42  ;;  %v9446_v11 = vadd.f32 %v15482_v35, %v9410_v53  ;;  %v6732_v32 = vrot.slane %v6577_v61, 3  ;;  %v11242_v61 = vld [vmem:[#allocation2 + $0x21c] ss:$0 sps:$4 sm:$0x77]  }
 0x4d1   : > { %v7826_v28 = vpop.permute.xlu1 %7825 }
 0x4d2   : > { %v9478_v55 = vmax.f32 %v9446_v11, 0.0  ;;  %v8434_v20 = vpop.permute.xlu0 %8433  ;;  %v6734_v36 = vsel %vm6656_vm13, %v6732_v32, %v6733_v59  ;;  %v8895_v40 = vsel %vm519_vm7, %v11619_v43, %v7826_v28  ;;  %v11241_v28 = vld [vmem:[#allocation2 + $0x214] sm:$0xf8]  }
 0x4d3   : > { %7042 = vmatprep.mubr.bf16.mxu1 %v6734_v36  ;;  %v9023_v4 = vsel %vm519_vm7, %v8319_v48, %v8434_v20  ;;  %v11621_v20 = vld [vmem:[#allocation2 + $0x378] ss:$0 sps:$4 sm:$0x77]  }
 0x4d4   : > { %9510 = vst [vmem:[%s13802_s17 + $0x138] sm:$0xff] %v9478_v55  ;;  %v10618_v52 = vpop.f32.mrf.mxu1  ;;  %7043 = vmatmul.mubr.bf16.gmra.mxu1 %v6731_v54  ;;  %v16421_v54 = vld [vmem:[#allocation78_spill] sm:$0xff] }
 0x4d5   : > { %v8034_v44 = vpop.permute.xlu1 %8033  ;;  %v6227_v43 = vsel %vm519_vm7, %v11242_v61, %v16421_v54  ;;  %v11623_v54 = vld [vmem:[#allocation2 + $0x37c] ss:$0 sps:$4 sm:$0x33]  }
 0x4d6   : > { %v8642_v1 = vpop.permute.xlu0 %8641  ;;  %v10619_v23 = vpop.f32.mrf.mxu1  ;;  %v8930_v41 = vsel %vm3333_vm9, %v8895_v40, %v8034_v44  ;;  %v11620_v44 = vld [vmem:[#allocation2 + $0x370] sm:$0xf8]  }
 0x4d7   : > { %v10620_v6 = vadd.f32 %v10619_v23, %v10618_v52  ;;  %v9058_v53 = vsel %vm3333_vm9, %v9023_v4, %v8642_v1 }
 0x4d8   : > { %v10621_v0 = vpop.f32.mrf.mxu1 }
 0x4d9   : > { %v7083_v42 = vadd.f32 %v10620_v6, %v14780_v33  ;;  %v8146_v46 = vpop.permute.xlu1 %8145  ;;  %v16423_v6 = vld [vmem:[#allocation62_spill] sm:$0xff] }
 0x4da   : > { %v8850_v13 = vpop.permute.xlu0 %8849  ;;  %v8974_v21 = vsel %vm3382_vm10, %v8930_v41, %v8146_v46  ;;  %v10622_v31 = vpop.f32.mrf.mxu1  ;;  %v6295_v40 = vsel %vm3333_vm9, %v6227_v43, %v16423_v6  ;;  %v16424_v41 = vld [vmem:[#allocation63_spill] sm:$0xff]  ;;  %v16425_v46 = vld [vmem:[#allocation72_spill] sm:$0xff] }
 0x4db   : > { %v7119_v5 = vadd.f32 %v15458_v63, %v7083_v42  ;;  %v10623_v51 = vadd.f32 %v10622_v31, %v10621_v0  ;;  %v9102_v39 = vsel %vm3382_vm10, %v9058_v53, %v8850_v13  ;;  %v6359_v53 = vsel %vm3382_vm10, %v6295_v40, %v16425_v46 }
 0x4dc   : > { %9370 = vmatprep.mubr.bf16.mxu0 %v9102_v39 }
 0x4dd   : > { %v7151_v59 = vmax.f32 %v7119_v5, 0.0  ;;  %v7084_v11 = vadd.f32 %v10623_v51, %v14812_v30  ;;  %v10730_v32 = vpop.f32.mrf.mxu0  ;;  %9371 = vmatmul.mubr.bf16.gmra.mxu0 %v8974_v21  ;;  %v5703_v33 = vpop.permute.xlu1 %5702  ;;  %v16422_v30 = vld [vmem:[#allocation100_spill] sm:$0xff]  ;;  %v16426_v21 = vld [vmem:[#allocation73_spill] sm:$0xff] }
 0x4de   : > { %v5701_v55 = vpop.permute.xlu0 %5700  ;;  %v6224_v23 = vsel %vm519_vm7, %v11241_v28, %v16422_v30  ;;  %v6451_v5 = vsel %vm519_vm7, %v11621_v20, %v5703_v33  ;;  %v6736_v20 = vrot.slane %v6359_v53, 3 }
 0x4df   : > { %7183 = vst [vmem:[%s13802_s17 + $0x158] sm:$0xff] %v7151_v59  ;;  %v7120_v2 = vadd.f32 %v15458_v63, %v7084_v11  ;;  %v10731_v15 = vpop.f32.mrf.mxu0  ;;  %v6293_v42 = vsel %vm3333_vm9, %v6224_v23, %v16424_v41  ;;  %v8321_v23 = vrot.slane %v11623_v54, 2 }
 0x4e0   : > { %v10732_v36 = vadd.f32 %v10731_v15, %v10730_v32  ;;  %v6357_v31 = vsel %vm3382_vm10, %v6293_v42, %v16426_v21 }
 0x4e1   : > { %v7152_v52 = vmax.f32 %v7120_v2, 0.0  ;;  %v10733_v48 = vpop.f32.mrf.mxu0  ;;  %v5943_v1 = vpop.permute.xlu1 %5942  ;;  %v6735_v33 = vrot.slane %v6357_v31, 3 }
 0x4e2   : > { %v9411_v0 = vadd.f32 %v10732_v36, %v14794_v29  ;;  %v5941_v4 = vpop.permute.xlu0 %5940  ;;  %v6448_v29 = vsel %vm519_vm7, %v11620_v44, %v5701_v55  ;;  %v6519_v61 = vsel %vm3333_vm9, %v6451_v5, %v5943_v1  ;;  %v11622_v36 = vld [vmem:[#allocation2 + $0x374] sm:$0xfc]  }
 0x4e3   : > { %7184 = vst [vmem:[%s13802_s17 + $0x180] sm:$0xff] %v7152_v52  ;;  %v10734_v13 = vpop.f32.mrf.mxu0  ;;  %v6517_v32 = vsel %vm3333_vm9, %v6448_v29, %v5941_v4  ;;  %v8320_v30 = vrot.slane %v11622_v36, 2  ;;  %v6737_v40 = vsel %vm6656_vm13, %v6735_v33, %v6736_v20 }
 0x4e4   : > { %v9447_v51 = vadd.f32 %v15482_v35, %v9411_v0  ;;  %v10735_v39 = vadd.f32 %v10734_v13, %v10733_v48  ;;  %v11624_v0 = vld [vmem:[#allocation2 + $0x16c] sm:$0xff]  }
 0x4e5   : > { %v6135_v59 = vpop.permute.xlu1 %6134  ;;  %v8322_v42 = vsel %vm3703_vm11, %v8320_v30, %v8321_v23 }
 0x4e6   : > { %v9479_v11 = vmax.f32 %v9447_v51, 0.0  ;;  %v9412_v28 = vadd.f32 %v10735_v39, %v14825_v10  ;;  %v6133_v2 = vpop.permute.xlu0 %6132  ;;  %v6583_v15 = vsel %vm3382_vm10, %v6519_v61, %v6135_v59 }
 0x4e7   : > { %v6581_v43 = vsel %vm3382_vm10, %v6517_v32, %v6133_v2  ;;  %v6739_v52 = vrot.slane %v6583_v15, 3 }
 0x4e8   : > { %9511 = vst [vmem:[%s13802_s17 + $0x160] sm:$0xff] %v9479_v11  ;;  %v9448_v55 = vadd.f32 %v15482_v35, %v9412_v28  ;;  %v6738_v44 = vrot.slane %v6581_v43, 3 }
 0x4e9   : > { %v7828_v48 = vpop.permute.xlu1 %7827 }
 0x4ea   : > { %v9480_v1 = vmax.f32 %v9448_v55, 0.0  ;;  %v8436_v10 = vpop.permute.xlu0 %8435  ;;  %v6740_v6 = vsel %vm6656_vm13, %v6738_v44, %v6739_v52  ;;  %v8898_v21 = vsel %vm519_vm7, %v11624_v0, %v7828_v48  ;;  %v11626_v55 = vld [vmem:[#allocation2 + $0x394] ss:$0 sps:$4 sm:$0x77]  }
 0x4eb   : > { %7050 = vmatprep.mubr.bf16.mxu1 %v6740_v6  ;;  %v9026_v5 = vsel %vm519_vm7, %v8322_v42, %v8436_v10  ;;  %v11246_v42 = vld [vmem:[#allocation2 + $0x230] sm:$0xf8]  }
 0x4ec   : > { %9512 = vst [vmem:[%s13802_s17 + $0x188] sm:$0xff] %v9480_v1  ;;  %v10624_v4 = vpop.f32.mrf.mxu1  ;;  %7051 = vmatmul.mubr.bf16.gmra.mxu1 %v6737_v40  ;;  %v11625_v1 = vld [vmem:[#allocation2 + $0x38c] sm:$0xf8]   ;;  %v11247_v40 = vld [vmem:[#allocation2 + $0x238] ss:$0 sps:$4 sm:$0x77]  }
 0x4ed   : > { %v8036_v41 = vpop.permute.xlu1 %8035 }
 0x4ee   : > { %v8644_v46 = vpop.permute.xlu0 %8643  ;;  %v10625_v53 = vpop.f32.mrf.mxu1  ;;  %v8932_v51 = vsel %vm3333_vm9, %v8898_v21, %v8036_v41 }
 0x4ef   : > { %v10626_v13 = vadd.f32 %v10625_v53, %v10624_v4  ;;  %v9060_v61 = vsel %vm3333_vm9, %v9026_v5, %v8644_v46 }
 0x4f0   : > { %v10627_v31 = vpop.f32.mrf.mxu1 }
 0x4f1   : > { %v7085_v39 = vadd.f32 %v10626_v13, %v14855_v26  ;;  %v8148_v29 = vpop.permute.xlu1 %8147 }
 0x4f2   : > { %v8852_v59 = vpop.permute.xlu0 %8851  ;;  %v8977_v11 = vsel %vm3382_vm10, %v8932_v51, %v8148_v29  ;;  %v10628_v32 = vpop.f32.mrf.mxu1 }
 0x4f3   : > { %v7121_v28 = vadd.f32 %v15458_v63, %v7085_v39  ;;  %v10629_v2 = vadd.f32 %v10628_v32, %v10627_v31  ;;  %v9105_v15 = vsel %vm3382_vm10, %v9060_v61, %v8852_v59  ;;  %v16427_v61 = vld [vmem:[#allocation22_spill] sm:$0xff] }
 0x4f4   : > { %9378 = vmatprep.mubr.bf16.mxu0 %v9105_v15  ;;  %v6233_v59 = vsel %vm519_vm7, %v11247_v40, %v16427_v61  ;;  %v16429_v15 = vld [vmem:[#allocation87_spill] sm:$0xff] }
 0x4f5   : > { %v7153_v36 = vmax.f32 %v7121_v28, 0.0  ;;  %v7086_v54 = vadd.f32 %v10629_v2, %v14887_v7  ;;  %v10736_v33 = vpop.f32.mrf.mxu0  ;;  %9379 = vmatmul.mubr.bf16.gmra.mxu0 %v8977_v11  ;;  %v5707_v26 = vpop.permute.xlu1 %5706  ;;  %v16428_v28 = vld [vmem:[#allocation23_spill] sm:$0xff] }
 0x4f6   : > { %v5705_v20 = vpop.permute.xlu0 %5704  ;;  %v6457_v0 = vsel %vm519_vm7, %v11626_v55, %v5707_v26  ;;  %v6230_v2 = vsel %vm519_vm7, %v11246_v42, %v16428_v28  ;;  %v11627_v55 = vld [vmem:[#allocation2 + $0x390] sm:$0xfc]   ;;  %v11629_v42 = vld [vmem:[#allocation2 + $0x188] sm:$0xff]  }
 0x4f7   : > { %7185 = vst [vmem:[%s13802_s17 + $0x1a8] sm:$0xff] %v7153_v36  ;;  %v7122_v43 = vadd.f32 %v15458_v63, %v7086_v54  ;;  %v10737_v52 = vpop.f32.mrf.mxu0  ;;  %v6454_v46 = vsel %vm519_vm7, %v11625_v1, %v5705_v20  ;;  %v16430_v54 = vld [vmem:[#allocation106_spill] sm:$0xff] }
 0x4f8   : > { %v10738_v44 = vadd.f32 %v10737_v52, %v10736_v33  ;;  %v6297_v33 = vsel %vm3333_vm9, %v6230_v2, %v16430_v54 }
 0x4f9   : > { %v7154_v48 = vmax.f32 %v7122_v43, 0.0  ;;  %v10739_v30 = vpop.f32.mrf.mxu0  ;;  %v5947_v23 = vpop.permute.xlu1 %5946 }
 0x4fa   : > { %v9413_v10 = vadd.f32 %v10738_v44, %v14867_v22  ;;  %v5945_v6 = vpop.permute.xlu0 %5944  ;;  %v6523_v53 = vsel %vm3333_vm9, %v6457_v0, %v5947_v23  ;;  %v11628_v44 = vld [vmem:[#allocation2 + $0x398] ss:$0 sps:$4 sm:$0x33]  }
 0x4fb   : > { %7186 = vst [vmem:[%s13802_s17 + $0x1d0] sm:$0xff] %v7154_v48  ;;  %v10740_v7 = vpop.f32.mrf.mxu0  ;;  %v6521_v31 = vsel %vm3333_vm9, %v6454_v46, %v5945_v6  ;;  %v8323_v6 = vrot.slane %v11627_v55, 2 }
 0x4fc   : > { %v9449_v4 = vadd.f32 %v15482_v35, %v9413_v10  ;;  %v10741_v41 = vadd.f32 %v10740_v7, %v10739_v30  ;;  %v8324_v7 = vrot.slane %v11628_v44, 2 }
 0x4fd   : > { %v6139_v13 = vpop.permute.xlu1 %6138 }
 0x4fe   : > { %v9481_v21 = vmax.f32 %v9449_v4, 0.0  ;;  %v9414_v22 = vadd.f32 %v10741_v41, %v14901_v47  ;;  %v6137_v5 = vpop.permute.xlu0 %6136  ;;  %v6587_v51 = vsel %vm3382_vm10, %v6523_v53, %v6139_v13  ;;  %v6299_v47 = vsel %vm3333_vm9, %v6233_v59, %v16429_v15 }
 0x4ff   : > { %v6585_v39 = vsel %vm3382_vm10, %v6521_v31, %v6137_v5  ;;  %v6745_v29 = vrot.slane %v6587_v51, 3 }
 0x500   : > { %9513 = vst [vmem:[%s13802_s17 + $0x1b0] sm:$0xff] %v9481_v21  ;;  %v9450_v11 = vadd.f32 %v15482_v35, %v9414_v22  ;;  %v6744_v32 = vrot.slane %v6585_v39, 3  ;;  %v8325_v21 = vsel %vm3703_vm11, %v8323_v6, %v8324_v7 }
 0x501   : > { %v5387_v36 = vpop.permute.xlu1 %5386 }
 0x502   : > { %v9482_v26 = vmax.f32 %v9450_v11, 0.0  ;;  %v5385_v20 = vpop.permute.xlu0 %5384  ;;  %v6363_v43 = vsel %vm3382_vm10, %v6299_v47, %v5387_v36  ;;  %v6746_v52 = vsel %vm6656_vm13, %v6744_v32, %v6745_v29 }
 0x503   : > { %v6361_v48 = vsel %vm3382_vm10, %v6297_v33, %v5385_v20  ;;  %v6742_v1 = vrot.slane %v6363_v43, 3  ;;  %7058 = vmatprep.mubr.bf16.mxu1 %v6746_v52 }
 0x504   : > { %9514 = vst [vmem:[%s13802_s17 + $0x1d8] sm:$0xff] %v9482_v26  ;;  %v6741_v30 = vrot.slane %v6361_v48, 3  ;;  %v10630_v23 = vpop.f32.mrf.mxu1  ;;  %v11631_v48 = vld [vmem:[#allocation2 + $0x3b0] ss:$0 sps:$4 sm:$0x77]  }
 0x505   : > { %v7830_v10 = vpop.permute.xlu1 %7829 }
 0x506   : > { %v8438_v40 = vpop.permute.xlu0 %8437  ;;  %v10631_v0 = vpop.f32.mrf.mxu1  ;;  %v6743_v4 = vsel %vm6656_vm13, %v6741_v30, %v6742_v1  ;;  %v8901_v39 = vsel %vm519_vm7, %v11629_v42, %v7830_v10  ;;  %v11630_v30 = vld [vmem:[#allocation2 + $0x3a8] sm:$0xf8]  }
 0x507   : > { %v10632_v41 = vadd.f32 %v10631_v0, %v10630_v23  ;;  %7059 = vmatmul.mubr.bf16.gmra.mxu1 %v6743_v4  ;;  %v9029_v29 = vsel %vm519_vm7, %v8325_v21, %v8438_v40  ;;  %v11251_v40 = vld [vmem:[#allocation2 + $0x254] ss:$0 sps:$4 sm:$0x77]   ;;  %v11250_v4 = vld [vmem:[#allocation2 + $0x24c] sm:$0xf8]  }
 0x508   : > { %v10633_v46 = vpop.f32.mrf.mxu1 }
 0x509   : > { %v7087_v53 = vadd.f32 %v10632_v41, %v14919_v14  ;;  %v8038_v13 = vpop.permute.xlu1 %8037 }
 0x50a   : > { %v8646_v31 = vpop.permute.xlu0 %8645  ;;  %v10634_v22 = vpop.f32.mrf.mxu1  ;;  %v8934_v59 = vsel %vm3333_vm9, %v8901_v39, %v8038_v13 }
 0x50b   : > { %v7123_v5 = vadd.f32 %v15458_v63, %v7087_v53  ;;  %v10635_v51 = vadd.f32 %v10634_v22, %v10633_v46  ;;  %v9062_v28 = vsel %vm3333_vm9, %v9029_v29, %v8646_v31 }
 0x50d   : > { %v7155_v61 = vmax.f32 %v7123_v5, 0.0  ;;  %v7088_v11 = vadd.f32 %v10635_v51, %v14962_v12  ;;  %v10742_v32 = vpop.f32.mrf.mxu0  ;;  %v8150_v14 = vpop.permute.xlu1 %8149  ;;  %v16431_v5 = vld [vmem:[#allocation41_spill] sm:$0xff] }
 0x50e   : > { %v8854_v2 = vpop.permute.xlu0 %8853  ;;  %v8980_v15 = vsel %vm3382_vm10, %v8934_v59, %v8150_v14  ;;  %v6239_v51 = vsel %vm519_vm7, %v11251_v40, %v16431_v5 }
 0x50f   : > { %7187 = vst [vmem:[%s13802_s17 + $0x1f8] sm:$0xff] %v7155_v61  ;;  %v7124_v47 = vadd.f32 %v15458_v63, %v7088_v11  ;;  %v10743_v36 = vpop.f32.mrf.mxu0  ;;  %v9108_v54 = vsel %vm3382_vm10, %v9062_v28, %v8854_v2  ;;  %v16432_v61 = vld [vmem:[#allocation56_spill] sm:$0xff]  ;;  %v16433_v11 = vld [vmem:[#allocation30_spill] sm:$0xff]  ;;  %v16434_v28 = vld [vmem:[#allocation31_spill] sm:$0xff] }
 0x510   : > { %v10744_v33 = vadd.f32 %v10743_v36, %v10742_v32  ;;  %9386 = vmatprep.mubr.bf16.mxu0 %v9108_v54  ;;  %v6236_v59 = vsel %vm519_vm7, %v11250_v4, %v16432_v61  ;;  %v6303_v32 = vsel %vm3333_vm9, %v6239_v51, %v16433_v11 }
 0x511   : > { %v7156_v26 = vmax.f32 %v7124_v47, 0.0  ;;  %v10745_v20 = vpop.f32.mrf.mxu0  ;;  %9387 = vmatmul.mubr.bf16.gmra.mxu0 %v8980_v15  ;;  %v5711_v12 = vpop.permute.xlu1 %5710  ;;  %v6301_v2 = vsel %vm3333_vm9, %v6236_v59, %v16434_v28 }
 0x512   : > { %v9415_v43 = vadd.f32 %v10744_v33, %v14932_v18  ;;  %v5709_v52 = vpop.permute.xlu0 %5708  ;;  %v6463_v0 = vsel %vm519_vm7, %v11631_v48, %v5711_v12  ;;  %v11632_v33 = vld [vmem:[#allocation2 + $0x3ac] sm:$0xfc]  }
 0x513   : > { %7188 = vst [vmem:[%s13802_s17 + $0x220] sm:$0xff] %v7156_v26  ;;  %v10746_v55 = vpop.f32.mrf.mxu0  ;;  %v6460_v41 = vsel %vm519_vm7, %v11630_v30, %v5709_v52  ;;  %v11633_v26 = vld [vmem:[#allocation2 + $0x3b4] ss:$0 sps:$4 sm:$0x33]  }
 0x514   : > { %v9451_v44 = vadd.f32 %v15482_v35, %v9415_v43  ;;  %v10747_v1 = vadd.f32 %v10746_v55, %v10745_v20  ;;  %v8327_v30 = vrot.slane %v11633_v26, 2 }
 0x515   : > { %v5951_v23 = vpop.permute.xlu1 %5950 }
 0x516   : > { %v9483_v10 = vmax.f32 %v9451_v44, 0.0  ;;  %v9416_v6 = vadd.f32 %v10747_v1, %v14974_v57  ;;  %v5949_v7 = vpop.permute.xlu0 %5948  ;;  %v6527_v42 = vsel %vm3333_vm9, %v6463_v0, %v5951_v23  ;;  %v8326_v1 = vrot.slane %v11632_v33, 2  ;;  %v11634_v0 = vld [vmem:[#allocation2 + $0x1a4] sm:$0xff]  }
 0x517   : > { %v6525_v13 = vsel %vm3333_vm9, %v6460_v41, %v5949_v7 }
 0x518   : > { %9515 = vst [vmem:[%s13802_s17 + $0x200] sm:$0xff] %v9483_v10  ;;  %v9452_v18 = vadd.f32 %v15482_v35, %v9416_v6 }
 0x519   : > { %v6143_v46 = vpop.permute.xlu1 %6142 }
 0x51a   : > { %v9484_v53 = vmax.f32 %v9452_v18, 0.0  ;;  %v6141_v21 = vpop.permute.xlu0 %6140  ;;  %v6591_v57 = vsel %vm3382_vm10, %v6527_v42, %v6143_v46 }
 0x51b   : > { %v6589_v31 = vsel %vm3382_vm10, %v6525_v13, %v6141_v21  ;;  %v6751_v22 = vrot.slane %v6591_v57, 3 }
 0x51c   : > { %9516 = vst [vmem:[%s13802_s17 + $0x228] sm:$0xff] %v9484_v53  ;;  %v6750_v39 = vrot.slane %v6589_v31, 3  ;;  %v10636_v29 = vpop.f32.mrf.mxu1 }
 0x51d   : > { %v5391_v14 = vpop.permute.xlu1 %5390 }
 0x51e   : > { %v5389_v15 = vpop.permute.xlu0 %5388  ;;  %v6367_v47 = vsel %vm3382_vm10, %v6303_v32, %v5391_v14  ;;  %v10637_v36 = vpop.f32.mrf.mxu1  ;;  %v6752_v54 = vsel %vm6656_vm13, %v6750_v39, %v6751_v22 }
 0x51f   : > { %v6365_v20 = vsel %vm3382_vm10, %v6301_v2, %v5389_v15  ;;  %v6748_v12 = vrot.slane %v6367_v47, 3  ;;  %v10638_v43 = vadd.f32 %v10637_v36, %v10636_v29  ;;  %7066 = vmatprep.mubr.bf16.mxu1 %v6752_v54 }
 0x520   : > { %v6747_v52 = vrot.slane %v6365_v20, 3  ;;  %v10639_v55 = vpop.f32.mrf.mxu1 }
 0x521   : > { %v7089_v44 = vadd.f32 %v10638_v43, %v14992_v58  ;;  %v7832_v48 = vpop.permute.xlu1 %7831  ;;  %v8328_v58 = vsel %vm3703_vm11, %v8326_v1, %v8327_v30 }
 0x522   : > { %v8440_v23 = vpop.permute.xlu0 %8439  ;;  %v10640_v10 = vpop.f32.mrf.mxu1  ;;  %v6749_v6 = vsel %vm6656_vm13, %v6747_v52, %v6748_v12  ;;  %v8904_v21 = vsel %vm519_vm7, %v11634_v0, %v7832_v48 }
 0x523   : > { %v7125_v7 = vadd.f32 %v15458_v63, %v7089_v44  ;;  %v10641_v40 = vadd.f32 %v10640_v10, %v10639_v55  ;;  %7067 = vmatmul.mubr.bf16.gmra.mxu1 %v6749_v6  ;;  %v9032_v31 = vsel %vm519_vm7, %v8328_v58, %v8440_v23 }
 0x525   : > { %v7157_v18 = vmax.f32 %v7125_v7, 0.0  ;;  %v7090_v4 = vadd.f32 %v10641_v40, %v15019_v34  ;;  %v10748_v41 = vpop.f32.mrf.mxu0  ;;  %v8040_v42 = vpop.permute.xlu1 %8039 }
 0x526   : > { %v8648_v46 = vpop.permute.xlu0 %8647  ;;  %v8936_v5 = vsel %vm3333_vm9, %v8904_v21, %v8040_v42 }
 0x527   : > { %7189 = vst [vmem:[%s13802_s17 + $0x248] sm:$0xff] %v7157_v18  ;;  %v7126_v53 = vadd.f32 %v15458_v63, %v7090_v4  ;;  %v10749_v13 = vpop.f32.mrf.mxu0  ;;  %v9064_v39 = vsel %vm3333_vm9, %v9032_v31, %v8648_v46 }
 0x528   : > { %v10750_v57 = vadd.f32 %v10749_v13, %v10748_v41 }
 0x529   : > { %v7158_v22 = vmax.f32 %v7126_v53, 0.0  ;;  %v10751_v34 = vpop.f32.mrf.mxu0  ;;  %v8152_v51 = vpop.permute.xlu1 %8151 }
 0x52a   : > { %v9417_v29 = vadd.f32 %v10750_v57, %v15005_v56  ;;  %v8856_v61 = vpop.permute.xlu0 %8855  ;;  %v8983_v59 = vsel %vm3382_vm10, %v8936_v5, %v8152_v51 }
 0x52b   : > { %7190 = vst [vmem:[%s13802_s17 + $0x270] sm:$0xff] %v7158_v22  ;;  %v10752_v11 = vpop.f32.mrf.mxu0  ;;  %v9111_v32 = vsel %vm3382_vm10, %v9064_v39, %v8856_v61 }
 0x52c   : > { %v9453_v14 = vadd.f32 %v15482_v35, %v9417_v29  ;;  %v10753_v28 = vadd.f32 %v10752_v11, %v10751_v34  ;;  %9394 = vmatprep.mubr.bf16.mxu0 %v9111_v32 }
 0x52d   : > { %9395 = vmatmul.mubr.bf16.gmra.mxu0 %v8983_v59 }
 0x52e   : > { %v9485_v2 = vmax.f32 %v9453_v14, 0.0  ;;  %v9418_v15 = vadd.f32 %v10753_v28, %v15040_v3 }
 0x530   : > { %9517 = vst [vmem:[%s13802_s17 + $0x250] sm:$0xff] %v9485_v2  ;;  %v9454_v47 = vadd.f32 %v15482_v35, %v9418_v15 }
 0x532   : > { %v9486_v56 = vmax.f32 %v9454_v47, 0.0 }
 0x534   : > { %9518 = vst [vmem:[%s13802_s17 + $0x278] sm:$0xff] %v9486_v56  ;;  %v10642_v36 = vpop.f32.mrf.mxu1 }
 0x536   : > { %v10643_v54 = vpop.f32.mrf.mxu1 }
 0x537   : > { %v10644_v33 = vadd.f32 %v10643_v54, %v10642_v36 }
 0x538   : > { %v10645_v26 = vpop.f32.mrf.mxu1 }
 0x539   : > { %v7091_v20 = vadd.f32 %v10644_v33, %v15065_v45 }
 0x53a   : > { %v10646_v12 = vpop.f32.mrf.mxu1 }
 0x53b   : > { %v7127_v43 = vadd.f32 %v15458_v63, %v7091_v20  ;;  %v10647_v52 = vadd.f32 %v10646_v12, %v10645_v26 }
 0x53d   : > { %v7159_v55 = vmax.f32 %v7127_v43, 0.0  ;;  %v7092_v3 = vadd.f32 %v10647_v52, %v15097_v49  ;;  %v10754_v44 = vpop.f32.mrf.mxu0 }
 0x53f   : > { %7191 = vst [vmem:[%s13802_s17 + $0x298] sm:$0xff] %v7159_v55  ;;  %v7128_v48 = vadd.f32 %v15458_v63, %v7092_v3  ;;  %v10755_v1 = vpop.f32.mrf.mxu0 }
 0x540   : > { %v10756_v30 = vadd.f32 %v10755_v1, %v10754_v44 }
 0x541   : > { %v7160_v23 = vmax.f32 %v7128_v48, 0.0  ;;  %v10757_v10 = vpop.f32.mrf.mxu0 }
 0x542   : > { %v9419_v6 = vadd.f32 %v10756_v30, %v15081_v9 }
 0x543   : > { %7192 = vst [vmem:[%s13802_s17 + $0x2c0] sm:$0xff] %v7160_v23  ;;  %v10758_v45 = vpop.f32.mrf.mxu0  ;;  %v9685_v23 = vld [vmem:[%s275_s30] ss:$0 sm:$0xff] }
 0x544   : > { %v9455_v7 = vadd.f32 %v15482_v35, %v9419_v6  ;;  %v10759_v40 = vadd.f32 %v10758_v45, %v10757_v10  ;;  %327 = vst [vmem:[%s13802_s17] sm:$0xff] %v9685_v23  ;;  %328 = vst [vmem:[%s13802_s17 + $0x28] sm:$0xff] %v9685_v23 }
 0x545   : > { %329 = vst [vmem:[%s13802_s17 + $0x50] sm:$0xff] %v9685_v23  ;;  %330 = vst [vmem:[%s13802_s17 + $0x78] sm:$0xff] %v9685_v23 }
 0x546   : > { %v9487_v0 = vmax.f32 %v9455_v7, 0.0  ;;  %v9420_v18 = vadd.f32 %v10759_v40, %v15114_v17  ;;  %331 = vst [vmem:[%s13802_s17 + $0xa0] sm:$0xff] %v9685_v23  ;;  %332 = vst [vmem:[%s13802_s17 + $0xc8] sm:$0xff] %v9685_v23 }
 0x547   : > { %333 = vst [vmem:[%s13802_s17 + $0xf0] sm:$0xff] %v9685_v23  ;;  %334 = vst [vmem:[%s13802_s17 + $0x118] sm:$0xff] %v9685_v23 }
 0x548   : > { %9519 = vst [vmem:[%s13802_s17 + $0x2a0] sm:$0xff] %v9487_v0  ;;  %v9456_v49 = vadd.f32 %v15482_v35, %v9420_v18  ;;  %335 = vst [vmem:[%s13802_s17 + $0x140] sm:$0xff] %v9685_v23 }
 0x549   : > { %336 = vst [vmem:[%s13802_s17 + $0x168] sm:$0xff] %v9685_v23  ;;  %337 = vst [vmem:[%s13802_s17 + $0x190] sm:$0xff] %v9685_v23 }
 0x54a   : > { %v9488_v4 = vmax.f32 %v9456_v49, 0.0  ;;  %338 = vst [vmem:[%s13802_s17 + $0x1b8] sm:$0xff] %v9685_v23  ;;  %339 = vst [vmem:[%s13802_s17 + $0x1e0] sm:$0xff] %v9685_v23 }
 0x54b   : > { %340 = vst [vmem:[%s13802_s17 + $0x208] sm:$0xff] %v9685_v23  ;;  %341 = vst [vmem:[%s13802_s17 + $0x230] sm:$0xff] %v9685_v23 }
 0x54c   : > { %9520 = vst [vmem:[%s13802_s17 + $0x2c8] sm:$0xff] %v9488_v4  ;;  %v10648_v41 = vpop.f32.mrf.mxu1  ;;  %342 = vst [vmem:[%s13802_s17 + $0x258] sm:$0xff] %v9685_v23 }
 0x54d   : > { %343 = vst [vmem:[%s13802_s17 + $0x280] sm:$0xff] %v9685_v23  ;;  %344 = vst [vmem:[%s13802_s17 + $0x2a8] sm:$0xff] %v9685_v23 }
 0x54e   : > { %v10649_v42 = vpop.f32.mrf.mxu1  ;;  %345 = vst [vmem:[%s13802_s17 + $0x2d0] sm:$0xff] %v9685_v23  ;;  %346 = vst [vmem:[%s13802_s17 + $0x2f8] sm:$0xff] %v9685_v23 }
 0x54f   : > { %v10650_v58 = vadd.f32 %v10649_v42, %v10648_v41  ;;  %347 = vst [vmem:[%s13802_s17 + $0x320] sm:$0xff] %v9685_v23  ;;  %348 = vst [vmem:[%s13802_s17 + $0x348] sm:$0xff] %v9685_v23 }
 0x550   : > { %v10651_v46 = vpop.f32.mrf.mxu1  ;;  %349 = vst [vmem:[%s13802_s17 + $0x370] sm:$0xff] %v9685_v23  ;;  %350 = vst [vmem:[%s13802_s17 + $0x398] sm:$0xff] %v9685_v23 }
 0x551   : > { %v7093_v9 = vadd.f32 %v10650_v58, %v15140_v38  ;;  %351 = vst [vmem:[%s13802_s17 + $0x3c0] sm:$0xff] %v9685_v23  ;;  %352 = vst [vmem:[%s13802_s17 + $0x3e8] sm:$0xff] %v9685_v23 }
 0x552   : > { %v10652_v53 = vpop.f32.mrf.mxu1  ;;  %353 = vst [vmem:[%s13802_s17 + $0x410] sm:$0xff] %v9685_v23  ;;  %354 = vst [vmem:[%s13802_s17 + $0x438] sm:$0xff] %v9685_v23 }
 0x553   : > { %v7129_v13 = vadd.f32 %v15458_v63, %v7093_v9  ;;  %v10653_v21 = vadd.f32 %v10652_v53, %v10651_v46  ;;  %355 = vst [vmem:[%s13802_s17 + $0x460] sm:$0xff] %v9685_v23  ;;  %356 = vst [vmem:[%s13802_s17 + $0x488] sm:$0xff] %v9685_v23 }
 0x554   : > { %357 = vst [vmem:[%s13802_s17 + $0x4b0] sm:$0xff] %v9685_v23  ;;  %358 = vst [vmem:[%s13802_s17 + $0x4d8] sm:$0xff] %v9685_v23 }
 0x555   : > { %v7161_v57 = vmax.f32 %v7129_v13, 0.0  ;;  %v7094_v17 = vadd.f32 %v10653_v21, %v15171_v19  ;;  %v10760_v31 = vpop.f32.mrf.mxu0 }
 0x557   : > { %7193 = vst [vmem:[%s13802_s17 + $0x2e8] sm:$0xff] %v7161_v57  ;;  %v7130_v22 = vadd.f32 %v15458_v63, %v7094_v17  ;;  %v10761_v5 = vpop.f32.mrf.mxu0 }
 0x558   : > { %v10762_v34 = vadd.f32 %v10761_v5, %v10760_v31  ;;  %v16435_v31 = vld [vmem:[#allocation57_spill] sm:$0xff] }
 0x559   : > { %v7162_v51 = vmax.f32 %v7130_v22, 0.0  ;;  %v10763_v39 = vpop.f32.mrf.mxu0 }
 0x55a   : > { %v9421_v29 = vadd.f32 %v10762_v34, %v15155_v60 }
 0x55b   : > { %7194 = vst [vmem:[%s13802_s17 + $0x310] sm:$0xff] %v7162_v51  ;;  %v10764_v38 = vpop.f32.mrf.mxu0 }
 0x55c   : > { %v9457_v61 = vadd.f32 %v15482_v35, %v9421_v29  ;;  %v10765_v59 = vadd.f32 %v10764_v38, %v10763_v39 }
 0x55e   : > { %v9489_v11 = vmax.f32 %v9457_v61, 0.0  ;;  %v9422_v32 = vadd.f32 %v10765_v59, %v15183_v16 }
 0x560   : > { %9521 = vst [vmem:[%s13802_s17 + $0x2f0] sm:$0xff] %v9489_v11  ;;  %v9458_v19 = vadd.f32 %v15482_v35, %v9422_v32 }
 0x562   : > { %v9490_v14 = vmax.f32 %v9458_v19, 0.0  ;;  %v16437_v19 = vld [vmem:[#allocation74_spill] sm:$0xff] }
 0x564   : > { %9522 = vst [vmem:[%s13802_s17 + $0x318] sm:$0xff] %v9490_v14  ;;  %v10654_v28 = vpop.f32.mrf.mxu1 }
 0x566   : > { %v10655_v2 = vpop.f32.mrf.mxu1 }
 0x567   : > { %v10656_v15 = vadd.f32 %v10655_v2, %v10654_v28 }
 0x568   : > { %v10657_v47 = vpop.f32.mrf.mxu1 }
 0x569   : > { %v7095_v60 = vadd.f32 %v10656_v15, %v15199_v24 }
 0x56a   : > { %v10658_v56 = vpop.f32.mrf.mxu1 }
 0x56b   : > { %v7131_v36 = vadd.f32 %v15458_v63, %v7095_v60  ;;  %v10659_v54 = vadd.f32 %v10658_v56, %v10657_v47 }
 0x56d   : > { %v7163_v33 = vmax.f32 %v7131_v36, 0.0  ;;  %v7096_v16 = vadd.f32 %v10659_v54, %v15226_v50  ;;  %v10766_v26 = vpop.f32.mrf.mxu0  ;;  %v16438_v36 = vld [vmem:[#allocation80_spill] sm:$0xff] }
 0x56f   : > { %7195 = vst [vmem:[%s13802_s17 + $0x338] sm:$0xff] %v7163_v33  ;;  %v7132_v20 = vadd.f32 %v15458_v63, %v7096_v16  ;;  %v10767_v12 = vpop.f32.mrf.mxu0 }
 0x570   : > { %v10768_v43 = vadd.f32 %v10767_v12, %v10766_v26  ;;  %v16439_v12 = vld [vmem:[#allocation109_spill] sm:$0xff] }
 0x571   : > { %v7164_v52 = vmax.f32 %v7132_v20, 0.0  ;;  %v10769_v24 = vpop.f32.mrf.mxu0 }
 0x572   : > { %v9423_v55 = vadd.f32 %v10768_v43, %v15214_v62 }
 0x573   : > { %7196 = vst [vmem:[%s13802_s17 + $0x360] sm:$0xff] %v7164_v52  ;;  %v10770_v3 = vpop.f32.mrf.mxu0 }
 0x574   : > { %v9459_v50 = vadd.f32 %v15482_v35, %v9423_v55  ;;  %v10771_v44 = vadd.f32 %v10770_v3, %v10769_v24 }
 0x576   : > { %v9491_v48 = vmax.f32 %v9459_v50, 0.0  ;;  %v9424_v1 = vadd.f32 %v10771_v44, %v15242_v25 }
 0x578   : > { %9523 = vst [vmem:[%s13802_s17 + $0x340] sm:$0xff] %v9491_v48  ;;  %v9460_v30 = vadd.f32 %v15482_v35, %v9424_v1  ;;  %v16440_v48 = vld [vmem:[#allocation102_spill] sm:$0xff] }
 0x57a   : > { %v9492_v62 = vmax.f32 %v9460_v30, 0.0 }
 0x57c   : > { %9524 = vst [vmem:[%s13802_s17 + $0x368] sm:$0xff] %v9492_v62  ;;  %v10660_v10 = vpop.f32.mrf.mxu1 }
 0x57e   : > { %v10661_v25 = vpop.f32.mrf.mxu1 }
 0x57f   : > { %v10662_v6 = vadd.f32 %v10661_v25, %v10660_v10  ;;  %v16441_v25 = vld [vmem:[#allocation85_spill] sm:$0xff] }
 0x580   : > { %v10663_v45 = vpop.f32.mrf.mxu1 }
 0x581   : > { %v7097_v7 = vadd.f32 %v10662_v6, %v15252_v8 }
 0x582   : > { %v10664_v40 = vpop.f32.mrf.mxu1 }
 0x583   : > { %v7133_v0 = vadd.f32 %v15458_v63, %v7097_v7  ;;  %v10665_v18 = vadd.f32 %v10664_v40, %v10663_v45 }
 0x585   : > { %v7165_v49 = vmax.f32 %v7133_v0, 0.0  ;;  %v7098_v4 = vadd.f32 %v10665_v18, %v15273_v27  ;;  %v10772_v41 = vpop.f32.mrf.mxu0 }
 0x587   : > { %7197 = vst [vmem:[%s13802_s17 + $0x388] sm:$0xff] %v7165_v49  ;;  %v7134_v42 = vadd.f32 %v15458_v63, %v7098_v4  ;;  %v10773_v58 = vpop.f32.mrf.mxu0  ;;  %v16442_v4 = vld [vmem:[#allocation43_spill] sm:$0xff] }
 0x588   : > { %v10774_v46 = vadd.f32 %v10773_v58, %v10772_v41 }
 0x589   : > { %v7166_v9 = vmax.f32 %v7134_v42, 0.0  ;;  %v10775_v53 = vpop.f32.mrf.mxu0 }
 0x58a   : > { %v9425_v13 = vadd.f32 %v10774_v46, %v15262_v37  ;;  %v16436_v37 = vld [vmem:[#allocation51_spill] sm:$0xff] }
 0x58b   : > { %7198 = vst [vmem:[%s13802_s17 + $0x3b0] sm:$0xff] %v7166_v9  ;;  %v10776_v8 = vpop.f32.mrf.mxu0 }
 0x58c   : > { %v9461_v21 = vadd.f32 %v15482_v35, %v9425_v13  ;;  %v10777_v57 = vadd.f32 %v10776_v8, %v10775_v53  ;;  %v16443_v53 = vld [vmem:[#allocation105_spill] sm:$0xff] }
 0x58e   : > { %v9493_v17 = vmax.f32 %v9461_v21, 0.0  ;;  %v9426_v22 = vadd.f32 %v10777_v57, %v16435_v31 }
 0x590   : > { %9525 = vst [vmem:[%s13802_s17 + $0x390] sm:$0xff] %v9493_v17  ;;  %v9462_v27 = vadd.f32 %v15482_v35, %v9426_v22 }
 0x592   : > { %v9494_v5 = vmax.f32 %v9462_v27, 0.0  ;;  %v16444_v27 = vld [vmem:[#allocation96_spill] sm:$0xff] }
 0x594   : > { %9526 = vst [vmem:[%s13802_s17 + $0x3b8] sm:$0xff] %v9494_v5  ;;  %v10666_v34 = vpop.f32.mrf.mxu1 }
 0x596   : > { %v10667_v51 = vpop.f32.mrf.mxu1 }
 0x597   : > { %v10668_v39 = vadd.f32 %v10667_v51, %v10666_v34 }
 0x598   : > { %v10669_v29 = vpop.f32.mrf.mxu1 }
 0x599   : > { %v7099_v38 = vadd.f32 %v10668_v39, %v16436_v37  ;;  %v16445_v37 = vld [vmem:[#allocation81_spill] sm:$0xff] }
 0x59a   : > { %v10670_v61 = vpop.f32.mrf.mxu1 }
 0x59b   : > { %v7135_v59 = vadd.f32 %v15458_v63, %v7099_v38  ;;  %v10671_v11 = vadd.f32 %v10670_v61, %v10669_v29 }
 0x59d   : > { %v7167_v32 = vmax.f32 %v7135_v59, 0.0  ;;  %v7100_v14 = vadd.f32 %v10671_v11, %v16437_v19  ;;  %v10778_v28 = vpop.f32.mrf.mxu0 }
 0x59f   : > { %7199 = vst [vmem:[%s13802_s17 + $0x3d8] sm:$0xff] %v7167_v32  ;;  %v7136_v2 = vadd.f32 %v15458_v63, %v7100_v14  ;;  %v10779_v15 = vpop.f32.mrf.mxu0 }
 0x5a0   : > { %v10780_v47 = vadd.f32 %v10779_v15, %v10778_v28  ;;  %v16446_v28 = vld [vmem:[#allocation75_spill] sm:$0xff] }
 0x5a1   : > { %v7168_v60 = vmax.f32 %v7136_v2, 0.0  ;;  %v10781_v56 = vpop.f32.mrf.mxu0 }
 0x5a2   : > { %v9427_v54 = vadd.f32 %v10780_v47, %v16438_v36  ;;  %v16447_v36 = vld [vmem:[#allocation46_spill] sm:$0xff] }
 0x5a3   : > { %7200 = vst [vmem:[%s13802_s17 + $0x400] sm:$0xff] %v7168_v60  ;;  %v10782_v33 = vpop.f32.mrf.mxu0 }
 0x5a4   : > { %v9463_v16 = vadd.f32 %v15482_v35, %v9427_v54  ;;  %v10783_v26 = vadd.f32 %v10782_v33, %v10781_v56 }
 0x5a6   : > { %v9495_v20 = vmax.f32 %v9463_v16, 0.0  ;;  %v9428_v43 = vadd.f32 %v10783_v26, %v16439_v12 }
 0x5a8   : > { %9527 = vst [vmem:[%s13802_s17 + $0x3e0] sm:$0xff] %v9495_v20  ;;  %v9464_v52 = vadd.f32 %v15482_v35, %v9428_v43 }
 0x5aa   : > { %v9496_v24 = vmax.f32 %v9464_v52, 0.0  ;;  %v16448_v52 = vld [vmem:[#allocation101_spill] sm:$0xff] }
 0x5ac   : > { %9528 = vst [vmem:[%s13802_s17 + $0x408] sm:$0xff] %v9496_v24  ;;  %v10672_v55 = vpop.f32.mrf.mxu1 }
 0x5ae   : > { %v10673_v3 = vpop.f32.mrf.mxu1 }
 0x5af   : > { %v10674_v50 = vadd.f32 %v10673_v3, %v10672_v55 }
 0x5b0   : > { %v10675_v44 = vpop.f32.mrf.mxu1 }
 0x5b1   : > { %v7101_v1 = vadd.f32 %v10674_v50, %v16440_v48  ;;  %v16449_v48 = vld [vmem:[#allocation33_spill] sm:$0xff] }
 0x5b2   : > { %v10676_v30 = vpop.f32.mrf.mxu1 }
 0x5b3   : > { %v7137_v62 = vadd.f32 %v15458_v63, %v7101_v1  ;;  %v10677_v23 = vadd.f32 %v10676_v30, %v10675_v44 }
 0x5b5   : > { %v7169_v10 = vmax.f32 %v7137_v62, 0.0  ;;  %v7102_v6 = vadd.f32 %v10677_v23, %v16441_v25  ;;  %v10784_v45 = vpop.f32.mrf.mxu0 }
 0x5b7   : > { %7201 = vst [vmem:[%s13802_s17 + $0x428] sm:$0xff] %v7169_v10  ;;  %v7138_v7 = vadd.f32 %v15458_v63, %v7102_v6  ;;  %v10785_v40 = vpop.f32.mrf.mxu0 }
 0x5b8   : > { %v10786_v0 = vadd.f32 %v10785_v40, %v10784_v45  ;;  %v16450_v45 = vld [vmem:[#allocation32_spill] sm:$0xff] }
 0x5b9   : > { %v7170_v18 = vmax.f32 %v7138_v7, 0.0  ;;  %v10787_v49 = vpop.f32.mrf.mxu0 }
 0x5ba   : > { %v9429_v41 = vadd.f32 %v10786_v0, %v16442_v4  ;;  %v16451_v4 = vld [vmem:[#allocation86_spill] sm:$0xff] }
 0x5bb   : > { %7202 = vst [vmem:[%s13802_s17 + $0x450] sm:$0xff] %v7170_v18  ;;  %v10788_v42 = vpop.f32.mrf.mxu0 }
 0x5bc   : > { %v9465_v58 = vadd.f32 %v15482_v35, %v9429_v41  ;;  %v10789_v46 = vadd.f32 %v10788_v42, %v10787_v49 }
 0x5be   : > { %v9497_v9 = vmax.f32 %v9465_v58, 0.0  ;;  %v9430_v13 = vadd.f32 %v10789_v46, %v16443_v53 }
 0x5c0   : > { %9529 = vst [vmem:[%s13802_s17 + $0x430] sm:$0xff] %v9497_v9  ;;  %v9466_v8 = vadd.f32 %v15482_v35, %v9430_v13 }
 0x5c2   : > { %v9498_v21 = vmax.f32 %v9466_v8, 0.0 }
 0x5c4   : > { %9530 = vst [vmem:[%s13802_s17 + $0x458] sm:$0xff] %v9498_v21 }
 0x5c7   : > { %v10678_v57 = vpop.f32.mrf.mxu1 }
 0x5c9   : > { %v10679_v17 = vpop.f32.mrf.mxu1 }
 0x5ca   : > { %v10680_v31 = vadd.f32 %v10679_v17, %v10678_v57 }
 0x5cb   : > { %v10681_v22 = vpop.f32.mrf.mxu1 }
 0x5cc   : > { %v7103_v5 = vadd.f32 %v10680_v31, %v16444_v27 }
 0x5cd   : > { %v10682_v34 = vpop.f32.mrf.mxu1 }
 0x5ce   : > { %v7139_v51 = vadd.f32 %v15458_v63, %v7103_v5  ;;  %v10683_v39 = vadd.f32 %v10682_v34, %v10681_v22 }
 0x5d0   : > { %v7171_v29 = vmax.f32 %v7139_v51, 0.0  ;;  %v7104_v38 = vadd.f32 %v10683_v39, %v16445_v37 }
 0x5d1   : > { %v10790_v61 = vpop.f32.mrf.mxu0 }
 0x5d2   : > { %7203 = vst [vmem:[%s13802_s17 + $0x478] sm:$0xff] %v7171_v29  ;;  %v7140_v59 = vadd.f32 %v15458_v63, %v7104_v38 }
 0x5d3   : > { %v10791_v11 = vpop.f32.mrf.mxu0 }
 0x5d4   : > { %v7172_v32 = vmax.f32 %v7140_v59, 0.0  ;;  %v10792_v19 = vadd.f32 %v10791_v11, %v10790_v61 }
 0x5d5   : > { %v10793_v14 = vpop.f32.mrf.mxu0 }
 0x5d6   : > { %7204 = vst [vmem:[%s13802_s17 + $0x4a0] sm:$0xff] %v7172_v32  ;;  %v9431_v2 = vadd.f32 %v10792_v19, %v16446_v28 }
 0x5d7   : > { %v10794_v15 = vpop.f32.mrf.mxu0 }
 0x5d8   : > { %v9467_v47 = vadd.f32 %v15482_v35, %v9431_v2  ;;  %v10795_v60 = vadd.f32 %v10794_v15, %v10793_v14 }
 0x5da   : > { %v9499_v56 = vmax.f32 %v9467_v47, 0.0  ;;  %v9432_v54 = vadd.f32 %v10795_v60, %v16447_v36 }
 0x5dc   : > { %9531 = vst [vmem:[%s13802_s17 + $0x480] sm:$0xff] %v9499_v56  ;;  %v9468_v33 = vadd.f32 %v15482_v35, %v9432_v54 }
 0x5de   : > { %v9500_v16 = vmax.f32 %v9468_v33, 0.0 }
 0x5e0   : > { %9532 = vst [vmem:[%s13802_s17 + $0x4a8] sm:$0xff] %v9500_v16 }
 0x5e3   : > { %v10684_v26 = vpop.f32.mrf.mxu1 }
 0x5e5   : > { %v10685_v20 = vpop.f32.mrf.mxu1 }
 0x5e6   : > { %v10686_v12 = vadd.f32 %v10685_v20, %v10684_v26 }
 0x5e7   : > { %v10687_v43 = vpop.f32.mrf.mxu1 }
 0x5e8   : > { %v7105_v24 = vadd.f32 %v10686_v12, %v16448_v52 }
 0x5e9   : > { %v10688_v55 = vpop.f32.mrf.mxu1 }
 0x5ea   : > { %v7141_v3 = vadd.f32 %v15458_v63, %v7105_v24  ;;  %v10689_v50 = vadd.f32 %v10688_v55, %v10687_v43 }
 0x5ec   : > { %v7173_v44 = vmax.f32 %v7141_v3, 0.0  ;;  %v7106_v1 = vadd.f32 %v10689_v50, %v16449_v48 }
 0x5ed   : > { %v10796_v30 = vpop.f32.mrf.mxu0 }
 0x5ee   : > { %7205 = vst [vmem:[%s13802_s17 + $0x4c8] sm:$0xff] %v7173_v44  ;;  %v7142_v62 = vadd.f32 %v15458_v63, %v7106_v1 }
 0x5ef   : > { %v10797_v23 = vpop.f32.mrf.mxu0 }
 0x5f0   : > { %v7174_v10 = vmax.f32 %v7142_v62, 0.0  ;;  %v10798_v25 = vadd.f32 %v10797_v23, %v10796_v30 }
 0x5f1   : > { %v10799_v6 = vpop.f32.mrf.mxu0 }
 0x5f2   : > { %7206 = vst [vmem:[%s13802_s17 + $0x4f0] sm:$0xff] %v7174_v10  ;;  %v9433_v7 = vadd.f32 %v10798_v25, %v16450_v45 }
 0x5f3   : > { %v10800_v40 = vpop.f32.mrf.mxu0 }
 0x5f4   : > { %v9469_v0 = vadd.f32 %v15482_v35, %v9433_v7  ;;  %v10801_v18 = vadd.f32 %v10800_v40, %v10799_v6 }
 0x5f6   : > { %v9501_v49 = vmax.f32 %v9469_v0, 0.0  ;;  %v9434_v41 = vadd.f32 %v10801_v18, %v16451_v4 }
 0x5f8   : > { %9533 = vst [vmem:[%s13802_s17 + $0x4d0] sm:$0xff] %v9501_v49  ;;  %v9470_v63 = vadd.f32 %v15482_v35, %v9434_v41 }
 0x5fa   : > { %v9502_v42 = vmax.f32 %v9470_v63, 0.0 }
 0x5fc   : > { %9534 = vst [vmem:[%s13802_s17 + $0x4f8] sm:$0xff] %v9502_v42 }
 0x5fd   : > { %11800 = shalt.err (!%p11797_p6)
}
 0x5fe   : > { %s11801_s0 = scalar_lea.hbm %s15934_s16, 20480  ;;  %s11805_s24 = scalar_lea.hbm %s15985_s5, 40960 }
 0x5ff   : > { %p11802_p13 = scmp.ne.s32.totalorder %s15934_s16, %s11801_s0  ;;  %p11806_p11 = scmp.lt.s32.totalorder %s15934_s16, %s15985_s5 }
 0x600   : > { %p11807_p0 = scmp.lt.s32.totalorder %s11805_s24, %s11801_s0 }
 0x601   : > { %p11803_p7 = pnand %p11802_p13, %p16452_p1 }
 0x602   : > { %p11808_p5 = por %p11807_p0, %p11806_p11 }
 0x603   : > { %p11804_p8 = pneg %p11803_p7 }
 0x605   : > { %p11809_p10 = pnand %p11808_p5, %p11804_p8 }
 0x607   : > { %11812 = shalt.err (!%p11809_p10)
}
 0x608   : > { %s11879_s14 = smov 640   ;;  %s11880_s17 = smov 40  }
 0x609   : > { %10824 = dma.vmem_to_hbm [thread:$0]  (%p16452_p1), %s15936_s8, 20480, %s15934_s16, %s9536_s22, %s11879_s14, %s11879_s14, %s11880_s17  }
 0x60a PF: > { %s9564_s28 = sand.u32 1, %s11851_s18   ;;  %p16453_p2 = scmp.ne.s32.totalorder %s16008_s25, 0 }
 0x60b   : > { %p16454_p3 = scmp.ge.s32.totalorder %s11863_s21, 2  ;;  %s9565_s10 = scalar_lea.sflag [#allocation5], %s9564_s28 }
 0x60d   : > { %p10844_p9 = pnand %p16454_p3, %p16453_p2 }
 0x60f   : > { %p10845_p12 = pneg %p10844_p9 }
 0x611   : > { %11846 = dma.done.wait (%p10845_p12), %s9565_s10, 20480  }
 0x612   : > { %11848 = vsyncadd (%p10845_p12), %s9565_s10, 4294946816  ;;  %p22_p4 = scmp.ge.s32.totalorder %s11986_s27, 4   ;;  %s16455_s18 = smov %s11855_s19 }
 0x613   : > { %s16456_s19 = smov %s11859_s20  ;;  %s16457_s20 = smov %s12004_s29 }
 0x614   : > { %s16458_s21 = smov %s11986_s27  ;;  %24 = sbr.rel (!%p22_p4) target bundleno = 11 (0xb), region = 119 }
 0x619   :  { %9570 = vsyncpa [#allocation4], 1 }
 0x61a   :  { %9572 = vsyncpa [#allocation4 + $0x1], 1 }
 0x61b   :  { %9573 = vsyncpa [#allocation7], 1 }
 0x61c   :  { %9575 = vsyncpa [#allocation7 + $0x1], 1 }
 0x61d   :  { %9576 = vsyncpa [#allocation10], 1 }
 0x61e   :  { %9577 = vsyncpa [#allocation5], 1 }
 0x61f   :  { %9579 = vsyncpa [#allocation5 + $0x1], 1 }

</bundles_post_ra>
